<compile_context>
chip_gen: v6e
topology: v6e:2x2x1
jax: 0.10.0
libtpu: 0.0.40
codegen_flags: <defaults>
</compile_context>

<pallas_src>
import functools

import jax
import jax.numpy as jnp
from jax.experimental import pallas as pl
from jax.experimental.pallas import tpu as pltpu


# ---------------------------------------------------------------------------
# Kernels
# ---------------------------------------------------------------------------
def _deep_kernel(s_ref, p_ref, w_ref, bbi_ref, wp_ref, bp_ref, out_ref, *,
                 k_total):
    """Bilinear + fused Tanh -> Linear(1), accumulated over the K grid axis.

    s_ref, p_ref : (TN, D)     bf16
    w_ref        : (TK, D, D)  bf16   W[k, i, j] tile
    bbi_ref      : (1, TK)     f32    bilinear bias tile
    wp_ref       : (1, TK)     f32    projection weight tile
    bp_ref       : (1, 1)      f32    projection bias
    out_ref      : (TN, 1)     f32    resident accumulator across K tiles
    """
    k_step = pl.program_id(1)
    tk = w_ref.shape[0]
    tn, d = p_ref.shape

    # t[k, n, i] = sum_j p[n, j] * W[k, i, j]   (K-batched bf16 MXU matmul)
    p_b = jnp.broadcast_to(p_ref[...], (tk, tn, d))
    t3 = jnp.einsum('knj,kij->kni', p_b, w_ref[...],
                    preferred_element_type=jnp.float32)          # (TK, TN, D)

    # v[k, n] = sum_i s[n, i] * t[k, n, i]   (VPU multiply + XLU lane reduce)
    s = s_ref[...].astype(jnp.float32)
    v_kn = jnp.sum(t3 * s[None, :, :], axis=-1)                  # (TK, TN)

    v = v_kn.T + bbi_ref[...]                                    # (TN, TK)
    h = jnp.tanh(v)                                              # EUP

    # Partial projection for this K tile; mask padded columns of a ragged tile.
    col = k_step * tk + jax.lax.broadcasted_iota(jnp.int32, (1, tk), 1)
    contrib = jnp.where(col < k_total, h * wp_ref[...], 0.0)     # (TN, TK)
    part = jnp.sum(contrib, axis=-1, keepdims=True)              # (TN, 1)

    @pl.when(k_step == 0)
    def _init():
        out_ref[...] = part + bp_ref[...]

    @pl.when(k_step != 0)
    def _acc():
        out_ref[...] = out_ref[...] + part


def _shallow_kernel(s_ref, p_ref, w_ref, bbi_ref, out_ref):
    """Bilinear with out_bi == 1: out[n] = sum_ij s[n,i] W[0,i,j] p[n,j] + b."""
    # t[n, i] = sum_j p[n, j] * W[0, i, j]
    t = jax.lax.dot_general(p_ref[...], w_ref[0],
                            dimension_numbers=(((1,), (1,)), ((), ())),
                            preferred_element_type=jnp.float32)  # (TN, D)
    s = s_ref[...].astype(jnp.float32)
    out_ref[...] = jnp.sum(t * s, axis=-1, keepdims=True) + bbi_ref[...]


# ---------------------------------------------------------------------------
# Wrapper
# ---------------------------------------------------------------------------
def _pick_tiles(N, K, D):
    """Choose (TN, TK) so a double-buffered W tile + activations fit VMEM."""
    TN = N if N <= 128 else 128
    if K == 1:
        return TN, 1
    # Per-unit-TK VMEM bytes: double-buffered bf16 weight slab (2*2*D*D)
    # + f32 einsum result (4*TN*D) + bf16 broadcast of p (2*TN*D) + small.
    per_tk = 4 * D * D + 6 * TN * D + 16 * TN
    budget = 20 * 1024 * 1024
    tk = budget // per_tk
    if tk >= K:
        return TN, K
    tk = max(128, (tk // 128) * 128)   # (1, TK) bias/proj blocks need TK % 128
    return TN, min(tk, K)


def comparisor_forward(svecs, pvecs, w_bi, b_bi, w_proj=None, b_proj=None, *,
                       deep):
    """Pallas implementation of Comparisor.forward -> (N, 1) float32."""
    N, D = svecs.shape
    K = w_bi.shape[0]
    bf16, f32 = jnp.bfloat16, jnp.float32

    s = svecs.astype(bf16)
    p = pvecs.astype(bf16)
    w = w_bi.astype(bf16)                       # (K, D, D): halves weight DMA
    bbi = b_bi.reshape(1, K).astype(f32)

    TN, TK = _pick_tiles(N, K, D)
    grid_n = pl.cdiv(N, TN)
    grid_k = pl.cdiv(K, TK)

    if deep:
        wp = w_proj.reshape(1, K).astype(f32)
        bp = b_proj.reshape(1, 1).astype(f32)
        cost = pl.CostEstimate(
            flops=2 * N * K * D * D + 4 * N * K * D,
            transcendentals=N * K,
            bytes_accessed=2 * K * D * D * grid_n + 4 * N * D * grid_k + 4 * N,
        )
        return pl.pallas_call(
            functools.partial(_deep_kernel, k_total=K),
            out_shape=jax.ShapeDtypeStruct((N, 1), f32),
            grid=(grid_n, grid_k),
            in_specs=[
                pl.BlockSpec((TN, D), lambda n, k: (n, 0)),         # svecs
                pl.BlockSpec((TN, D), lambda n, k: (n, 0)),         # pvecs
                pl.BlockSpec((TK, D, D), lambda n, k: (k, 0, 0)),   # W tile
                pl.BlockSpec((1, TK), lambda n, k: (0, k)),         # bilinear b
                pl.BlockSpec((1, TK), lambda n, k: (0, k)),         # proj W
                pl.BlockSpec((1, 1), lambda n, k: (0, 0)),          # proj b
            ],
            out_specs=pl.BlockSpec((TN, 1), lambda n, k: (n, 0)),   # resident/K
            compiler_params=pltpu.CompilerParams(
                dimension_semantics=("parallel", "arbitrary"),
                vmem_limit_bytes=48 * 1024 * 1024,
            ),
            cost_estimate=cost,
        )(s, p, w, bbi, wp, bp)

    # deep=False: out_bi == 1, no projection; unused proj operands are skipped.
    cost = pl.CostEstimate(
        flops=2 * N * D * D + 2 * N * D,
        transcendentals=0,
        bytes_accessed=2 * D * D * grid_n + 4 * N * D + 4 * N,
    )
    return pl.pallas_call(
        _shallow_kernel,
        out_shape=jax.ShapeDtypeStruct((N, 1), f32),
        grid=(grid_n,),
        in_specs=[
            pl.BlockSpec((TN, D), lambda n: (n, 0)),
            pl.BlockSpec((TN, D), lambda n: (n, 0)),
            pl.BlockSpec((1, D, D), lambda n: (0, 0, 0)),
            pl.BlockSpec((1, 1), lambda n: (0, 0)),
        ],
        out_specs=pl.BlockSpec((TN, 1), lambda n: (n, 0)),
        compiler_params=pltpu.CompilerParams(
            dimension_semantics=("parallel",),
            vmem_limit_bytes=48 * 1024 * 1024,
        ),
        cost_estimate=cost,
    )(s, p, w, bbi)


# ---------------------------------------------------------------------------
# Reference + self-test
# ---------------------------------------------------------------------------
def _reference_forward(svecs, pvecs, w_bi, b_bi, w_proj, b_proj, *, deep):
    # Match the kernel's operand precision (bf16 MXU inputs, f32 accumulation)
    # so the check stays tight regardless of chip generation.
    s = svecs.astype(jnp.bfloat16).astype(jnp.float32)
    p = pvecs.astype(jnp.bfloat16).astype(jnp.float32)
    w = w_bi.astype(jnp.bfloat16).astype(jnp.float32)
    v = jnp.einsum('ni,kij,nj->nk', s, w, p,
                   precision=jax.lax.Precision.HIGHEST) + b_bi[None, :]
    if not deep:
        return v
    return jnp.tanh(v) @ jnp.transpose(w_proj) + b_proj[None, :]


def _make_params(key, d_model, deep):
    out_bi = d_model if deep else 1
    k1, k2, k3, k4 = jax.random.split(key, 4)
    bound = 1.0 / jnp.sqrt(d_model)
    w_bi = jax.random.uniform(k1, (out_bi, d_model, d_model),
                              minval=-bound, maxval=bound, dtype=jnp.float32)
    b_bi = jax.random.uniform(k2, (out_bi,),
                              minval=-bound, maxval=bound, dtype=jnp.float32)
    w_proj = jax.random.uniform(k3, (1, d_model),
                                minval=-bound, maxval=bound, dtype=jnp.float32)
    b_proj = jax.random.uniform(k4, (1,),
                                minval=-bound, maxval=bound, dtype=jnp.float32)
    return w_bi, b_bi, w_proj, b_proj


if __name__ == "__main__":
    N, D = 16, 128   # batch of (sentence, paragraph) vector pairs, d_model=128
    key = jax.random.PRNGKey(0)
    ks, kp, kparams = jax.random.split(key, 3)
    svecs = jax.random.normal(ks, (N, D), dtype=jnp.float32)
    pvecs = jax.random.normal(kp, (N, D), dtype=jnp.float32)

    ok = True
    for deep in (True, False):
        w_bi, b_bi, w_proj, b_proj = _make_params(kparams, D, deep)
        out = comparisor_forward(svecs, pvecs, w_bi, b_bi, w_proj, b_proj,
                                 deep=deep)
        out = jax.block_until_ready(out)
        ref = _reference_forward(svecs, pvecs, w_bi, b_bi, w_proj, b_proj,
                                 deep=deep)
        if out.shape != (N, 1):
            ok = False
        if not jnp.allclose(out, ref, rtol=1e-2, atol=1e-2):
            ok = False

    if ok:
        print("KERNEL_OK")
</pallas_src>

<mosaic_0001>
module attributes {stable_mosaic.version = 11 : i64} {
  func.func @_deep_kernel(%arg0: i32, %arg1: i32, %arg2: memref<16x128xbf16, #tpu.memory_space<vmem>>, %arg3: memref<16x128xbf16, #tpu.memory_space<vmem>>, %arg4: memref<128x128x128xbf16, #tpu.memory_space<vmem>>, %arg5: memref<1x128xf32, #tpu.memory_space<vmem>>, %arg6: memref<1x128xf32, #tpu.memory_space<vmem>>, %arg7: memref<1x1xf32, #tpu.memory_space<vmem>>, %arg8: memref<16x1xf32, #tpu.memory_space<vmem>>) attributes {dimension_semantics = [#tpu.dimension_semantics<parallel>, #tpu.dimension_semantics<arbitrary>], iteration_bounds = array<i64: 1, 1>, scalar_prefetch = 0 : i64, scratch_operands = 0 : i64, tpu.core_type = #tpu.core_type<tc>, window_params = [{transform_indices = @transform_0, window_bounds = array<i64: 16, 128>}, {transform_indices = @transform_1, window_bounds = array<i64: 16, 128>}, {transform_indices = @transform_2, window_bounds = array<i64: 128, 128, 128>}, {transform_indices = @transform_3, window_bounds = array<i64: 1, 128>}, {transform_indices = @transform_4, window_bounds = array<i64: 1, 128>}, {pipeline_mode = #tpu.pipeline_mode<synchronous>, transform_indices = @transform_5, window_bounds = array<i64: 1, 1>}, {transform_indices = @transform_6, window_bounds = array<i64: 16, 1>}]} {
    %c0 = arith.constant 0 : index
    %c0_0 = arith.constant 0 : index
    %0 = vector.load %arg3[%c0, %c0_0] : memref<16x128xbf16, #tpu.memory_space<vmem>>, vector<16x128xbf16>
    %1 = vector.shape_cast %0 : vector<16x128xbf16> to vector<1x16x128xbf16>
    %2 = vector.broadcast %1 : vector<1x16x128xbf16> to vector<128x16x128xbf16>
    %c0_1 = arith.constant 0 : index
    %c0_2 = arith.constant 0 : index
    %c0_3 = arith.constant 0 : index
    %3 = vector.load %arg4[%c0_1, %c0_2, %c0_3] : memref<128x128x128xbf16, #tpu.memory_space<vmem>>, vector<128x128x128xbf16>
    "tpu.trace_start"() <{level = 10 : i32, message = "knj,kij->kni"}> : () -> ()
    %cst = arith.constant dense<0.000000e+00> : vector<128x16x128xf32>
    %4 = tpu.matmul %2, %3, %cst {dimension_numbers = #tpu.dot_dimension_numbers<[2], [2], [1], [1], [0, 0, 0, 1, 1, 1], [0], [0]>} : vector<128x16x128xbf16>, vector<128x128x128xbf16>, vector<128x16x128xf32> -> vector<128x16x128xf32>
    "tpu.trace_stop"() : () -> ()
    %c0_4 = arith.constant 0 : index
    %c0_5 = arith.constant 0 : index
    %5 = vector.load %arg2[%c0_4, %c0_5] : memref<16x128xbf16, #tpu.memory_space<vmem>>, vector<16x128xbf16>
    %6 = arith.extf %5 : vector<16x128xbf16> to vector<16x128xf32>
    %7 = vector.shape_cast %6 : vector<16x128xf32> to vector<1x16x128xf32>
    %8 = vector.broadcast %7 : vector<1x16x128xf32> to vector<128x16x128xf32>
    %9 = arith.mulf %4, %8 : vector<128x16x128xf32>
    %cst_6 = arith.constant dense<0.000000e+00> : vector<128x16xf32>
    %10 = vector.multi_reduction <add>, %9, %cst_6 [2] : vector<128x16x128xf32> to vector<128x16xf32>
    %11 = tpu.transpose %10, [1, 0] : vector<128x16xf32> -> vector<16x128xf32>
    %c0_7 = arith.constant 0 : index
    %c0_8 = arith.constant 0 : index
    %12 = vector.load %arg5[%c0_7, %c0_8] : memref<1x128xf32, #tpu.memory_space<vmem>>, vector<1x128xf32>
    %13 = vector.broadcast %12 : vector<1x128xf32> to vector<16x128xf32>
    %14 = arith.addf %11, %13 : vector<16x128xf32>
    %15 = math.tanh %14 : vector<16x128xf32>
    %c128_i32 = arith.constant 128 : i32
    %16 = arith.muli %arg1, %c128_i32 : i32
    %17 = tpu.iota {dimensions = array<i32: 1>} : vector<1x128xi32>
    %18 = vector.broadcast %16 : i32 to vector<1x128xi32>
    %19 = arith.addi %18, %17 : vector<1x128xi32>
    %c128_i32_9 = arith.constant 128 : i32
    %20 = vector.broadcast %c128_i32_9 : i32 to vector<1x128xi32>
    %21 = arith.cmpi slt, %19, %20 : vector<1x128xi32>
    %c0_10 = arith.constant 0 : index
    %c0_11 = arith.constant 0 : index
    %22 = vector.load %arg6[%c0_10, %c0_11] : memref<1x128xf32, #tpu.memory_space<vmem>>, vector<1x128xf32>
    %23 = vector.broadcast %22 : vector<1x128xf32> to vector<16x128xf32>
    %24 = arith.mulf %15, %23 : vector<16x128xf32>
    %cst_12 = arith.constant 0.000000e+00 : f32
    %25 = vector.shape_cast %21 : vector<1x128xi1> to vector<1x128xi1>
    %26 = vector.broadcast %25 : vector<1x128xi1> to vector<16x128xi1>
    %27 = vector.broadcast %cst_12 : f32 to vector<16x128xf32>
    %28 = arith.select %26, %24, %27 : vector<16x128xi1>, vector<16x128xf32>
    %cst_13 = arith.constant dense<0.000000e+00> : vector<16xf32>
    %29 = vector.multi_reduction <add>, %28, %cst_13 [1] : vector<16x128xf32> to vector<16xf32>
    %30 = vector.shape_cast %29 : vector<16xf32> to vector<16x1xf32>
    %c0_i32 = arith.constant 0 : i32
    %31 = arith.cmpi eq, %arg1, %c0_i32 : i32
    %32 = arith.extui %31 : i1 to i32
    %c0_i32_14 = arith.constant 0 : i32
    %33 = arith.cmpi ne, %32, %c0_i32_14 : i32
    scf.if %33 {
      %c0_17 = arith.constant 0 : index
      %c0_18 = arith.constant 0 : index
      %37 = vector.load %arg7[%c0_17, %c0_18] : memref<1x1xf32, #tpu.memory_space<vmem>>, vector<1x1xf32>
      %38 = vector.broadcast %37 : vector<1x1xf32> to vector<16x1xf32>
      %39 = arith.addf %30, %38 : vector<16x1xf32>
      %c0_19 = arith.constant 0 : index
      %c0_20 = arith.constant 0 : index
      %40 = vector.load %arg8[%c0_19, %c0_20] : memref<16x1xf32, #tpu.memory_space<vmem>>, vector<16x1xf32>
      tpu.vector_store %arg8[%c0_19, %c0_20], %39 {strides = array<i32>} : memref<16x1xf32, #tpu.memory_space<vmem>>, vector<16x1xf32>,
    } else {
    }
    %c0_i32_15 = arith.constant 0 : i32
    %34 = arith.cmpi ne, %arg1, %c0_i32_15 : i32
    %35 = arith.extui %34 : i1 to i32
    %c0_i32_16 = arith.constant 0 : i32
    %36 = arith.cmpi ne, %35, %c0_i32_16 : i32
    scf.if %36 {
      %c0_17 = arith.constant 0 : index
      %c0_18 = arith.constant 0 : index
      %37 = vector.load %arg8[%c0_17, %c0_18] : memref<16x1xf32, #tpu.memory_space<vmem>>, vector<16x1xf32>
      %38 = arith.addf %37, %30 : vector<16x1xf32>
      %c0_19 = arith.constant 0 : index
      %c0_20 = arith.constant 0 : index
      %39 = vector.load %arg8[%c0_19, %c0_20] : memref<16x1xf32, #tpu.memory_space<vmem>>, vector<16x1xf32>
      tpu.vector_store %arg8[%c0_19, %c0_20], %38 {strides = array<i32>} : memref<16x1xf32, #tpu.memory_space<vmem>>, vector<16x1xf32>,
    } else {
    }
    return
  }
  func.func @transform_0(%arg0: i32, %arg1: i32) -> (i32, i32) {
    %c0_i32 = arith.constant 0 : i32
    %c0_i32_0 = arith.constant 0 : i32
    return %arg0, %c0_i32 : i32, i32
  }
  func.func @transform_1(%arg0: i32, %arg1: i32) -> (i32, i32) {
    %c0_i32 = arith.constant 0 : i32
    %c0_i32_0 = arith.constant 0 : i32
    return %arg0, %c0_i32 : i32, i32
  }
  func.func @transform_2(%arg0: i32, %arg1: i32) -> (i32, i32, i32) {
    %c0_i32 = arith.constant 0 : i32
    %c0_i32_0 = arith.constant 0 : i32
    %c0_i32_1 = arith.constant 0 : i32
    return %arg1, %c0_i32, %c0_i32_0 : i32, i32, i32
  }
  func.func @transform_3(%arg0: i32, %arg1: i32) -> (i32, i32) {
    %c0_i32 = arith.constant 0 : i32
    %c0_i32_0 = arith.constant 0 : i32
    return %c0_i32, %arg1 : i32, i32
  }
  func.func @transform_4(%arg0: i32, %arg1: i32) -> (i32, i32) {
    %c0_i32 = arith.constant 0 : i32
    %c0_i32_0 = arith.constant 0 : i32
    return %c0_i32, %arg1 : i32, i32
  }
  func.func @transform_5(%arg0: i32, %arg1: i32) -> (i32, i32) {
    %c0_i32 = arith.constant 0 : i32
    %c0_i32_0 = arith.constant 0 : i32
    %c0_i32_1 = arith.constant 0 : i32
    return %c0_i32, %c0_i32_0 : i32, i32
  }
  func.func @transform_6(%arg0: i32, %arg1: i32) -> (i32, i32) {
    %c0_i32 = arith.constant 0 : i32
    %c0_i32_0 = arith.constant 0 : i32
    return %arg0, %c0_i32 : i32, i32
  }
}

</mosaic_0001>

<bundles_post_ra>
// kernel: tpu_custom_call.1
= control target key start
LH: loop header
LB: loop body
LE: loop exit
PB: predicated region body
PF: predicated region fallthrough
CT: control target
= control target key end

     0   :  { %s24756_s0 = inlined_call_operand.hbm [shape: bf16[16,128], index: 0, kind: input, shape index: {}]   ;;  %s24757_s1 = inlined_call_operand.hbm [shape: bf16[16,128], index: 1, kind: input, shape index: {}]   ;;  %s24758_s2 = inlined_call_operand.hbm [shape: bf16[128,128,128], index: 2, kind: input, shape index: {}]   ;;  %s24759_s3 = inlined_call_operand.hbm [shape: f32[1,128], index: 3, kind: input, shape index: {}]   ;;  %s24760_s4 = inlined_call_operand.hbm [shape: f32[1,128], index: 4, kind: input, shape index: {}]   ;;  %s24761_s5 = inlined_call_operand.<no memory space> [shape: f32[1,1], index: 5, kind: input, shape index: {}]   ;;  %s24762_s6 = inlined_call_operand.vmem [shape: f32[16,1], index: 6, kind: output, shape index: {}]  }
   0x1   :  { %v11_v0 = vstv %s24761_s5 }
   0x2   :  { %12 = vst [vmem:[#allocation2] sm:$0x1] %v11_v0 }
   0x3   :  { %13 = vsyncpa [#allocation4], 0 }
   0x4   :  { %14 = vsyncpa [#allocation6], 0 }
   0x5   :  { %15 = vsyncpa [#allocation9], 0  ;;  %s21853_s23 = smov [#allocation5]   ;;  %s21854_s25 = smov [#allocation8]  }
   0x6   :  { %s33_s24 = sshll.u32 %s21853_s23, 4  ;;  %s58_s26 = sshll.u32 %s21854_s25, 4  ;;  %s34_s24 = int_to_ptr.vmem [resolvable:$true] %s33_s24  ;;  %s59_s26 = int_to_ptr.vmem [resolvable:$true] %s58_s26 }
   0x7   :  { %s21755_s27 = scalar_lea.vmem %s34_s24, 128  ;;  %p21760_p1 = scmp.lt.s32.totalorder %s34_s24, %s34_s24 }
   0x8   :  { %p21756_p0 = scmp.ne.s32.totalorder %s34_s24, %s21755_s27  ;;  %p21761_p2 = scmp.lt.s32.totalorder %s21755_s27, %s21755_s27 }
   0xa   :  { %p21762_p3 = por %p21761_p2, %p21760_p1 }
   0xc   :  { %p21763_p4 = pnand %p21762_p3, %p21756_p0 }
   0xe   :  { %21766 = shalt.err (!%p21763_p4)
}
   0xf   :  { %s21855_s28 = smov 64   ;;  %s21856_s29 = smov 4  }
  0x10   :  { %39 = dma.hbm_to_vmem [thread:$0]  %s24757_s1, 128, %s34_s24, [#allocation6], %s21855_s28, %s21855_s28, %s21856_s29  }
  0x11   :  { %s21775_s7 = scalar_lea.vmem %s59_s26, 16  ;;  %s21779_s8 = scalar_lea.vmem %s59_s26, 32 }
  0x12   :  { %p21776_p5 = scmp.ne.s32.totalorder %s59_s26, %s21775_s7  ;;  %p21780_p6 = scmp.lt.s32.totalorder %s59_s26, %s59_s26 }
  0x13   :  { %p21781_p7 = scmp.lt.s32.totalorder %s21779_s8, %s21775_s7 }
  0x15   :  { %p21782_p8 = por %p21781_p7, %p21780_p6 }
  0x17   :  { %p21783_p9 = pnand %p21782_p8, %p21776_p5 }
  0x19   :  { %21786 = shalt.err (!%p21783_p9)
}
  0x1a   :  { %61 = dma.hbm_to_vmem [thread:$0]  %s24759_s3, 16, %s59_s26, [#allocation9]  }
  0x1b   :  { %s21857_s11 = smov [#allocation3]   ;;  %s21858_s13 = smov [#allocation7]  }
  0x1c   :  { %s21_s12 = sshll.u32 %s21857_s11, 4  ;;  %s45_s14 = sshll.u32 %s21858_s13, 4  ;;  %s22_s12 = int_to_ptr.vmem [resolvable:$true] %s21_s12  ;;  %s46_s14 = int_to_ptr.vmem [resolvable:$true] %s45_s14 }
  0x1d   :  { %s21795_s15 = scalar_lea.vmem %s22_s12, 128  ;;  %p21800_p11 = scmp.lt.s32.totalorder %s22_s12, %s22_s12 }
  0x1e   :  { %p21796_p10 = scmp.ne.s32.totalorder %s22_s12, %s21795_s15  ;;  %p21801_p12 = scmp.lt.s32.totalorder %s21795_s15, %s21795_s15 }
  0x20   :  { %p21802_p13 = por %p21801_p12, %p21800_p11 }
  0x22   :  { %p21803_p0 = pnand %p21802_p13, %p21796_p10 }
  0x24   :  { %21806 = shalt.err (!%p21803_p0)
}
  0x25   :  { %27 = dma.hbm_to_vmem [thread:$0]  %s24756_s0, 128, %s22_s12, [#allocation4], %s21855_s28, %s21855_s28, %s21856_s29  }
  0x26   :  { %s21815_s3 = scalar_lea.vmem %s46_s14, 131072  ;;  %p21820_p2 = scmp.lt.s32.totalorder %s46_s14, %s46_s14 }
  0x27   :  { %p21816_p1 = scmp.ne.s32.totalorder %s46_s14, %s21815_s3  ;;  %p21821_p3 = scmp.lt.s32.totalorder %s21815_s3, %s21815_s3 }
  0x29   :  { %p21822_p4 = por %p21821_p3, %p21820_p2 }
  0x2b   :  { %p21823_p5 = pnand %p21822_p4, %p21816_p1 }
  0x2d   :  { %21826 = shalt.err (!%p21823_p5)
}
  0x2e   :  { %51 = dma.hbm_to_vmem [thread:$0]  %s24758_s2, 131072, %s46_s14, [#allocation6], %s21855_s28, %s21855_s28, %s21856_s29  }
  0x2f   :  { %s21859_s19 = smov [#allocation10]  }
  0x30   :  { %s68_s20 = sshll.u32 %s21859_s19, 4  ;;  %s69_s20 = int_to_ptr.vmem [resolvable:$true] %s68_s20 }
  0x31   :  { %s21835_s21 = scalar_lea.vmem %s69_s20, 16  ;;  %s21839_s0 = scalar_lea.vmem %s69_s20, 32 }
  0x32   :  { %p21836_p6 = scmp.ne.s32.totalorder %s69_s20, %s21835_s21  ;;  %p21840_p7 = scmp.lt.s32.totalorder %s69_s20, %s69_s20 }
  0x33   :  { %p21841_p8 = scmp.lt.s32.totalorder %s21839_s0, %s21835_s21 }
  0x35   :  { %p21842_p9 = por %p21841_p8, %p21840_p7 }
  0x37   :  { %p21843_p10 = pnand %p21842_p9, %p21836_p6 }
  0x39   :  { %21846 = shalt.err (!%p21843_p10)
}
  0x3a   :  { %71 = dma.hbm_to_vmem [thread:$0]  %s24760_s4, 16, %s69_s20, [#allocation9]  }
  0x3b   :  { %21847 = dma.done.wait [#allocation4], 128  }
  0x3c   :  { %21848 = vsyncadd [#allocation4], 4294967168 }
  0x3d   :  { %21849 = dma.done.wait [#allocation6], 131200  }
  0x3e   :  { %21850 = vsyncadd [#allocation6], 4294836096 }
  0x3f   :  { %21851 = dma.done.wait [#allocation9], 32  }
  0x40   :  { %21852 = vsyncadd [#allocation9], 4294967264  ;;  %v24763_v1 = vmov 0.0   ;;  %vm21861_vm0 = vmmov 0   ;;  %v20708_v2 = vld [vmem:[#allocation7 + $0x38] sm:$0xff]   ;;  %v20710_v4 = vld [vmem:[#allocation7 + $0x30] sm:$0xff]  }
  0x41   :  { %18139 = vmatprep.subr.bf16.mxu0 %v24763_v1  ;;  %18159 = vmatprep.subr.bf16.mxu1 %v24763_v1  ;;  %v20709_v3 = vld [vmem:[#allocation7 + $0x78] sm:$0xff]   ;;  %v20711_v5 = vld [vmem:[#allocation7 + $0x70] sm:$0xff]   ;;  %v20712_v6 = vld [vmem:[#allocation7 + $0x28] sm:$0xff]   ;;  %vm14577_vm1 = vcmask 130112   ;;  %vm15722_vm2 = vcmask 1041409   ;;  %vm15724_vm3 = vcmask 1042434  }
  0x42   :  { %18155 = vmatprep.mubr.msk.bf16.mxu0 %vm21861_vm0, %v24763_v1  ;;  %18175 = vmatprep.mubr.msk.bf16.mxu1 %vm21861_vm0, %v24763_v1  ;;  %v20713_v7 = vld [vmem:[#allocation7 + $0x68] sm:$0xff]   ;;  %v20714_v8 = vld [vmem:[#allocation7 + $0x20] sm:$0xff]   ;;  %v20716_v10 = vld [vmem:[#allocation7 + $0x18] sm:$0xff]   ;;  %vm15726_vm4 = vcmask 1043459   ;;  %vm15728_vm5 = vcmask 1044484   ;;  %vm15730_vm6 = vcmask 1045509  }
  0x43   :  { %18140 = vmatpush3.bf16.xpose.msra.mxu0 %v20708_v2  ;;  %18160 = vmatpush3.bf16.xpose.msra.mxu1 %v20709_v3  ;;  %v20715_v9 = vld [vmem:[#allocation7 + $0x60] sm:$0xff]   ;;  %v20717_v11 = vld [vmem:[#allocation7 + $0x58] sm:$0xff]   ;;  %v20718_v12 = vld [vmem:[#allocation7 + $0x10] sm:$0xff]   ;;  %vm15732_vm7 = vcmask 1046534   ;;  %vm15734_vm8 = vcmask 1047559   ;;  %vm15934_vm9 = vcmask 7168  }
  0x44   :  { %18141 = vmatprep.subr.bf16.mxu0 %v24763_v1  ;;  %18161 = vmatprep.subr.bf16.mxu1 %v24763_v1  ;;  %v20719_v13 = vld [vmem:[#allocation7 + $0x50] sm:$0xff]   ;;  %v20720_v14 = vld [vmem:[#allocation7 + $0x8] sm:$0xff]   ;;  %v20722_v16 = vld [vmem:[#allocation7] sm:$0xff]  }
  0x45   :  { %v20721_v15 = vld [vmem:[#allocation7 + $0x48] sm:$0xff]   ;;  %v20723_v17 = vld [vmem:[#allocation7 + $0x40] sm:$0xff]   ;;  %v21944_v18 = vld [vmem:[#allocation5] sm:$0xff]  }
  0x46   :  { %v20725_v19 = vld [vmem:[#allocation7 + $0xb8] sm:$0xff]   ;;  %v20727_v21 = vld [vmem:[#allocation7 + $0xb0] sm:$0xff]   ;;  %v20729_v23 = vld [vmem:[#allocation7 + $0xa8] sm:$0xff]  }
  0x47   :  { %v20726_v20 = vld [vmem:[#allocation7 + $0xf8] sm:$0xff]   ;;  %v20728_v22 = vld [vmem:[#allocation7 + $0xf0] sm:$0xff]   ;;  %v20730_v24 = vld [vmem:[#allocation7 + $0xe8] sm:$0xff]  }
  0x48   :  { %v20731_v25 = vld [vmem:[#allocation7 + $0xa0] sm:$0xff]   ;;  %v20733_v27 = vld [vmem:[#allocation7 + $0x98] sm:$0xff]   ;;  %v20735_v29 = vld [vmem:[#allocation7 + $0x90] sm:$0xff]  }
  0x49   :  { %v20732_v26 = vld [vmem:[#allocation7 + $0xe0] sm:$0xff]   ;;  %v20734_v28 = vld [vmem:[#allocation7 + $0xd8] sm:$0xff]   ;;  %v20736_v30 = vld [vmem:[#allocation7 + $0xd0] sm:$0xff]  }
  0x4a   :  { %v20737_v31 = vld [vmem:[#allocation7 + $0x88] sm:$0xff]   ;;  %v20739_v33 = vld [vmem:[#allocation7 + $0x80] sm:$0xff]   ;;  %v20741_v35 = vld [vmem:[#allocation7 + $0x138] sm:$0xff]  }
  0x4b   :  { %18142 = vmatpush3.bf16.xpose.msra.mxu0 %v20710_v4  ;;  %18162 = vmatpush3.bf16.xpose.msra.mxu1 %v20711_v5  ;;  %v20738_v32 = vld [vmem:[#allocation7 + $0xc8] sm:$0xff]   ;;  %v20740_v34 = vld [vmem:[#allocation7 + $0xc0] sm:$0xff]   ;;  %v20742_v36 = vld [vmem:[#allocation7 + $0x178] sm:$0xff]  }
  0x4c   :  { %18143 = vmatprep.subr.bf16.mxu0 %v24763_v1  ;;  %18163 = vmatprep.subr.bf16.mxu1 %v24763_v1  ;;  %v20743_v37 = vld [vmem:[#allocation7 + $0x130] sm:$0xff]   ;;  %v20745_v39 = vld [vmem:[#allocation7 + $0x128] sm:$0xff]   ;;  %v20747_v41 = vld [vmem:[#allocation7 + $0x120] sm:$0xff]  }
  0x4d   :  { %v20744_v38 = vld [vmem:[#allocation7 + $0x170] sm:$0xff]   ;;  %v20746_v40 = vld [vmem:[#allocation7 + $0x168] sm:$0xff]   ;;  %v20748_v42 = vld [vmem:[#allocation7 + $0x160] sm:$0xff]  }
  0x4e   :  { %v20749_v43 = vld [vmem:[#allocation7 + $0x118] sm:$0xff]   ;;  %v20751_v45 = vld [vmem:[#allocation7 + $0x110] sm:$0xff]   ;;  %v20753_v47 = vld [vmem:[#allocation7 + $0x108] sm:$0xff]  }
  0x4f   :  { %v20750_v44 = vld [vmem:[#allocation7 + $0x158] sm:$0xff]   ;;  %v20752_v46 = vld [vmem:[#allocation7 + $0x150] sm:$0xff]   ;;  %v20754_v48 = vld [vmem:[#allocation7 + $0x148] sm:$0xff]  }
  0x50   :  { %v20755_v49 = vld [vmem:[#allocation7 + $0x100] sm:$0xff]   ;;  %v20757_v51 = vld [vmem:[#allocation7 + $0x1b8] sm:$0xff]   ;;  %v20759_v53 = vld [vmem:[#allocation7 + $0x1b0] sm:$0xff]  }
  0x51   :  { %v20756_v50 = vld [vmem:[#allocation7 + $0x140] sm:$0xff]   ;;  %v20758_v52 = vld [vmem:[#allocation7 + $0x1f8] sm:$0xff]   ;;  %v20760_v54 = vld [vmem:[#allocation7 + $0x1f0] sm:$0xff]  }
  0x52   :  { %v20761_v55 = vld [vmem:[#allocation7 + $0x1a8] sm:$0xff]   ;;  %v20763_v57 = vld [vmem:[#allocation7 + $0x1a0] sm:$0xff]   ;;  %v20765_v59 = vld [vmem:[#allocation7 + $0x198] sm:$0xff]  }
  0x53   :  { %18144 = vmatpush3.bf16.xpose.msra.mxu0 %v20712_v6  ;;  %18164 = vmatpush3.bf16.xpose.msra.mxu1 %v20713_v7  ;;  %v20762_v56 = vld [vmem:[#allocation7 + $0x1e8] sm:$0xff]   ;;  %v20764_v58 = vld [vmem:[#allocation7 + $0x1e0] sm:$0xff]   ;;  %v20766_v60 = vld [vmem:[#allocation7 + $0x1d8] sm:$0xff]  }
  0x54   :  { %18145 = vmatprep.subr.bf16.mxu0 %v24763_v1  ;;  %18165 = vmatprep.subr.bf16.mxu1 %v24763_v1  ;;  %v20767_v61 = vld [vmem:[#allocation7 + $0x190] sm:$0xff]   ;;  %v20769_v63 = vld [vmem:[#allocation7 + $0x188] sm:$0xff]   ;;  %v20771_v2 = vld [vmem:[#allocation7 + $0x180] sm:$0xff]  }
  0x55   :  { %v20768_v62 = vld [vmem:[#allocation7 + $0x1d0] sm:$0xff]   ;;  %v20770_v0 = vld [vmem:[#allocation7 + $0x1c8] sm:$0xff]   ;;  %v20772_v3 = vld [vmem:[#allocation7 + $0x1c0] sm:$0xff]  }
  0x56   :  { %v16984_v4 = vld [vmem:[#allocation3] sm:$0xff]   ;;  %v20773_v5 = vld [vmem:[#allocation7 + $0x238] sm:$0xff]  }
  0x57   :  { %v20774_v6 = vld [vmem:[#allocation7 + $0x278] sm:$0xff]   ;;  %v22014_v7 = vunpack.c.l.bf16 %v16984_v4 }
  0x5b   :  { %18146 = vmatpush3.bf16.xpose.msra.mxu0 %v20714_v8  ;;  %18166 = vmatpush3.bf16.xpose.msra.mxu1 %v20715_v9  ;;  %v22016_v9 = vld [vmem:[#allocation5] sm:$0xff]  }
  0x5c   :  { %18147 = vmatprep.subr.bf16.mxu0 %v24763_v1  ;;  %18167 = vmatprep.subr.bf16.mxu1 %v24763_v1 }
  0x63   :  { %18148 = vmatpush3.bf16.xpose.msra.mxu0 %v20716_v10  ;;  %18168 = vmatpush3.bf16.xpose.msra.mxu1 %v20717_v11 }
  0x64   :  { %18149 = vmatprep.subr.bf16.mxu0 %v24763_v1  ;;  %18169 = vmatprep.subr.bf16.mxu1 %v24763_v1 }
  0x6b   :  { %18150 = vmatpush3.bf16.xpose.msra.mxu0 %v20718_v12  ;;  %18170 = vmatpush3.bf16.xpose.msra.mxu1 %v20719_v13  ;;  %v22021_v12 = vunpack.c.h.bf16 %v16984_v4 }
  0x6c   :  { %18151 = vmatprep.subr.bf16.mxu0 %v24763_v1  ;;  %18171 = vmatprep.subr.bf16.mxu1 %v24763_v1 }
  0x73   :  { %18152 = vmatpush3.bf16.xpose.msra.mxu0 %v20720_v14  ;;  %18172 = vmatpush3.bf16.xpose.msra.mxu1 %v20721_v15 }
  0x74   :  { %18153 = vmatprep.subr.bf16.mxu0 %v24763_v1  ;;  %18173 = vmatprep.subr.bf16.mxu1 %v24763_v1 }
  0x7b   :  { %18154 = vmatpush3.bf16.xpose.msra.mxu0 %v20722_v16  ;;  %18174 = vmatpush3.bf16.xpose.msra.mxu1 %v20723_v17  ;;  %v20775_v16 = vld [vmem:[#allocation7 + $0x230] sm:$0xff]  }
  0x7c   :  { %18179 = vmatprep.subr.bf16.mxu0 %v24763_v1  ;;  %18199 = vmatprep.subr.bf16.mxu1 %v24763_v1 }
  0x82   :  { %18156 = vmatmul.mubr.bf16.vlgmr.msra.gmra.mxu0 %v21944_v18  ;;  %18176 = vmatmul.mubr.bf16.vlgmr.msra.gmra.mxu1 %v21944_v18 }
  0x83   :  { %18180 = vmatpush3.bf16.xpose.msra.mxu0 %v20725_v19  ;;  %18200 = vmatpush3.bf16.xpose.msra.mxu1 %v20726_v20 }
  0x84   :  { %18181 = vmatprep.subr.bf16.mxu0 %v24763_v1  ;;  %18201 = vmatprep.subr.bf16.mxu1 %v24763_v1 }
  0x85   :  { %18195 = vmatprep.mubr.msk.bf16.mxu0 %vm21861_vm0, %v24763_v1  ;;  %18215 = vmatprep.mubr.msk.bf16.mxu1 %vm21861_vm0, %v24763_v1 }
  0x8b   :  { %18182 = vmatpush3.bf16.xpose.msra.mxu0 %v20727_v21  ;;  %18202 = vmatpush3.bf16.xpose.msra.mxu1 %v20728_v22 }
  0x8c   :  { %18183 = vmatprep.subr.bf16.mxu0 %v24763_v1  ;;  %18203 = vmatprep.subr.bf16.mxu1 %v24763_v1 }
  0x93   :  { %18184 = vmatpush3.bf16.xpose.msra.mxu0 %v20729_v23  ;;  %18204 = vmatpush3.bf16.xpose.msra.mxu1 %v20730_v24  ;;  %v20777_v24 = vld [vmem:[#allocation7 + $0x228] sm:$0xff]  }
  0x94   :  { %18185 = vmatprep.subr.bf16.mxu0 %v24763_v1  ;;  %18205 = vmatprep.subr.bf16.mxu1 %v24763_v1 }
  0x9b   :  { %18186 = vmatpush3.bf16.xpose.msra.mxu0 %v20731_v25  ;;  %18206 = vmatpush3.bf16.xpose.msra.mxu1 %v20732_v26  ;;  %v20778_v25 = vld [vmem:[#allocation7 + $0x268] sm:$0xff]   ;;  %v20779_v26 = vld [vmem:[#allocation7 + $0x220] sm:$0xff]  }
  0x9c   :  { %18187 = vmatprep.subr.bf16.mxu0 %v24763_v1  ;;  %18207 = vmatprep.subr.bf16.mxu1 %v24763_v1 }
  0xa3   :  { %18188 = vmatpush3.bf16.xpose.msra.mxu0 %v20733_v27  ;;  %18208 = vmatpush3.bf16.xpose.msra.mxu1 %v20734_v28  ;;  %v20780_v27 = vld [vmem:[#allocation7 + $0x260] sm:$0xff]   ;;  %v20781_v28 = vld [vmem:[#allocation7 + $0x218] sm:$0xff]  }
  0xa4   :  { %18189 = vmatprep.subr.bf16.mxu0 %v24763_v1  ;;  %18209 = vmatprep.subr.bf16.mxu1 %v24763_v1 }
  0xab   :  { %18190 = vmatpush3.bf16.xpose.msra.mxu0 %v20735_v29  ;;  %18210 = vmatpush3.bf16.xpose.msra.mxu1 %v20736_v30  ;;  %v20782_v29 = vld [vmem:[#allocation7 + $0x258] sm:$0xff]   ;;  %v20783_v30 = vld [vmem:[#allocation7 + $0x210] sm:$0xff]  }
  0xac   :  { %18191 = vmatprep.subr.bf16.mxu0 %v24763_v1  ;;  %18211 = vmatprep.subr.bf16.mxu1 %v24763_v1 }
  0xb3   :  { %18192 = vmatpush3.bf16.xpose.msra.mxu0 %v20737_v31  ;;  %18212 = vmatpush3.bf16.xpose.msra.mxu1 %v20738_v32  ;;  %v20784_v31 = vld [vmem:[#allocation7 + $0x250] sm:$0xff]   ;;  %v20785_v32 = vld [vmem:[#allocation7 + $0x208] sm:$0xff]  }
  0xb4   :  { %18193 = vmatprep.subr.bf16.mxu0 %v24763_v1  ;;  %18213 = vmatprep.subr.bf16.mxu1 %v24763_v1 }
  0xbb   :  { %18194 = vmatpush3.bf16.xpose.msra.mxu0 %v20739_v33  ;;  %18214 = vmatpush3.bf16.xpose.msra.mxu1 %v20740_v34  ;;  %v20786_v33 = vld [vmem:[#allocation7 + $0x248] sm:$0xff]   ;;  %v20787_v34 = vld [vmem:[#allocation7 + $0x200] sm:$0xff]  }
  0xbc   :  { %18219 = vmatprep.subr.bf16.mxu0 %v24763_v1  ;;  %18239 = vmatprep.subr.bf16.mxu1 %v24763_v1 }
  0xc2   :  { %18196 = vmatmul.mubr.bf16.vlgmr.msra.gmra.mxu0 %v21944_v18  ;;  %18216 = vmatmul.mubr.bf16.vlgmr.msra.gmra.mxu1 %v21944_v18 }
  0xc3   :  { %18220 = vmatpush3.bf16.xpose.msra.mxu0 %v20741_v35  ;;  %18240 = vmatpush3.bf16.xpose.msra.mxu1 %v20742_v36  ;;  %v20788_v35 = vld [vmem:[#allocation7 + $0x240] sm:$0xff]   ;;  %v20789_v36 = vld [vmem:[#allocation7 + $0x2b8] sm:$0xff]  }
  0xc4   :  { %18221 = vmatprep.subr.bf16.mxu0 %v24763_v1  ;;  %18241 = vmatprep.subr.bf16.mxu1 %v24763_v1 }
  0xc5   :  { %18235 = vmatprep.mubr.msk.bf16.mxu0 %vm21861_vm0, %v24763_v1  ;;  %18255 = vmatprep.mubr.msk.bf16.mxu1 %vm21861_vm0, %v24763_v1 }
  0xcb   :  { %18222 = vmatpush3.bf16.xpose.msra.mxu0 %v20743_v37  ;;  %18242 = vmatpush3.bf16.xpose.msra.mxu1 %v20744_v38  ;;  %v20790_v37 = vld [vmem:[#allocation7 + $0x2f8] sm:$0xff]  }
  0xcc   :  { %18223 = vmatprep.subr.bf16.mxu0 %v24763_v1  ;;  %18243 = vmatprep.subr.bf16.mxu1 %v24763_v1 }
  0xd3   :  { %18224 = vmatpush3.bf16.xpose.msra.mxu0 %v20745_v39  ;;  %18244 = vmatpush3.bf16.xpose.msra.mxu1 %v20746_v40 }
  0xd4   :  { %18225 = vmatprep.subr.bf16.mxu0 %v24763_v1  ;;  %18245 = vmatprep.subr.bf16.mxu1 %v24763_v1 }
  0xdb   :  { %18226 = vmatpush3.bf16.xpose.msra.mxu0 %v20747_v41  ;;  %18246 = vmatpush3.bf16.xpose.msra.mxu1 %v20748_v42 }
  0xdc   :  { %18227 = vmatprep.subr.bf16.mxu0 %v24763_v1  ;;  %18247 = vmatprep.subr.bf16.mxu1 %v24763_v1 }
  0xe3   :  { %18228 = vmatpush3.bf16.xpose.msra.mxu0 %v20749_v43  ;;  %18248 = vmatpush3.bf16.xpose.msra.mxu1 %v20750_v44  ;;  %v20791_v44 = vld [vmem:[#allocation7 + $0x2b0] sm:$0xff]  }
  0xe4   :  { %18229 = vmatprep.subr.bf16.mxu0 %v24763_v1  ;;  %18249 = vmatprep.subr.bf16.mxu1 %v24763_v1 }
  0xeb   :  { %18230 = vmatpush3.bf16.xpose.msra.mxu0 %v20751_v45  ;;  %18250 = vmatpush3.bf16.xpose.msra.mxu1 %v20752_v46  ;;  %v20792_v46 = vld [vmem:[#allocation7 + $0x2f0] sm:$0xff]  }
  0xec   :  { %18231 = vmatprep.subr.bf16.mxu0 %v24763_v1  ;;  %18251 = vmatprep.subr.bf16.mxu1 %v24763_v1 }
  0xf3   :  { %18232 = vmatpush3.bf16.xpose.msra.mxu0 %v20753_v47  ;;  %18252 = vmatpush3.bf16.xpose.msra.mxu1 %v20754_v48 }
  0xf4   :  { %18233 = vmatprep.subr.bf16.mxu0 %v24763_v1  ;;  %18253 = vmatprep.subr.bf16.mxu1 %v24763_v1 }
  0xfb   :  { %18234 = vmatpush3.bf16.xpose.msra.mxu0 %v20755_v49  ;;  %18254 = vmatpush3.bf16.xpose.msra.mxu1 %v20756_v50 }
  0xfc   :  { %18259 = vmatprep.subr.bf16.mxu0 %v24763_v1  ;;  %18279 = vmatprep.subr.bf16.mxu1 %v24763_v1 }
 0x102   :  { %18236 = vmatmul.mubr.bf16.vlgmr.msra.gmra.mxu0 %v21944_v18  ;;  %18256 = vmatmul.mubr.bf16.vlgmr.msra.gmra.mxu1 %v21944_v18  ;;  %v20776_v18 = vld [vmem:[#allocation7 + $0x270] sm:$0xff]  }
 0x103   :  { %18260 = vmatpush3.bf16.xpose.msra.mxu0 %v20757_v51  ;;  %18280 = vmatpush3.bf16.xpose.msra.mxu1 %v20758_v52  ;;  %v20793_v52 = vld [vmem:[#allocation7 + $0x2a8] sm:$0xff]  }
 0x104   :  { %18261 = vmatprep.subr.bf16.mxu0 %v24763_v1  ;;  %18281 = vmatprep.subr.bf16.mxu1 %v24763_v1 }
 0x105   :  { %18275 = vmatprep.mubr.msk.bf16.mxu0 %vm21861_vm0, %v24763_v1  ;;  %18295 = vmatprep.mubr.msk.bf16.mxu1 %vm21861_vm0, %v24763_v1 }
 0x10b   :  { %18262 = vmatpush3.bf16.xpose.msra.mxu0 %v20759_v53  ;;  %18282 = vmatpush3.bf16.xpose.msra.mxu1 %v20760_v54  ;;  %v20794_v53 = vld [vmem:[#allocation7 + $0x2e8] sm:$0xff]   ;;  %v20795_v54 = vld [vmem:[#allocation7 + $0x2a0] sm:$0xff]  }
 0x10c   :  { %18263 = vmatprep.subr.bf16.mxu0 %v24763_v1  ;;  %18283 = vmatprep.subr.bf16.mxu1 %v24763_v1 }
 0x113   :  { %18264 = vmatpush3.bf16.xpose.msra.mxu0 %v20761_v55  ;;  %18284 = vmatpush3.bf16.xpose.msra.mxu1 %v20762_v56  ;;  %v20796_v55 = vld [vmem:[#allocation7 + $0x2e0] sm:$0xff]   ;;  %v20797_v56 = vld [vmem:[#allocation7 + $0x298] sm:$0xff]  }
 0x114   :  { %18265 = vmatprep.subr.bf16.mxu0 %v24763_v1  ;;  %18285 = vmatprep.subr.bf16.mxu1 %v24763_v1 }
 0x11b   :  { %18266 = vmatpush3.bf16.xpose.msra.mxu0 %v20763_v57  ;;  %18286 = vmatpush3.bf16.xpose.msra.mxu1 %v20764_v58  ;;  %v20798_v57 = vld [vmem:[#allocation7 + $0x2d8] sm:$0xff]   ;;  %v20799_v58 = vld [vmem:[#allocation7 + $0x290] sm:$0xff]  }
 0x11c   :  { %18267 = vmatprep.subr.bf16.mxu0 %v24763_v1  ;;  %18287 = vmatprep.subr.bf16.mxu1 %v24763_v1 }
 0x123   :  { %18268 = vmatpush3.bf16.xpose.msra.mxu0 %v20765_v59  ;;  %18288 = vmatpush3.bf16.xpose.msra.mxu1 %v20766_v60  ;;  %v20800_v59 = vld [vmem:[#allocation7 + $0x2d0] sm:$0xff]   ;;  %v20801_v60 = vld [vmem:[#allocation7 + $0x288] sm:$0xff]  }
 0x124   :  { %18269 = vmatprep.subr.bf16.mxu0 %v24763_v1  ;;  %18289 = vmatprep.subr.bf16.mxu1 %v24763_v1 }
 0x12b   :  { %18270 = vmatpush3.bf16.xpose.msra.mxu0 %v20767_v61  ;;  %18290 = vmatpush3.bf16.xpose.msra.mxu1 %v20768_v62  ;;  %v20802_v61 = vld [vmem:[#allocation7 + $0x2c8] sm:$0xff]   ;;  %v20803_v62 = vld [vmem:[#allocation7 + $0x280] sm:$0xff]  }
 0x12c   :  { %18271 = vmatprep.subr.bf16.mxu0 %v24763_v1  ;;  %18291 = vmatprep.subr.bf16.mxu1 %v24763_v1 }
 0x133   :  { %18272 = vmatpush3.bf16.xpose.msra.mxu0 %v20769_v63  ;;  %18292 = vmatpush3.bf16.xpose.msra.mxu1 %v20770_v0  ;;  %v20804_v63 = vld [vmem:[#allocation7 + $0x2c0] sm:$0xff]   ;;  %v20805_v0 = vld [vmem:[#allocation7 + $0x338] sm:$0xff]  }
 0x134   :  { %18273 = vmatprep.subr.bf16.mxu0 %v24763_v1  ;;  %18293 = vmatprep.subr.bf16.mxu1 %v24763_v1 }
 0x13b   :  { %18274 = vmatpush3.bf16.xpose.msra.mxu0 %v20771_v2  ;;  %18294 = vmatpush3.bf16.xpose.msra.mxu1 %v20772_v3  ;;  %v20806_v2 = vld [vmem:[#allocation7 + $0x378] sm:$0xff]  }
 0x13c   :  { %18299 = vmatprep.subr.bf16.mxu0 %v24763_v1  ;;  %18319 = vmatprep.subr.bf16.mxu1 %v24763_v1 }
 0x142   :  { %v2228_v8 = vpop.f32.mrf.mxu0  ;;  %18276 = vmatmul.mubr.bf16.vlgmr.msra.gmra.mxu0 %v22016_v9  ;;  %v2317_v10 = vpop.f32.mrf.mxu1  ;;  %18296 = vmatmul.mubr.bf16.vlgmr.msra.gmra.mxu1 %v22016_v9 }
 0x143   :  { %18300 = vmatpush3.bf16.xpose.msra.mxu0 %v20773_v5  ;;  %v13542_v11 = vmul.f32 %v22014_v7, %v2228_v8  ;;  %18320 = vmatpush3.bf16.xpose.msra.mxu1 %v20774_v6  ;;  %v13544_v14 = vmul.f32 %v22014_v7, %v2317_v10 }
 0x144   :  { %v18157_v13 = vpop.f32.mrf.mxu0  ;;  %18301 = vmatprep.subr.bf16.mxu0 %v24763_v1  ;;  %v18177_v15 = vpop.f32.mrf.mxu1  ;;  %18321 = vmatprep.subr.bf16.mxu1 %v24763_v1 }
 0x145   :  { %13798 = vadd.xlane.f32.xlu0 %v13542_v11  ;;  %13802 = vadd.xlane.f32.xlu1 %v13544_v14  ;;  %v20807_v11 = vld [vmem:[#allocation7 + $0x330] sm:$0xff]  }
 0x146   :  { %v2231_v17 = vpop.f32.mrf.mxu0  ;;  %18315 = vmatprep.mubr.msk.bf16.mxu0 %vm21861_vm0, %v24763_v1  ;;  %v2320_v20 = vpop.f32.mrf.mxu1  ;;  %18335 = vmatprep.mubr.msk.bf16.mxu1 %vm21861_vm0, %v24763_v1  ;;  %v20808_v14 = vld [vmem:[#allocation7 + $0x370] sm:$0xff]  }
 0x147   :  { %v13543_v19 = vmul.f32 %v22021_v12, %v2231_v17  ;;  %v13545_v21 = vmul.f32 %v22021_v12, %v2320_v20  ;;  %v20810_v20 = vld [vmem:[#allocation7 + $0x368] sm:$0xff]  }
 0x148   :  { %v18158_v22 = vpop.f32.mrf.mxu0  ;;  %v18178_v23 = vpop.f32.mrf.mxu1 }
 0x149   :  { %13800 = vadd.xlane.f32.xlu0 %v13543_v19  ;;  %13804 = vadd.xlane.f32.xlu1 %v13545_v21  ;;  %v20809_v19 = vld [vmem:[#allocation7 + $0x328] sm:$0xff]   ;;  %v20811_v21 = vld [vmem:[#allocation7 + $0x320] sm:$0xff]   ;;  %v20813_v23 = vld [vmem:[#allocation7 + $0x318] sm:$0xff]  }
 0x14a   :  { %v20812_v22 = vld [vmem:[#allocation7 + $0x360] sm:$0xff]  }
 0x14b   :  { %18302 = vmatpush3.bf16.xpose.msra.mxu0 %v20775_v16  ;;  %18322 = vmatpush3.bf16.xpose.msra.mxu1 %v20776_v18 }
 0x14c   :  { %18303 = vmatprep.subr.bf16.mxu0 %v24763_v1  ;;  %18323 = vmatprep.subr.bf16.mxu1 %v24763_v1 }
 0x153   :  { %18304 = vmatpush3.bf16.xpose.msra.mxu0 %v20777_v24  ;;  %18324 = vmatpush3.bf16.xpose.msra.mxu1 %v20778_v25  ;;  %v20814_v24 = vld [vmem:[#allocation7 + $0x358] sm:$0xff]   ;;  %v20815_v25 = vld [vmem:[#allocation7 + $0x310] sm:$0xff]  }
 0x154   :  { %18305 = vmatprep.subr.bf16.mxu0 %v24763_v1  ;;  %18325 = vmatprep.subr.bf16.mxu1 %v24763_v1 }
 0x15b   :  { %18306 = vmatpush3.bf16.xpose.msra.mxu0 %v20779_v26  ;;  %18326 = vmatpush3.bf16.xpose.msra.mxu1 %v20780_v27  ;;  %v20816_v26 = vld [vmem:[#allocation7 + $0x350] sm:$0xff]   ;;  %v20817_v27 = vld [vmem:[#allocation7 + $0x308] sm:$0xff]  }
 0x15c   :  { %18307 = vmatprep.subr.bf16.mxu0 %v24763_v1  ;;  %18327 = vmatprep.subr.bf16.mxu1 %v24763_v1 }
 0x163   :  { %18308 = vmatpush3.bf16.xpose.msra.mxu0 %v20781_v28  ;;  %18328 = vmatpush3.bf16.xpose.msra.mxu1 %v20782_v29  ;;  %v20818_v28 = vld [vmem:[#allocation7 + $0x348] sm:$0xff]   ;;  %v20819_v29 = vld [vmem:[#allocation7 + $0x300] sm:$0xff]  }
 0x164   :  { %18309 = vmatprep.subr.bf16.mxu0 %v24763_v1  ;;  %18329 = vmatprep.subr.bf16.mxu1 %v24763_v1 }
 0x16b   :  { %18310 = vmatpush3.bf16.xpose.msra.mxu0 %v20783_v30  ;;  %18330 = vmatpush3.bf16.xpose.msra.mxu1 %v20784_v31  ;;  %v20820_v30 = vld [vmem:[#allocation7 + $0x340] sm:$0xff]   ;;  %v20821_v31 = vld [vmem:[#allocation7 + $0x3b8] sm:$0xff]  }
 0x16c   :  { %18311 = vmatprep.subr.bf16.mxu0 %v24763_v1  ;;  %18331 = vmatprep.subr.bf16.mxu1 %v24763_v1 }
 0x173   :  { %18312 = vmatpush3.bf16.xpose.msra.mxu0 %v20785_v32  ;;  %18332 = vmatpush3.bf16.xpose.msra.mxu1 %v20786_v33  ;;  %v20822_v32 = vld [vmem:[#allocation7 + $0x3f8] sm:$0xff]  }
 0x174   :  { %18313 = vmatprep.subr.bf16.mxu0 %v24763_v1  ;;  %18333 = vmatprep.subr.bf16.mxu1 %v24763_v1 }
 0x17b   :  { %18314 = vmatpush3.bf16.xpose.msra.mxu0 %v20787_v34  ;;  %18334 = vmatpush3.bf16.xpose.msra.mxu1 %v20788_v35  ;;  %v22098_v34 = vld [vmem:[#allocation5] sm:$0xff]  }
 0x17c   :  { %18339 = vmatprep.subr.bf16.mxu0 %v24763_v1  ;;  %18359 = vmatprep.subr.bf16.mxu1 %v24763_v1 }
 0x182   :  { %v2406_v38 = vpop.f32.mrf.mxu0  ;;  %18316 = vmatmul.mubr.bf16.vlgmr.msra.gmra.mxu0 %v22016_v9  ;;  %v2495_v40 = vpop.f32.mrf.mxu1  ;;  %18336 = vmatmul.mubr.bf16.vlgmr.msra.gmra.mxu1 %v22016_v9 }
 0x183   :  { %v13546_v39 = vmul.f32 %v22014_v7, %v2406_v38  ;;  %18340 = vmatpush3.bf16.xpose.msra.mxu0 %v20789_v36  ;;  %18360 = vmatpush3.bf16.xpose.msra.mxu1 %v20790_v37  ;;  %v13548_v42 = vmul.f32 %v22014_v7, %v2495_v40  ;;  %v20823_v40 = vld [vmem:[#allocation7 + $0x3b0] sm:$0xff]  }
 0x184   :  { %v18197_v41 = vpop.f32.mrf.mxu0  ;;  %18341 = vmatprep.subr.bf16.mxu0 %v24763_v1  ;;  %v18217_v43 = vpop.f32.mrf.mxu1  ;;  %18361 = vmatprep.subr.bf16.mxu1 %v24763_v1 }
 0x185   :  { %13806 = vadd.xlane.f32.xlu0 %v13546_v39  ;;  %18355 = vmatprep.mubr.msk.bf16.mxu0 %vm21861_vm0, %v24763_v1 }
 0x186   :  { %v2409_v45 = vpop.f32.mrf.mxu0  ;;  %18375 = vmatprep.mubr.msk.bf16.mxu1 %vm21861_vm0, %v24763_v1  ;;  %v2498_v47 = vpop.f32.mrf.mxu1 }
 0x187   :  { %v13547_v48 = vmul.f32 %v22021_v12, %v2409_v45  ;;  %v13549_v51 = vmul.f32 %v22021_v12, %v2498_v47 }
 0x188   :  { %v18198_v49 = vpop.f32.mrf.mxu0  ;;  %v18218_v50 = vpop.f32.mrf.mxu1 }
 0x189   :  { %13808 = vadd.xlane.f32.xlu1 %v13547_v48  ;;  %13810 = vadd.xlane.f32.xlu0 %v13548_v42  ;;  %v20824_v42 = vld [vmem:[#allocation7 + $0x3f0] sm:$0xff]   ;;  %v20825_v48 = vld [vmem:[#allocation7 + $0x3a8] sm:$0xff]   ;;  %v20827_v50 = vld [vmem:[#allocation7 + $0x3a0] sm:$0xff]  }
 0x18a   :  { %v20826_v49 = vld [vmem:[#allocation7 + $0x3e8] sm:$0xff]  }
 0x18b   :  { %18342 = vmatpush3.bf16.xpose.msra.mxu0 %v20791_v44  ;;  %18362 = vmatpush3.bf16.xpose.msra.mxu1 %v20792_v46 }
 0x18c   :  { %18343 = vmatprep.subr.bf16.mxu0 %v24763_v1  ;;  %18363 = vmatprep.subr.bf16.mxu1 %v24763_v1 }
 0x18d   :  { %13812 = vadd.xlane.f32.xlu1 %v13549_v51  ;;  %v20828_v51 = vld [vmem:[#allocation7 + $0x3e0] sm:$0xff]  }
 0x193   :  { %18344 = vmatpush3.bf16.xpose.msra.mxu0 %v20793_v52  ;;  %18364 = vmatpush3.bf16.xpose.msra.mxu1 %v20794_v53  ;;  %v20829_v52 = vld [vmem:[#allocation7 + $0x398] sm:$0xff]  }
 0x194   :  { %18345 = vmatprep.subr.bf16.mxu0 %v24763_v1  ;;  %18365 = vmatprep.subr.bf16.mxu1 %v24763_v1  ;;  %v20830_v53 = vld [vmem:[#allocation7 + $0x3d8] sm:$0xff]  }
 0x19b   :  { %18346 = vmatpush3.bf16.xpose.msra.mxu0 %v20795_v54  ;;  %18366 = vmatpush3.bf16.xpose.msra.mxu1 %v20796_v55  ;;  %v20831_v54 = vld [vmem:[#allocation7 + $0x390] sm:$0xff]  }
 0x19c   :  { %18347 = vmatprep.subr.bf16.mxu0 %v24763_v1  ;;  %18367 = vmatprep.subr.bf16.mxu1 %v24763_v1  ;;  %v20832_v55 = vld [vmem:[#allocation7 + $0x3d0] sm:$0xff]  }
 0x1a3   :  { %18348 = vmatpush3.bf16.xpose.msra.mxu0 %v20797_v56  ;;  %18368 = vmatpush3.bf16.xpose.msra.mxu1 %v20798_v57  ;;  %v20833_v56 = vld [vmem:[#allocation7 + $0x388] sm:$0xff]  }
 0x1a4   :  { %18349 = vmatprep.subr.bf16.mxu0 %v24763_v1  ;;  %18369 = vmatprep.subr.bf16.mxu1 %v24763_v1  ;;  %v20834_v57 = vld [vmem:[#allocation7 + $0x3c8] sm:$0xff]  }
 0x1ab   :  { %18350 = vmatpush3.bf16.xpose.msra.mxu0 %v20799_v58  ;;  %18370 = vmatpush3.bf16.xpose.msra.mxu1 %v20800_v59  ;;  %v20835_v58 = vld [vmem:[#allocation7 + $0x380] sm:$0xff]  }
 0x1ac   :  { %18351 = vmatprep.subr.bf16.mxu0 %v24763_v1  ;;  %18371 = vmatprep.subr.bf16.mxu1 %v24763_v1  ;;  %v20836_v59 = vld [vmem:[#allocation7 + $0x3c0] sm:$0xff]  }
 0x1b3   :  { %18352 = vmatpush3.bf16.xpose.msra.mxu0 %v20801_v60  ;;  %18372 = vmatpush3.bf16.xpose.msra.mxu1 %v20802_v61  ;;  %v20837_v60 = vld [vmem:[#allocation7 + $0x438] sm:$0xff]  }
 0x1b4   :  { %18353 = vmatprep.subr.bf16.mxu0 %v24763_v1  ;;  %18373 = vmatprep.subr.bf16.mxu1 %v24763_v1  ;;  %v20838_v61 = vld [vmem:[#allocation7 + $0x478] sm:$0xff]  }
 0x1bb   :  { %18354 = vmatpush3.bf16.xpose.msra.mxu0 %v20803_v62  ;;  %18374 = vmatpush3.bf16.xpose.msra.mxu1 %v20804_v63 }
 0x1bc   :  { %18379 = vmatprep.subr.bf16.mxu0 %v24763_v1  ;;  %18399 = vmatprep.subr.bf16.mxu1 %v24763_v1 }
 0x1c2   :  { %v2584_v3 = vpop.f32.mrf.mxu0  ;;  %18356 = vmatmul.mubr.bf16.vlgmr.msra.gmra.mxu0 %v22016_v9  ;;  %v2673_v5 = vpop.f32.mrf.mxu1  ;;  %18376 = vmatmul.mubr.bf16.vlgmr.msra.gmra.mxu1 %v22016_v9 }
 0x1c3   :  { %v13550_v4 = vmul.f32 %v22014_v7, %v2584_v3  ;;  %18380 = vmatpush3.bf16.xpose.msra.mxu0 %v20805_v0  ;;  %18400 = vmatpush3.bf16.xpose.msra.mxu1 %v20806_v2  ;;  %v13552_v8 = vmul.f32 %v22014_v7, %v2673_v5  ;;  %v20839_v5 = vld [vmem:[#allocation7 + $0x430] sm:$0xff]  }
 0x1c4   :  { %v18237_v6 = vpop.f32.mrf.mxu0  ;;  %18381 = vmatprep.subr.bf16.mxu0 %v24763_v1  ;;  %v18257_v10 = vpop.f32.mrf.mxu1  ;;  %18401 = vmatprep.subr.bf16.mxu1 %v24763_v1 }
 0x1c5   :  { %13814 = vadd.xlane.f32.xlu0 %v13550_v4  ;;  %18395 = vmatprep.mubr.msk.bf16.mxu0 %vm21861_vm0, %v24763_v1 }
 0x1c6   :  { %v2587_v13 = vpop.f32.mrf.mxu0  ;;  %18415 = vmatprep.mubr.msk.bf16.mxu1 %vm21861_vm0, %v24763_v1  ;;  %v2676_v9 = vpop.f32.mrf.mxu1 }
 0x1c7   :  { %v13551_v15 = vmul.f32 %v22021_v12, %v2587_v13  ;;  %v13553_v18 = vmul.f32 %v22021_v12, %v2676_v9 }
 0x1c8   :  { %v18238_v16 = vpop.f32.mrf.mxu0  ;;  %v18258_v17 = vpop.f32.mrf.mxu1 }
 0x1c9   :  { %13816 = vadd.xlane.f32.xlu1 %v13551_v15  ;;  %13818 = vadd.xlane.f32.xlu0 %v13552_v8  ;;  %v20840_v8 = vld [vmem:[#allocation7 + $0x470] sm:$0xff]   ;;  %v20841_v15 = vld [vmem:[#allocation7 + $0x428] sm:$0xff]   ;;  %v20843_v17 = vld [vmem:[#allocation7 + $0x420] sm:$0xff]  }
 0x1ca   :  { %v20842_v16 = vld [vmem:[#allocation7 + $0x468] sm:$0xff]  }
 0x1cb   :  { %18382 = vmatpush3.bf16.xpose.msra.mxu0 %v20807_v11  ;;  %18402 = vmatpush3.bf16.xpose.msra.mxu1 %v20808_v14 }
 0x1cc   :  { %18383 = vmatprep.subr.bf16.mxu0 %v24763_v1  ;;  %18403 = vmatprep.subr.bf16.mxu1 %v24763_v1 }
 0x1cd   :  { %13820 = vadd.xlane.f32.xlu1 %v13553_v18  ;;  %v20844_v18 = vld [vmem:[#allocation7 + $0x460] sm:$0xff]  }
 0x1d3   :  { %18384 = vmatpush3.bf16.xpose.msra.mxu0 %v20809_v19  ;;  %18404 = vmatpush3.bf16.xpose.msra.mxu1 %v20810_v20  ;;  %v20845_v19 = vld [vmem:[#allocation7 + $0x418] sm:$0xff]  }
 0x1d4   :  { %18385 = vmatprep.subr.bf16.mxu0 %v24763_v1  ;;  %18405 = vmatprep.subr.bf16.mxu1 %v24763_v1  ;;  %v20846_v20 = vld [vmem:[#allocation7 + $0x458] sm:$0xff]  }
 0x1db   :  { %18386 = vmatpush3.bf16.xpose.msra.mxu0 %v20811_v21  ;;  %18406 = vmatpush3.bf16.xpose.msra.mxu1 %v20812_v22  ;;  %v20847_v21 = vld [vmem:[#allocation7 + $0x410] sm:$0xff]  }
 0x1dc   :  { %18387 = vmatprep.subr.bf16.mxu0 %v24763_v1  ;;  %18407 = vmatprep.subr.bf16.mxu1 %v24763_v1  ;;  %v20848_v22 = vld [vmem:[#allocation7 + $0x450] sm:$0xff]  }
 0x1e3   :  { %18388 = vmatpush3.bf16.xpose.msra.mxu0 %v20813_v23  ;;  %18408 = vmatpush3.bf16.xpose.msra.mxu1 %v20814_v24  ;;  %v20849_v23 = vld [vmem:[#allocation7 + $0x408] sm:$0xff]  }
 0x1e4   :  { %18389 = vmatprep.subr.bf16.mxu0 %v24763_v1  ;;  %18409 = vmatprep.subr.bf16.mxu1 %v24763_v1  ;;  %v20850_v24 = vld [vmem:[#allocation7 + $0x448] sm:$0xff]  }
 0x1eb   :  { %18390 = vmatpush3.bf16.xpose.msra.mxu0 %v20815_v25  ;;  %18410 = vmatpush3.bf16.xpose.msra.mxu1 %v20816_v26  ;;  %v20851_v25 = vld [vmem:[#allocation7 + $0x400] sm:$0xff]  }
 0x1ec   :  { %18391 = vmatprep.subr.bf16.mxu0 %v24763_v1  ;;  %18411 = vmatprep.subr.bf16.mxu1 %v24763_v1  ;;  %v20852_v26 = vld [vmem:[#allocation7 + $0x440] sm:$0xff]  }
 0x1f3   :  { %18392 = vmatpush3.bf16.xpose.msra.mxu0 %v20817_v27  ;;  %18412 = vmatpush3.bf16.xpose.msra.mxu1 %v20818_v28  ;;  %v20853_v27 = vld [vmem:[#allocation7 + $0x4b8] sm:$0xff]  }
 0x1f4   :  { %18393 = vmatprep.subr.bf16.mxu0 %v24763_v1  ;;  %18413 = vmatprep.subr.bf16.mxu1 %v24763_v1  ;;  %v20854_v28 = vld [vmem:[#allocation7 + $0x4f8] sm:$0xff]  }
 0x1fb   :  { %18394 = vmatpush3.bf16.xpose.msra.mxu0 %v20819_v29  ;;  %18414 = vmatpush3.bf16.xpose.msra.mxu1 %v20820_v30 }
 0x1fc   :  { %18419 = vmatprep.subr.bf16.mxu0 %v24763_v1  ;;  %18439 = vmatprep.subr.bf16.mxu1 %v24763_v1 }
 0x202   :  { %v2762_v33 = vpop.f32.mrf.mxu0  ;;  %18396 = vmatmul.mubr.bf16.vlgmr.msra.gmra.mxu0 %v22098_v34  ;;  %v2851_v36 = vpop.f32.mrf.mxu1  ;;  %18416 = vmatmul.mubr.bf16.vlgmr.msra.gmra.mxu1 %v22098_v34 }
 0x203   :  { %v13554_v35 = vmul.f32 %v22014_v7, %v2762_v33  ;;  %18420 = vmatpush3.bf16.xpose.msra.mxu0 %v20821_v31  ;;  %18440 = vmatpush3.bf16.xpose.msra.mxu1 %v20822_v32  ;;  %v13556_v38 = vmul.f32 %v22014_v7, %v2851_v36  ;;  %v20855_v36 = vld [vmem:[#allocation7 + $0x4b0] sm:$0xff]  }
 0x204   :  { %v18277_v37 = vpop.f32.mrf.mxu0  ;;  %18421 = vmatprep.subr.bf16.mxu0 %v24763_v1  ;;  %v18297_v39 = vpop.f32.mrf.mxu1  ;;  %18441 = vmatprep.subr.bf16.mxu1 %v24763_v1 }
 0x205   :  { %13822 = vadd.xlane.f32.xlu0 %v13554_v35  ;;  %18435 = vmatprep.mubr.msk.bf16.mxu0 %vm21861_vm0, %v24763_v1 }
 0x206   :  { %v2765_v41 = vpop.f32.mrf.mxu0  ;;  %18455 = vmatprep.mubr.msk.bf16.mxu1 %vm21861_vm0, %v24763_v1  ;;  %v2854_v43 = vpop.f32.mrf.mxu1 }
 0x207   :  { %v13555_v44 = vmul.f32 %v22021_v12, %v2765_v41  ;;  %v13557_v47 = vmul.f32 %v22021_v12, %v2854_v43  ;;  %v20857_v43 = vld [vmem:[#allocation7 + $0x4a8] sm:$0xff]  }
 0x208   :  { %v18278_v45 = vpop.f32.mrf.mxu0  ;;  %v18298_v46 = vpop.f32.mrf.mxu1 }
 0x209   :  { %13824 = vadd.xlane.f32.xlu1 %v13555_v44  ;;  %13826 = vadd.xlane.f32.xlu0 %v13556_v38  ;;  %v20856_v38 = vld [vmem:[#allocation7 + $0x4f0] sm:$0xff]   ;;  %v20858_v44 = vld [vmem:[#allocation7 + $0x4e8] sm:$0xff]   ;;  %v20859_v45 = vld [vmem:[#allocation7 + $0x4a0] sm:$0xff]  }
 0x20a   :  { %v20860_v46 = vld [vmem:[#allocation7 + $0x4e0] sm:$0xff]  }
 0x20b   :  { %18422 = vmatpush3.bf16.xpose.msra.mxu0 %v20823_v40  ;;  %18442 = vmatpush3.bf16.xpose.msra.mxu1 %v20824_v42 }
 0x20c   :  { %18423 = vmatprep.subr.bf16.mxu0 %v24763_v1  ;;  %18443 = vmatprep.subr.bf16.mxu1 %v24763_v1 }
 0x20d   :  { %13828 = vadd.xlane.f32.xlu1 %v13557_v47  ;;  %v20861_v47 = vld [vmem:[#allocation7 + $0x498] sm:$0xff]  }
 0x213   :  { %18424 = vmatpush3.bf16.xpose.msra.mxu0 %v20825_v48  ;;  %18444 = vmatpush3.bf16.xpose.msra.mxu1 %v20826_v49  ;;  %v20862_v48 = vld [vmem:[#allocation7 + $0x4d8] sm:$0xff]   ;;  %v20863_v49 = vld [vmem:[#allocation7 + $0x490] sm:$0xff]  }
 0x214   :  { %18425 = vmatprep.subr.bf16.mxu0 %v24763_v1  ;;  %18445 = vmatprep.subr.bf16.mxu1 %v24763_v1 }
 0x21b   :  { %18426 = vmatpush3.bf16.xpose.msra.mxu0 %v20827_v50  ;;  %18446 = vmatpush3.bf16.xpose.msra.mxu1 %v20828_v51  ;;  %v20864_v50 = vld [vmem:[#allocation7 + $0x4d0] sm:$0xff]   ;;  %v20865_v51 = vld [vmem:[#allocation7 + $0x488] sm:$0xff]  }
 0x21c   :  { %18427 = vmatprep.subr.bf16.mxu0 %v24763_v1  ;;  %18447 = vmatprep.subr.bf16.mxu1 %v24763_v1 }
 0x223   :  { %18428 = vmatpush3.bf16.xpose.msra.mxu0 %v20829_v52  ;;  %18448 = vmatpush3.bf16.xpose.msra.mxu1 %v20830_v53  ;;  %v20866_v52 = vld [vmem:[#allocation7 + $0x4c8] sm:$0xff]   ;;  %v20867_v53 = vld [vmem:[#allocation7 + $0x480] sm:$0xff]  }
 0x224   :  { %18429 = vmatprep.subr.bf16.mxu0 %v24763_v1  ;;  %18449 = vmatprep.subr.bf16.mxu1 %v24763_v1 }
 0x22b   :  { %18430 = vmatpush3.bf16.xpose.msra.mxu0 %v20831_v54  ;;  %18450 = vmatpush3.bf16.xpose.msra.mxu1 %v20832_v55  ;;  %v20868_v54 = vld [vmem:[#allocation7 + $0x4c0] sm:$0xff]   ;;  %v20869_v55 = vld [vmem:[#allocation7 + $0x538] sm:$0xff]  }
 0x22c   :  { %18431 = vmatprep.subr.bf16.mxu0 %v24763_v1  ;;  %18451 = vmatprep.subr.bf16.mxu1 %v24763_v1 }
 0x233   :  { %18432 = vmatpush3.bf16.xpose.msra.mxu0 %v20833_v56  ;;  %18452 = vmatpush3.bf16.xpose.msra.mxu1 %v20834_v57  ;;  %v20870_v56 = vld [vmem:[#allocation7 + $0x578] sm:$0xff]  }
 0x234   :  { %18433 = vmatprep.subr.bf16.mxu0 %v24763_v1  ;;  %18453 = vmatprep.subr.bf16.mxu1 %v24763_v1 }
 0x23b   :  { %18434 = vmatpush3.bf16.xpose.msra.mxu0 %v20835_v58  ;;  %18454 = vmatpush3.bf16.xpose.msra.mxu1 %v20836_v59  ;;  %v22178_v58 = vld [vmem:[#allocation5] sm:$0xff]  }
 0x23c   :  { %18459 = vmatprep.subr.bf16.mxu0 %v24763_v1  ;;  %18479 = vmatprep.subr.bf16.mxu1 %v24763_v1 }
 0x242   :  { %v2940_v62 = vpop.f32.mrf.mxu0  ;;  %18436 = vmatmul.mubr.bf16.vlgmr.msra.gmra.mxu0 %v22098_v34  ;;  %v3029_v0 = vpop.f32.mrf.mxu1  ;;  %18456 = vmatmul.mubr.bf16.vlgmr.msra.gmra.mxu1 %v22098_v34 }
 0x243   :  { %v13558_v63 = vmul.f32 %v22014_v7, %v2940_v62  ;;  %18460 = vmatpush3.bf16.xpose.msra.mxu0 %v20837_v60  ;;  %18480 = vmatpush3.bf16.xpose.msra.mxu1 %v20838_v61  ;;  %v13560_v3 = vmul.f32 %v22014_v7, %v3029_v0  ;;  %v20871_v0 = vld [vmem:[#allocation7 + $0x530] sm:$0xff]  }
 0x244   :  { %v18317_v2 = vpop.f32.mrf.mxu0  ;;  %18461 = vmatprep.subr.bf16.mxu0 %v24763_v1  ;;  %v18337_v4 = vpop.f32.mrf.mxu1  ;;  %18481 = vmatprep.subr.bf16.mxu1 %v24763_v1 }
 0x245   :  { %13830 = vadd.xlane.f32.xlu0 %v13558_v63  ;;  %18475 = vmatprep.mubr.msk.bf16.mxu0 %vm21861_vm0, %v24763_v1 }
 0x246   :  { %v2943_v6 = vpop.f32.mrf.mxu0  ;;  %18495 = vmatprep.mubr.msk.bf16.mxu1 %vm21861_vm0, %v24763_v1  ;;  %v3032_v10 = vpop.f32.mrf.mxu1 }
 0x247   :  { %v13559_v11 = vmul.f32 %v22021_v12, %v2943_v6  ;;  %v13561_v9 = vmul.f32 %v22021_v12, %v3032_v10 }
 0x248   :  { %v18318_v13 = vpop.f32.mrf.mxu0  ;;  %v18338_v14 = vpop.f32.mrf.mxu1 }
 0x249   :  { %13832 = vadd.xlane.f32.xlu1 %v13559_v11  ;;  %13834 = vadd.xlane.f32.xlu0 %v13560_v3  ;;  %v20872_v3 = vld [vmem:[#allocation7 + $0x570] sm:$0xff]   ;;  %v20873_v11 = vld [vmem:[#allocation7 + $0x528] sm:$0xff]   ;;  %v20875_v14 = vld [vmem:[#allocation7 + $0x520] sm:$0xff]  }
 0x24a   :  { %v20874_v13 = vld [vmem:[#allocation7 + $0x568] sm:$0xff]  }
 0x24b   :  { %18462 = vmatpush3.bf16.xpose.msra.mxu0 %v20839_v5  ;;  %18482 = vmatpush3.bf16.xpose.msra.mxu1 %v20840_v8 }
 0x24c   :  { %18463 = vmatprep.subr.bf16.mxu0 %v24763_v1  ;;  %18483 = vmatprep.subr.bf16.mxu1 %v24763_v1 }
 0x24d   :  { %13836 = vadd.xlane.f32.xlu1 %v13561_v9  ;;  %v20876_v9 = vld [vmem:[#allocation7 + $0x560] sm:$0xff]  }
 0x253   :  { %18464 = vmatpush3.bf16.xpose.msra.mxu0 %v20841_v15  ;;  %18484 = vmatpush3.bf16.xpose.msra.mxu1 %v20842_v16  ;;  %v20877_v15 = vld [vmem:[#allocation7 + $0x518] sm:$0xff]  }
 0x254   :  { %18465 = vmatprep.subr.bf16.mxu0 %v24763_v1  ;;  %18485 = vmatprep.subr.bf16.mxu1 %v24763_v1  ;;  %v20878_v16 = vld [vmem:[#allocation7 + $0x558] sm:$0xff]  }
 0x25b   :  { %18466 = vmatpush3.bf16.xpose.msra.mxu0 %v20843_v17  ;;  %18486 = vmatpush3.bf16.xpose.msra.mxu1 %v20844_v18  ;;  %v20879_v17 = vld [vmem:[#allocation7 + $0x510] sm:$0xff]  }
 0x25c   :  { %18467 = vmatprep.subr.bf16.mxu0 %v24763_v1  ;;  %18487 = vmatprep.subr.bf16.mxu1 %v24763_v1  ;;  %v20880_v18 = vld [vmem:[#allocation7 + $0x550] sm:$0xff]  }
 0x263   :  { %18468 = vmatpush3.bf16.xpose.msra.mxu0 %v20845_v19  ;;  %18488 = vmatpush3.bf16.xpose.msra.mxu1 %v20846_v20  ;;  %v20881_v19 = vld [vmem:[#allocation7 + $0x508] sm:$0xff]  }
 0x264   :  { %18469 = vmatprep.subr.bf16.mxu0 %v24763_v1  ;;  %18489 = vmatprep.subr.bf16.mxu1 %v24763_v1  ;;  %v20882_v20 = vld [vmem:[#allocation7 + $0x548] sm:$0xff]  }
 0x26b   :  { %18470 = vmatpush3.bf16.xpose.msra.mxu0 %v20847_v21  ;;  %18490 = vmatpush3.bf16.xpose.msra.mxu1 %v20848_v22  ;;  %v20883_v21 = vld [vmem:[#allocation7 + $0x500] sm:$0xff]  }
 0x26c   :  { %18471 = vmatprep.subr.bf16.mxu0 %v24763_v1  ;;  %18491 = vmatprep.subr.bf16.mxu1 %v24763_v1  ;;  %v20884_v22 = vld [vmem:[#allocation7 + $0x540] sm:$0xff]  }
 0x273   :  { %18472 = vmatpush3.bf16.xpose.msra.mxu0 %v20849_v23  ;;  %18492 = vmatpush3.bf16.xpose.msra.mxu1 %v20850_v24  ;;  %v20885_v23 = vld [vmem:[#allocation7 + $0x5b8] sm:$0xff]  }
 0x274   :  { %18473 = vmatprep.subr.bf16.mxu0 %v24763_v1  ;;  %18493 = vmatprep.subr.bf16.mxu1 %v24763_v1  ;;  %v20886_v24 = vld [vmem:[#allocation7 + $0x5f8] sm:$0xff]  }
 0x27b   :  { %18474 = vmatpush3.bf16.xpose.msra.mxu0 %v20851_v25  ;;  %18494 = vmatpush3.bf16.xpose.msra.mxu1 %v20852_v26 }
 0x27c   :  { %18499 = vmatprep.subr.bf16.mxu0 %v24763_v1  ;;  %18519 = vmatprep.subr.bf16.mxu1 %v24763_v1 }
 0x282   :  { %v3118_v29 = vpop.f32.mrf.mxu0  ;;  %18476 = vmatmul.mubr.bf16.vlgmr.msra.gmra.mxu0 %v22098_v34  ;;  %v3207_v31 = vpop.f32.mrf.mxu1  ;;  %18496 = vmatmul.mubr.bf16.vlgmr.msra.gmra.mxu1 %v22098_v34 }
 0x283   :  { %v13562_v30 = vmul.f32 %v22014_v7, %v3118_v29  ;;  %18500 = vmatpush3.bf16.xpose.msra.mxu0 %v20853_v27  ;;  %18520 = vmatpush3.bf16.xpose.msra.mxu1 %v20854_v28  ;;  %v13564_v33 = vmul.f32 %v22014_v7, %v3207_v31  ;;  %v20887_v31 = vld [vmem:[#allocation7 + $0x5b0] sm:$0xff]  }
 0x284   :  { %v18357_v32 = vpop.f32.mrf.mxu0  ;;  %18501 = vmatprep.subr.bf16.mxu0 %v24763_v1  ;;  %v18377_v35 = vpop.f32.mrf.mxu1  ;;  %18521 = vmatprep.subr.bf16.mxu1 %v24763_v1 }
 0x285   :  { %13838 = vadd.xlane.f32.xlu0 %v13562_v30  ;;  %18515 = vmatprep.mubr.msk.bf16.mxu0 %vm21861_vm0, %v24763_v1 }
 0x286   :  { %v3121_v37 = vpop.f32.mrf.mxu0  ;;  %18535 = vmatprep.mubr.msk.bf16.mxu1 %vm21861_vm0, %v24763_v1  ;;  %v3210_v34 = vpop.f32.mrf.mxu1 }
 0x287   :  { %v13563_v39 = vmul.f32 %v22021_v12, %v3121_v37  ;;  %v13565_v42 = vmul.f32 %v22021_v12, %v3210_v34 }
 0x288   :  { %v18358_v40 = vpop.f32.mrf.mxu0  ;;  %v18378_v41 = vpop.f32.mrf.mxu1 }
 0x289   :  { %13840 = vadd.xlane.f32.xlu1 %v13563_v39  ;;  %13842 = vadd.xlane.f32.xlu0 %v13564_v33  ;;  %v20888_v33 = vld [vmem:[#allocation7 + $0x5f0] sm:$0xff]   ;;  %v20889_v39 = vld [vmem:[#allocation7 + $0x5a8] sm:$0xff]   ;;  %v20891_v41 = vld [vmem:[#allocation7 + $0x5a0] sm:$0xff]  }
 0x28a   :  { %v20890_v40 = vld [vmem:[#allocation7 + $0x5e8] sm:$0xff]  }
 0x28b   :  { %18502 = vmatpush3.bf16.xpose.msra.mxu0 %v20855_v36  ;;  %18522 = vmatpush3.bf16.xpose.msra.mxu1 %v20856_v38 }
 0x28c   :  { %18503 = vmatprep.subr.bf16.mxu0 %v24763_v1  ;;  %18523 = vmatprep.subr.bf16.mxu1 %v24763_v1 }
 0x28d   :  { %13844 = vadd.xlane.f32.xlu1 %v13565_v42  ;;  %v20892_v42 = vld [vmem:[#allocation7 + $0x5e0] sm:$0xff]  }
 0x293   :  { %18504 = vmatpush3.bf16.xpose.msra.mxu0 %v20857_v43  ;;  %18524 = vmatpush3.bf16.xpose.msra.mxu1 %v20858_v44  ;;  %v20893_v43 = vld [vmem:[#allocation7 + $0x598] sm:$0xff]  }
 0x294   :  { %18505 = vmatprep.subr.bf16.mxu0 %v24763_v1  ;;  %18525 = vmatprep.subr.bf16.mxu1 %v24763_v1  ;;  %v20894_v44 = vld [vmem:[#allocation7 + $0x5d8] sm:$0xff]  }
 0x29b   :  { %18506 = vmatpush3.bf16.xpose.msra.mxu0 %v20859_v45  ;;  %18526 = vmatpush3.bf16.xpose.msra.mxu1 %v20860_v46  ;;  %v20895_v45 = vld [vmem:[#allocation7 + $0x590] sm:$0xff]  }
 0x29c   :  { %18507 = vmatprep.subr.bf16.mxu0 %v24763_v1  ;;  %18527 = vmatprep.subr.bf16.mxu1 %v24763_v1  ;;  %v20896_v46 = vld [vmem:[#allocation7 + $0x5d0] sm:$0xff]  }
 0x2a3   :  { %18508 = vmatpush3.bf16.xpose.msra.mxu0 %v20861_v47  ;;  %18528 = vmatpush3.bf16.xpose.msra.mxu1 %v20862_v48  ;;  %v20897_v47 = vld [vmem:[#allocation7 + $0x588] sm:$0xff]  }
 0x2a4   :  { %18509 = vmatprep.subr.bf16.mxu0 %v24763_v1  ;;  %18529 = vmatprep.subr.bf16.mxu1 %v24763_v1  ;;  %v20898_v48 = vld [vmem:[#allocation7 + $0x5c8] sm:$0xff]  }
 0x2ab   :  { %18510 = vmatpush3.bf16.xpose.msra.mxu0 %v20863_v49  ;;  %18530 = vmatpush3.bf16.xpose.msra.mxu1 %v20864_v50  ;;  %v20899_v49 = vld [vmem:[#allocation7 + $0x580] sm:$0xff]  }
 0x2ac   :  { %18511 = vmatprep.subr.bf16.mxu0 %v24763_v1  ;;  %18531 = vmatprep.subr.bf16.mxu1 %v24763_v1  ;;  %v20900_v50 = vld [vmem:[#allocation7 + $0x5c0] sm:$0xff]  }
 0x2b3   :  { %18512 = vmatpush3.bf16.xpose.msra.mxu0 %v20865_v51  ;;  %18532 = vmatpush3.bf16.xpose.msra.mxu1 %v20866_v52  ;;  %v20901_v51 = vld [vmem:[#allocation7 + $0x638] sm:$0xff]  }
 0x2b4   :  { %18513 = vmatprep.subr.bf16.mxu0 %v24763_v1  ;;  %18533 = vmatprep.subr.bf16.mxu1 %v24763_v1  ;;  %v20902_v52 = vld [vmem:[#allocation7 + $0x678] sm:$0xff]  }
 0x2bb   :  { %18514 = vmatpush3.bf16.xpose.msra.mxu0 %v20867_v53  ;;  %18534 = vmatpush3.bf16.xpose.msra.mxu1 %v20868_v54 }
 0x2bc   :  { %18539 = vmatprep.subr.bf16.mxu0 %v24763_v1  ;;  %18559 = vmatprep.subr.bf16.mxu1 %v24763_v1 }
 0x2c2   :  { %v3296_v57 = vpop.f32.mrf.mxu0  ;;  %18516 = vmatmul.mubr.bf16.vlgmr.msra.gmra.mxu0 %v22178_v58  ;;  %v3385_v60 = vpop.f32.mrf.mxu1  ;;  %18536 = vmatmul.mubr.bf16.vlgmr.msra.gmra.mxu1 %v22178_v58 }
 0x2c3   :  { %v13566_v59 = vmul.f32 %v22014_v7, %v3296_v57  ;;  %18540 = vmatpush3.bf16.xpose.msra.mxu0 %v20869_v55  ;;  %18560 = vmatpush3.bf16.xpose.msra.mxu1 %v20870_v56  ;;  %v13568_v62 = vmul.f32 %v22014_v7, %v3385_v60 }
 0x2c4   :  { %v18397_v61 = vpop.f32.mrf.mxu0  ;;  %18541 = vmatprep.subr.bf16.mxu0 %v24763_v1  ;;  %v18417_v63 = vpop.f32.mrf.mxu1  ;;  %18561 = vmatprep.subr.bf16.mxu1 %v24763_v1 }
 0x2c5   :  { %13846 = vadd.xlane.f32.xlu0 %v13566_v59  ;;  %18555 = vmatprep.mubr.msk.bf16.mxu0 %vm21861_vm0, %v24763_v1 }
 0x2c6   :  { %v3299_v2 = vpop.f32.mrf.mxu0  ;;  %18575 = vmatprep.mubr.msk.bf16.mxu1 %vm21861_vm0, %v24763_v1  ;;  %v3388_v4 = vpop.f32.mrf.mxu1 }
 0x2c7   :  { %v13567_v5 = vmul.f32 %v22021_v12, %v3299_v2  ;;  %v13569_v10 = vmul.f32 %v22021_v12, %v3388_v4  ;;  %v20905_v4 = vld [vmem:[#allocation7 + $0x628] sm:$0xff]  }
 0x2c8   :  { %v18398_v6 = vpop.f32.mrf.mxu0  ;;  %v18418_v8 = vpop.f32.mrf.mxu1 }
 0x2c9   :  { %13848 = vadd.xlane.f32.xlu1 %v13567_v5  ;;  %13850 = vadd.xlane.f32.xlu0 %v13568_v62  ;;  %v20903_v62 = vld [vmem:[#allocation7 + $0x630] sm:$0xff]   ;;  %v20906_v5 = vld [vmem:[#allocation7 + $0x668] sm:$0xff]   ;;  %v20907_v6 = vld [vmem:[#allocation7 + $0x620] sm:$0xff]  }
 0x2ca   :  { %v20908_v8 = vld [vmem:[#allocation7 + $0x660] sm:$0xff]  }
 0x2cb   :  { %18542 = vmatpush3.bf16.xpose.msra.mxu0 %v20871_v0  ;;  %18562 = vmatpush3.bf16.xpose.msra.mxu1 %v20872_v3  ;;  %v20904_v0 = vld [vmem:[#allocation7 + $0x670] sm:$0xff]  }
 0x2cc   :  { %18543 = vmatprep.subr.bf16.mxu0 %v24763_v1  ;;  %18563 = vmatprep.subr.bf16.mxu1 %v24763_v1 }
 0x2cd   :  { %13852 = vadd.xlane.f32.xlu1 %v13569_v10  ;;  %v20909_v10 = vld [vmem:[#allocation7 + $0x618] sm:$0xff]  }
 0x2d3   :  { %18544 = vmatpush3.bf16.xpose.msra.mxu0 %v20873_v11  ;;  %18564 = vmatpush3.bf16.xpose.msra.mxu1 %v20874_v13  ;;  %v20910_v11 = vld [vmem:[#allocation7 + $0x658] sm:$0xff]   ;;  %v20911_v13 = vld [vmem:[#allocation7 + $0x610] sm:$0xff]  }
 0x2d4   :  { %18545 = vmatprep.subr.bf16.mxu0 %v24763_v1  ;;  %18565 = vmatprep.subr.bf16.mxu1 %v24763_v1 }
 0x2db   :  { %18546 = vmatpush3.bf16.xpose.msra.mxu0 %v20875_v14  ;;  %18566 = vmatpush3.bf16.xpose.msra.mxu1 %v20876_v9  ;;  %v20912_v14 = vld [vmem:[#allocation7 + $0x650] sm:$0xff]   ;;  %v20913_v9 = vld [vmem:[#allocation7 + $0x608] sm:$0xff]  }
 0x2dc   :  { %18547 = vmatprep.subr.bf16.mxu0 %v24763_v1  ;;  %18567 = vmatprep.subr.bf16.mxu1 %v24763_v1 }
 0x2e3   :  { %18548 = vmatpush3.bf16.xpose.msra.mxu0 %v20877_v15  ;;  %18568 = vmatpush3.bf16.xpose.msra.mxu1 %v20878_v16  ;;  %v20914_v15 = vld [vmem:[#allocation7 + $0x648] sm:$0xff]   ;;  %v20915_v16 = vld [vmem:[#allocation7 + $0x600] sm:$0xff]  }
 0x2e4   :  { %18549 = vmatprep.subr.bf16.mxu0 %v24763_v1  ;;  %18569 = vmatprep.subr.bf16.mxu1 %v24763_v1 }
 0x2eb   :  { %18550 = vmatpush3.bf16.xpose.msra.mxu0 %v20879_v17  ;;  %18570 = vmatpush3.bf16.xpose.msra.mxu1 %v20880_v18  ;;  %v20916_v17 = vld [vmem:[#allocation7 + $0x640] sm:$0xff]   ;;  %v20917_v18 = vld [vmem:[#allocation7 + $0x6b8] sm:$0xff]  }
 0x2ec   :  { %18551 = vmatprep.subr.bf16.mxu0 %v24763_v1  ;;  %18571 = vmatprep.subr.bf16.mxu1 %v24763_v1 }
 0x2f3   :  { %18552 = vmatpush3.bf16.xpose.msra.mxu0 %v20881_v19  ;;  %18572 = vmatpush3.bf16.xpose.msra.mxu1 %v20882_v20  ;;  %v20918_v19 = vld [vmem:[#allocation7 + $0x6f8] sm:$0xff]  }
 0x2f4   :  { %18553 = vmatprep.subr.bf16.mxu0 %v24763_v1  ;;  %18573 = vmatprep.subr.bf16.mxu1 %v24763_v1 }
 0x2fb   :  { %18554 = vmatpush3.bf16.xpose.msra.mxu0 %v20883_v21  ;;  %18574 = vmatpush3.bf16.xpose.msra.mxu1 %v20884_v22  ;;  %v22258_v21 = vld [vmem:[#allocation5] sm:$0xff]  }
 0x2fc   :  { %18579 = vmatprep.subr.bf16.mxu0 %v24763_v1  ;;  %18599 = vmatprep.subr.bf16.mxu1 %v24763_v1 }
 0x302   :  { %v3474_v25 = vpop.f32.mrf.mxu0  ;;  %18556 = vmatmul.mubr.bf16.vlgmr.msra.gmra.mxu0 %v22178_v58  ;;  %v3563_v27 = vpop.f32.mrf.mxu1  ;;  %18576 = vmatmul.mubr.bf16.vlgmr.msra.gmra.mxu1 %v22178_v58 }
 0x303   :  { %v13570_v26 = vmul.f32 %v22014_v7, %v3474_v25  ;;  %18580 = vmatpush3.bf16.xpose.msra.mxu0 %v20885_v23  ;;  %18600 = vmatpush3.bf16.xpose.msra.mxu1 %v20886_v24  ;;  %v13572_v29 = vmul.f32 %v22014_v7, %v3563_v27 }
 0x304   :  { %v18437_v28 = vpop.f32.mrf.mxu0  ;;  %18581 = vmatprep.subr.bf16.mxu0 %v24763_v1  ;;  %v18457_v30 = vpop.f32.mrf.mxu1  ;;  %18601 = vmatprep.subr.bf16.mxu1 %v24763_v1 }
 0x305   :  { %13854 = vadd.xlane.f32.xlu0 %v13570_v26  ;;  %18595 = vmatprep.mubr.msk.bf16.mxu0 %vm21861_vm0, %v24763_v1  ;;  %v20919_v30 = vld [vmem:[#allocation7 + $0x6b0] sm:$0xff]  }
 0x306   :  { %v3477_v32 = vpop.f32.mrf.mxu0  ;;  %18615 = vmatprep.mubr.msk.bf16.mxu1 %vm21861_vm0, %v24763_v1  ;;  %v3566_v35 = vpop.f32.mrf.mxu1 }
 0x307   :  { %v13571_v36 = vmul.f32 %v22021_v12, %v3477_v32  ;;  %v13573_v34 = vmul.f32 %v22021_v12, %v3566_v35  ;;  %v20920_v32 = vld [vmem:[#allocation7 + $0x6f0] sm:$0xff]  }
 0x308   :  { %v18438_v37 = vpop.f32.mrf.mxu0  ;;  %v18458_v38 = vpop.f32.mrf.mxu1 }
 0x309   :  { %13856 = vadd.xlane.f32.xlu1 %v13571_v36  ;;  %13858 = vadd.xlane.f32.xlu0 %v13572_v29  ;;  %v20921_v36 = vld [vmem:[#allocation7 + $0x6a8] sm:$0xff]   ;;  %v20923_v38 = vld [vmem:[#allocation7 + $0x6a0] sm:$0xff]  }
 0x30a   :  { %v20922_v37 = vld [vmem:[#allocation7 + $0x6e8] sm:$0xff]  }
 0x30b   :  { %18582 = vmatpush3.bf16.xpose.msra.mxu0 %v20887_v31  ;;  %18602 = vmatpush3.bf16.xpose.msra.mxu1 %v20888_v33 }
 0x30c   :  { %18583 = vmatprep.subr.bf16.mxu0 %v24763_v1  ;;  %18603 = vmatprep.subr.bf16.mxu1 %v24763_v1 }
 0x30d   :  { %13860 = vadd.xlane.f32.xlu1 %v13573_v34  ;;  %v20924_v34 = vld [vmem:[#allocation7 + $0x6e0] sm:$0xff]  }
 0x313   :  { %18584 = vmatpush3.bf16.xpose.msra.mxu0 %v20889_v39  ;;  %18604 = vmatpush3.bf16.xpose.msra.mxu1 %v20890_v40  ;;  %v20925_v39 = vld [vmem:[#allocation7 + $0x698] sm:$0xff]  }
 0x314   :  { %18585 = vmatprep.subr.bf16.mxu0 %v24763_v1  ;;  %18605 = vmatprep.subr.bf16.mxu1 %v24763_v1  ;;  %v20926_v40 = vld [vmem:[#allocation7 + $0x6d8] sm:$0xff]  }
 0x31b   :  { %18586 = vmatpush3.bf16.xpose.msra.mxu0 %v20891_v41  ;;  %18606 = vmatpush3.bf16.xpose.msra.mxu1 %v20892_v42  ;;  %v20927_v41 = vld [vmem:[#allocation7 + $0x690] sm:$0xff]  }
 0x31c   :  { %18587 = vmatprep.subr.bf16.mxu0 %v24763_v1  ;;  %18607 = vmatprep.subr.bf16.mxu1 %v24763_v1  ;;  %v20928_v42 = vld [vmem:[#allocation7 + $0x6d0] sm:$0xff]  }
 0x323   :  { %18588 = vmatpush3.bf16.xpose.msra.mxu0 %v20893_v43  ;;  %18608 = vmatpush3.bf16.xpose.msra.mxu1 %v20894_v44  ;;  %v20929_v43 = vld [vmem:[#allocation7 + $0x688] sm:$0xff]  }
 0x324   :  { %18589 = vmatprep.subr.bf16.mxu0 %v24763_v1  ;;  %18609 = vmatprep.subr.bf16.mxu1 %v24763_v1  ;;  %v20930_v44 = vld [vmem:[#allocation7 + $0x6c8] sm:$0xff]  }
 0x32b   :  { %18590 = vmatpush3.bf16.xpose.msra.mxu0 %v20895_v45  ;;  %18610 = vmatpush3.bf16.xpose.msra.mxu1 %v20896_v46  ;;  %v20931_v45 = vld [vmem:[#allocation7 + $0x680] sm:$0xff]  }
 0x32c   :  { %18591 = vmatprep.subr.bf16.mxu0 %v24763_v1  ;;  %18611 = vmatprep.subr.bf16.mxu1 %v24763_v1  ;;  %v20932_v46 = vld [vmem:[#allocation7 + $0x6c0] sm:$0xff]  }
 0x333   :  { %18592 = vmatpush3.bf16.xpose.msra.mxu0 %v20897_v47  ;;  %18612 = vmatpush3.bf16.xpose.msra.mxu1 %v20898_v48  ;;  %v20933_v47 = vld [vmem:[#allocation7 + $0x738] sm:$0xff]  }
 0x334   :  { %18593 = vmatprep.subr.bf16.mxu0 %v24763_v1  ;;  %18613 = vmatprep.subr.bf16.mxu1 %v24763_v1  ;;  %v20934_v48 = vld [vmem:[#allocation7 + $0x778] sm:$0xff]  }
 0x33b   :  { %18594 = vmatpush3.bf16.xpose.msra.mxu0 %v20899_v49  ;;  %18614 = vmatpush3.bf16.xpose.msra.mxu1 %v20900_v50 }
 0x33c   :  { %18619 = vmatprep.subr.bf16.mxu0 %v24763_v1  ;;  %18639 = vmatprep.subr.bf16.mxu1 %v24763_v1 }
 0x342   :  { %v3652_v53 = vpop.f32.mrf.mxu0  ;;  %18596 = vmatmul.mubr.bf16.vlgmr.msra.gmra.mxu0 %v22178_v58  ;;  %v3741_v55 = vpop.f32.mrf.mxu1  ;;  %18616 = vmatmul.mubr.bf16.vlgmr.msra.gmra.mxu1 %v22178_v58 }
 0x343   :  { %v13574_v54 = vmul.f32 %v22014_v7, %v3652_v53  ;;  %18620 = vmatpush3.bf16.xpose.msra.mxu0 %v20901_v51  ;;  %18640 = vmatpush3.bf16.xpose.msra.mxu1 %v20902_v52  ;;  %v13576_v57 = vmul.f32 %v22014_v7, %v3741_v55 }
 0x344   :  { %v18477_v56 = vpop.f32.mrf.mxu0  ;;  %18621 = vmatprep.subr.bf16.mxu0 %v24763_v1  ;;  %v18497_v59 = vpop.f32.mrf.mxu1  ;;  %18641 = vmatprep.subr.bf16.mxu1 %v24763_v1 }
 0x345   :  { %13862 = vadd.xlane.f32.xlu0 %v13574_v54  ;;  %18635 = vmatprep.mubr.msk.bf16.mxu0 %vm21861_vm0, %v24763_v1  ;;  %v20935_v59 = vld [vmem:[#allocation7 + $0x730] sm:$0xff]  }
 0x346   :  { %v3655_v60 = vpop.f32.mrf.mxu0  ;;  %18655 = vmatprep.mubr.msk.bf16.mxu1 %vm21861_vm0, %v24763_v1  ;;  %v3744_v61 = vpop.f32.mrf.mxu1 }
 0x347   :  { %v13575_v58 = vmul.f32 %v22021_v12, %v3655_v60  ;;  %v13577_v3 = vmul.f32 %v22021_v12, %v3744_v61  ;;  %v20936_v61 = vld [vmem:[#allocation7 + $0x770] sm:$0xff]  }
 0x348   :  { %v18478_v63 = vpop.f32.mrf.mxu0  ;;  %v18498_v2 = vpop.f32.mrf.mxu1 }
 0x349   :  { %13864 = vadd.xlane.f32.xlu1 %v13575_v58  ;;  %13866 = vadd.xlane.f32.xlu0 %v13576_v57  ;;  %v20937_v63 = vld [vmem:[#allocation7 + $0x728] sm:$0xff]   ;;  %v20939_v2 = vld [vmem:[#allocation7 + $0x720] sm:$0xff]  }
 0x34b   :  { %18622 = vmatpush3.bf16.xpose.msra.mxu0 %v20903_v62  ;;  %18642 = vmatpush3.bf16.xpose.msra.mxu1 %v20904_v0  ;;  %v20938_v0 = vld [vmem:[#allocation7 + $0x768] sm:$0xff]  }
 0x34c   :  { %18623 = vmatprep.subr.bf16.mxu0 %v24763_v1  ;;  %18643 = vmatprep.subr.bf16.mxu1 %v24763_v1 }
 0x34d   :  { %13868 = vadd.xlane.f32.xlu1 %v13577_v3  ;;  %v20940_v3 = vld [vmem:[#allocation7 + $0x760] sm:$0xff]  }
 0x353   :  { %18624 = vmatpush3.bf16.xpose.msra.mxu0 %v20905_v4  ;;  %18644 = vmatpush3.bf16.xpose.msra.mxu1 %v20906_v5  ;;  %v20941_v4 = vld [vmem:[#allocation7 + $0x718] sm:$0xff]  }
 0x354   :  { %18625 = vmatprep.subr.bf16.mxu0 %v24763_v1  ;;  %18645 = vmatprep.subr.bf16.mxu1 %v24763_v1  ;;  %v20942_v5 = vld [vmem:[#allocation7 + $0x758] sm:$0xff]  }
 0x35b   :  { %18626 = vmatpush3.bf16.xpose.msra.mxu0 %v20907_v6  ;;  %18646 = vmatpush3.bf16.xpose.msra.mxu1 %v20908_v8  ;;  %v20943_v6 = vld [vmem:[#allocation7 + $0x710] sm:$0xff]  }
 0x35c   :  { %18627 = vmatprep.subr.bf16.mxu0 %v24763_v1  ;;  %18647 = vmatprep.subr.bf16.mxu1 %v24763_v1  ;;  %v20944_v8 = vld [vmem:[#allocation7 + $0x750] sm:$0xff]  }
 0x363   :  { %18628 = vmatpush3.bf16.xpose.msra.mxu0 %v20909_v10  ;;  %18648 = vmatpush3.bf16.xpose.msra.mxu1 %v20910_v11  ;;  %v20945_v10 = vld [vmem:[#allocation7 + $0x708] sm:$0xff]  }
 0x364   :  { %18629 = vmatprep.subr.bf16.mxu0 %v24763_v1  ;;  %18649 = vmatprep.subr.bf16.mxu1 %v24763_v1  ;;  %v20946_v11 = vld [vmem:[#allocation7 + $0x748] sm:$0xff]  }
 0x36b   :  { %18630 = vmatpush3.bf16.xpose.msra.mxu0 %v20911_v13  ;;  %18650 = vmatpush3.bf16.xpose.msra.mxu1 %v20912_v14  ;;  %v20947_v13 = vld [vmem:[#allocation7 + $0x700] sm:$0xff]  }
 0x36c   :  { %18631 = vmatprep.subr.bf16.mxu0 %v24763_v1  ;;  %18651 = vmatprep.subr.bf16.mxu1 %v24763_v1  ;;  %v20948_v14 = vld [vmem:[#allocation7 + $0x740] sm:$0xff]  }
 0x373   :  { %18632 = vmatpush3.bf16.xpose.msra.mxu0 %v20913_v9  ;;  %18652 = vmatpush3.bf16.xpose.msra.mxu1 %v20914_v15  ;;  %v20949_v9 = vld [vmem:[#allocation7 + $0x7b8] sm:$0xff]  }
 0x374   :  { %18633 = vmatprep.subr.bf16.mxu0 %v24763_v1  ;;  %18653 = vmatprep.subr.bf16.mxu1 %v24763_v1  ;;  %v20950_v15 = vld [vmem:[#allocation7 + $0x7f8] sm:$0xff]  }
 0x37b   :  { %18634 = vmatpush3.bf16.xpose.msra.mxu0 %v20915_v16  ;;  %18654 = vmatpush3.bf16.xpose.msra.mxu1 %v20916_v17 }
 0x37c   :  { %18659 = vmatprep.subr.bf16.mxu0 %v24763_v1  ;;  %18679 = vmatprep.subr.bf16.mxu1 %v24763_v1 }
 0x382   :  { %v3830_v20 = vpop.f32.mrf.mxu0  ;;  %18636 = vmatmul.mubr.bf16.vlgmr.msra.gmra.mxu0 %v22258_v21  ;;  %v3919_v23 = vpop.f32.mrf.mxu1  ;;  %18656 = vmatmul.mubr.bf16.vlgmr.msra.gmra.mxu1 %v22258_v21 }
 0x383   :  { %v13578_v22 = vmul.f32 %v22014_v7, %v3830_v20  ;;  %18660 = vmatpush3.bf16.xpose.msra.mxu0 %v20917_v18  ;;  %18680 = vmatpush3.bf16.xpose.msra.mxu1 %v20918_v19  ;;  %v13580_v25 = vmul.f32 %v22014_v7, %v3919_v23 }
 0x384   :  { %v18517_v24 = vpop.f32.mrf.mxu0  ;;  %18661 = vmatprep.subr.bf16.mxu0 %v24763_v1  ;;  %v18537_v26 = vpop.f32.mrf.mxu1  ;;  %18681 = vmatprep.subr.bf16.mxu1 %v24763_v1 }
 0x385   :  { %13870 = vadd.xlane.f32.xlu0 %v13578_v22  ;;  %18675 = vmatprep.mubr.msk.bf16.mxu0 %vm21861_vm0, %v24763_v1  ;;  %v20951_v26 = vld [vmem:[#allocation7 + $0x7b0] sm:$0xff]  }
 0x386   :  { %v3833_v27 = vpop.f32.mrf.mxu0  ;;  %18695 = vmatprep.mubr.msk.bf16.mxu1 %vm21861_vm0, %v24763_v1  ;;  %v3922_v28 = vpop.f32.mrf.mxu1 }
 0x387   :  { %v13579_v29 = vmul.f32 %v22021_v12, %v3833_v27  ;;  %v13581_v35 = vmul.f32 %v22021_v12, %v3922_v28  ;;  %v20952_v28 = vld [vmem:[#allocation7 + $0x7f0] sm:$0xff]  }
 0x388   :  { %v18518_v31 = vpop.f32.mrf.mxu0  ;;  %v18538_v33 = vpop.f32.mrf.mxu1 }
 0x389   :  { %13872 = vadd.xlane.f32.xlu1 %v13579_v29  ;;  %13874 = vadd.xlane.f32.xlu0 %v13580_v25  ;;  %v20953_v31 = vld [vmem:[#allocation7 + $0x7a8] sm:$0xff]   ;;  %v20955_v33 = vld [vmem:[#allocation7 + $0x7a0] sm:$0xff]  }
 0x38b   :  { %18662 = vmatpush3.bf16.xpose.msra.mxu0 %v20919_v30  ;;  %18682 = vmatpush3.bf16.xpose.msra.mxu1 %v20920_v32  ;;  %v20954_v32 = vld [vmem:[#allocation7 + $0x7e8] sm:$0xff]  }
 0x38c   :  { %18663 = vmatprep.subr.bf16.mxu0 %v24763_v1  ;;  %18683 = vmatprep.subr.bf16.mxu1 %v24763_v1 }
 0x38d   :  { %13876 = vadd.xlane.f32.xlu1 %v13581_v35  ;;  %v20956_v35 = vld [vmem:[#allocation7 + $0x7e0] sm:$0xff]  }
 0x393   :  { %18664 = vmatpush3.bf16.xpose.msra.mxu0 %v20921_v36  ;;  %18684 = vmatpush3.bf16.xpose.msra.mxu1 %v20922_v37  ;;  %v20957_v36 = vld [vmem:[#allocation7 + $0x798] sm:$0xff]  }
 0x394   :  { %18665 = vmatprep.subr.bf16.mxu0 %v24763_v1  ;;  %18685 = vmatprep.subr.bf16.mxu1 %v24763_v1  ;;  %v20958_v37 = vld [vmem:[#allocation7 + $0x7d8] sm:$0xff]  }
 0x39b   :  { %18666 = vmatpush3.bf16.xpose.msra.mxu0 %v20923_v38  ;;  %18686 = vmatpush3.bf16.xpose.msra.mxu1 %v20924_v34  ;;  %v20959_v38 = vld [vmem:[#allocation7 + $0x790] sm:$0xff]  }
 0x39c   :  { %18667 = vmatprep.subr.bf16.mxu0 %v24763_v1  ;;  %18687 = vmatprep.subr.bf16.mxu1 %v24763_v1  ;;  %v20960_v34 = vld [vmem:[#allocation7 + $0x7d0] sm:$0xff]  }
 0x3a3   :  { %18668 = vmatpush3.bf16.xpose.msra.mxu0 %v20925_v39  ;;  %18688 = vmatpush3.bf16.xpose.msra.mxu1 %v20926_v40  ;;  %v20961_v39 = vld [vmem:[#allocation7 + $0x788] sm:$0xff]  }
 0x3a4   :  { %18669 = vmatprep.subr.bf16.mxu0 %v24763_v1  ;;  %18689 = vmatprep.subr.bf16.mxu1 %v24763_v1  ;;  %v20962_v40 = vld [vmem:[#allocation7 + $0x7c8] sm:$0xff]  }
 0x3ab   :  { %18670 = vmatpush3.bf16.xpose.msra.mxu0 %v20927_v41  ;;  %18690 = vmatpush3.bf16.xpose.msra.mxu1 %v20928_v42  ;;  %v20963_v41 = vld [vmem:[#allocation7 + $0x780] sm:$0xff]  }
 0x3ac   :  { %18671 = vmatprep.subr.bf16.mxu0 %v24763_v1  ;;  %18691 = vmatprep.subr.bf16.mxu1 %v24763_v1  ;;  %v20964_v42 = vld [vmem:[#allocation7 + $0x7c0] sm:$0xff]  }
 0x3b3   :  { %18672 = vmatpush3.bf16.xpose.msra.mxu0 %v20929_v43  ;;  %18692 = vmatpush3.bf16.xpose.msra.mxu1 %v20930_v44  ;;  %v20965_v43 = vld [vmem:[#allocation7 + $0x838] sm:$0xff]  }
 0x3b4   :  { %18673 = vmatprep.subr.bf16.mxu0 %v24763_v1  ;;  %18693 = vmatprep.subr.bf16.mxu1 %v24763_v1  ;;  %v20966_v44 = vld [vmem:[#allocation7 + $0x878] sm:$0xff]  }
 0x3bb   :  { %18674 = vmatpush3.bf16.xpose.msra.mxu0 %v20931_v45  ;;  %18694 = vmatpush3.bf16.xpose.msra.mxu1 %v20932_v46 }
 0x3bc   :  { %18699 = vmatprep.subr.bf16.mxu0 %v24763_v1  ;;  %18719 = vmatprep.subr.bf16.mxu1 %v24763_v1 }
 0x3c2   :  { %v4008_v49 = vpop.f32.mrf.mxu0  ;;  %18676 = vmatmul.mubr.bf16.vlgmr.msra.gmra.mxu0 %v22258_v21  ;;  %v4097_v51 = vpop.f32.mrf.mxu1  ;;  %18696 = vmatmul.mubr.bf16.vlgmr.msra.gmra.mxu1 %v22258_v21 }
 0x3c3   :  { %v13582_v50 = vmul.f32 %v22014_v7, %v4008_v49  ;;  %18700 = vmatpush3.bf16.xpose.msra.mxu0 %v20933_v47  ;;  %18720 = vmatpush3.bf16.xpose.msra.mxu1 %v20934_v48  ;;  %v13584_v53 = vmul.f32 %v22014_v7, %v4097_v51 }
 0x3c4   :  { %v18557_v52 = vpop.f32.mrf.mxu0  ;;  %18701 = vmatprep.subr.bf16.mxu0 %v24763_v1  ;;  %v18577_v54 = vpop.f32.mrf.mxu1  ;;  %18721 = vmatprep.subr.bf16.mxu1 %v24763_v1 }
 0x3c5   :  { %13878 = vadd.xlane.f32.xlu0 %v13582_v50  ;;  %18715 = vmatprep.mubr.msk.bf16.mxu0 %vm21861_vm0, %v24763_v1  ;;  %v20967_v54 = vld [vmem:[#allocation7 + $0x830] sm:$0xff]  }
 0x3c6   :  { %v4011_v55 = vpop.f32.mrf.mxu0  ;;  %18735 = vmatprep.mubr.msk.bf16.mxu1 %vm21861_vm0, %v24763_v1  ;;  %v4100_v56 = vpop.f32.mrf.mxu1 }
 0x3c7   :  { %v13583_v57 = vmul.f32 %v22021_v12, %v4011_v55  ;;  %v13585_v62 = vmul.f32 %v22021_v12, %v4100_v56  ;;  %v20968_v56 = vld [vmem:[#allocation7 + $0x870] sm:$0xff]  }
 0x3c8   :  { %v18558_v60 = vpop.f32.mrf.mxu0  ;;  %v18578_v58 = vpop.f32.mrf.mxu1 }
 0x3c9   :  { %13880 = vadd.xlane.f32.xlu1 %v13583_v57  ;;  %13882 = vadd.xlane.f32.xlu0 %v13584_v53  ;;  %v20969_v60 = vld [vmem:[#allocation7 + $0x828] sm:$0xff]   ;;  %v20971_v58 = vld [vmem:[#allocation7 + $0x820] sm:$0xff]  }
 0x3cb   :  { %18702 = vmatpush3.bf16.xpose.msra.mxu0 %v20935_v59  ;;  %18722 = vmatpush3.bf16.xpose.msra.mxu1 %v20936_v61  ;;  %v20970_v61 = vld [vmem:[#allocation7 + $0x868] sm:$0xff]  }
 0x3cc   :  { %18703 = vmatprep.subr.bf16.mxu0 %v24763_v1  ;;  %18723 = vmatprep.subr.bf16.mxu1 %v24763_v1 }
 0x3cd   :  { %13884 = vadd.xlane.f32.xlu1 %v13585_v62  ;;  %v20972_v62 = vld [vmem:[#allocation7 + $0x860] sm:$0xff]  }
 0x3d3   :  { %18704 = vmatpush3.bf16.xpose.msra.mxu0 %v20937_v63  ;;  %18724 = vmatpush3.bf16.xpose.msra.mxu1 %v20938_v0  ;;  %v20973_v63 = vld [vmem:[#allocation7 + $0x818] sm:$0xff]  }
 0x3d4   :  { %18705 = vmatprep.subr.bf16.mxu0 %v24763_v1  ;;  %18725 = vmatprep.subr.bf16.mxu1 %v24763_v1  ;;  %v20974_v0 = vld [vmem:[#allocation7 + $0x858] sm:$0xff]  }
 0x3db   :  { %18706 = vmatpush3.bf16.xpose.msra.mxu0 %v20939_v2  ;;  %18726 = vmatpush3.bf16.xpose.msra.mxu1 %v20940_v3  ;;  %v20975_v2 = vld [vmem:[#allocation7 + $0x810] sm:$0xff]  }
 0x3dc   :  { %18707 = vmatprep.subr.bf16.mxu0 %v24763_v1  ;;  %18727 = vmatprep.subr.bf16.mxu1 %v24763_v1  ;;  %v20976_v3 = vld [vmem:[#allocation7 + $0x850] sm:$0xff]  }
 0x3e3   :  { %18708 = vmatpush3.bf16.xpose.msra.mxu0 %v20941_v4  ;;  %18728 = vmatpush3.bf16.xpose.msra.mxu1 %v20942_v5  ;;  %v20977_v4 = vld [vmem:[#allocation7 + $0x808] sm:$0xff]  }
 0x3e4   :  { %18709 = vmatprep.subr.bf16.mxu0 %v24763_v1  ;;  %18729 = vmatprep.subr.bf16.mxu1 %v24763_v1  ;;  %v20978_v5 = vld [vmem:[#allocation7 + $0x848] sm:$0xff]  }
 0x3eb   :  { %18710 = vmatpush3.bf16.xpose.msra.mxu0 %v20943_v6  ;;  %18730 = vmatpush3.bf16.xpose.msra.mxu1 %v20944_v8  ;;  %v20979_v6 = vld [vmem:[#allocation7 + $0x800] sm:$0xff]  }
 0x3ec   :  { %18711 = vmatprep.subr.bf16.mxu0 %v24763_v1  ;;  %18731 = vmatprep.subr.bf16.mxu1 %v24763_v1  ;;  %v20980_v8 = vld [vmem:[#allocation7 + $0x840] sm:$0xff]  }
 0x3f3   :  { %18712 = vmatpush3.bf16.xpose.msra.mxu0 %v20945_v10  ;;  %18732 = vmatpush3.bf16.xpose.msra.mxu1 %v20946_v11  ;;  %v20981_v10 = vld [vmem:[#allocation7 + $0x8b8] sm:$0xff]  }
 0x3f4   :  { %18713 = vmatprep.subr.bf16.mxu0 %v24763_v1  ;;  %18733 = vmatprep.subr.bf16.mxu1 %v24763_v1  ;;  %v20982_v11 = vld [vmem:[#allocation7 + $0x8f8] sm:$0xff]  }
 0x3fb   :  { %18714 = vmatpush3.bf16.xpose.msra.mxu0 %v20947_v13  ;;  %18734 = vmatpush3.bf16.xpose.msra.mxu1 %v20948_v14 }
 0x3fc   :  { %18739 = vmatprep.subr.bf16.mxu0 %v24763_v1  ;;  %18759 = vmatprep.subr.bf16.mxu1 %v24763_v1 }
 0x402   :  { %v4186_v16 = vpop.f32.mrf.mxu0  ;;  %18716 = vmatmul.mubr.bf16.vlgmr.msra.gmra.mxu0 %v22258_v21  ;;  %v4275_v18 = vpop.f32.mrf.mxu1  ;;  %18736 = vmatmul.mubr.bf16.vlgmr.msra.gmra.mxu1 %v22258_v21 }
 0x403   :  { %v13586_v17 = vmul.f32 %v22014_v7, %v4186_v16  ;;  %18740 = vmatpush3.bf16.xpose.msra.mxu0 %v20949_v9  ;;  %18760 = vmatpush3.bf16.xpose.msra.mxu1 %v20950_v15  ;;  %v13588_v20 = vmul.f32 %v22014_v7, %v4275_v18 }
 0x404   :  { %v18597_v19 = vpop.f32.mrf.mxu0  ;;  %18741 = vmatprep.subr.bf16.mxu0 %v24763_v1  ;;  %v18617_v22 = vpop.f32.mrf.mxu1  ;;  %18761 = vmatprep.subr.bf16.mxu1 %v24763_v1 }
 0x405   :  { %13886 = vadd.xlane.f32.xlu0 %v13586_v17  ;;  %18755 = vmatprep.mubr.msk.bf16.mxu0 %vm21861_vm0, %v24763_v1  ;;  %v20983_v22 = vld [vmem:[#allocation7 + $0x8b0] sm:$0xff]  }
 0x406   :  { %v4189_v23 = vpop.f32.mrf.mxu0  ;;  %18775 = vmatprep.mubr.msk.bf16.mxu1 %vm21861_vm0, %v24763_v1  ;;  %v4278_v24 = vpop.f32.mrf.mxu1 }
 0x407   :  { %v13587_v25 = vmul.f32 %v22021_v12, %v4189_v23  ;;  %v13589_v30 = vmul.f32 %v22021_v12, %v4278_v24  ;;  %v20984_v24 = vld [vmem:[#allocation7 + $0x8f0] sm:$0xff]  }
 0x408   :  { %v18598_v27 = vpop.f32.mrf.mxu0  ;;  %v18618_v29 = vpop.f32.mrf.mxu1 }
 0x409   :  { %13888 = vadd.xlane.f32.xlu1 %v13587_v25  ;;  %13890 = vadd.xlane.f32.xlu0 %v13588_v20  ;;  %v20985_v27 = vld [vmem:[#allocation7 + $0x8a8] sm:$0xff]   ;;  %v20987_v29 = vld [vmem:[#allocation7 + $0x8a0] sm:$0xff]  }
 0x40b   :  { %18742 = vmatpush3.bf16.xpose.msra.mxu0 %v20951_v26  ;;  %18762 = vmatpush3.bf16.xpose.msra.mxu1 %v20952_v28  ;;  %v20986_v28 = vld [vmem:[#allocation7 + $0x8e8] sm:$0xff]  }
 0x40c   :  { %18743 = vmatprep.subr.bf16.mxu0 %v24763_v1  ;;  %18763 = vmatprep.subr.bf16.mxu1 %v24763_v1 }
 0x40d   :  { %13892 = vadd.xlane.f32.xlu1 %v13589_v30  ;;  %v20988_v30 = vld [vmem:[#allocation7 + $0x8e0] sm:$0xff]  }
 0x413   :  { %18744 = vmatpush3.bf16.xpose.msra.mxu0 %v20953_v31  ;;  %18764 = vmatpush3.bf16.xpose.msra.mxu1 %v20954_v32  ;;  %v20989_v31 = vld [vmem:[#allocation7 + $0x898] sm:$0xff]  }
 0x414   :  { %18745 = vmatprep.subr.bf16.mxu0 %v24763_v1  ;;  %18765 = vmatprep.subr.bf16.mxu1 %v24763_v1  ;;  %v20990_v32 = vld [vmem:[#allocation7 + $0x8d8] sm:$0xff]  }
 0x41b   :  { %18746 = vmatpush3.bf16.xpose.msra.mxu0 %v20955_v33  ;;  %18766 = vmatpush3.bf16.xpose.msra.mxu1 %v20956_v35  ;;  %v20991_v33 = vld [vmem:[#allocation7 + $0x890] sm:$0xff]  }
 0x41c   :  { %18747 = vmatprep.subr.bf16.mxu0 %v24763_v1  ;;  %18767 = vmatprep.subr.bf16.mxu1 %v24763_v1  ;;  %v20992_v35 = vld [vmem:[#allocation7 + $0x8d0] sm:$0xff]  }
 0x423   :  { %18748 = vmatpush3.bf16.xpose.msra.mxu0 %v20957_v36  ;;  %18768 = vmatpush3.bf16.xpose.msra.mxu1 %v20958_v37  ;;  %v20993_v36 = vld [vmem:[#allocation7 + $0x888] sm:$0xff]  }
 0x424   :  { %18749 = vmatprep.subr.bf16.mxu0 %v24763_v1  ;;  %18769 = vmatprep.subr.bf16.mxu1 %v24763_v1  ;;  %v20994_v37 = vld [vmem:[#allocation7 + $0x8c8] sm:$0xff]  }
 0x42b   :  { %18750 = vmatpush3.bf16.xpose.msra.mxu0 %v20959_v38  ;;  %18770 = vmatpush3.bf16.xpose.msra.mxu1 %v20960_v34  ;;  %v20995_v38 = vld [vmem:[#allocation7 + $0x880] sm:$0xff]  }
 0x42c   :  { %18751 = vmatprep.subr.bf16.mxu0 %v24763_v1  ;;  %18771 = vmatprep.subr.bf16.mxu1 %v24763_v1  ;;  %v20996_v34 = vld [vmem:[#allocation7 + $0x8c0] sm:$0xff]  }
 0x433   :  { %18752 = vmatpush3.bf16.xpose.msra.mxu0 %v20961_v39  ;;  %18772 = vmatpush3.bf16.xpose.msra.mxu1 %v20962_v40  ;;  %v20997_v39 = vld [vmem:[#allocation7 + $0x938] sm:$0xff]  }
 0x434   :  { %18753 = vmatprep.subr.bf16.mxu0 %v24763_v1  ;;  %18773 = vmatprep.subr.bf16.mxu1 %v24763_v1  ;;  %v20998_v40 = vld [vmem:[#allocation7 + $0x978] sm:$0xff]  }
 0x43b   :  { %18754 = vmatpush3.bf16.xpose.msra.mxu0 %v20963_v41  ;;  %18774 = vmatpush3.bf16.xpose.msra.mxu1 %v20964_v42 }
 0x43c   :  { %18779 = vmatprep.subr.bf16.mxu0 %v24763_v1  ;;  %18799 = vmatprep.subr.bf16.mxu1 %v24763_v1 }
 0x442   :  { %v4364_v45 = vpop.f32.mrf.mxu0  ;;  %18756 = vmatmul.mubr.bf16.vlgmr.msra.gmra.mxu0 %v22258_v21  ;;  %v4453_v47 = vpop.f32.mrf.mxu1  ;;  %18776 = vmatmul.mubr.bf16.vlgmr.msra.gmra.mxu1 %v22258_v21 }
 0x443   :  { %v13590_v46 = vmul.f32 %v22014_v7, %v4364_v45  ;;  %18780 = vmatpush3.bf16.xpose.msra.mxu0 %v20965_v43  ;;  %18800 = vmatpush3.bf16.xpose.msra.mxu1 %v20966_v44  ;;  %v13592_v49 = vmul.f32 %v22014_v7, %v4453_v47 }
 0x444   :  { %v18637_v48 = vpop.f32.mrf.mxu0  ;;  %18781 = vmatprep.subr.bf16.mxu0 %v24763_v1  ;;  %v18657_v50 = vpop.f32.mrf.mxu1  ;;  %18801 = vmatprep.subr.bf16.mxu1 %v24763_v1 }
 0x445   :  { %13894 = vadd.xlane.f32.xlu0 %v13590_v46  ;;  %18795 = vmatprep.mubr.msk.bf16.mxu0 %vm21861_vm0, %v24763_v1  ;;  %v20999_v50 = vld [vmem:[#allocation7 + $0x930] sm:$0xff]  }
 0x446   :  { %v4367_v51 = vpop.f32.mrf.mxu0  ;;  %18815 = vmatprep.mubr.msk.bf16.mxu1 %vm21861_vm0, %v24763_v1  ;;  %v4456_v52 = vpop.f32.mrf.mxu1 }
 0x447   :  { %v13591_v53 = vmul.f32 %v22021_v12, %v4367_v51  ;;  %v13593_v59 = vmul.f32 %v22021_v12, %v4456_v52  ;;  %v21000_v52 = vld [vmem:[#allocation7 + $0x970] sm:$0xff]  }
 0x448   :  { %v18638_v55 = vpop.f32.mrf.mxu0  ;;  %v18658_v57 = vpop.f32.mrf.mxu1 }
 0x449   :  { %13896 = vadd.xlane.f32.xlu1 %v13591_v53  ;;  %13898 = vadd.xlane.f32.xlu0 %v13592_v49  ;;  %v21001_v55 = vld [vmem:[#allocation7 + $0x928] sm:$0xff]   ;;  %v21003_v57 = vld [vmem:[#allocation7 + $0x920] sm:$0xff]  }
 0x44b   :  { %18782 = vmatpush3.bf16.xpose.msra.mxu0 %v20967_v54  ;;  %18802 = vmatpush3.bf16.xpose.msra.mxu1 %v20968_v56  ;;  %v21002_v56 = vld [vmem:[#allocation7 + $0x968] sm:$0xff]  }
 0x44c   :  { %18783 = vmatprep.subr.bf16.mxu0 %v24763_v1  ;;  %18803 = vmatprep.subr.bf16.mxu1 %v24763_v1 }
 0x44d   :  { %13900 = vadd.xlane.f32.xlu1 %v13593_v59  ;;  %v21004_v59 = vld [vmem:[#allocation7 + $0x960] sm:$0xff]  }
 0x453   :  { %18784 = vmatpush3.bf16.xpose.msra.mxu0 %v20969_v60  ;;  %18804 = vmatpush3.bf16.xpose.msra.mxu1 %v20970_v61  ;;  %v21005_v60 = vld [vmem:[#allocation7 + $0x918] sm:$0xff]  }
 0x454   :  { %18785 = vmatprep.subr.bf16.mxu0 %v24763_v1  ;;  %18805 = vmatprep.subr.bf16.mxu1 %v24763_v1  ;;  %v21006_v61 = vld [vmem:[#allocation7 + $0x958] sm:$0xff]  }
 0x45b   :  { %18786 = vmatpush3.bf16.xpose.msra.mxu0 %v20971_v58  ;;  %18806 = vmatpush3.bf16.xpose.msra.mxu1 %v20972_v62  ;;  %v21007_v58 = vld [vmem:[#allocation7 + $0x910] sm:$0xff]  }
 0x45c   :  { %18787 = vmatprep.subr.bf16.mxu0 %v24763_v1  ;;  %18807 = vmatprep.subr.bf16.mxu1 %v24763_v1  ;;  %v21008_v62 = vld [vmem:[#allocation7 + $0x950] sm:$0xff]  }
 0x463   :  { %18788 = vmatpush3.bf16.xpose.msra.mxu0 %v20973_v63  ;;  %18808 = vmatpush3.bf16.xpose.msra.mxu1 %v20974_v0  ;;  %v21009_v63 = vld [vmem:[#allocation7 + $0x908] sm:$0xff]  }
 0x464   :  { %18789 = vmatprep.subr.bf16.mxu0 %v24763_v1  ;;  %18809 = vmatprep.subr.bf16.mxu1 %v24763_v1  ;;  %v21010_v0 = vld [vmem:[#allocation7 + $0x948] sm:$0xff]  }
 0x46b   :  { %18790 = vmatpush3.bf16.xpose.msra.mxu0 %v20975_v2  ;;  %18810 = vmatpush3.bf16.xpose.msra.mxu1 %v20976_v3  ;;  %v21011_v2 = vld [vmem:[#allocation7 + $0x900] sm:$0xff]  }
 0x46c   :  { %18791 = vmatprep.subr.bf16.mxu0 %v24763_v1  ;;  %18811 = vmatprep.subr.bf16.mxu1 %v24763_v1  ;;  %v21012_v3 = vld [vmem:[#allocation7 + $0x940] sm:$0xff]  }
 0x473   :  { %18792 = vmatpush3.bf16.xpose.msra.mxu0 %v20977_v4  ;;  %18812 = vmatpush3.bf16.xpose.msra.mxu1 %v20978_v5  ;;  %v21013_v4 = vld [vmem:[#allocation7 + $0x9b8] sm:$0xff]  }
 0x474   :  { %18793 = vmatprep.subr.bf16.mxu0 %v24763_v1  ;;  %18813 = vmatprep.subr.bf16.mxu1 %v24763_v1  ;;  %v21014_v5 = vld [vmem:[#allocation7 + $0x9f8] sm:$0xff]  }
 0x47b   :  { %18794 = vmatpush3.bf16.xpose.msra.mxu0 %v20979_v6  ;;  %18814 = vmatpush3.bf16.xpose.msra.mxu1 %v20980_v8 }
 0x47c   :  { %18819 = vmatprep.subr.bf16.mxu0 %v24763_v1  ;;  %18839 = vmatprep.subr.bf16.mxu1 %v24763_v1 }
 0x482   :  { %v4542_v13 = vpop.f32.mrf.mxu0  ;;  %18796 = vmatmul.mubr.bf16.vlgmr.msra.gmra.mxu0 %v22258_v21  ;;  %v4631_v9 = vpop.f32.mrf.mxu1  ;;  %18816 = vmatmul.mubr.bf16.vlgmr.msra.gmra.mxu1 %v22258_v21 }
 0x483   :  { %v13594_v14 = vmul.f32 %v22014_v7, %v4542_v13  ;;  %18820 = vmatpush3.bf16.xpose.msra.mxu0 %v20981_v10  ;;  %18840 = vmatpush3.bf16.xpose.msra.mxu1 %v20982_v11  ;;  %v13596_v16 = vmul.f32 %v22014_v7, %v4631_v9 }
 0x484   :  { %v18677_v15 = vpop.f32.mrf.mxu0  ;;  %18821 = vmatprep.subr.bf16.mxu0 %v24763_v1  ;;  %v18697_v17 = vpop.f32.mrf.mxu1  ;;  %18841 = vmatprep.subr.bf16.mxu1 %v24763_v1 }
 0x485   :  { %13902 = vadd.xlane.f32.xlu0 %v13594_v14  ;;  %18835 = vmatprep.mubr.msk.bf16.mxu0 %vm21861_vm0, %v24763_v1  ;;  %v21015_v17 = vld [vmem:[#allocation7 + $0x9b0] sm:$0xff]  }
 0x486   :  { %v4545_v18 = vpop.f32.mrf.mxu0  ;;  %18855 = vmatprep.mubr.msk.bf16.mxu1 %vm21861_vm0, %v24763_v1  ;;  %v4634_v19 = vpop.f32.mrf.mxu1 }
 0x487   :  { %v13595_v20 = vmul.f32 %v22021_v12, %v4545_v18  ;;  %v13597_v26 = vmul.f32 %v22021_v12, %v4634_v19  ;;  %v21016_v19 = vld [vmem:[#allocation7 + $0x9f0] sm:$0xff]  }
 0x488   :  { %v18678_v23 = vpop.f32.mrf.mxu0  ;;  %v18698_v25 = vpop.f32.mrf.mxu1 }
 0x489   :  { %13904 = vadd.xlane.f32.xlu1 %v13595_v20  ;;  %13906 = vadd.xlane.f32.xlu0 %v13596_v16  ;;  %v21017_v23 = vld [vmem:[#allocation7 + $0x9a8] sm:$0xff]   ;;  %v21019_v25 = vld [vmem:[#allocation7 + $0x9a0] sm:$0xff]  }
 0x48b   :  { %18822 = vmatpush3.bf16.xpose.msra.mxu0 %v20983_v22  ;;  %18842 = vmatpush3.bf16.xpose.msra.mxu1 %v20984_v24  ;;  %v21018_v24 = vld [vmem:[#allocation7 + $0x9e8] sm:$0xff]  }
 0x48c   :  { %18823 = vmatprep.subr.bf16.mxu0 %v24763_v1  ;;  %18843 = vmatprep.subr.bf16.mxu1 %v24763_v1 }
 0x48d   :  { %13908 = vadd.xlane.f32.xlu1 %v13597_v26  ;;  %v21020_v26 = vld [vmem:[#allocation7 + $0x9e0] sm:$0xff]  }
 0x493   :  { %18824 = vmatpush3.bf16.xpose.msra.mxu0 %v20985_v27  ;;  %18844 = vmatpush3.bf16.xpose.msra.mxu1 %v20986_v28  ;;  %v21021_v27 = vld [vmem:[#allocation7 + $0x998] sm:$0xff]  }
 0x494   :  { %18825 = vmatprep.subr.bf16.mxu0 %v24763_v1  ;;  %18845 = vmatprep.subr.bf16.mxu1 %v24763_v1  ;;  %v21022_v28 = vld [vmem:[#allocation7 + $0x9d8] sm:$0xff]  }
 0x49b   :  { %18826 = vmatpush3.bf16.xpose.msra.mxu0 %v20987_v29  ;;  %18846 = vmatpush3.bf16.xpose.msra.mxu1 %v20988_v30  ;;  %v21023_v29 = vld [vmem:[#allocation7 + $0x990] sm:$0xff]  }
 0x49c   :  { %18827 = vmatprep.subr.bf16.mxu0 %v24763_v1  ;;  %18847 = vmatprep.subr.bf16.mxu1 %v24763_v1  ;;  %v21024_v30 = vld [vmem:[#allocation7 + $0x9d0] sm:$0xff]  }
 0x4a3   :  { %18828 = vmatpush3.bf16.xpose.msra.mxu0 %v20989_v31  ;;  %18848 = vmatpush3.bf16.xpose.msra.mxu1 %v20990_v32  ;;  %v21025_v31 = vld [vmem:[#allocation7 + $0x988] sm:$0xff]  }
 0x4a4   :  { %18829 = vmatprep.subr.bf16.mxu0 %v24763_v1  ;;  %18849 = vmatprep.subr.bf16.mxu1 %v24763_v1  ;;  %v21026_v32 = vld [vmem:[#allocation7 + $0x9c8] sm:$0xff]  }
 0x4ab   :  { %18830 = vmatpush3.bf16.xpose.msra.mxu0 %v20991_v33  ;;  %18850 = vmatpush3.bf16.xpose.msra.mxu1 %v20992_v35  ;;  %v21027_v33 = vld [vmem:[#allocation7 + $0x980] sm:$0xff]  }
 0x4ac   :  { %18831 = vmatprep.subr.bf16.mxu0 %v24763_v1  ;;  %18851 = vmatprep.subr.bf16.mxu1 %v24763_v1  ;;  %v21028_v35 = vld [vmem:[#allocation7 + $0x9c0] sm:$0xff]  }
 0x4b3   :  { %18832 = vmatpush3.bf16.xpose.msra.mxu0 %v20993_v36  ;;  %18852 = vmatpush3.bf16.xpose.msra.mxu1 %v20994_v37  ;;  %v21029_v36 = vld [vmem:[#allocation7 + $0xa38] sm:$0xff]  }
 0x4b4   :  { %18833 = vmatprep.subr.bf16.mxu0 %v24763_v1  ;;  %18853 = vmatprep.subr.bf16.mxu1 %v24763_v1  ;;  %v21030_v37 = vld [vmem:[#allocation7 + $0xa78] sm:$0xff]  }
 0x4bb   :  { %18834 = vmatpush3.bf16.xpose.msra.mxu0 %v20995_v38  ;;  %18854 = vmatpush3.bf16.xpose.msra.mxu1 %v20996_v34 }
 0x4bc   :  { %18859 = vmatprep.subr.bf16.mxu0 %v24763_v1  ;;  %18879 = vmatprep.subr.bf16.mxu1 %v24763_v1 }
 0x4c2   :  { %v4720_v41 = vpop.f32.mrf.mxu0  ;;  %18836 = vmatmul.mubr.bf16.vlgmr.msra.gmra.mxu0 %v22258_v21  ;;  %v4809_v43 = vpop.f32.mrf.mxu1  ;;  %18856 = vmatmul.mubr.bf16.vlgmr.msra.gmra.mxu1 %v22258_v21 }
 0x4c3   :  { %v13598_v42 = vmul.f32 %v22014_v7, %v4720_v41  ;;  %18860 = vmatpush3.bf16.xpose.msra.mxu0 %v20997_v39  ;;  %18880 = vmatpush3.bf16.xpose.msra.mxu1 %v20998_v40  ;;  %v13600_v45 = vmul.f32 %v22014_v7, %v4809_v43 }
 0x4c4   :  { %v18717_v44 = vpop.f32.mrf.mxu0  ;;  %18861 = vmatprep.subr.bf16.mxu0 %v24763_v1  ;;  %v18737_v46 = vpop.f32.mrf.mxu1  ;;  %18881 = vmatprep.subr.bf16.mxu1 %v24763_v1 }
 0x4c5   :  { %13910 = vadd.xlane.f32.xlu0 %v13598_v42  ;;  %18875 = vmatprep.mubr.msk.bf16.mxu0 %vm21861_vm0, %v24763_v1 }
 0x4c6   :  { %v4723_v47 = vpop.f32.mrf.mxu0  ;;  %18895 = vmatprep.mubr.msk.bf16.mxu1 %vm21861_vm0, %v24763_v1  ;;  %v4812_v48 = vpop.f32.mrf.mxu1 }
 0x4c7   :  { %v13599_v49 = vmul.f32 %v22021_v12, %v4723_v47  ;;  %v13601_v54 = vmul.f32 %v22021_v12, %v4812_v48  ;;  %v21032_v47 = vld [vmem:[#allocation7 + $0xa70] sm:$0xff]  }
 0x4c8   :  { %v18718_v51 = vpop.f32.mrf.mxu0  ;;  %v18738_v53 = vpop.f32.mrf.mxu1 }
 0x4c9   :  { %13912 = vadd.xlane.f32.xlu1 %v13599_v49  ;;  %13914 = vadd.xlane.f32.xlu0 %v13600_v45  ;;  %v21031_v45 = vld [vmem:[#allocation7 + $0xa30] sm:$0xff]   ;;  %v21034_v51 = vld [vmem:[#allocation7 + $0xa68] sm:$0xff]   ;;  %v21036_v53 = vld [vmem:[#allocation7 + $0xa60] sm:$0xff]  }
 0x4cb   :  { %18862 = vmatpush3.bf16.xpose.msra.mxu0 %v20999_v50  ;;  %18882 = vmatpush3.bf16.xpose.msra.mxu1 %v21000_v52  ;;  %v21033_v50 = vld [vmem:[#allocation7 + $0xa28] sm:$0xff]   ;;  %v21035_v52 = vld [vmem:[#allocation7 + $0xa20] sm:$0xff]  }
 0x4cc   :  { %18863 = vmatprep.subr.bf16.mxu0 %v24763_v1  ;;  %18883 = vmatprep.subr.bf16.mxu1 %v24763_v1 }
 0x4cd   :  { %13916 = vadd.xlane.f32.xlu1 %v13601_v54  ;;  %v21037_v54 = vld [vmem:[#allocation7 + $0xa18] sm:$0xff]  }
 0x4d3   :  { %18864 = vmatpush3.bf16.xpose.msra.mxu0 %v21001_v55  ;;  %18884 = vmatpush3.bf16.xpose.msra.mxu1 %v21002_v56  ;;  %v21038_v55 = vld [vmem:[#allocation7 + $0xa58] sm:$0xff]   ;;  %v21039_v56 = vld [vmem:[#allocation7 + $0xa10] sm:$0xff]  }
 0x4d4   :  { %18865 = vmatprep.subr.bf16.mxu0 %v24763_v1  ;;  %18885 = vmatprep.subr.bf16.mxu1 %v24763_v1 }
 0x4db   :  { %18866 = vmatpush3.bf16.xpose.msra.mxu0 %v21003_v57  ;;  %18886 = vmatpush3.bf16.xpose.msra.mxu1 %v21004_v59  ;;  %v21040_v57 = vld [vmem:[#allocation7 + $0xa50] sm:$0xff]   ;;  %v21041_v59 = vld [vmem:[#allocation7 + $0xa08] sm:$0xff]  }
 0x4dc   :  { %18867 = vmatprep.subr.bf16.mxu0 %v24763_v1  ;;  %18887 = vmatprep.subr.bf16.mxu1 %v24763_v1 }
 0x4e3   :  { %18868 = vmatpush3.bf16.xpose.msra.mxu0 %v21005_v60  ;;  %18888 = vmatpush3.bf16.xpose.msra.mxu1 %v21006_v61  ;;  %v21042_v60 = vld [vmem:[#allocation7 + $0xa48] sm:$0xff]   ;;  %v21043_v61 = vld [vmem:[#allocation7 + $0xa00] sm:$0xff]  }
 0x4e4   :  { %18869 = vmatprep.subr.bf16.mxu0 %v24763_v1  ;;  %18889 = vmatprep.subr.bf16.mxu1 %v24763_v1 }
 0x4eb   :  { %18870 = vmatpush3.bf16.xpose.msra.mxu0 %v21007_v58  ;;  %18890 = vmatpush3.bf16.xpose.msra.mxu1 %v21008_v62  ;;  %v21044_v58 = vld [vmem:[#allocation7 + $0xa40] sm:$0xff]   ;;  %v21045_v62 = vld [vmem:[#allocation7 + $0xab8] sm:$0xff]  }
 0x4ec   :  { %18871 = vmatprep.subr.bf16.mxu0 %v24763_v1  ;;  %18891 = vmatprep.subr.bf16.mxu1 %v24763_v1 }
 0x4f3   :  { %18872 = vmatpush3.bf16.xpose.msra.mxu0 %v21009_v63  ;;  %18892 = vmatpush3.bf16.xpose.msra.mxu1 %v21010_v0  ;;  %v21046_v63 = vld [vmem:[#allocation7 + $0xaf8] sm:$0xff]  }
 0x4f4   :  { %18873 = vmatprep.subr.bf16.mxu0 %v24763_v1  ;;  %18893 = vmatprep.subr.bf16.mxu1 %v24763_v1 }
 0x4fb   :  { %18874 = vmatpush3.bf16.xpose.msra.mxu0 %v21011_v2  ;;  %18894 = vmatpush3.bf16.xpose.msra.mxu1 %v21012_v3  ;;  %v22468_v2 = vld [vmem:[#allocation5] sm:$0xff]  }
 0x4fc   :  { %18899 = vmatprep.subr.bf16.mxu0 %v24763_v1  ;;  %18919 = vmatprep.subr.bf16.mxu1 %v24763_v1 }
 0x502   :  { %v4898_v6 = vpop.f32.mrf.mxu0  ;;  %18876 = vmatmul.mubr.bf16.vlgmr.msra.gmra.mxu0 %v22258_v21  ;;  %v4987_v10 = vpop.f32.mrf.mxu1  ;;  %18896 = vmatmul.mubr.bf16.vlgmr.msra.gmra.mxu1 %v22258_v21 }
 0x503   :  { %v13602_v8 = vmul.f32 %v22014_v7, %v4898_v6  ;;  %18900 = vmatpush3.bf16.xpose.msra.mxu0 %v21013_v4  ;;  %18920 = vmatpush3.bf16.xpose.msra.mxu1 %v21014_v5  ;;  %v13604_v13 = vmul.f32 %v22014_v7, %v4987_v10 }
 0x504   :  { %v18757_v11 = vpop.f32.mrf.mxu0  ;;  %18901 = vmatprep.subr.bf16.mxu0 %v24763_v1  ;;  %v18777_v14 = vpop.f32.mrf.mxu1  ;;  %18921 = vmatprep.subr.bf16.mxu1 %v24763_v1 }
 0x505   :  { %13918 = vadd.xlane.f32.xlu0 %v13602_v8  ;;  %18915 = vmatprep.mubr.msk.bf16.mxu0 %vm21861_vm0, %v24763_v1  ;;  %v21047_v14 = vld [vmem:[#allocation7 + $0xab0] sm:$0xff]  }
 0x506   :  { %v4901_v9 = vpop.f32.mrf.mxu0  ;;  %18935 = vmatprep.mubr.msk.bf16.mxu1 %vm21861_vm0, %v24763_v1  ;;  %v4990_v15 = vpop.f32.mrf.mxu1 }
 0x507   :  { %v13603_v16 = vmul.f32 %v22021_v12, %v4901_v9  ;;  %v13605_v22 = vmul.f32 %v22021_v12, %v4990_v15  ;;  %v21048_v15 = vld [vmem:[#allocation7 + $0xaf0] sm:$0xff]  }
 0x508   :  { %v18758_v18 = vpop.f32.mrf.mxu0  ;;  %v18778_v20 = vpop.f32.mrf.mxu1 }
 0x509   :  { %13920 = vadd.xlane.f32.xlu1 %v13603_v16  ;;  %13922 = vadd.xlane.f32.xlu0 %v13604_v13  ;;  %v21049_v18 = vld [vmem:[#allocation7 + $0xaa8] sm:$0xff]   ;;  %v21051_v20 = vld [vmem:[#allocation7 + $0xaa0] sm:$0xff]  }
 0x50b   :  { %18902 = vmatpush3.bf16.xpose.msra.mxu0 %v21015_v17  ;;  %18922 = vmatpush3.bf16.xpose.msra.mxu1 %v21016_v19  ;;  %v21050_v19 = vld [vmem:[#allocation7 + $0xae8] sm:$0xff]  }
 0x50c   :  { %18903 = vmatprep.subr.bf16.mxu0 %v24763_v1  ;;  %18923 = vmatprep.subr.bf16.mxu1 %v24763_v1 }
 0x50d   :  { %13924 = vadd.xlane.f32.xlu1 %v13605_v22  ;;  %v21052_v22 = vld [vmem:[#allocation7 + $0xae0] sm:$0xff]  }
 0x513   :  { %18904 = vmatpush3.bf16.xpose.msra.mxu0 %v21017_v23  ;;  %18924 = vmatpush3.bf16.xpose.msra.mxu1 %v21018_v24  ;;  %v21053_v23 = vld [vmem:[#allocation7 + $0xa98] sm:$0xff]  }
 0x514   :  { %18905 = vmatprep.subr.bf16.mxu0 %v24763_v1  ;;  %18925 = vmatprep.subr.bf16.mxu1 %v24763_v1  ;;  %v21054_v24 = vld [vmem:[#allocation7 + $0xad8] sm:$0xff]  }
 0x51b   :  { %18906 = vmatpush3.bf16.xpose.msra.mxu0 %v21019_v25  ;;  %18926 = vmatpush3.bf16.xpose.msra.mxu1 %v21020_v26  ;;  %v21055_v25 = vld [vmem:[#allocation7 + $0xa90] sm:$0xff]  }
 0x51c   :  { %18907 = vmatprep.subr.bf16.mxu0 %v24763_v1  ;;  %18927 = vmatprep.subr.bf16.mxu1 %v24763_v1  ;;  %v21056_v26 = vld [vmem:[#allocation7 + $0xad0] sm:$0xff]  }
 0x523   :  { %18908 = vmatpush3.bf16.xpose.msra.mxu0 %v21021_v27  ;;  %18928 = vmatpush3.bf16.xpose.msra.mxu1 %v21022_v28  ;;  %v21057_v27 = vld [vmem:[#allocation7 + $0xa88] sm:$0xff]  }
 0x524   :  { %18909 = vmatprep.subr.bf16.mxu0 %v24763_v1  ;;  %18929 = vmatprep.subr.bf16.mxu1 %v24763_v1  ;;  %v21058_v28 = vld [vmem:[#allocation7 + $0xac8] sm:$0xff]  }
 0x52b   :  { %18910 = vmatpush3.bf16.xpose.msra.mxu0 %v21023_v29  ;;  %18930 = vmatpush3.bf16.xpose.msra.mxu1 %v21024_v30  ;;  %v21059_v29 = vld [vmem:[#allocation7 + $0xa80] sm:$0xff]  }
 0x52c   :  { %18911 = vmatprep.subr.bf16.mxu0 %v24763_v1  ;;  %18931 = vmatprep.subr.bf16.mxu1 %v24763_v1  ;;  %v21060_v30 = vld [vmem:[#allocation7 + $0xac0] sm:$0xff]  }
 0x533   :  { %18912 = vmatpush3.bf16.xpose.msra.mxu0 %v21025_v31  ;;  %18932 = vmatpush3.bf16.xpose.msra.mxu1 %v21026_v32  ;;  %v21061_v31 = vld [vmem:[#allocation7 + $0xb38] sm:$0xff]  }
 0x534   :  { %18913 = vmatprep.subr.bf16.mxu0 %v24763_v1  ;;  %18933 = vmatprep.subr.bf16.mxu1 %v24763_v1  ;;  %v21062_v32 = vld [vmem:[#allocation7 + $0xb78] sm:$0xff]  }
 0x53b   :  { %18914 = vmatpush3.bf16.xpose.msra.mxu0 %v21027_v33  ;;  %18934 = vmatpush3.bf16.xpose.msra.mxu1 %v21028_v35 }
 0x53c   :  { %18939 = vmatprep.subr.bf16.mxu0 %v24763_v1  ;;  %18959 = vmatprep.subr.bf16.mxu1 %v24763_v1 }
 0x542   :  { %v5076_v38 = vpop.f32.mrf.mxu0  ;;  %18916 = vmatmul.mubr.bf16.vlgmr.msra.gmra.mxu0 %v22258_v21  ;;  %v5165_v39 = vpop.f32.mrf.mxu1  ;;  %18936 = vmatmul.mubr.bf16.vlgmr.msra.gmra.mxu1 %v22258_v21 }
 0x543   :  { %v13606_v34 = vmul.f32 %v22014_v7, %v5076_v38  ;;  %18940 = vmatpush3.bf16.xpose.msra.mxu0 %v21029_v36  ;;  %18960 = vmatpush3.bf16.xpose.msra.mxu1 %v21030_v37  ;;  %v13608_v41 = vmul.f32 %v22014_v7, %v5165_v39 }
 0x544   :  { %v18797_v40 = vpop.f32.mrf.mxu0  ;;  %18941 = vmatprep.subr.bf16.mxu0 %v24763_v1  ;;  %v18817_v42 = vpop.f32.mrf.mxu1  ;;  %18961 = vmatprep.subr.bf16.mxu1 %v24763_v1 }
 0x545   :  { %13926 = vadd.xlane.f32.xlu0 %v13606_v34  ;;  %18955 = vmatprep.mubr.msk.bf16.mxu0 %vm21861_vm0, %v24763_v1  ;;  %v21063_v42 = vld [vmem:[#allocation7 + $0xb30] sm:$0xff]  }
 0x546   :  { %v5079_v43 = vpop.f32.mrf.mxu0  ;;  %18975 = vmatprep.mubr.msk.bf16.mxu1 %vm21861_vm0, %v24763_v1  ;;  %v5168_v44 = vpop.f32.mrf.mxu1 }
 0x547   :  { %v13607_v21 = vmul.f32 %v22021_v12, %v5079_v43  ;;  %v13609_v49 = vmul.f32 %v22021_v12, %v5168_v44  ;;  %v21064_v44 = vld [vmem:[#allocation7 + $0xb70] sm:$0xff]  }
 0x548   :  { %v18798_v46 = vpop.f32.mrf.mxu0  ;;  %v18818_v48 = vpop.f32.mrf.mxu1 }
 0x549   :  { %13928 = vadd.xlane.f32.xlu1 %v13607_v21  ;;  %13930 = vadd.xlane.f32.xlu0 %v13608_v41  ;;  %v21065_v46 = vld [vmem:[#allocation7 + $0xb28] sm:$0xff]   ;;  %v21067_v48 = vld [vmem:[#allocation7 + $0xb20] sm:$0xff]  }
 0x54b   :  { %18942 = vmatpush3.bf16.xpose.msra.mxu0 %v21031_v45  ;;  %18962 = vmatpush3.bf16.xpose.msra.mxu1 %v21032_v47  ;;  %v21066_v47 = vld [vmem:[#allocation7 + $0xb68] sm:$0xff]  }
 0x54c   :  { %18943 = vmatprep.subr.bf16.mxu0 %v24763_v1  ;;  %18963 = vmatprep.subr.bf16.mxu1 %v24763_v1 }
 0x54d   :  { %13932 = vadd.xlane.f32.xlu1 %v13609_v49  ;;  %v21068_v49 = vld [vmem:[#allocation7 + $0xb60] sm:$0xff]  }
 0x553   :  { %18944 = vmatpush3.bf16.xpose.msra.mxu0 %v21033_v50  ;;  %18964 = vmatpush3.bf16.xpose.msra.mxu1 %v21034_v51  ;;  %v21069_v50 = vld [vmem:[#allocation7 + $0xb18] sm:$0xff]  }
 0x554   :  { %18945 = vmatprep.subr.bf16.mxu0 %v24763_v1  ;;  %18965 = vmatprep.subr.bf16.mxu1 %v24763_v1  ;;  %v21070_v51 = vld [vmem:[#allocation7 + $0xb58] sm:$0xff]  }
 0x55b   :  { %18946 = vmatpush3.bf16.xpose.msra.mxu0 %v21035_v52  ;;  %18966 = vmatpush3.bf16.xpose.msra.mxu1 %v21036_v53  ;;  %v21071_v52 = vld [vmem:[#allocation7 + $0xb10] sm:$0xff]  }
 0x55c   :  { %18947 = vmatprep.subr.bf16.mxu0 %v24763_v1  ;;  %18967 = vmatprep.subr.bf16.mxu1 %v24763_v1  ;;  %v21072_v53 = vld [vmem:[#allocation7 + $0xb50] sm:$0xff]  }
 0x563   :  { %18948 = vmatpush3.bf16.xpose.msra.mxu0 %v21037_v54  ;;  %18968 = vmatpush3.bf16.xpose.msra.mxu1 %v21038_v55  ;;  %v21073_v54 = vld [vmem:[#allocation7 + $0xb08] sm:$0xff]  }
 0x564   :  { %18949 = vmatprep.subr.bf16.mxu0 %v24763_v1  ;;  %18969 = vmatprep.subr.bf16.mxu1 %v24763_v1  ;;  %v21074_v55 = vld [vmem:[#allocation7 + $0xb48] sm:$0xff]  }
 0x56b   :  { %18950 = vmatpush3.bf16.xpose.msra.mxu0 %v21039_v56  ;;  %18970 = vmatpush3.bf16.xpose.msra.mxu1 %v21040_v57  ;;  %v21075_v56 = vld [vmem:[#allocation7 + $0xb00] sm:$0xff]  }
 0x56c   :  { %18951 = vmatprep.subr.bf16.mxu0 %v24763_v1  ;;  %18971 = vmatprep.subr.bf16.mxu1 %v24763_v1  ;;  %v21076_v57 = vld [vmem:[#allocation7 + $0xb40] sm:$0xff]  }
 0x573   :  { %18952 = vmatpush3.bf16.xpose.msra.mxu0 %v21041_v59  ;;  %18972 = vmatpush3.bf16.xpose.msra.mxu1 %v21042_v60  ;;  %v21077_v59 = vld [vmem:[#allocation7 + $0xbb8] sm:$0xff]  }
 0x574   :  { %18953 = vmatprep.subr.bf16.mxu0 %v24763_v1  ;;  %18973 = vmatprep.subr.bf16.mxu1 %v24763_v1  ;;  %v21078_v60 = vld [vmem:[#allocation7 + $0xbf8] sm:$0xff]  }
 0x57b   :  { %18954 = vmatpush3.bf16.xpose.msra.mxu0 %v21043_v61  ;;  %18974 = vmatpush3.bf16.xpose.msra.mxu1 %v21044_v58 }
 0x57c   :  { %18979 = vmatprep.subr.bf16.mxu0 %v24763_v1  ;;  %18999 = vmatprep.subr.bf16.mxu1 %v24763_v1 }
 0x582   :  { %v5254_v0 = vpop.f32.mrf.mxu0  ;;  %18956 = vmatmul.mubr.bf16.vlgmr.msra.gmra.mxu0 %v22468_v2  ;;  %v5343_v4 = vpop.f32.mrf.mxu1  ;;  %18976 = vmatmul.mubr.bf16.vlgmr.msra.gmra.mxu1 %v22468_v2 }
 0x583   :  { %v13610_v3 = vmul.f32 %v22014_v7, %v5254_v0  ;;  %18980 = vmatpush3.bf16.xpose.msra.mxu0 %v21045_v62  ;;  %19000 = vmatpush3.bf16.xpose.msra.mxu1 %v21046_v63  ;;  %v13612_v6 = vmul.f32 %v22014_v7, %v5343_v4 }
 0x584   :  { %v18837_v5 = vpop.f32.mrf.mxu0  ;;  %18981 = vmatprep.subr.bf16.mxu0 %v24763_v1  ;;  %v18857_v8 = vpop.f32.mrf.mxu1  ;;  %19001 = vmatprep.subr.bf16.mxu1 %v24763_v1 }
 0x585   :  { %13934 = vadd.xlane.f32.xlu0 %v13610_v3  ;;  %18995 = vmatprep.mubr.msk.bf16.mxu0 %vm21861_vm0, %v24763_v1  ;;  %v21079_v8 = vld [vmem:[#allocation7 + $0xbb0] sm:$0xff]  }
 0x586   :  { %v5257_v10 = vpop.f32.mrf.mxu0  ;;  %19015 = vmatprep.mubr.msk.bf16.mxu1 %vm21861_vm0, %v24763_v1  ;;  %v5346_v11 = vpop.f32.mrf.mxu1 }
 0x587   :  { %v13611_v13 = vmul.f32 %v22021_v12, %v5257_v10  ;;  %v13613_v17 = vmul.f32 %v22021_v12, %v5346_v11  ;;  %v21080_v11 = vld [vmem:[#allocation7 + $0xbf0] sm:$0xff]  }
 0x588   :  { %v18838_v9 = vpop.f32.mrf.mxu0  ;;  %v18858_v16 = vpop.f32.mrf.mxu1 }
 0x589   :  { %13936 = vadd.xlane.f32.xlu1 %v13611_v13  ;;  %13938 = vadd.xlane.f32.xlu0 %v13612_v6  ;;  %v21081_v9 = vld [vmem:[#allocation7 + $0xba8] sm:$0xff]   ;;  %v21083_v16 = vld [vmem:[#allocation7 + $0xba0] sm:$0xff]  }
 0x58b   :  { %18982 = vmatpush3.bf16.xpose.msra.mxu0 %v21047_v14  ;;  %19002 = vmatpush3.bf16.xpose.msra.mxu1 %v21048_v15  ;;  %v21082_v15 = vld [vmem:[#allocation7 + $0xbe8] sm:$0xff]  }
 0x58c   :  { %18983 = vmatprep.subr.bf16.mxu0 %v24763_v1  ;;  %19003 = vmatprep.subr.bf16.mxu1 %v24763_v1 }
 0x58d   :  { %13940 = vadd.xlane.f32.xlu1 %v13613_v17  ;;  %v21084_v17 = vld [vmem:[#allocation7 + $0xbe0] sm:$0xff]  }
 0x593   :  { %18984 = vmatpush3.bf16.xpose.msra.mxu0 %v21049_v18  ;;  %19004 = vmatpush3.bf16.xpose.msra.mxu1 %v21050_v19  ;;  %v21085_v18 = vld [vmem:[#allocation7 + $0xb98] sm:$0xff]  }
 0x594   :  { %18985 = vmatprep.subr.bf16.mxu0 %v24763_v1  ;;  %19005 = vmatprep.subr.bf16.mxu1 %v24763_v1  ;;  %v21086_v19 = vld [vmem:[#allocation7 + $0xbd8] sm:$0xff]  }
 0x59b   :  { %18986 = vmatpush3.bf16.xpose.msra.mxu0 %v21051_v20  ;;  %19006 = vmatpush3.bf16.xpose.msra.mxu1 %v21052_v22  ;;  %v21087_v20 = vld [vmem:[#allocation7 + $0xb90] sm:$0xff]  }
 0x59c   :  { %18987 = vmatprep.subr.bf16.mxu0 %v24763_v1  ;;  %19007 = vmatprep.subr.bf16.mxu1 %v24763_v1  ;;  %v21088_v22 = vld [vmem:[#allocation7 + $0xbd0] sm:$0xff]  }
 0x5a3   :  { %18988 = vmatpush3.bf16.xpose.msra.mxu0 %v21053_v23  ;;  %19008 = vmatpush3.bf16.xpose.msra.mxu1 %v21054_v24  ;;  %v21089_v23 = vld [vmem:[#allocation7 + $0xb88] sm:$0xff]  }
 0x5a4   :  { %18989 = vmatprep.subr.bf16.mxu0 %v24763_v1  ;;  %19009 = vmatprep.subr.bf16.mxu1 %v24763_v1  ;;  %v21090_v24 = vld [vmem:[#allocation7 + $0xbc8] sm:$0xff]  }
 0x5ab   :  { %18990 = vmatpush3.bf16.xpose.msra.mxu0 %v21055_v25  ;;  %19010 = vmatpush3.bf16.xpose.msra.mxu1 %v21056_v26  ;;  %v21091_v25 = vld [vmem:[#allocation7 + $0xb80] sm:$0xff]  }
 0x5ac   :  { %18991 = vmatprep.subr.bf16.mxu0 %v24763_v1  ;;  %19011 = vmatprep.subr.bf16.mxu1 %v24763_v1  ;;  %v21092_v26 = vld [vmem:[#allocation7 + $0xbc0] sm:$0xff]  }
 0x5b3   :  { %18992 = vmatpush3.bf16.xpose.msra.mxu0 %v21057_v27  ;;  %19012 = vmatpush3.bf16.xpose.msra.mxu1 %v21058_v28  ;;  %v21093_v27 = vld [vmem:[#allocation7 + $0xc38] sm:$0xff]  }
 0x5b4   :  { %18993 = vmatprep.subr.bf16.mxu0 %v24763_v1  ;;  %19013 = vmatprep.subr.bf16.mxu1 %v24763_v1  ;;  %v21094_v28 = vld [vmem:[#allocation7 + $0xc78] sm:$0xff]  }
 0x5bb   :  { %18994 = vmatpush3.bf16.xpose.msra.mxu0 %v21059_v29  ;;  %19014 = vmatpush3.bf16.xpose.msra.mxu1 %v21060_v30 }
 0x5bc   :  { %19019 = vmatprep.subr.bf16.mxu0 %v24763_v1  ;;  %19039 = vmatprep.subr.bf16.mxu1 %v24763_v1 }
 0x5c2   :  { %v5432_v33 = vpop.f32.mrf.mxu0  ;;  %18996 = vmatmul.mubr.bf16.vlgmr.msra.gmra.mxu0 %v22468_v2  ;;  %v5521_v36 = vpop.f32.mrf.mxu1  ;;  %19016 = vmatmul.mubr.bf16.vlgmr.msra.gmra.mxu1 %v22468_v2 }
 0x5c3   :  { %v13614_v35 = vmul.f32 %v22014_v7, %v5432_v33  ;;  %19020 = vmatpush3.bf16.xpose.msra.mxu0 %v21061_v31  ;;  %19040 = vmatpush3.bf16.xpose.msra.mxu1 %v21062_v32  ;;  %v13616_v38 = vmul.f32 %v22014_v7, %v5521_v36 }
 0x5c4   :  { %v18877_v37 = vpop.f32.mrf.mxu0  ;;  %19021 = vmatprep.subr.bf16.mxu0 %v24763_v1  ;;  %v18897_v34 = vpop.f32.mrf.mxu1  ;;  %19041 = vmatprep.subr.bf16.mxu1 %v24763_v1 }
 0x5c5   :  { %13942 = vadd.xlane.f32.xlu0 %v13614_v35  ;;  %19035 = vmatprep.mubr.msk.bf16.mxu0 %vm21861_vm0, %v24763_v1  ;;  %v21095_v34 = vld [vmem:[#allocation7 + $0xc30] sm:$0xff]  }
 0x5c6   :  { %v5435_v39 = vpop.f32.mrf.mxu0  ;;  %19055 = vmatprep.mubr.msk.bf16.mxu1 %vm21861_vm0, %v24763_v1  ;;  %v5524_v40 = vpop.f32.mrf.mxu1 }
 0x5c7   :  { %v13615_v41 = vmul.f32 %v22021_v12, %v5435_v39  ;;  %v13617_v45 = vmul.f32 %v22021_v12, %v5524_v40  ;;  %v21096_v40 = vld [vmem:[#allocation7 + $0xc70] sm:$0xff]  }
 0x5c8   :  { %v18878_v43 = vpop.f32.mrf.mxu0  ;;  %v18898_v21 = vpop.f32.mrf.mxu1 }
 0x5c9   :  { %13944 = vadd.xlane.f32.xlu1 %v13615_v41  ;;  %13946 = vadd.xlane.f32.xlu0 %v13616_v38  ;;  %v21097_v43 = vld [vmem:[#allocation7 + $0xc28] sm:$0xff]   ;;  %v21099_v21 = vld [vmem:[#allocation7 + $0xc20] sm:$0xff]  }
 0x5cb   :  { %19022 = vmatpush3.bf16.xpose.msra.mxu0 %v21063_v42  ;;  %19042 = vmatpush3.bf16.xpose.msra.mxu1 %v21064_v44  ;;  %v21098_v44 = vld [vmem:[#allocation7 + $0xc68] sm:$0xff]  }
 0x5cc   :  { %19023 = vmatprep.subr.bf16.mxu0 %v24763_v1  ;;  %19043 = vmatprep.subr.bf16.mxu1 %v24763_v1 }
 0x5cd   :  { %13948 = vadd.xlane.f32.xlu1 %v13617_v45  ;;  %v21100_v45 = vld [vmem:[#allocation7 + $0xc60] sm:$0xff]  }
 0x5d3   :  { %19024 = vmatpush3.bf16.xpose.msra.mxu0 %v21065_v46  ;;  %19044 = vmatpush3.bf16.xpose.msra.mxu1 %v21066_v47  ;;  %v21101_v46 = vld [vmem:[#allocation7 + $0xc18] sm:$0xff]  }
 0x5d4   :  { %19025 = vmatprep.subr.bf16.mxu0 %v24763_v1  ;;  %19045 = vmatprep.subr.bf16.mxu1 %v24763_v1  ;;  %v21102_v47 = vld [vmem:[#allocation7 + $0xc58] sm:$0xff]  }
 0x5db   :  { %19026 = vmatpush3.bf16.xpose.msra.mxu0 %v21067_v48  ;;  %19046 = vmatpush3.bf16.xpose.msra.mxu1 %v21068_v49  ;;  %v21103_v48 = vld [vmem:[#allocation7 + $0xc10] sm:$0xff]  }
 0x5dc   :  { %19027 = vmatprep.subr.bf16.mxu0 %v24763_v1  ;;  %19047 = vmatprep.subr.bf16.mxu1 %v24763_v1  ;;  %v21104_v49 = vld [vmem:[#allocation7 + $0xc50] sm:$0xff]  }
 0x5e3   :  { %19028 = vmatpush3.bf16.xpose.msra.mxu0 %v21069_v50  ;;  %19048 = vmatpush3.bf16.xpose.msra.mxu1 %v21070_v51  ;;  %v21105_v50 = vld [vmem:[#allocation7 + $0xc08] sm:$0xff]  }
 0x5e4   :  { %19029 = vmatprep.subr.bf16.mxu0 %v24763_v1  ;;  %19049 = vmatprep.subr.bf16.mxu1 %v24763_v1  ;;  %v21106_v51 = vld [vmem:[#allocation7 + $0xc48] sm:$0xff]  }
 0x5eb   :  { %19030 = vmatpush3.bf16.xpose.msra.mxu0 %v21071_v52  ;;  %19050 = vmatpush3.bf16.xpose.msra.mxu1 %v21072_v53  ;;  %v21107_v52 = vld [vmem:[#allocation7 + $0xc00] sm:$0xff]  }
 0x5ec   :  { %19031 = vmatprep.subr.bf16.mxu0 %v24763_v1  ;;  %19051 = vmatprep.subr.bf16.mxu1 %v24763_v1  ;;  %v21108_v53 = vld [vmem:[#allocation7 + $0xc40] sm:$0xff]  }
 0x5f3   :  { %19032 = vmatpush3.bf16.xpose.msra.mxu0 %v21073_v54  ;;  %19052 = vmatpush3.bf16.xpose.msra.mxu1 %v21074_v55  ;;  %v21109_v54 = vld [vmem:[#allocation7 + $0xcb8] sm:$0xff]  }
 0x5f4   :  { %19033 = vmatprep.subr.bf16.mxu0 %v24763_v1  ;;  %19053 = vmatprep.subr.bf16.mxu1 %v24763_v1  ;;  %v21110_v55 = vld [vmem:[#allocation7 + $0xcf8] sm:$0xff]  }
 0x5fb   :  { %19034 = vmatpush3.bf16.xpose.msra.mxu0 %v21075_v56  ;;  %19054 = vmatpush3.bf16.xpose.msra.mxu1 %v21076_v57 }
 0x5fc   :  { %19059 = vmatprep.subr.bf16.mxu0 %v24763_v1  ;;  %19079 = vmatprep.subr.bf16.mxu1 %v24763_v1 }
 0x602   :  { %v5610_v61 = vpop.f32.mrf.mxu0  ;;  %19036 = vmatmul.mubr.bf16.vlgmr.msra.gmra.mxu0 %v22468_v2  ;;  %v5699_v62 = vpop.f32.mrf.mxu1  ;;  %19056 = vmatmul.mubr.bf16.vlgmr.msra.gmra.mxu1 %v22468_v2 }
 0x603   :  { %v13618_v58 = vmul.f32 %v22014_v7, %v5610_v61  ;;  %19060 = vmatpush3.bf16.xpose.msra.mxu0 %v21077_v59  ;;  %19080 = vmatpush3.bf16.xpose.msra.mxu1 %v21078_v60  ;;  %v13620_v0 = vmul.f32 %v22014_v7, %v5699_v62 }
 0x604   :  { %v18917_v63 = vpop.f32.mrf.mxu0  ;;  %19061 = vmatprep.subr.bf16.mxu0 %v24763_v1  ;;  %v18937_v3 = vpop.f32.mrf.mxu1  ;;  %19081 = vmatprep.subr.bf16.mxu1 %v24763_v1 }
 0x605   :  { %13950 = vadd.xlane.f32.xlu0 %v13618_v58  ;;  %19075 = vmatprep.mubr.msk.bf16.mxu0 %vm21861_vm0, %v24763_v1  ;;  %v21111_v3 = vld [vmem:[#allocation7 + $0xcb0] sm:$0xff]  }
 0x606   :  { %v5613_v4 = vpop.f32.mrf.mxu0  ;;  %19095 = vmatprep.mubr.msk.bf16.mxu1 %vm21861_vm0, %v24763_v1  ;;  %v5702_v5 = vpop.f32.mrf.mxu1 }
 0x607   :  { %v13619_v6 = vmul.f32 %v22021_v12, %v5613_v4  ;;  %v13621_v14 = vmul.f32 %v22021_v12, %v5702_v5  ;;  %v21112_v5 = vld [vmem:[#allocation7 + $0xcf0] sm:$0xff]  }
 0x608   :  { %v18918_v10 = vpop.f32.mrf.mxu0  ;;  %v18938_v13 = vpop.f32.mrf.mxu1 }
 0x609   :  { %13952 = vadd.xlane.f32.xlu1 %v13619_v6  ;;  %13954 = vadd.xlane.f32.xlu0 %v13620_v0  ;;  %v21113_v10 = vld [vmem:[#allocation7 + $0xca8] sm:$0xff]   ;;  %v21115_v13 = vld [vmem:[#allocation7 + $0xca0] sm:$0xff]  }
 0x60b   :  { %19062 = vmatpush3.bf16.xpose.msra.mxu0 %v21079_v8  ;;  %19082 = vmatpush3.bf16.xpose.msra.mxu1 %v21080_v11  ;;  %v21114_v11 = vld [vmem:[#allocation7 + $0xce8] sm:$0xff]  }
 0x60c   :  { %19063 = vmatprep.subr.bf16.mxu0 %v24763_v1  ;;  %19083 = vmatprep.subr.bf16.mxu1 %v24763_v1 }
 0x60d   :  { %13956 = vadd.xlane.f32.xlu1 %v13621_v14  ;;  %v21116_v14 = vld [vmem:[#allocation7 + $0xce0] sm:$0xff]  }
 0x613   :  { %19064 = vmatpush3.bf16.xpose.msra.mxu0 %v21081_v9  ;;  %19084 = vmatpush3.bf16.xpose.msra.mxu1 %v21082_v15  ;;  %v21117_v9 = vld [vmem:[#allocation7 + $0xc98] sm:$0xff]  }
 0x614   :  { %19065 = vmatprep.subr.bf16.mxu0 %v24763_v1  ;;  %19085 = vmatprep.subr.bf16.mxu1 %v24763_v1  ;;  %v21118_v15 = vld [vmem:[#allocation7 + $0xcd8] sm:$0xff]  }
 0x61b   :  { %19066 = vmatpush3.bf16.xpose.msra.mxu0 %v21083_v16  ;;  %19086 = vmatpush3.bf16.xpose.msra.mxu1 %v21084_v17  ;;  %v21119_v16 = vld [vmem:[#allocation7 + $0xc90] sm:$0xff]  }
 0x61c   :  { %19067 = vmatprep.subr.bf16.mxu0 %v24763_v1  ;;  %19087 = vmatprep.subr.bf16.mxu1 %v24763_v1  ;;  %v21120_v17 = vld [vmem:[#allocation7 + $0xcd0] sm:$0xff]  }
 0x623   :  { %19068 = vmatpush3.bf16.xpose.msra.mxu0 %v21085_v18  ;;  %19088 = vmatpush3.bf16.xpose.msra.mxu1 %v21086_v19  ;;  %v21121_v18 = vld [vmem:[#allocation7 + $0xc88] sm:$0xff]  }
 0x624   :  { %19069 = vmatprep.subr.bf16.mxu0 %v24763_v1  ;;  %19089 = vmatprep.subr.bf16.mxu1 %v24763_v1  ;;  %v21122_v19 = vld [vmem:[#allocation7 + $0xcc8] sm:$0xff]  }
 0x62b   :  { %19070 = vmatpush3.bf16.xpose.msra.mxu0 %v21087_v20  ;;  %19090 = vmatpush3.bf16.xpose.msra.mxu1 %v21088_v22  ;;  %v21123_v20 = vld [vmem:[#allocation7 + $0xc80] sm:$0xff]  }
 0x62c   :  { %19071 = vmatprep.subr.bf16.mxu0 %v24763_v1  ;;  %19091 = vmatprep.subr.bf16.mxu1 %v24763_v1  ;;  %v21124_v22 = vld [vmem:[#allocation7 + $0xcc0] sm:$0xff]  }
 0x633   :  { %19072 = vmatpush3.bf16.xpose.msra.mxu0 %v21089_v23  ;;  %19092 = vmatpush3.bf16.xpose.msra.mxu1 %v21090_v24  ;;  %v21125_v23 = vld [vmem:[#allocation7 + $0xd38] sm:$0xff]  }
 0x634   :  { %19073 = vmatprep.subr.bf16.mxu0 %v24763_v1  ;;  %19093 = vmatprep.subr.bf16.mxu1 %v24763_v1  ;;  %v21126_v24 = vld [vmem:[#allocation7 + $0xd78] sm:$0xff]  }
 0x63b   :  { %19074 = vmatpush3.bf16.xpose.msra.mxu0 %v21091_v25  ;;  %19094 = vmatpush3.bf16.xpose.msra.mxu1 %v21092_v26 }
 0x63c   :  { %19099 = vmatprep.subr.bf16.mxu0 %v24763_v1  ;;  %19119 = vmatprep.subr.bf16.mxu1 %v24763_v1 }
 0x642   :  { %v5788_v29 = vpop.f32.mrf.mxu0  ;;  %19076 = vmatmul.mubr.bf16.vlgmr.msra.gmra.mxu0 %v22468_v2  ;;  %v5877_v31 = vpop.f32.mrf.mxu1  ;;  %19096 = vmatmul.mubr.bf16.vlgmr.msra.gmra.mxu1 %v22468_v2 }
 0x643   :  { %v13622_v30 = vmul.f32 %v22014_v7, %v5788_v29  ;;  %19100 = vmatpush3.bf16.xpose.msra.mxu0 %v21093_v27  ;;  %19120 = vmatpush3.bf16.xpose.msra.mxu1 %v21094_v28  ;;  %v13624_v33 = vmul.f32 %v22014_v7, %v5877_v31 }
 0x644   :  { %v18957_v32 = vpop.f32.mrf.mxu0  ;;  %19101 = vmatprep.subr.bf16.mxu0 %v24763_v1  ;;  %v18977_v35 = vpop.f32.mrf.mxu1  ;;  %19121 = vmatprep.subr.bf16.mxu1 %v24763_v1 }
 0x645   :  { %13958 = vadd.xlane.f32.xlu0 %v13622_v30  ;;  %19115 = vmatprep.mubr.msk.bf16.mxu0 %vm21861_vm0, %v24763_v1  ;;  %v21127_v35 = vld [vmem:[#allocation7 + $0xd30] sm:$0xff]  }
 0x646   :  { %v5791_v36 = vpop.f32.mrf.mxu0  ;;  %19135 = vmatprep.mubr.msk.bf16.mxu1 %vm21861_vm0, %v24763_v1  ;;  %v5880_v37 = vpop.f32.mrf.mxu1 }
 0x647   :  { %v13623_v38 = vmul.f32 %v22021_v12, %v5791_v36  ;;  %v13625_v42 = vmul.f32 %v22021_v12, %v5880_v37  ;;  %v21128_v37 = vld [vmem:[#allocation7 + $0xd70] sm:$0xff]  }
 0x648   :  { %v18958_v39 = vpop.f32.mrf.mxu0  ;;  %v18978_v41 = vpop.f32.mrf.mxu1 }
 0x649   :  { %13960 = vadd.xlane.f32.xlu1 %v13623_v38  ;;  %13962 = vadd.xlane.f32.xlu0 %v13624_v33  ;;  %v21129_v39 = vld [vmem:[#allocation7 + $0xd28] sm:$0xff]   ;;  %v21131_v41 = vld [vmem:[#allocation7 + $0xd20] sm:$0xff]  }
 0x64b   :  { %19102 = vmatpush3.bf16.xpose.msra.mxu0 %v21095_v34  ;;  %19122 = vmatpush3.bf16.xpose.msra.mxu1 %v21096_v40  ;;  %v21130_v40 = vld [vmem:[#allocation7 + $0xd68] sm:$0xff]  }
 0x64c   :  { %19103 = vmatprep.subr.bf16.mxu0 %v24763_v1  ;;  %19123 = vmatprep.subr.bf16.mxu1 %v24763_v1 }
 0x64d   :  { %13964 = vadd.xlane.f32.xlu1 %v13625_v42  ;;  %v21132_v42 = vld [vmem:[#allocation7 + $0xd60] sm:$0xff]  }
 0x653   :  { %19104 = vmatpush3.bf16.xpose.msra.mxu0 %v21097_v43  ;;  %19124 = vmatpush3.bf16.xpose.msra.mxu1 %v21098_v44  ;;  %v21133_v43 = vld [vmem:[#allocation7 + $0xd18] sm:$0xff]  }
 0x654   :  { %19105 = vmatprep.subr.bf16.mxu0 %v24763_v1  ;;  %19125 = vmatprep.subr.bf16.mxu1 %v24763_v1  ;;  %v21134_v44 = vld [vmem:[#allocation7 + $0xd58] sm:$0xff]  }
 0x65b   :  { %19106 = vmatpush3.bf16.xpose.msra.mxu0 %v21099_v21  ;;  %19126 = vmatpush3.bf16.xpose.msra.mxu1 %v21100_v45  ;;  %v21135_v21 = vld [vmem:[#allocation7 + $0xd10] sm:$0xff]  }
 0x65c   :  { %19107 = vmatprep.subr.bf16.mxu0 %v24763_v1  ;;  %19127 = vmatprep.subr.bf16.mxu1 %v24763_v1  ;;  %v21136_v45 = vld [vmem:[#allocation7 + $0xd50] sm:$0xff]  }
 0x663   :  { %19108 = vmatpush3.bf16.xpose.msra.mxu0 %v21101_v46  ;;  %19128 = vmatpush3.bf16.xpose.msra.mxu1 %v21102_v47  ;;  %v21137_v46 = vld [vmem:[#allocation7 + $0xd08] sm:$0xff]  }
 0x664   :  { %19109 = vmatprep.subr.bf16.mxu0 %v24763_v1  ;;  %19129 = vmatprep.subr.bf16.mxu1 %v24763_v1  ;;  %v21138_v47 = vld [vmem:[#allocation7 + $0xd48] sm:$0xff]  }
 0x66b   :  { %19110 = vmatpush3.bf16.xpose.msra.mxu0 %v21103_v48  ;;  %19130 = vmatpush3.bf16.xpose.msra.mxu1 %v21104_v49  ;;  %v21139_v48 = vld [vmem:[#allocation7 + $0xd00] sm:$0xff]  }
 0x66c   :  { %19111 = vmatprep.subr.bf16.mxu0 %v24763_v1  ;;  %19131 = vmatprep.subr.bf16.mxu1 %v24763_v1  ;;  %v21140_v49 = vld [vmem:[#allocation7 + $0xd40] sm:$0xff]  }
 0x673   :  { %19112 = vmatpush3.bf16.xpose.msra.mxu0 %v21105_v50  ;;  %19132 = vmatpush3.bf16.xpose.msra.mxu1 %v21106_v51  ;;  %v21141_v50 = vld [vmem:[#allocation7 + $0xdb8] sm:$0xff]  }
 0x674   :  { %19113 = vmatprep.subr.bf16.mxu0 %v24763_v1  ;;  %19133 = vmatprep.subr.bf16.mxu1 %v24763_v1  ;;  %v21142_v51 = vld [vmem:[#allocation7 + $0xdf8] sm:$0xff]  }
 0x67b   :  { %19114 = vmatpush3.bf16.xpose.msra.mxu0 %v21107_v52  ;;  %19134 = vmatpush3.bf16.xpose.msra.mxu1 %v21108_v53 }
 0x67c   :  { %19139 = vmatprep.subr.bf16.mxu0 %v24763_v1  ;;  %19159 = vmatprep.subr.bf16.mxu1 %v24763_v1 }
 0x682   :  { %v5966_v56 = vpop.f32.mrf.mxu0  ;;  %19116 = vmatmul.mubr.bf16.vlgmr.msra.gmra.mxu0 %v22468_v2  ;;  %v6055_v59 = vpop.f32.mrf.mxu1  ;;  %19136 = vmatmul.mubr.bf16.vlgmr.msra.gmra.mxu1 %v22468_v2 }
 0x683   :  { %v13626_v57 = vmul.f32 %v22014_v7, %v5966_v56  ;;  %19140 = vmatpush3.bf16.xpose.msra.mxu0 %v21109_v54  ;;  %19160 = vmatpush3.bf16.xpose.msra.mxu1 %v21110_v55  ;;  %v13628_v61 = vmul.f32 %v22014_v7, %v6055_v59 }
 0x684   :  { %v18997_v60 = vpop.f32.mrf.mxu0  ;;  %19141 = vmatprep.subr.bf16.mxu0 %v24763_v1  ;;  %v19017_v58 = vpop.f32.mrf.mxu1  ;;  %19161 = vmatprep.subr.bf16.mxu1 %v24763_v1 }
 0x685   :  { %13966 = vadd.xlane.f32.xlu0 %v13626_v57  ;;  %19155 = vmatprep.mubr.msk.bf16.mxu0 %vm21861_vm0, %v24763_v1  ;;  %v21143_v58 = vld [vmem:[#allocation7 + $0xdb0] sm:$0xff]  }
 0x686   :  { %v5969_v62 = vpop.f32.mrf.mxu0  ;;  %19175 = vmatprep.mubr.msk.bf16.mxu1 %vm21861_vm0, %v24763_v1  ;;  %v6058_v63 = vpop.f32.mrf.mxu1 }
 0x687   :  { %v13627_v0 = vmul.f32 %v22021_v12, %v5969_v62  ;;  %v13629_v8 = vmul.f32 %v22021_v12, %v6058_v63  ;;  %v21144_v63 = vld [vmem:[#allocation7 + $0xdf0] sm:$0xff]  }
 0x688   :  { %v18998_v4 = vpop.f32.mrf.mxu0  ;;  %v19018_v6 = vpop.f32.mrf.mxu1 }
 0x689   :  { %13968 = vadd.xlane.f32.xlu1 %v13627_v0  ;;  %13970 = vadd.xlane.f32.xlu0 %v13628_v61  ;;  %v21145_v4 = vld [vmem:[#allocation7 + $0xda8] sm:$0xff]   ;;  %v21147_v6 = vld [vmem:[#allocation7 + $0xda0] sm:$0xff]  }
 0x68b   :  { %19142 = vmatpush3.bf16.xpose.msra.mxu0 %v21111_v3  ;;  %19162 = vmatpush3.bf16.xpose.msra.mxu1 %v21112_v5  ;;  %v21146_v5 = vld [vmem:[#allocation7 + $0xde8] sm:$0xff]  }
 0x68c   :  { %19143 = vmatprep.subr.bf16.mxu0 %v24763_v1  ;;  %19163 = vmatprep.subr.bf16.mxu1 %v24763_v1 }
 0x68d   :  { %13972 = vadd.xlane.f32.xlu1 %v13629_v8  ;;  %v21148_v8 = vld [vmem:[#allocation7 + $0xde0] sm:$0xff]  }
 0x693   :  { %19144 = vmatpush3.bf16.xpose.msra.mxu0 %v21113_v10  ;;  %19164 = vmatpush3.bf16.xpose.msra.mxu1 %v21114_v11  ;;  %v21149_v10 = vld [vmem:[#allocation7 + $0xd98] sm:$0xff]  }
 0x694   :  { %19145 = vmatprep.subr.bf16.mxu0 %v24763_v1  ;;  %19165 = vmatprep.subr.bf16.mxu1 %v24763_v1  ;;  %v21150_v11 = vld [vmem:[#allocation7 + $0xdd8] sm:$0xff]  }
 0x69b   :  { %19146 = vmatpush3.bf16.xpose.msra.mxu0 %v21115_v13  ;;  %19166 = vmatpush3.bf16.xpose.msra.mxu1 %v21116_v14  ;;  %v21151_v13 = vld [vmem:[#allocation7 + $0xd90] sm:$0xff]  }
 0x69c   :  { %19147 = vmatprep.subr.bf16.mxu0 %v24763_v1  ;;  %19167 = vmatprep.subr.bf16.mxu1 %v24763_v1  ;;  %v21152_v14 = vld [vmem:[#allocation7 + $0xdd0] sm:$0xff]  }
 0x6a3   :  { %19148 = vmatpush3.bf16.xpose.msra.mxu0 %v21117_v9  ;;  %19168 = vmatpush3.bf16.xpose.msra.mxu1 %v21118_v15  ;;  %v21153_v9 = vld [vmem:[#allocation7 + $0xd88] sm:$0xff]  }
 0x6a4   :  { %19149 = vmatprep.subr.bf16.mxu0 %v24763_v1  ;;  %19169 = vmatprep.subr.bf16.mxu1 %v24763_v1  ;;  %v21154_v15 = vld [vmem:[#allocation7 + $0xdc8] sm:$0xff]  }
 0x6ab   :  { %19150 = vmatpush3.bf16.xpose.msra.mxu0 %v21119_v16  ;;  %19170 = vmatpush3.bf16.xpose.msra.mxu1 %v21120_v17  ;;  %v21155_v16 = vld [vmem:[#allocation7 + $0xd80] sm:$0xff]  }
 0x6ac   :  { %19151 = vmatprep.subr.bf16.mxu0 %v24763_v1  ;;  %19171 = vmatprep.subr.bf16.mxu1 %v24763_v1  ;;  %v21156_v17 = vld [vmem:[#allocation7 + $0xdc0] sm:$0xff]  }
 0x6b3   :  { %19152 = vmatpush3.bf16.xpose.msra.mxu0 %v21121_v18  ;;  %19172 = vmatpush3.bf16.xpose.msra.mxu1 %v21122_v19  ;;  %v21157_v18 = vld [vmem:[#allocation7 + $0xe38] sm:$0xff]  }
 0x6b4   :  { %19153 = vmatprep.subr.bf16.mxu0 %v24763_v1  ;;  %19173 = vmatprep.subr.bf16.mxu1 %v24763_v1  ;;  %v21158_v19 = vld [vmem:[#allocation7 + $0xe78] sm:$0xff]  }
 0x6bb   :  { %19154 = vmatpush3.bf16.xpose.msra.mxu0 %v21123_v20  ;;  %19174 = vmatpush3.bf16.xpose.msra.mxu1 %v21124_v22 }
 0x6bc   :  { %19179 = vmatprep.subr.bf16.mxu0 %v24763_v1  ;;  %19199 = vmatprep.subr.bf16.mxu1 %v24763_v1 }
 0x6c2   :  { %v6144_v25 = vpop.f32.mrf.mxu0  ;;  %19156 = vmatmul.mubr.bf16.vlgmr.msra.gmra.mxu0 %v22468_v2  ;;  %v6233_v27 = vpop.f32.mrf.mxu1  ;;  %19176 = vmatmul.mubr.bf16.vlgmr.msra.gmra.mxu1 %v22468_v2 }
 0x6c3   :  { %v13630_v26 = vmul.f32 %v22014_v7, %v6144_v25  ;;  %19180 = vmatpush3.bf16.xpose.msra.mxu0 %v21125_v23  ;;  %19200 = vmatpush3.bf16.xpose.msra.mxu1 %v21126_v24  ;;  %v13632_v29 = vmul.f32 %v22014_v7, %v6233_v27 }
 0x6c4   :  { %v19037_v28 = vpop.f32.mrf.mxu0  ;;  %19181 = vmatprep.subr.bf16.mxu0 %v24763_v1  ;;  %v19057_v30 = vpop.f32.mrf.mxu1  ;;  %19201 = vmatprep.subr.bf16.mxu1 %v24763_v1 }
 0x6c5   :  { %13974 = vadd.xlane.f32.xlu0 %v13630_v26  ;;  %19195 = vmatprep.mubr.msk.bf16.mxu0 %vm21861_vm0, %v24763_v1 }
 0x6c6   :  { %v6147_v31 = vpop.f32.mrf.mxu0  ;;  %19215 = vmatprep.mubr.msk.bf16.mxu1 %vm21861_vm0, %v24763_v1  ;;  %v6236_v32 = vpop.f32.mrf.mxu1 }
 0x6c7   :  { %v13631_v33 = vmul.f32 %v22021_v12, %v6147_v31  ;;  %v13633_v34 = vmul.f32 %v22021_v12, %v6236_v32  ;;  %v21160_v31 = vld [vmem:[#allocation7 + $0xe70] sm:$0xff]   ;;  %v22663_v32 = vpop.xlane.xlu0 %13798 }
 0x6c8   :  { %v19038_v36 = vpop.f32.mrf.mxu0  ;;  %v19058_v38 = vpop.f32.mrf.mxu1 }
 0x6c9   :  { %13976 = vadd.xlane.f32.xlu1 %v13631_v33  ;;  %13978 = vadd.xlane.f32.xlu0 %v13632_v29  ;;  %v21159_v29 = vld [vmem:[#allocation7 + $0xe30] sm:$0xff]   ;;  %v22667_v36 = vpop.xlane.xlu1 %13802  ;;  %v21162_v38 = vld [vmem:[#allocation7 + $0xe68] sm:$0xff]  }
 0x6cb   :  { %19182 = vmatpush3.bf16.xpose.msra.mxu0 %v21127_v35  ;;  %19202 = vmatpush3.bf16.xpose.msra.mxu1 %v21128_v37  ;;  %v21161_v37 = vld [vmem:[#allocation7 + $0xe28] sm:$0xff]  }
 0x6cc   :  { %19183 = vmatprep.subr.bf16.mxu0 %v24763_v1  ;;  %19203 = vmatprep.subr.bf16.mxu1 %v24763_v1 }
 0x6cd   :  { %13980 = vadd.xlane.f32.xlu1 %v13633_v34  ;;  %v21163_v34 = vld [vmem:[#allocation7 + $0xe20] sm:$0xff]  }
 0x6d3   :  { %19184 = vmatpush3.bf16.xpose.msra.mxu0 %v21129_v39  ;;  %19204 = vmatpush3.bf16.xpose.msra.mxu1 %v21130_v40  ;;  %v21164_v39 = vld [vmem:[#allocation7 + $0xe60] sm:$0xff]   ;;  %v21165_v40 = vld [vmem:[#allocation7 + $0xe18] sm:$0xff]  }
 0x6d4   :  { %19185 = vmatprep.subr.bf16.mxu0 %v24763_v1  ;;  %19205 = vmatprep.subr.bf16.mxu1 %v24763_v1 }
 0x6db   :  { %19186 = vmatpush3.bf16.xpose.msra.mxu0 %v21131_v41  ;;  %19206 = vmatpush3.bf16.xpose.msra.mxu1 %v21132_v42  ;;  %v21166_v41 = vld [vmem:[#allocation7 + $0xe58] sm:$0xff]   ;;  %v21167_v42 = vld [vmem:[#allocation7 + $0xe10] sm:$0xff]  }
 0x6dc   :  { %19187 = vmatprep.subr.bf16.mxu0 %v24763_v1  ;;  %19207 = vmatprep.subr.bf16.mxu1 %v24763_v1 }
 0x6e3   :  { %19188 = vmatpush3.bf16.xpose.msra.mxu0 %v21133_v43  ;;  %19208 = vmatpush3.bf16.xpose.msra.mxu1 %v21134_v44  ;;  %v21168_v43 = vld [vmem:[#allocation7 + $0xe50] sm:$0xff]   ;;  %v21169_v44 = vld [vmem:[#allocation7 + $0xe08] sm:$0xff]  }
 0x6e4   :  { %19189 = vmatprep.subr.bf16.mxu0 %v24763_v1  ;;  %19209 = vmatprep.subr.bf16.mxu1 %v24763_v1 }
 0x6eb   :  { %19190 = vmatpush3.bf16.xpose.msra.mxu0 %v21135_v21  ;;  %19210 = vmatpush3.bf16.xpose.msra.mxu1 %v21136_v45  ;;  %v21170_v21 = vld [vmem:[#allocation7 + $0xe48] sm:$0xff]   ;;  %v21171_v45 = vld [vmem:[#allocation7 + $0xe00] sm:$0xff]  }
 0x6ec   :  { %19191 = vmatprep.subr.bf16.mxu0 %v24763_v1  ;;  %19211 = vmatprep.subr.bf16.mxu1 %v24763_v1 }
 0x6f3   :  { %19192 = vmatpush3.bf16.xpose.msra.mxu0 %v21137_v46  ;;  %19212 = vmatpush3.bf16.xpose.msra.mxu1 %v21138_v47  ;;  %v21172_v46 = vld [vmem:[#allocation7 + $0xe40] sm:$0xff]   ;;  %v21173_v47 = vld [vmem:[#allocation7 + $0xeb8] sm:$0xff]  }
 0x6f4   :  { %19193 = vmatprep.subr.bf16.mxu0 %v24763_v1  ;;  %19213 = vmatprep.subr.bf16.mxu1 %v24763_v1 }
 0x6fb   :  { %19194 = vmatpush3.bf16.xpose.msra.mxu0 %v21139_v48  ;;  %19214 = vmatpush3.bf16.xpose.msra.mxu1 %v21140_v49  ;;  %v21174_v48 = vld [vmem:[#allocation7 + $0xef8] sm:$0xff]  }
 0x6fc   :  { %19219 = vmatprep.subr.bf16.mxu0 %v24763_v1  ;;  %19239 = vmatprep.subr.bf16.mxu1 %v24763_v1 }
 0x702   :  { %v6322_v52 = vpop.f32.mrf.mxu0  ;;  %19196 = vmatmul.mubr.bf16.vlgmr.msra.gmra.mxu0 %v22468_v2  ;;  %v6411_v54 = vpop.f32.mrf.mxu1  ;;  %19216 = vmatmul.mubr.bf16.vlgmr.msra.gmra.mxu1 %v22468_v2 }
 0x703   :  { %v13634_v53 = vmul.f32 %v22014_v7, %v6322_v52  ;;  %19220 = vmatpush3.bf16.xpose.msra.mxu0 %v21141_v50  ;;  %19240 = vmatpush3.bf16.xpose.msra.mxu1 %v21142_v51  ;;  %v13636_v56 = vmul.f32 %v22014_v7, %v6411_v54  ;;  %v22682_v50 = vld [vmem:[#allocation5] sm:$0xff]   ;;  %v22688_v54 = vpop.xlane.xlu0 %13800 }
 0x704   :  { %v19077_v55 = vpop.f32.mrf.mxu0  ;;  %19221 = vmatprep.subr.bf16.mxu0 %v24763_v1  ;;  %v19097_v57 = vpop.f32.mrf.mxu1  ;;  %19241 = vmatprep.subr.bf16.mxu1 %v24763_v1 }
 0x705   :  { %13982 = vadd.xlane.f32.xlu0 %v13634_v53  ;;  %19235 = vmatprep.mubr.msk.bf16.mxu0 %vm21861_vm0, %v24763_v1 }
 0x706   :  { %v6325_v59 = vpop.f32.mrf.mxu0  ;;  %19255 = vmatprep.mubr.msk.bf16.mxu1 %vm21861_vm0, %v24763_v1  ;;  %v6414_v60 = vpop.f32.mrf.mxu1 }
 0x707   :  { %v13635_v61 = vmul.f32 %v22021_v12, %v6325_v59  ;;  %v13637_v3 = vmul.f32 %v22021_v12, %v6414_v60 }
 0x708   :  { %v19078_v62 = vpop.f32.mrf.mxu0  ;;  %v19098_v0 = vpop.f32.mrf.mxu1 }
 0x709   :  { %13984 = vadd.xlane.f32.xlu1 %v13635_v61  ;;  %13986 = vadd.xlane.f32.xlu0 %v13636_v56  ;;  %v21175_v61 = vld [vmem:[#allocation7 + $0xeb0] sm:$0xff]   ;;  %v22699_v0 = vpop.xlane.xlu0 %13806 }
 0x70b   :  { %19222 = vmatpush3.bf16.xpose.msra.mxu0 %v21143_v58  ;;  %19242 = vmatpush3.bf16.xpose.msra.mxu1 %v21144_v63  ;;  %v22697_v58 = vpop.xlane.xlu1 %13804  ;;  %v21176_v63 = vld [vmem:[#allocation7 + $0xef0] sm:$0xff]  }
 0x70c   :  { %19223 = vmatprep.subr.bf16.mxu0 %v24763_v1  ;;  %19243 = vmatprep.subr.bf16.mxu1 %v24763_v1 }
 0x70d   :  { %13988 = vadd.xlane.f32.xlu1 %v13637_v3 }
 0x713   :  { %19224 = vmatpush3.bf16.xpose.msra.mxu0 %v21145_v4  ;;  %19244 = vmatpush3.bf16.xpose.msra.mxu1 %v21146_v5  ;;  %v22703_v5 = vpop.xlane.xlu1 %13808 }
 0x714   :  { %19225 = vmatprep.subr.bf16.mxu0 %v24763_v1  ;;  %19245 = vmatprep.subr.bf16.mxu1 %v24763_v1 }
 0x71b   :  { %19226 = vmatpush3.bf16.xpose.msra.mxu0 %v21147_v6  ;;  %19246 = vmatpush3.bf16.xpose.msra.mxu1 %v21148_v8  ;;  %v21177_v6 = vld [vmem:[#allocation7 + $0xea8] sm:$0xff]  }
 0x71c   :  { %19227 = vmatprep.subr.bf16.mxu0 %v24763_v1  ;;  %19247 = vmatprep.subr.bf16.mxu1 %v24763_v1  ;;  %v21178_v8 = vld [vmem:[#allocation7 + $0xee8] sm:$0xff]  }
 0x723   :  { %19228 = vmatpush3.bf16.xpose.msra.mxu0 %v21149_v10  ;;  %19248 = vmatpush3.bf16.xpose.msra.mxu1 %v21150_v11  ;;  %v21179_v10 = vld [vmem:[#allocation7 + $0xea0] sm:$0xff]  }
 0x724   :  { %19229 = vmatprep.subr.bf16.mxu0 %v24763_v1  ;;  %19249 = vmatprep.subr.bf16.mxu1 %v24763_v1  ;;  %v21180_v11 = vld [vmem:[#allocation7 + $0xee0] sm:$0xff]  }
 0x72b   :  { %19230 = vmatpush3.bf16.xpose.msra.mxu0 %v21151_v13  ;;  %19250 = vmatpush3.bf16.xpose.msra.mxu1 %v21152_v14  ;;  %v21181_v13 = vld [vmem:[#allocation7 + $0xe98] sm:$0xff]  }
 0x72c   :  { %19231 = vmatprep.subr.bf16.mxu0 %v24763_v1  ;;  %19251 = vmatprep.subr.bf16.mxu1 %v24763_v1  ;;  %v21182_v14 = vld [vmem:[#allocation7 + $0xed8] sm:$0xff]  }
 0x733   :  { %19232 = vmatpush3.bf16.xpose.msra.mxu0 %v21153_v9  ;;  %19252 = vmatpush3.bf16.xpose.msra.mxu1 %v21154_v15  ;;  %v21183_v9 = vld [vmem:[#allocation7 + $0xe90] sm:$0xff]  }
 0x734   :  { %19233 = vmatprep.subr.bf16.mxu0 %v24763_v1  ;;  %19253 = vmatprep.subr.bf16.mxu1 %v24763_v1  ;;  %v21184_v15 = vld [vmem:[#allocation7 + $0xed0] sm:$0xff]  }
 0x73b   :  { %19234 = vmatpush3.bf16.xpose.msra.mxu0 %v21155_v16  ;;  %19254 = vmatpush3.bf16.xpose.msra.mxu1 %v21156_v17  ;;  %v21185_v16 = vld [vmem:[#allocation7 + $0xe88] sm:$0xff]  }
 0x73c   :  { %19259 = vmatprep.subr.bf16.mxu0 %v24763_v1  ;;  %19279 = vmatprep.subr.bf16.mxu1 %v24763_v1  ;;  %v21186_v17 = vld [vmem:[#allocation7 + $0xec8] sm:$0xff]  }
 0x742   :  { %v6500_v20 = vpop.f32.mrf.mxu0  ;;  %19236 = vmatmul.mubr.bf16.vlgmr.msra.gmra.mxu0 %v22468_v2  ;;  %v6589_v23 = vpop.f32.mrf.mxu1  ;;  %19256 = vmatmul.mubr.bf16.vlgmr.msra.gmra.mxu1 %v22468_v2 }
 0x743   :  { %v13638_v22 = vmul.f32 %v22014_v7, %v6500_v20  ;;  %19260 = vmatpush3.bf16.xpose.msra.mxu0 %v21157_v18  ;;  %19280 = vmatpush3.bf16.xpose.msra.mxu1 %v21158_v19  ;;  %v13640_v25 = vmul.f32 %v22014_v7, %v6589_v23  ;;  %v21187_v18 = vld [vmem:[#allocation7 + $0xe80] sm:$0xff]   ;;  %v21189_v20 = vld [vmem:[#allocation7 + $0xf38] sm:$0xff]  }
 0x744   :  { %v19117_v24 = vpop.f32.mrf.mxu0  ;;  %19261 = vmatprep.subr.bf16.mxu0 %v24763_v1  ;;  %v19137_v26 = vpop.f32.mrf.mxu1  ;;  %19281 = vmatprep.subr.bf16.mxu1 %v24763_v1  ;;  %v21188_v19 = vld [vmem:[#allocation7 + $0xec0] sm:$0xff]  }
 0x745   :  { %13990 = vadd.xlane.f32.xlu0 %v13638_v22  ;;  %19275 = vmatprep.mubr.msk.bf16.mxu0 %vm21861_vm0, %v24763_v1  ;;  %v21190_v22 = vld [vmem:[#allocation7 + $0xf78] sm:$0xff]  }
 0x746   :  { %v6503_v27 = vpop.f32.mrf.mxu0  ;;  %19295 = vmatprep.mubr.msk.bf16.mxu1 %vm21861_vm0, %v24763_v1  ;;  %v6592_v28 = vpop.f32.mrf.mxu1 }
 0x747   :  { %v13639_v2 = vmul.f32 %v22021_v12, %v6503_v27  ;;  %v13641_v35 = vmul.f32 %v22021_v12, %v6592_v28  ;;  %v22722_v27 = vpop.xlane.xlu0 %13810 }
 0x748   :  { %v19118_v30 = vpop.f32.mrf.mxu0  ;;  %v19138_v33 = vpop.f32.mrf.mxu1 }
 0x749   :  { %13992 = vadd.xlane.f32.xlu1 %v13639_v2  ;;  %13994 = vadd.xlane.f32.xlu0 %v13640_v25  ;;  %v21191_v33 = vld [vmem:[#allocation7 + $0xf30] sm:$0xff]  }
 0x74b   :  { %19262 = vmatpush3.bf16.xpose.msra.mxu0 %v21159_v29  ;;  %19282 = vmatpush3.bf16.xpose.msra.mxu1 %v21160_v31 }
 0x74c   :  { %19263 = vmatprep.subr.bf16.mxu0 %v24763_v1  ;;  %19283 = vmatprep.subr.bf16.mxu1 %v24763_v1 }
 0x74d   :  { %13996 = vadd.xlane.f32.xlu1 %v13641_v35  ;;  %v22731_v35 = vpop.xlane.xlu1 %13812 }
 0x753   :  { %19264 = vmatpush3.bf16.xpose.msra.mxu0 %v21161_v37  ;;  %19284 = vmatpush3.bf16.xpose.msra.mxu1 %v21162_v38  ;;  %v21192_v38 = vld [vmem:[#allocation7 + $0xf70] sm:$0xff]  }
 0x754   :  { %19265 = vmatprep.subr.bf16.mxu0 %v24763_v1  ;;  %19285 = vmatprep.subr.bf16.mxu1 %v24763_v1 }
 0x75b   :  { %19266 = vmatpush3.bf16.xpose.msra.mxu0 %v21163_v34  ;;  %19286 = vmatpush3.bf16.xpose.msra.mxu1 %v21164_v39  ;;  %v22733_v34 = vpop.xlane.xlu0 %13814 }
 0x75c   :  { %19267 = vmatprep.subr.bf16.mxu0 %v24763_v1  ;;  %19287 = vmatprep.subr.bf16.mxu1 %v24763_v1 }
 0x763   :  { %19268 = vmatpush3.bf16.xpose.msra.mxu0 %v21165_v40  ;;  %19288 = vmatpush3.bf16.xpose.msra.mxu1 %v21166_v41  ;;  %v22737_v41 = vpop.xlane.xlu1 %13816 }
 0x764   :  { %19269 = vmatprep.subr.bf16.mxu0 %v24763_v1  ;;  %19289 = vmatprep.subr.bf16.mxu1 %v24763_v1 }
 0x76b   :  { %19270 = vmatpush3.bf16.xpose.msra.mxu0 %v21167_v42  ;;  %19290 = vmatpush3.bf16.xpose.msra.mxu1 %v21168_v43  ;;  %v21193_v42 = vld [vmem:[#allocation7 + $0xf28] sm:$0xff]  }
 0x76c   :  { %19271 = vmatprep.subr.bf16.mxu0 %v24763_v1  ;;  %19291 = vmatprep.subr.bf16.mxu1 %v24763_v1  ;;  %v21194_v43 = vld [vmem:[#allocation7 + $0xf68] sm:$0xff]  }
 0x773   :  { %19272 = vmatpush3.bf16.xpose.msra.mxu0 %v21169_v44  ;;  %19292 = vmatpush3.bf16.xpose.msra.mxu1 %v21170_v21  ;;  %v21195_v44 = vld [vmem:[#allocation7 + $0xf20] sm:$0xff]  }
 0x774   :  { %19273 = vmatprep.subr.bf16.mxu0 %v24763_v1  ;;  %19293 = vmatprep.subr.bf16.mxu1 %v24763_v1  ;;  %v21196_v21 = vld [vmem:[#allocation7 + $0xf60] sm:$0xff]  }
 0x77b   :  { %19274 = vmatpush3.bf16.xpose.msra.mxu0 %v21171_v45  ;;  %19294 = vmatpush3.bf16.xpose.msra.mxu1 %v21172_v46  ;;  %v21197_v45 = vld [vmem:[#allocation7 + $0xf18] sm:$0xff]  }
 0x77c   :  { %19299 = vmatprep.subr.bf16.mxu0 %v24763_v1  ;;  %19319 = vmatprep.subr.bf16.mxu1 %v24763_v1  ;;  %v21198_v46 = vld [vmem:[#allocation7 + $0xf58] sm:$0xff]  }
 0x782   :  { %v6678_v49 = vpop.f32.mrf.mxu0  ;;  %19276 = vmatmul.mubr.bf16.vlgmr.msra.gmra.mxu0 %v22682_v50  ;;  %v6767_v52 = vpop.f32.mrf.mxu1  ;;  %19296 = vmatmul.mubr.bf16.vlgmr.msra.gmra.mxu1 %v22682_v50 }
 0x783   :  { %v13642_v51 = vmul.f32 %v22014_v7, %v6678_v49  ;;  %19300 = vmatpush3.bf16.xpose.msra.mxu0 %v21173_v47  ;;  %19320 = vmatpush3.bf16.xpose.msra.mxu1 %v21174_v48  ;;  %v13644_v55 = vmul.f32 %v22014_v7, %v6767_v52  ;;  %v21199_v47 = vld [vmem:[#allocation7 + $0xf10] sm:$0xff]   ;;  %v21201_v49 = vld [vmem:[#allocation7 + $0xf08] sm:$0xff]   ;;  %v21203_v52 = vld [vmem:[#allocation7 + $0xf00] sm:$0xff]  }
 0x784   :  { %v19157_v53 = vpop.f32.mrf.mxu0  ;;  %19301 = vmatprep.subr.bf16.mxu0 %v24763_v1  ;;  %v19177_v56 = vpop.f32.mrf.mxu1  ;;  %19321 = vmatprep.subr.bf16.mxu1 %v24763_v1  ;;  %v21200_v48 = vld [vmem:[#allocation7 + $0xf50] sm:$0xff]  }
 0x785   :  { %13998 = vadd.xlane.f32.xlu0 %v13642_v51  ;;  %19315 = vmatprep.mubr.msk.bf16.mxu0 %vm21861_vm0, %v24763_v1  ;;  %v21202_v51 = vld [vmem:[#allocation7 + $0xf48] sm:$0xff]   ;;  %v21204_v53 = vld [vmem:[#allocation7 + $0xf40] sm:$0xff]   ;;  %v21206_v56 = vld [vmem:[#allocation7 + $0xff8] sm:$0xff]  }
 0x786   :  { %v6681_v57 = vpop.f32.mrf.mxu0  ;;  %19335 = vmatprep.mubr.msk.bf16.mxu1 %vm21861_vm0, %v24763_v1  ;;  %v6770_v59 = vpop.f32.mrf.mxu1 }
 0x787   :  { %v13643_v60 = vmul.f32 %v22021_v12, %v6681_v57  ;;  %v13645_v4 = vmul.f32 %v22021_v12, %v6770_v59 }
 0x788   :  { %v19158_v62 = vpop.f32.mrf.mxu0  ;;  %v19178_v3 = vpop.f32.mrf.mxu1 }
 0x789   :  { %14000 = vadd.xlane.f32.xlu1 %v13643_v60  ;;  %14002 = vadd.xlane.f32.xlu0 %v13644_v55  ;;  %v21205_v55 = vld [vmem:[#allocation7 + $0xfb8] sm:$0xff]   ;;  %v22756_v62 = vpop.xlane.xlu0 %13818 }
 0x78b   :  { %19302 = vmatpush3.bf16.xpose.msra.mxu0 %v21175_v61  ;;  %19322 = vmatpush3.bf16.xpose.msra.mxu1 %v21176_v63 }
 0x78c   :  { %19303 = vmatprep.subr.bf16.mxu0 %v24763_v1  ;;  %19323 = vmatprep.subr.bf16.mxu1 %v24763_v1 }
 0x78d   :  { %14004 = vadd.xlane.f32.xlu1 %v13645_v4 }
 0x793   :  { %19304 = vmatpush3.bf16.xpose.msra.mxu0 %v21177_v6  ;;  %19324 = vmatpush3.bf16.xpose.msra.mxu1 %v21178_v8 }
 0x794   :  { %19305 = vmatprep.subr.bf16.mxu0 %v24763_v1  ;;  %19325 = vmatprep.subr.bf16.mxu1 %v24763_v1 }
 0x79b   :  { %19306 = vmatpush3.bf16.xpose.msra.mxu0 %v21179_v10  ;;  %19326 = vmatpush3.bf16.xpose.msra.mxu1 %v21180_v11  ;;  %v21207_v10 = vld [vmem:[#allocation7 + $0xfb0] sm:$0xff]   ;;  %v22765_v11 = vpop.xlane.xlu1 %13820 }
 0x79c   :  { %19307 = vmatprep.subr.bf16.mxu0 %v24763_v1  ;;  %19327 = vmatprep.subr.bf16.mxu1 %v24763_v1 }
 0x7a3   :  { %19308 = vmatpush3.bf16.xpose.msra.mxu0 %v21181_v13  ;;  %19328 = vmatpush3.bf16.xpose.msra.mxu1 %v21182_v14  ;;  %v21208_v14 = vld [vmem:[#allocation7 + $0xff0] sm:$0xff]  }
 0x7a4   :  { %19309 = vmatprep.subr.bf16.mxu0 %v24763_v1  ;;  %19329 = vmatprep.subr.bf16.mxu1 %v24763_v1 }
 0x7ab   :  { %19310 = vmatpush3.bf16.xpose.msra.mxu0 %v21183_v9  ;;  %19330 = vmatpush3.bf16.xpose.msra.mxu1 %v21184_v15  ;;  %v22767_v9 = vpop.xlane.xlu0 %13822 }
 0x7ac   :  { %19311 = vmatprep.subr.bf16.mxu0 %v24763_v1  ;;  %19331 = vmatprep.subr.bf16.mxu1 %v24763_v1 }
 0x7b3   :  { %19312 = vmatpush3.bf16.xpose.msra.mxu0 %v21185_v16  ;;  %19332 = vmatpush3.bf16.xpose.msra.mxu1 %v21186_v17  ;;  %v22771_v17 = vpop.xlane.xlu1 %13824 }
 0x7b4   :  { %19313 = vmatprep.subr.bf16.mxu0 %v24763_v1  ;;  %19333 = vmatprep.subr.bf16.mxu1 %v24763_v1 }
 0x7bb   :  { %19314 = vmatpush3.bf16.xpose.msra.mxu0 %v21187_v18  ;;  %19334 = vmatpush3.bf16.xpose.msra.mxu1 %v21188_v19  ;;  %v21209_v18 = vld [vmem:[#allocation7 + $0xfa8] sm:$0xff]  }
 0x7bc   :  { %19339 = vmatprep.subr.bf16.mxu0 %v24763_v1  ;;  %19359 = vmatprep.subr.bf16.mxu1 %v24763_v1  ;;  %v21210_v19 = vld [vmem:[#allocation7 + $0xfe8] sm:$0xff]  }
 0x7c2   :  { %v6856_v23 = vpop.f32.mrf.mxu0  ;;  %19316 = vmatmul.mubr.bf16.vlgmr.msra.gmra.mxu0 %v22682_v50  ;;  %v6945_v25 = vpop.f32.mrf.mxu1  ;;  %19336 = vmatmul.mubr.bf16.vlgmr.msra.gmra.mxu1 %v22682_v50 }
 0x7c3   :  { %v13646_v24 = vmul.f32 %v22014_v7, %v6856_v23  ;;  %19340 = vmatpush3.bf16.xpose.msra.mxu0 %v21189_v20  ;;  %19360 = vmatpush3.bf16.xpose.msra.mxu1 %v21190_v22  ;;  %v13648_v28 = vmul.f32 %v22014_v7, %v6945_v25  ;;  %v21211_v20 = vld [vmem:[#allocation7 + $0xfa0] sm:$0xff]   ;;  %v21213_v23 = vld [vmem:[#allocation7 + $0xf98] sm:$0xff]   ;;  %v21215_v25 = vld [vmem:[#allocation7 + $0xf90] sm:$0xff]  }
 0x7c4   :  { %v19197_v26 = vpop.f32.mrf.mxu0  ;;  %19341 = vmatprep.subr.bf16.mxu0 %v24763_v1  ;;  %v19217_v2 = vpop.f32.mrf.mxu1  ;;  %19361 = vmatprep.subr.bf16.mxu1 %v24763_v1  ;;  %v21212_v22 = vld [vmem:[#allocation7 + $0xfe0] sm:$0xff]  }
 0x7c5   :  { %14006 = vadd.xlane.f32.xlu0 %v13646_v24  ;;  %19355 = vmatprep.mubr.msk.bf16.mxu0 %vm21861_vm0, %v24763_v1  ;;  %v21214_v24 = vld [vmem:[#allocation7 + $0xfd8] sm:$0xff]   ;;  %v21216_v26 = vld [vmem:[#allocation7 + $0xfd0] sm:$0xff]   ;;  %v21218_v2 = vld [vmem:[#allocation7 + $0xfc8] sm:$0xff]  }
 0x7c6   :  { %v6859_v29 = vpop.f32.mrf.mxu0  ;;  %19375 = vmatprep.mubr.msk.bf16.mxu1 %vm21861_vm0, %v24763_v1  ;;  %v6948_v30 = vpop.f32.mrf.mxu1 }
 0x7c7   :  { %v13647_v31 = vmul.f32 %v22021_v12, %v6859_v29  ;;  %v13649_v40 = vmul.f32 %v22021_v12, %v6948_v30  ;;  %v21219_v29 = vld [vmem:[#allocation7 + $0xf80] sm:$0xff]  }
 0x7c8   :  { %v19198_v37 = vpop.f32.mrf.mxu0  ;;  %v19218_v39 = vpop.f32.mrf.mxu1  ;;  %v21220_v30 = vld [vmem:[#allocation7 + $0xfc0] sm:$0xff]  }
 0x7c9   :  { %14008 = vadd.xlane.f32.xlu1 %v13647_v31  ;;  %14010 = vadd.xlane.f32.xlu0 %v13648_v28  ;;  %v21217_v28 = vld [vmem:[#allocation7 + $0xf88] sm:$0xff]   ;;  %v21221_v31 = vld [vmem:[#allocation7 + $0x1038] sm:$0xff]  }
 0x7cb   :  { %19342 = vmatpush3.bf16.xpose.msra.mxu0 %v21191_v33  ;;  %19362 = vmatpush3.bf16.xpose.msra.mxu1 %v21192_v38  ;;  %v21222_v33 = vld [vmem:[#allocation7 + $0x1078] sm:$0xff]  }
 0x7cc   :  { %19343 = vmatprep.subr.bf16.mxu0 %v24763_v1  ;;  %19363 = vmatprep.subr.bf16.mxu1 %v24763_v1 }
 0x7cd   :  { %14012 = vadd.xlane.f32.xlu1 %v13649_v40 }
 0x7d3   :  { %19344 = vmatpush3.bf16.xpose.msra.mxu0 %v21193_v42  ;;  %19364 = vmatpush3.bf16.xpose.msra.mxu1 %v21194_v43  ;;  %v22790_v42 = vpop.xlane.xlu0 %13826 }
 0x7d4   :  { %19345 = vmatprep.subr.bf16.mxu0 %v24763_v1  ;;  %19365 = vmatprep.subr.bf16.mxu1 %v24763_v1 }
 0x7db   :  { %19346 = vmatpush3.bf16.xpose.msra.mxu0 %v21195_v44  ;;  %19366 = vmatpush3.bf16.xpose.msra.mxu1 %v21196_v21 }
 0x7dc   :  { %19347 = vmatprep.subr.bf16.mxu0 %v24763_v1  ;;  %19367 = vmatprep.subr.bf16.mxu1 %v24763_v1 }
 0x7e3   :  { %19348 = vmatpush3.bf16.xpose.msra.mxu0 %v21197_v45  ;;  %19368 = vmatpush3.bf16.xpose.msra.mxu1 %v21198_v46 }
 0x7e4   :  { %19349 = vmatprep.subr.bf16.mxu0 %v24763_v1  ;;  %19369 = vmatprep.subr.bf16.mxu1 %v24763_v1 }
 0x7eb   :  { %19350 = vmatpush3.bf16.xpose.msra.mxu0 %v21199_v47  ;;  %19370 = vmatpush3.bf16.xpose.msra.mxu1 %v21200_v48  ;;  %v21223_v47 = vld [vmem:[#allocation7 + $0x1030] sm:$0xff]   ;;  %v22799_v48 = vpop.xlane.xlu1 %13828 }
 0x7ec   :  { %19351 = vmatprep.subr.bf16.mxu0 %v24763_v1  ;;  %19371 = vmatprep.subr.bf16.mxu1 %v24763_v1 }
 0x7f3   :  { %19352 = vmatpush3.bf16.xpose.msra.mxu0 %v21201_v49  ;;  %19372 = vmatpush3.bf16.xpose.msra.mxu1 %v21202_v51  ;;  %v21224_v51 = vld [vmem:[#allocation7 + $0x1070] sm:$0xff]  }
 0x7f4   :  { %19353 = vmatprep.subr.bf16.mxu0 %v24763_v1  ;;  %19373 = vmatprep.subr.bf16.mxu1 %v24763_v1 }
 0x7fb   :  { %19354 = vmatpush3.bf16.xpose.msra.mxu0 %v21203_v52  ;;  %19374 = vmatpush3.bf16.xpose.msra.mxu1 %v21204_v53  ;;  %v22801_v52 = vpop.xlane.xlu0 %13830 }
 0x7fc   :  { %19379 = vmatprep.subr.bf16.mxu0 %v24763_v1  ;;  %19399 = vmatprep.subr.bf16.mxu1 %v24763_v1 }
 0x802   :  { %v7034_v57 = vpop.f32.mrf.mxu0  ;;  %19356 = vmatmul.mubr.bf16.vlgmr.msra.gmra.mxu0 %v22682_v50  ;;  %v7123_v60 = vpop.f32.mrf.mxu1  ;;  %19376 = vmatmul.mubr.bf16.vlgmr.msra.gmra.mxu1 %v22682_v50 }
 0x803   :  { %v13650_v59 = vmul.f32 %v22014_v7, %v7034_v57  ;;  %19380 = vmatpush3.bf16.xpose.msra.mxu0 %v21205_v55  ;;  %19400 = vmatpush3.bf16.xpose.msra.mxu1 %v21206_v56  ;;  %v13652_v63 = vmul.f32 %v22014_v7, %v7123_v60  ;;  %v22805_v56 = vpop.xlane.xlu1 %13832  ;;  %v21225_v57 = vld [vmem:[#allocation7 + $0x1028] sm:$0xff]   ;;  %v21227_v60 = vld [vmem:[#allocation7 + $0x1020] sm:$0xff]  }
 0x804   :  { %v19237_v61 = vpop.f32.mrf.mxu0  ;;  %19381 = vmatprep.subr.bf16.mxu0 %v24763_v1  ;;  %v19257_v3 = vpop.f32.mrf.mxu1  ;;  %19401 = vmatprep.subr.bf16.mxu1 %v24763_v1 }
 0x805   :  { %14014 = vadd.xlane.f32.xlu0 %v13650_v59  ;;  %19395 = vmatprep.mubr.msk.bf16.mxu0 %vm21861_vm0, %v24763_v1  ;;  %v21226_v59 = vld [vmem:[#allocation7 + $0x1068] sm:$0xff]   ;;  %v21228_v61 = vld [vmem:[#allocation7 + $0x1060] sm:$0xff]   ;;  %v21230_v3 = vld [vmem:[#allocation7 + $0x1058] sm:$0xff]  }
 0x806   :  { %v7037_v4 = vpop.f32.mrf.mxu0  ;;  %19415 = vmatprep.mubr.msk.bf16.mxu1 %vm21861_vm0, %v24763_v1  ;;  %v7126_v6 = vpop.f32.mrf.mxu1 }
 0x807   :  { %v13651_v8 = vmul.f32 %v22021_v12, %v7037_v4  ;;  %v13653_v16 = vmul.f32 %v22021_v12, %v7126_v6  ;;  %v21231_v4 = vld [vmem:[#allocation7 + $0x1010] sm:$0xff]  }
 0x808   :  { %v19238_v13 = vpop.f32.mrf.mxu0  ;;  %v19258_v15 = vpop.f32.mrf.mxu1  ;;  %v21232_v6 = vld [vmem:[#allocation7 + $0x1050] sm:$0xff]  }
 0x809   :  { %14016 = vadd.xlane.f32.xlu1 %v13651_v8  ;;  %14018 = vadd.xlane.f32.xlu0 %v13652_v63  ;;  %v21229_v63 = vld [vmem:[#allocation7 + $0x1018] sm:$0xff]   ;;  %v21233_v8 = vld [vmem:[#allocation7 + $0x1008] sm:$0xff]   ;;  %v21235_v13 = vld [vmem:[#allocation7 + $0x1000] sm:$0xff]  }
 0x80a   :  { %v21237_v15 = vld [vmem:[#allocation7 + $0x10b8] sm:$0xff]  }
 0x80b   :  { %19382 = vmatpush3.bf16.xpose.msra.mxu0 %v21207_v10  ;;  %19402 = vmatpush3.bf16.xpose.msra.mxu1 %v21208_v14  ;;  %v21234_v10 = vld [vmem:[#allocation7 + $0x1048] sm:$0xff]   ;;  %v21236_v14 = vld [vmem:[#allocation7 + $0x1040] sm:$0xff]  }
 0x80c   :  { %19383 = vmatprep.subr.bf16.mxu0 %v24763_v1  ;;  %19403 = vmatprep.subr.bf16.mxu1 %v24763_v1 }
 0x80d   :  { %14020 = vadd.xlane.f32.xlu1 %v13653_v16  ;;  %v21238_v16 = vld [vmem:[#allocation7 + $0x10f8] sm:$0xff]  }
 0x813   :  { %19384 = vmatpush3.bf16.xpose.msra.mxu0 %v21209_v18  ;;  %19404 = vmatpush3.bf16.xpose.msra.mxu1 %v21210_v19 }
 0x814   :  { %19385 = vmatprep.subr.bf16.mxu0 %v24763_v1  ;;  %19405 = vmatprep.subr.bf16.mxu1 %v24763_v1 }
 0x81b   :  { %19386 = vmatpush3.bf16.xpose.msra.mxu0 %v21211_v20  ;;  %19406 = vmatpush3.bf16.xpose.msra.mxu1 %v21212_v22 }
 0x81c   :  { %19387 = vmatprep.subr.bf16.mxu0 %v24763_v1  ;;  %19407 = vmatprep.subr.bf16.mxu1 %v24763_v1 }
 0x823   :  { %19388 = vmatpush3.bf16.xpose.msra.mxu0 %v21213_v23  ;;  %19408 = vmatpush3.bf16.xpose.msra.mxu1 %v21214_v24  ;;  %v22824_v23 = vpop.xlane.xlu0 %13834 }
 0x824   :  { %19389 = vmatprep.subr.bf16.mxu0 %v24763_v1  ;;  %19409 = vmatprep.subr.bf16.mxu1 %v24763_v1 }
 0x82b   :  { %19390 = vmatpush3.bf16.xpose.msra.mxu0 %v21215_v25  ;;  %19410 = vmatpush3.bf16.xpose.msra.mxu1 %v21216_v26 }
 0x82c   :  { %19391 = vmatprep.subr.bf16.mxu0 %v24763_v1  ;;  %19411 = vmatprep.subr.bf16.mxu1 %v24763_v1 }
 0x833   :  { %19392 = vmatpush3.bf16.xpose.msra.mxu0 %v21217_v28  ;;  %19412 = vmatpush3.bf16.xpose.msra.mxu1 %v21218_v2 }
 0x834   :  { %19393 = vmatprep.subr.bf16.mxu0 %v24763_v1  ;;  %19413 = vmatprep.subr.bf16.mxu1 %v24763_v1 }
 0x83b   :  { %19394 = vmatpush3.bf16.xpose.msra.mxu0 %v21219_v29  ;;  %19414 = vmatpush3.bf16.xpose.msra.mxu1 %v21220_v30  ;;  %v21239_v29 = vld [vmem:[#allocation7 + $0x10b0] sm:$0xff]   ;;  %v22833_v30 = vpop.xlane.xlu1 %13836 }
 0x83c   :  { %19419 = vmatprep.subr.bf16.mxu0 %v24763_v1  ;;  %19439 = vmatprep.subr.bf16.mxu1 %v24763_v1 }
 0x842   :  { %v7212_v37 = vpop.f32.mrf.mxu0  ;;  %19396 = vmatmul.mubr.bf16.vlgmr.msra.gmra.mxu0 %v22682_v50  ;;  %v7301_v39 = vpop.f32.mrf.mxu1  ;;  %19416 = vmatmul.mubr.bf16.vlgmr.msra.gmra.mxu1 %v22682_v50 }
 0x843   :  { %v13654_v38 = vmul.f32 %v22014_v7, %v7212_v37  ;;  %19420 = vmatpush3.bf16.xpose.msra.mxu0 %v21221_v31  ;;  %19440 = vmatpush3.bf16.xpose.msra.mxu1 %v21222_v33  ;;  %v13656_v43 = vmul.f32 %v22014_v7, %v7301_v39  ;;  %v21240_v33 = vld [vmem:[#allocation7 + $0x10f0] sm:$0xff]   ;;  %v22835_v37 = vpop.xlane.xlu0 %13838 }
 0x844   :  { %v19277_v40 = vpop.f32.mrf.mxu0  ;;  %19421 = vmatprep.subr.bf16.mxu0 %v24763_v1  ;;  %v19297_v44 = vpop.f32.mrf.mxu1  ;;  %19441 = vmatprep.subr.bf16.mxu1 %v24763_v1 }
 0x845   :  { %14022 = vadd.xlane.f32.xlu0 %v13654_v38  ;;  %19435 = vmatprep.mubr.msk.bf16.mxu0 %vm21861_vm0, %v24763_v1  ;;  %v22839_v40 = vpop.xlane.xlu1 %13840  ;;  %v21242_v44 = vld [vmem:[#allocation7 + $0x10e8] sm:$0xff]  }
 0x846   :  { %v7215_v21 = vpop.f32.mrf.mxu0  ;;  %19455 = vmatprep.mubr.msk.bf16.mxu1 %vm21861_vm0, %v24763_v1  ;;  %v7304_v45 = vpop.f32.mrf.mxu1 }
 0x847   :  { %v13655_v46 = vmul.f32 %v22021_v12, %v7215_v21  ;;  %v13657_v55 = vmul.f32 %v22021_v12, %v7304_v45  ;;  %v21243_v21 = vld [vmem:[#allocation7 + $0x10a0] sm:$0xff]  }
 0x848   :  { %v19278_v49 = vpop.f32.mrf.mxu0  ;;  %v19298_v53 = vpop.f32.mrf.mxu1  ;;  %v21244_v45 = vld [vmem:[#allocation7 + $0x10e0] sm:$0xff]  }
 0x849   :  { %14024 = vadd.xlane.f32.xlu1 %v13655_v46  ;;  %14026 = vadd.xlane.f32.xlu0 %v13656_v43  ;;  %v21241_v43 = vld [vmem:[#allocation7 + $0x10a8] sm:$0xff]   ;;  %v21245_v46 = vld [vmem:[#allocation7 + $0x1098] sm:$0xff]   ;;  %v21247_v49 = vld [vmem:[#allocation7 + $0x1090] sm:$0xff]  }
 0x84a   :  { %v21249_v53 = vld [vmem:[#allocation7 + $0x1088] sm:$0xff]  }
 0x84b   :  { %19422 = vmatpush3.bf16.xpose.msra.mxu0 %v21223_v47  ;;  %19442 = vmatpush3.bf16.xpose.msra.mxu1 %v21224_v51  ;;  %v21246_v47 = vld [vmem:[#allocation7 + $0x10d8] sm:$0xff]   ;;  %v21248_v51 = vld [vmem:[#allocation7 + $0x10d0] sm:$0xff]  }
 0x84c   :  { %19423 = vmatprep.subr.bf16.mxu0 %v24763_v1  ;;  %19443 = vmatprep.subr.bf16.mxu1 %v24763_v1 }
 0x84d   :  { %14028 = vadd.xlane.f32.xlu1 %v13657_v55  ;;  %v21250_v55 = vld [vmem:[#allocation7 + $0x10c8] sm:$0xff]  }
 0x853   :  { %19424 = vmatpush3.bf16.xpose.msra.mxu0 %v21225_v57  ;;  %19444 = vmatpush3.bf16.xpose.msra.mxu1 %v21226_v59  ;;  %v21251_v57 = vld [vmem:[#allocation7 + $0x1080] sm:$0xff]  }
 0x854   :  { %19425 = vmatprep.subr.bf16.mxu0 %v24763_v1  ;;  %19445 = vmatprep.subr.bf16.mxu1 %v24763_v1  ;;  %v21252_v59 = vld [vmem:[#allocation7 + $0x10c0] sm:$0xff]  }
 0x85b   :  { %19426 = vmatpush3.bf16.xpose.msra.mxu0 %v21227_v60  ;;  %19446 = vmatpush3.bf16.xpose.msra.mxu1 %v21228_v61  ;;  %v21253_v60 = vld [vmem:[#allocation7 + $0x1138] sm:$0xff]  }
 0x85c   :  { %19427 = vmatprep.subr.bf16.mxu0 %v24763_v1  ;;  %19447 = vmatprep.subr.bf16.mxu1 %v24763_v1  ;;  %v21254_v61 = vld [vmem:[#allocation7 + $0x1178] sm:$0xff]  }
 0x863   :  { %19428 = vmatpush3.bf16.xpose.msra.mxu0 %v21229_v63  ;;  %19448 = vmatpush3.bf16.xpose.msra.mxu1 %v21230_v3 }
 0x864   :  { %19429 = vmatprep.subr.bf16.mxu0 %v24763_v1  ;;  %19449 = vmatprep.subr.bf16.mxu1 %v24763_v1 }
 0x86b   :  { %19430 = vmatpush3.bf16.xpose.msra.mxu0 %v21231_v4  ;;  %19450 = vmatpush3.bf16.xpose.msra.mxu1 %v21232_v6 }
 0x86c   :  { %19431 = vmatprep.subr.bf16.mxu0 %v24763_v1  ;;  %19451 = vmatprep.subr.bf16.mxu1 %v24763_v1 }
 0x873   :  { %19432 = vmatpush3.bf16.xpose.msra.mxu0 %v21233_v8  ;;  %19452 = vmatpush3.bf16.xpose.msra.mxu1 %v21234_v10  ;;  %v22858_v8 = vpop.xlane.xlu0 %13842 }
 0x874   :  { %19433 = vmatprep.subr.bf16.mxu0 %v24763_v1  ;;  %19453 = vmatprep.subr.bf16.mxu1 %v24763_v1 }
 0x87b   :  { %19434 = vmatpush3.bf16.xpose.msra.mxu0 %v21235_v13  ;;  %19454 = vmatpush3.bf16.xpose.msra.mxu1 %v21236_v14 }
 0x87c   :  { %19459 = vmatprep.subr.bf16.mxu0 %v24763_v1  ;;  %19479 = vmatprep.subr.bf16.mxu1 %v24763_v1 }
 0x882   :  { %v7390_v18 = vpop.f32.mrf.mxu0  ;;  %19436 = vmatmul.mubr.bf16.vlgmr.msra.gmra.mxu0 %v22682_v50  ;;  %v7479_v20 = vpop.f32.mrf.mxu1  ;;  %19456 = vmatmul.mubr.bf16.vlgmr.msra.gmra.mxu1 %v22682_v50 }
 0x883   :  { %v13658_v19 = vmul.f32 %v22014_v7, %v7390_v18  ;;  %19460 = vmatpush3.bf16.xpose.msra.mxu0 %v21237_v15  ;;  %19480 = vmatpush3.bf16.xpose.msra.mxu1 %v21238_v16  ;;  %v13660_v24 = vmul.f32 %v22014_v7, %v7479_v20  ;;  %v21255_v18 = vld [vmem:[#allocation7 + $0x1130] sm:$0xff]  }
 0x884   :  { %v19317_v22 = vpop.f32.mrf.mxu0  ;;  %19461 = vmatprep.subr.bf16.mxu0 %v24763_v1  ;;  %v19337_v25 = vpop.f32.mrf.mxu1  ;;  %19481 = vmatprep.subr.bf16.mxu1 %v24763_v1 }
 0x885   :  { %14030 = vadd.xlane.f32.xlu0 %v13658_v19  ;;  %19475 = vmatprep.mubr.msk.bf16.mxu0 %vm21861_vm0, %v24763_v1  ;;  %v22867_v19 = vpop.xlane.xlu1 %13844  ;;  %v21256_v22 = vld [vmem:[#allocation7 + $0x1170] sm:$0xff]  }
 0x886   :  { %v7393_v26 = vpop.f32.mrf.mxu0  ;;  %19495 = vmatprep.mubr.msk.bf16.mxu1 %vm21861_vm0, %v24763_v1  ;;  %v7482_v28 = vpop.f32.mrf.mxu1 }
 0x887   :  { %v13659_v2 = vmul.f32 %v22021_v12, %v7393_v26  ;;  %v13661_v39 = vmul.f32 %v22021_v12, %v7482_v28 }
 0x888   :  { %v19318_v31 = vpop.f32.mrf.mxu0  ;;  %v19338_v38 = vpop.f32.mrf.mxu1 }
 0x889   :  { %14032 = vadd.xlane.f32.xlu1 %v13659_v2  ;;  %14034 = vadd.xlane.f32.xlu0 %v13660_v24  ;;  %v22869_v24 = vpop.xlane.xlu0 %13846  ;;  %v22873_v28 = vpop.xlane.xlu1 %13848  ;;  %v21257_v2 = vld [vmem:[#allocation7 + $0x1128] sm:$0xff]   ;;  %v21259_v31 = vld [vmem:[#allocation7 + $0x1120] sm:$0xff]   ;;  %v21261_v38 = vld [vmem:[#allocation7 + $0x1118] sm:$0xff]  }
 0x88b   :  { %19462 = vmatpush3.bf16.xpose.msra.mxu0 %v21239_v29  ;;  %19482 = vmatpush3.bf16.xpose.msra.mxu1 %v21240_v33  ;;  %v21258_v29 = vld [vmem:[#allocation7 + $0x1168] sm:$0xff]   ;;  %v21260_v33 = vld [vmem:[#allocation7 + $0x1160] sm:$0xff]  }
 0x88c   :  { %19463 = vmatprep.subr.bf16.mxu0 %v24763_v1  ;;  %19483 = vmatprep.subr.bf16.mxu1 %v24763_v1 }
 0x88d   :  { %14036 = vadd.xlane.f32.xlu1 %v13661_v39  ;;  %v21262_v39 = vld [vmem:[#allocation7 + $0x1158] sm:$0xff]  }
 0x893   :  { %19464 = vmatpush3.bf16.xpose.msra.mxu0 %v21241_v43  ;;  %19484 = vmatpush3.bf16.xpose.msra.mxu1 %v21242_v44  ;;  %v21263_v43 = vld [vmem:[#allocation7 + $0x1110] sm:$0xff]  }
 0x894   :  { %19465 = vmatprep.subr.bf16.mxu0 %v24763_v1  ;;  %19485 = vmatprep.subr.bf16.mxu1 %v24763_v1  ;;  %v21264_v44 = vld [vmem:[#allocation7 + $0x1150] sm:$0xff]  }
 0x89b   :  { %19466 = vmatpush3.bf16.xpose.msra.mxu0 %v21243_v21  ;;  %19486 = vmatpush3.bf16.xpose.msra.mxu1 %v21244_v45  ;;  %v21265_v21 = vld [vmem:[#allocation7 + $0x1108] sm:$0xff]  }
 0x89c   :  { %19467 = vmatprep.subr.bf16.mxu0 %v24763_v1  ;;  %19487 = vmatprep.subr.bf16.mxu1 %v24763_v1  ;;  %v21266_v45 = vld [vmem:[#allocation7 + $0x1148] sm:$0xff]  }
 0x8a3   :  { %19468 = vmatpush3.bf16.xpose.msra.mxu0 %v21245_v46  ;;  %19488 = vmatpush3.bf16.xpose.msra.mxu1 %v21246_v47  ;;  %v21267_v46 = vld [vmem:[#allocation7 + $0x1100] sm:$0xff]  }
 0x8a4   :  { %19469 = vmatprep.subr.bf16.mxu0 %v24763_v1  ;;  %19489 = vmatprep.subr.bf16.mxu1 %v24763_v1  ;;  %v21268_v47 = vld [vmem:[#allocation7 + $0x1140] sm:$0xff]  }
 0x8ab   :  { %19470 = vmatpush3.bf16.xpose.msra.mxu0 %v21247_v49  ;;  %19490 = vmatpush3.bf16.xpose.msra.mxu1 %v21248_v51  ;;  %v21269_v49 = vld [vmem:[#allocation7 + $0x11b8] sm:$0xff]  }
 0x8ac   :  { %19471 = vmatprep.subr.bf16.mxu0 %v24763_v1  ;;  %19491 = vmatprep.subr.bf16.mxu1 %v24763_v1  ;;  %v21270_v51 = vld [vmem:[#allocation7 + $0x11f8] sm:$0xff]  }
 0x8b3   :  { %19472 = vmatpush3.bf16.xpose.msra.mxu0 %v21249_v53  ;;  %19492 = vmatpush3.bf16.xpose.msra.mxu1 %v21250_v55 }
 0x8b4   :  { %19473 = vmatprep.subr.bf16.mxu0 %v24763_v1  ;;  %19493 = vmatprep.subr.bf16.mxu1 %v24763_v1 }
 0x8bb   :  { %19474 = vmatpush3.bf16.xpose.msra.mxu0 %v21251_v57  ;;  %19494 = vmatpush3.bf16.xpose.msra.mxu1 %v21252_v59 }
 0x8bc   :  { %19499 = vmatprep.subr.bf16.mxu0 %v24763_v1  ;;  %19519 = vmatprep.subr.bf16.mxu1 %v24763_v1 }
 0x8c2   :  { %v7568_v63 = vpop.f32.mrf.mxu0  ;;  %19476 = vmatmul.mubr.bf16.vlgmr.msra.gmra.mxu0 %v22682_v50  ;;  %v7657_v4 = vpop.f32.mrf.mxu1  ;;  %19496 = vmatmul.mubr.bf16.vlgmr.msra.gmra.mxu1 %v22682_v50 }
 0x8c3   :  { %v13662_v3 = vmul.f32 %v22014_v7, %v7568_v63  ;;  %19500 = vmatpush3.bf16.xpose.msra.mxu0 %v21253_v60  ;;  %19520 = vmatpush3.bf16.xpose.msra.mxu1 %v21254_v61  ;;  %v13664_v10 = vmul.f32 %v22014_v7, %v7657_v4  ;;  %v22892_v60 = vpop.xlane.xlu0 %13850 }
 0x8c4   :  { %v19357_v6 = vpop.f32.mrf.mxu0  ;;  %19501 = vmatprep.subr.bf16.mxu0 %v24763_v1  ;;  %v19377_v13 = vpop.f32.mrf.mxu1  ;;  %19521 = vmatprep.subr.bf16.mxu1 %v24763_v1 }
 0x8c5   :  { %14038 = vadd.xlane.f32.xlu0 %v13662_v3  ;;  %19515 = vmatprep.mubr.msk.bf16.mxu0 %vm21861_vm0, %v24763_v1  ;;  %v22901_v13 = vpop.xlane.xlu1 %13852 }
 0x8c6   :  { %v7571_v14 = vpop.f32.mrf.mxu0  ;;  %19535 = vmatprep.mubr.msk.bf16.mxu1 %vm21861_vm0, %v24763_v1  ;;  %v7660_v15 = vpop.f32.mrf.mxu1 }
 0x8c7   :  { %v13663_v16 = vmul.f32 %v22021_v12, %v7571_v14  ;;  %v13665_v26 = vmul.f32 %v22021_v12, %v7660_v15  ;;  %v21272_v15 = vld [vmem:[#allocation7 + $0x11f0] sm:$0xff]  }
 0x8c8   :  { %v19358_v20 = vpop.f32.mrf.mxu0  ;;  %v19378_v25 = vpop.f32.mrf.mxu1 }
 0x8c9   :  { %14040 = vadd.xlane.f32.xlu1 %v13663_v16  ;;  %14042 = vadd.xlane.f32.xlu0 %v13664_v10  ;;  %v21271_v10 = vld [vmem:[#allocation7 + $0x11b0] sm:$0xff]   ;;  %v22903_v16 = vpop.xlane.xlu0 %13854  ;;  %v21273_v25 = vld [vmem:[#allocation7 + $0x11a8] sm:$0xff]  }
 0x8cb   :  { %19502 = vmatpush3.bf16.xpose.msra.mxu0 %v21255_v18  ;;  %19522 = vmatpush3.bf16.xpose.msra.mxu1 %v21256_v22  ;;  %v22907_v22 = vpop.xlane.xlu1 %13856 }
 0x8cc   :  { %19503 = vmatprep.subr.bf16.mxu0 %v24763_v1  ;;  %19523 = vmatprep.subr.bf16.mxu1 %v24763_v1 }
 0x8cd   :  { %14044 = vadd.xlane.f32.xlu1 %v13665_v26  ;;  %v21274_v26 = vld [vmem:[#allocation7 + $0x11e8] sm:$0xff]  }
 0x8d3   :  { %19504 = vmatpush3.bf16.xpose.msra.mxu0 %v21257_v2  ;;  %19524 = vmatpush3.bf16.xpose.msra.mxu1 %v21258_v29  ;;  %v21275_v2 = vld [vmem:[#allocation7 + $0x11a0] sm:$0xff]  }
 0x8d4   :  { %19505 = vmatprep.subr.bf16.mxu0 %v24763_v1  ;;  %19525 = vmatprep.subr.bf16.mxu1 %v24763_v1  ;;  %v21276_v29 = vld [vmem:[#allocation7 + $0x11e0] sm:$0xff]  }
 0x8db   :  { %19506 = vmatpush3.bf16.xpose.msra.mxu0 %v21259_v31  ;;  %19526 = vmatpush3.bf16.xpose.msra.mxu1 %v21260_v33  ;;  %v21277_v31 = vld [vmem:[#allocation7 + $0x1198] sm:$0xff]  }
 0x8dc   :  { %19507 = vmatprep.subr.bf16.mxu0 %v24763_v1  ;;  %19527 = vmatprep.subr.bf16.mxu1 %v24763_v1  ;;  %v21278_v33 = vld [vmem:[#allocation7 + $0x11d8] sm:$0xff]  }
 0x8e3   :  { %19508 = vmatpush3.bf16.xpose.msra.mxu0 %v21261_v38  ;;  %19528 = vmatpush3.bf16.xpose.msra.mxu1 %v21262_v39  ;;  %v21279_v38 = vld [vmem:[#allocation7 + $0x1190] sm:$0xff]  }
 0x8e4   :  { %19509 = vmatprep.subr.bf16.mxu0 %v24763_v1  ;;  %19529 = vmatprep.subr.bf16.mxu1 %v24763_v1  ;;  %v21280_v39 = vld [vmem:[#allocation7 + $0x11d0] sm:$0xff]  }
 0x8eb   :  { %19510 = vmatpush3.bf16.xpose.msra.mxu0 %v21263_v43  ;;  %19530 = vmatpush3.bf16.xpose.msra.mxu1 %v21264_v44  ;;  %v21281_v43 = vld [vmem:[#allocation7 + $0x1188] sm:$0xff]  }
 0x8ec   :  { %19511 = vmatprep.subr.bf16.mxu0 %v24763_v1  ;;  %19531 = vmatprep.subr.bf16.mxu1 %v24763_v1  ;;  %v21282_v44 = vld [vmem:[#allocation7 + $0x11c8] sm:$0xff]  }
 0x8f3   :  { %19512 = vmatpush3.bf16.xpose.msra.mxu0 %v21265_v21  ;;  %19532 = vmatpush3.bf16.xpose.msra.mxu1 %v21266_v45  ;;  %v21283_v21 = vld [vmem:[#allocation7 + $0x1180] sm:$0xff]  }
 0x8f4   :  { %19513 = vmatprep.subr.bf16.mxu0 %v24763_v1  ;;  %19533 = vmatprep.subr.bf16.mxu1 %v24763_v1  ;;  %v21284_v45 = vld [vmem:[#allocation7 + $0x11c0] sm:$0xff]  }
 0x8fb   :  { %19514 = vmatpush3.bf16.xpose.msra.mxu0 %v21267_v46  ;;  %19534 = vmatpush3.bf16.xpose.msra.mxu1 %v21268_v47  ;;  %v21285_v46 = vld [vmem:[#allocation7 + $0x1238] sm:$0xff]  }
 0x8fc   :  { %19539 = vmatprep.subr.bf16.mxu0 %v24763_v1  ;;  %19559 = vmatprep.subr.bf16.mxu1 %v24763_v1  ;;  %v21286_v47 = vld [vmem:[#allocation7 + $0x1278] sm:$0xff]  }
 0x902   :  { %v7746_v53 = vpop.f32.mrf.mxu0  ;;  %19516 = vmatmul.mubr.bf16.vlgmr.msra.gmra.mxu0 %v22682_v50  ;;  %v7835_v57 = vpop.f32.mrf.mxu1  ;;  %19536 = vmatmul.mubr.bf16.vlgmr.msra.gmra.mxu1 %v22682_v50 }
 0x903   :  { %v13666_v55 = vmul.f32 %v22014_v7, %v7746_v53  ;;  %19540 = vmatpush3.bf16.xpose.msra.mxu0 %v21269_v49  ;;  %19560 = vmatpush3.bf16.xpose.msra.mxu1 %v21270_v51  ;;  %v13668_v61 = vmul.f32 %v22014_v7, %v7835_v57  ;;  %v22926_v57 = vpop.xlane.xlu0 %13858 }
 0x904   :  { %v19397_v59 = vpop.f32.mrf.mxu0  ;;  %19541 = vmatprep.subr.bf16.mxu0 %v24763_v1  ;;  %v19417_v63 = vpop.f32.mrf.mxu1  ;;  %19561 = vmatprep.subr.bf16.mxu1 %v24763_v1 }
 0x905   :  { %14046 = vadd.xlane.f32.xlu0 %v13666_v55  ;;  %19555 = vmatprep.mubr.msk.bf16.mxu0 %vm21861_vm0, %v24763_v1 }
 0x906   :  { %v7749_v3 = vpop.f32.mrf.mxu0  ;;  %19575 = vmatprep.mubr.msk.bf16.mxu1 %vm21861_vm0, %v24763_v1  ;;  %v7838_v4 = vpop.f32.mrf.mxu1 }
 0x907   :  { %v13667_v6 = vmul.f32 %v22021_v12, %v7749_v3  ;;  %v13669_v20 = vmul.f32 %v22021_v12, %v7838_v4  ;;  %v21287_v4 = vld [vmem:[#allocation7 + $0x1230] sm:$0xff]  }
 0x908   :  { %v19398_v14 = vpop.f32.mrf.mxu0  ;;  %v19418_v18 = vpop.f32.mrf.mxu1 }
 0x909   :  { %14048 = vadd.xlane.f32.xlu1 %v13667_v6  ;;  %14050 = vadd.xlane.f32.xlu0 %v13668_v61  ;;  %v22935_v6 = vpop.xlane.xlu1 %13860  ;;  %v21288_v14 = vld [vmem:[#allocation7 + $0x1270] sm:$0xff]  }
 0x90b   :  { %19542 = vmatpush3.bf16.xpose.msra.mxu0 %v21271_v10  ;;  %19562 = vmatpush3.bf16.xpose.msra.mxu1 %v21272_v15  ;;  %v22937_v15 = vpop.xlane.xlu0 %13862 }
 0x90c   :  { %19543 = vmatprep.subr.bf16.mxu0 %v24763_v1  ;;  %19563 = vmatprep.subr.bf16.mxu1 %v24763_v1 }
 0x90d   :  { %14052 = vadd.xlane.f32.xlu1 %v13669_v20 }
 0x913   :  { %19544 = vmatpush3.bf16.xpose.msra.mxu0 %v21273_v25  ;;  %19564 = vmatpush3.bf16.xpose.msra.mxu1 %v21274_v26  ;;  %v22941_v25 = vpop.xlane.xlu1 %13864  ;;  %v21289_v26 = vld [vmem:[#allocation7 + $0x1228] sm:$0xff]  }
 0x914   :  { %19545 = vmatprep.subr.bf16.mxu0 %v24763_v1  ;;  %19565 = vmatprep.subr.bf16.mxu1 %v24763_v1 }
 0x91b   :  { %19546 = vmatpush3.bf16.xpose.msra.mxu0 %v21275_v2  ;;  %19566 = vmatpush3.bf16.xpose.msra.mxu1 %v21276_v29  ;;  %v21290_v2 = vld [vmem:[#allocation7 + $0x1268] sm:$0xff]   ;;  %v21291_v29 = vld [vmem:[#allocation7 + $0x1220] sm:$0xff]  }
 0x91c   :  { %19547 = vmatprep.subr.bf16.mxu0 %v24763_v1  ;;  %19567 = vmatprep.subr.bf16.mxu1 %v24763_v1 }
 0x923   :  { %19548 = vmatpush3.bf16.xpose.msra.mxu0 %v21277_v31  ;;  %19568 = vmatpush3.bf16.xpose.msra.mxu1 %v21278_v33  ;;  %v21292_v31 = vld [vmem:[#allocation7 + $0x1260] sm:$0xff]   ;;  %v21293_v33 = vld [vmem:[#allocation7 + $0x1218] sm:$0xff]  }
 0x924   :  { %19549 = vmatprep.subr.bf16.mxu0 %v24763_v1  ;;  %19569 = vmatprep.subr.bf16.mxu1 %v24763_v1 }
 0x92b   :  { %19550 = vmatpush3.bf16.xpose.msra.mxu0 %v21279_v38  ;;  %19570 = vmatpush3.bf16.xpose.msra.mxu1 %v21280_v39  ;;  %v21294_v38 = vld [vmem:[#allocation7 + $0x1258] sm:$0xff]   ;;  %v21295_v39 = vld [vmem:[#allocation7 + $0x1210] sm:$0xff]  }
 0x92c   :  { %19551 = vmatprep.subr.bf16.mxu0 %v24763_v1  ;;  %19571 = vmatprep.subr.bf16.mxu1 %v24763_v1 }
 0x933   :  { %19552 = vmatpush3.bf16.xpose.msra.mxu0 %v21281_v43  ;;  %19572 = vmatpush3.bf16.xpose.msra.mxu1 %v21282_v44  ;;  %v21296_v43 = vld [vmem:[#allocation7 + $0x1250] sm:$0xff]   ;;  %v21297_v44 = vld [vmem:[#allocation7 + $0x1208] sm:$0xff]  }
 0x934   :  { %19553 = vmatprep.subr.bf16.mxu0 %v24763_v1  ;;  %19573 = vmatprep.subr.bf16.mxu1 %v24763_v1 }
 0x93b   :  { %19554 = vmatpush3.bf16.xpose.msra.mxu0 %v21283_v21  ;;  %19574 = vmatpush3.bf16.xpose.msra.mxu1 %v21284_v45  ;;  %v21298_v21 = vld [vmem:[#allocation7 + $0x1248] sm:$0xff]   ;;  %v21299_v45 = vld [vmem:[#allocation7 + $0x1200] sm:$0xff]  }
 0x93c   :  { %19579 = vmatprep.subr.bf16.mxu0 %v24763_v1  ;;  %19599 = vmatprep.subr.bf16.mxu1 %v24763_v1 }
 0x942   :  { %v7924_v49 = vpop.f32.mrf.mxu0  ;;  %19556 = vmatmul.mubr.bf16.vlgmr.msra.gmra.mxu0 %v22682_v50  ;;  %v8013_v53 = vpop.f32.mrf.mxu1  ;;  %19576 = vmatmul.mubr.bf16.vlgmr.msra.gmra.mxu1 %v22682_v50 }
 0x943   :  { %v13670_v51 = vmul.f32 %v22014_v7, %v7924_v49  ;;  %19580 = vmatpush3.bf16.xpose.msra.mxu0 %v21285_v46  ;;  %19600 = vmatpush3.bf16.xpose.msra.mxu1 %v21286_v47  ;;  %v13672_v59 = vmul.f32 %v22014_v7, %v8013_v53  ;;  %v21300_v46 = vld [vmem:[#allocation7 + $0x1240] sm:$0xff]   ;;  %v21301_v47 = vld [vmem:[#allocation7 + $0x12b8] sm:$0xff]  }
 0x944   :  { %v19437_v55 = vpop.f32.mrf.mxu0  ;;  %19581 = vmatprep.subr.bf16.mxu0 %v24763_v1  ;;  %v19457_v61 = vpop.f32.mrf.mxu1  ;;  %19601 = vmatprep.subr.bf16.mxu1 %v24763_v1  ;;  %v21302_v49 = vld [vmem:[#allocation7 + $0x12f8] sm:$0xff]  }
 0x945   :  { %14054 = vadd.xlane.f32.xlu0 %v13670_v51  ;;  %19595 = vmatprep.mubr.msk.bf16.mxu0 %vm21861_vm0, %v24763_v1  ;;  %v22956_v53 = vld [vmem:[#allocation5] sm:$0xff]  }
 0x946   :  { %v7927_v63 = vpop.f32.mrf.mxu0  ;;  %19615 = vmatprep.mubr.msk.bf16.mxu1 %vm21861_vm0, %v24763_v1  ;;  %v8016_v50 = vpop.f32.mrf.mxu1 }
 0x947   :  { %v13671_v3 = vmul.f32 %v22021_v12, %v7927_v63  ;;  %v13673_v20 = vmul.f32 %v22021_v12, %v8016_v50  ;;  %v22962_v63 = vpop.xlane.xlu0 %13866 }
 0x948   :  { %v19438_v10 = vpop.f32.mrf.mxu0  ;;  %v19458_v18 = vpop.f32.mrf.mxu1 }
 0x949   :  { %14056 = vadd.xlane.f32.xlu1 %v13671_v3  ;;  %14058 = vadd.xlane.f32.xlu0 %v13672_v59  ;;  %v21303_v18 = vld [vmem:[#allocation7 + $0x12b0] sm:$0xff]  }
 0x94b   :  { %19582 = vmatpush3.bf16.xpose.msra.mxu0 %v21287_v4  ;;  %19602 = vmatpush3.bf16.xpose.msra.mxu1 %v21288_v14 }
 0x94c   :  { %19583 = vmatprep.subr.bf16.mxu0 %v24763_v1  ;;  %19603 = vmatprep.subr.bf16.mxu1 %v24763_v1 }
 0x94d   :  { %14060 = vadd.xlane.f32.xlu1 %v13673_v20  ;;  %v22971_v20 = vpop.xlane.xlu1 %13868 }
 0x953   :  { %19584 = vmatpush3.bf16.xpose.msra.mxu0 %v21289_v26  ;;  %19604 = vmatpush3.bf16.xpose.msra.mxu1 %v21290_v2  ;;  %v21304_v2 = vld [vmem:[#allocation7 + $0x12f0] sm:$0xff]  }
 0x954   :  { %19585 = vmatprep.subr.bf16.mxu0 %v24763_v1  ;;  %19605 = vmatprep.subr.bf16.mxu1 %v24763_v1 }
 0x95b   :  { %19586 = vmatpush3.bf16.xpose.msra.mxu0 %v21291_v29  ;;  %19606 = vmatpush3.bf16.xpose.msra.mxu1 %v21292_v31  ;;  %v22973_v29 = vpop.xlane.xlu0 %13870 }
 0x95c   :  { %19587 = vmatprep.subr.bf16.mxu0 %v24763_v1  ;;  %19607 = vmatprep.subr.bf16.mxu1 %v24763_v1 }
 0x963   :  { %19588 = vmatpush3.bf16.xpose.msra.mxu0 %v21293_v33  ;;  %19608 = vmatpush3.bf16.xpose.msra.mxu1 %v21294_v38  ;;  %v22977_v38 = vpop.xlane.xlu1 %13872 }
 0x964   :  { %19589 = vmatprep.subr.bf16.mxu0 %v24763_v1  ;;  %19609 = vmatprep.subr.bf16.mxu1 %v24763_v1 }
 0x96b   :  { %19590 = vmatpush3.bf16.xpose.msra.mxu0 %v21295_v39  ;;  %19610 = vmatpush3.bf16.xpose.msra.mxu1 %v21296_v43  ;;  %v21305_v39 = vld [vmem:[#allocation7 + $0x12a8] sm:$0xff]  }
 0x96c   :  { %19591 = vmatprep.subr.bf16.mxu0 %v24763_v1  ;;  %19611 = vmatprep.subr.bf16.mxu1 %v24763_v1  ;;  %v21306_v43 = vld [vmem:[#allocation7 + $0x12e8] sm:$0xff]  }
 0x973   :  { %19592 = vmatpush3.bf16.xpose.msra.mxu0 %v21297_v44  ;;  %19612 = vmatpush3.bf16.xpose.msra.mxu1 %v21298_v21  ;;  %v21307_v44 = vld [vmem:[#allocation7 + $0x12a0] sm:$0xff]  }
 0x974   :  { %19593 = vmatprep.subr.bf16.mxu0 %v24763_v1  ;;  %19613 = vmatprep.subr.bf16.mxu1 %v24763_v1  ;;  %v21308_v21 = vld [vmem:[#allocation7 + $0x12e0] sm:$0xff]  }
 0x97b   :  { %19594 = vmatpush3.bf16.xpose.msra.mxu0 %v21299_v45  ;;  %19614 = vmatpush3.bf16.xpose.msra.mxu1 %v21300_v46  ;;  %v21309_v45 = vld [vmem:[#allocation7 + $0x1298] sm:$0xff]  }
 0x97c   :  { %19619 = vmatprep.subr.bf16.mxu0 %v24763_v1  ;;  %19639 = vmatprep.subr.bf16.mxu1 %v24763_v1  ;;  %v21310_v46 = vld [vmem:[#allocation7 + $0x12d8] sm:$0xff]  }
 0x982   :  { %v8102_v51 = vpop.f32.mrf.mxu0  ;;  %19596 = vmatmul.mubr.bf16.vlgmr.msra.gmra.mxu0 %v22956_v53  ;;  %v8191_v59 = vpop.f32.mrf.mxu1  ;;  %19616 = vmatmul.mubr.bf16.vlgmr.msra.gmra.mxu1 %v22956_v53 }
 0x983   :  { %v13674_v55 = vmul.f32 %v22014_v7, %v8102_v51  ;;  %19620 = vmatpush3.bf16.xpose.msra.mxu0 %v21301_v47  ;;  %19640 = vmatpush3.bf16.xpose.msra.mxu1 %v21302_v49  ;;  %v13676_v50 = vmul.f32 %v22014_v7, %v8191_v59  ;;  %v21311_v47 = vld [vmem:[#allocation7 + $0x1290] sm:$0xff]   ;;  %v21313_v51 = vld [vmem:[#allocation7 + $0x1288] sm:$0xff]   ;;  %v21315_v59 = vld [vmem:[#allocation7 + $0x1280] sm:$0xff]  }
 0x984   :  { %v19477_v61 = vpop.f32.mrf.mxu0  ;;  %19621 = vmatprep.subr.bf16.mxu0 %v24763_v1  ;;  %v19497_v3 = vpop.f32.mrf.mxu1  ;;  %19641 = vmatprep.subr.bf16.mxu1 %v24763_v1  ;;  %v21312_v49 = vld [vmem:[#allocation7 + $0x12d0] sm:$0xff]  }
 0x985   :  { %14062 = vadd.xlane.f32.xlu0 %v13674_v55  ;;  %19635 = vmatprep.mubr.msk.bf16.mxu0 %vm21861_vm0, %v24763_v1  ;;  %v21314_v55 = vld [vmem:[#allocation7 + $0x12c8] sm:$0xff]   ;;  %v21316_v61 = vld [vmem:[#allocation7 + $0x12c0] sm:$0xff]   ;;  %v21318_v3 = vld [vmem:[#allocation7 + $0x1378] sm:$0xff]  }
 0x986   :  { %v8105_v4 = vpop.f32.mrf.mxu0  ;;  %19655 = vmatprep.mubr.msk.bf16.mxu1 %vm21861_vm0, %v24763_v1  ;;  %v8194_v10 = vpop.f32.mrf.mxu1 }
 0x987   :  { %v13675_v14 = vmul.f32 %v22021_v12, %v8105_v4  ;;  %v13677_v33 = vmul.f32 %v22021_v12, %v8194_v10 }
 0x988   :  { %v19478_v26 = vpop.f32.mrf.mxu0  ;;  %v19498_v31 = vpop.f32.mrf.mxu1 }
 0x989   :  { %14064 = vadd.xlane.f32.xlu1 %v13675_v14  ;;  %14066 = vadd.xlane.f32.xlu0 %v13676_v50  ;;  %v21317_v50 = vld [vmem:[#allocation7 + $0x1338] sm:$0xff]   ;;  %v22996_v26 = vpop.xlane.xlu0 %13874 }
 0x98b   :  { %19622 = vmatpush3.bf16.xpose.msra.mxu0 %v21303_v18  ;;  %19642 = vmatpush3.bf16.xpose.msra.mxu1 %v21304_v2 }
 0x98c   :  { %19623 = vmatprep.subr.bf16.mxu0 %v24763_v1  ;;  %19643 = vmatprep.subr.bf16.mxu1 %v24763_v1 }
 0x98d   :  { %14068 = vadd.xlane.f32.xlu1 %v13677_v33 }
 0x993   :  { %19624 = vmatpush3.bf16.xpose.msra.mxu0 %v21305_v39  ;;  %19644 = vmatpush3.bf16.xpose.msra.mxu1 %v21306_v43 }
 0x994   :  { %19625 = vmatprep.subr.bf16.mxu0 %v24763_v1  ;;  %19645 = vmatprep.subr.bf16.mxu1 %v24763_v1 }
 0x99b   :  { %19626 = vmatpush3.bf16.xpose.msra.mxu0 %v21307_v44  ;;  %19646 = vmatpush3.bf16.xpose.msra.mxu1 %v21308_v21  ;;  %v21319_v44 = vld [vmem:[#allocation7 + $0x1330] sm:$0xff]   ;;  %v23005_v21 = vpop.xlane.xlu1 %13876 }
 0x99c   :  { %19627 = vmatprep.subr.bf16.mxu0 %v24763_v1  ;;  %19647 = vmatprep.subr.bf16.mxu1 %v24763_v1 }
 0x9a3   :  { %19628 = vmatpush3.bf16.xpose.msra.mxu0 %v21309_v45  ;;  %19648 = vmatpush3.bf16.xpose.msra.mxu1 %v21310_v46  ;;  %v21320_v46 = vld [vmem:[#allocation7 + $0x1370] sm:$0xff]  }
 0x9a4   :  { %19629 = vmatprep.subr.bf16.mxu0 %v24763_v1  ;;  %19649 = vmatprep.subr.bf16.mxu1 %v24763_v1 }
 0x9ab   :  { %19630 = vmatpush3.bf16.xpose.msra.mxu0 %v21311_v47  ;;  %19650 = vmatpush3.bf16.xpose.msra.mxu1 %v21312_v49  ;;  %v23007_v47 = vpop.xlane.xlu0 %13878 }
 0x9ac   :  { %19631 = vmatprep.subr.bf16.mxu0 %v24763_v1  ;;  %19651 = vmatprep.subr.bf16.mxu1 %v24763_v1 }
 0x9b3   :  { %19632 = vmatpush3.bf16.xpose.msra.mxu0 %v21313_v51  ;;  %19652 = vmatpush3.bf16.xpose.msra.mxu1 %v21314_v55  ;;  %v23011_v55 = vpop.xlane.xlu1 %13880 }
 0x9b4   :  { %19633 = vmatprep.subr.bf16.mxu0 %v24763_v1  ;;  %19653 = vmatprep.subr.bf16.mxu1 %v24763_v1 }
 0x9bb   :  { %19634 = vmatpush3.bf16.xpose.msra.mxu0 %v21315_v59  ;;  %19654 = vmatpush3.bf16.xpose.msra.mxu1 %v21316_v61  ;;  %v21321_v59 = vld [vmem:[#allocation7 + $0x1328] sm:$0xff]  }
 0x9bc   :  { %19659 = vmatprep.subr.bf16.mxu0 %v24763_v1  ;;  %19679 = vmatprep.subr.bf16.mxu1 %v24763_v1  ;;  %v21322_v61 = vld [vmem:[#allocation7 + $0x1368] sm:$0xff]  }
 0x9c2   :  { %v8280_v4 = vpop.f32.mrf.mxu0  ;;  %19636 = vmatmul.mubr.bf16.vlgmr.msra.gmra.mxu0 %v22956_v53  ;;  %v8369_v14 = vpop.f32.mrf.mxu1  ;;  %19656 = vmatmul.mubr.bf16.vlgmr.msra.gmra.mxu1 %v22956_v53 }
 0x9c3   :  { %v13678_v10 = vmul.f32 %v22014_v7, %v8280_v4  ;;  %19660 = vmatpush3.bf16.xpose.msra.mxu0 %v21317_v50  ;;  %19680 = vmatpush3.bf16.xpose.msra.mxu1 %v21318_v3  ;;  %v13680_v2 = vmul.f32 %v22014_v7, %v8369_v14  ;;  %v21323_v50 = vld [vmem:[#allocation7 + $0x1320] sm:$0xff]   ;;  %v21325_v4 = vld [vmem:[#allocation7 + $0x1318] sm:$0xff]   ;;  %v21327_v14 = vld [vmem:[#allocation7 + $0x1310] sm:$0xff]  }
 0x9c4   :  { %v19517_v18 = vpop.f32.mrf.mxu0  ;;  %19661 = vmatprep.subr.bf16.mxu0 %v24763_v1  ;;  %v19537_v31 = vpop.f32.mrf.mxu1  ;;  %19681 = vmatprep.subr.bf16.mxu1 %v24763_v1  ;;  %v21324_v3 = vld [vmem:[#allocation7 + $0x1360] sm:$0xff]  }
 0x9c5   :  { %14070 = vadd.xlane.f32.xlu0 %v13678_v10  ;;  %19675 = vmatprep.mubr.msk.bf16.mxu0 %vm21861_vm0, %v24763_v1  ;;  %v21326_v10 = vld [vmem:[#allocation7 + $0x1358] sm:$0xff]   ;;  %v21328_v18 = vld [vmem:[#allocation7 + $0x1350] sm:$0xff]   ;;  %v21330_v31 = vld [vmem:[#allocation7 + $0x1348] sm:$0xff]  }
 0x9c6   :  { %v8283_v33 = vpop.f32.mrf.mxu0  ;;  %19695 = vmatprep.mubr.msk.bf16.mxu1 %vm21861_vm0, %v24763_v1  ;;  %v8372_v39 = vpop.f32.mrf.mxu1 }
 0x9c7   :  { %v13679_v43 = vmul.f32 %v22021_v12, %v8283_v33  ;;  %v13681_v51 = vmul.f32 %v22021_v12, %v8372_v39  ;;  %v21331_v33 = vld [vmem:[#allocation7 + $0x1300] sm:$0xff]  }
 0x9c8   :  { %v19518_v45 = vpop.f32.mrf.mxu0  ;;  %v19538_v49 = vpop.f32.mrf.mxu1  ;;  %v21332_v39 = vld [vmem:[#allocation7 + $0x1340] sm:$0xff]  }
 0x9c9   :  { %14072 = vadd.xlane.f32.xlu1 %v13679_v43  ;;  %14074 = vadd.xlane.f32.xlu0 %v13680_v2  ;;  %v21329_v2 = vld [vmem:[#allocation7 + $0x1308] sm:$0xff]   ;;  %v21333_v43 = vld [vmem:[#allocation7 + $0x13b8] sm:$0xff]  }
 0x9cb   :  { %19662 = vmatpush3.bf16.xpose.msra.mxu0 %v21319_v44  ;;  %19682 = vmatpush3.bf16.xpose.msra.mxu1 %v21320_v46  ;;  %v21334_v44 = vld [vmem:[#allocation7 + $0x13f8] sm:$0xff]  }
 0x9cc   :  { %19663 = vmatprep.subr.bf16.mxu0 %v24763_v1  ;;  %19683 = vmatprep.subr.bf16.mxu1 %v24763_v1 }
 0x9cd   :  { %14076 = vadd.xlane.f32.xlu1 %v13681_v51 }
 0x9d3   :  { %19664 = vmatpush3.bf16.xpose.msra.mxu0 %v21321_v59  ;;  %19684 = vmatpush3.bf16.xpose.msra.mxu1 %v21322_v61  ;;  %v23030_v59 = vpop.xlane.xlu0 %13882 }
 0x9d4   :  { %19665 = vmatprep.subr.bf16.mxu0 %v24763_v1  ;;  %19685 = vmatprep.subr.bf16.mxu1 %v24763_v1  ;;  %24765 = vst [vmem:[#allocation14_spill] sm:$0xff] %v23030_v59 }
 0x9db   :  { %19666 = vmatpush3.bf16.xpose.msra.mxu0 %v21323_v50  ;;  %19686 = vmatpush3.bf16.xpose.msra.mxu1 %v21324_v3 }
 0x9dc   :  { %19667 = vmatprep.subr.bf16.mxu0 %v24763_v1  ;;  %19687 = vmatprep.subr.bf16.mxu1 %v24763_v1 }
 0x9e3   :  { %19668 = vmatpush3.bf16.xpose.msra.mxu0 %v21325_v4  ;;  %19688 = vmatpush3.bf16.xpose.msra.mxu1 %v21326_v10 }
 0x9e4   :  { %19669 = vmatprep.subr.bf16.mxu0 %v24763_v1  ;;  %19689 = vmatprep.subr.bf16.mxu1 %v24763_v1 }
 0x9eb   :  { %19670 = vmatpush3.bf16.xpose.msra.mxu0 %v21327_v14  ;;  %19690 = vmatpush3.bf16.xpose.msra.mxu1 %v21328_v18  ;;  %v21335_v14 = vld [vmem:[#allocation7 + $0x13b0] sm:$0xff]   ;;  %v23039_v18 = vpop.xlane.xlu1 %13884 }
 0x9ec   :  { %19671 = vmatprep.subr.bf16.mxu0 %v24763_v1  ;;  %19691 = vmatprep.subr.bf16.mxu1 %v24763_v1 }
 0x9f3   :  { %19672 = vmatpush3.bf16.xpose.msra.mxu0 %v21329_v2  ;;  %19692 = vmatpush3.bf16.xpose.msra.mxu1 %v21330_v31  ;;  %v21336_v31 = vld [vmem:[#allocation7 + $0x13f0] sm:$0xff]  }
 0x9f4   :  { %19673 = vmatprep.subr.bf16.mxu0 %v24763_v1  ;;  %19693 = vmatprep.subr.bf16.mxu1 %v24763_v1 }
 0x9fb   :  { %19674 = vmatpush3.bf16.xpose.msra.mxu0 %v21331_v33  ;;  %19694 = vmatpush3.bf16.xpose.msra.mxu1 %v21332_v39  ;;  %v23041_v33 = vpop.xlane.xlu0 %13886 }
 0x9fc   :  { %19699 = vmatprep.subr.bf16.mxu0 %v24763_v1  ;;  %19719 = vmatprep.subr.bf16.mxu1 %v24763_v1  ;;  %24766 = vst [vmem:[#allocation15_spill] sm:$0xff] %v23041_v33  ;;  %v21368_v33 = vld [vmem:[#allocation7 + $0x14f0] sm:$0xff]  }
 0xa02   :  { %v8458_v45 = vpop.f32.mrf.mxu0  ;;  %19676 = vmatmul.mubr.bf16.vlgmr.msra.gmra.mxu0 %v22956_v53  ;;  %v8547_v49 = vpop.f32.mrf.mxu1  ;;  %19696 = vmatmul.mubr.bf16.vlgmr.msra.gmra.mxu1 %v22956_v53 }
 0xa03   :  { %v13682_v46 = vmul.f32 %v22014_v7, %v8458_v45  ;;  %19700 = vmatpush3.bf16.xpose.msra.mxu0 %v21333_v43  ;;  %19720 = vmatpush3.bf16.xpose.msra.mxu1 %v21334_v44  ;;  %v13684_v61 = vmul.f32 %v22014_v7, %v8547_v49  ;;  %v23045_v44 = vpop.xlane.xlu1 %13888  ;;  %v21337_v45 = vld [vmem:[#allocation7 + $0x13a8] sm:$0xff]   ;;  %v21339_v49 = vld [vmem:[#allocation7 + $0x13a0] sm:$0xff]  }
 0xa04   :  { %v19557_v51 = vpop.f32.mrf.mxu0  ;;  %19701 = vmatprep.subr.bf16.mxu0 %v24763_v1  ;;  %v19577_v50 = vpop.f32.mrf.mxu1  ;;  %19721 = vmatprep.subr.bf16.mxu1 %v24763_v1  ;;  %24767 = vst [vmem:[#allocation16_spill] sm:$0xff] %v23045_v44 }
 0xa05   :  { %14078 = vadd.xlane.f32.xlu0 %v13682_v46  ;;  %19715 = vmatprep.mubr.msk.bf16.mxu0 %vm21861_vm0, %v24763_v1  ;;  %v21338_v46 = vld [vmem:[#allocation7 + $0x13e8] sm:$0xff]   ;;  %v21340_v51 = vld [vmem:[#allocation7 + $0x13e0] sm:$0xff]   ;;  %v21342_v50 = vld [vmem:[#allocation7 + $0x13d8] sm:$0xff]  }
 0xa06   :  { %v8461_v3 = vpop.f32.mrf.mxu0  ;;  %19735 = vmatprep.mubr.msk.bf16.mxu1 %vm21861_vm0, %v24763_v1  ;;  %v8550_v4 = vpop.f32.mrf.mxu1 }
 0xa07   :  { %v13683_v10 = vmul.f32 %v22021_v12, %v8461_v3  ;;  %v13685_v43 = vmul.f32 %v22021_v12, %v8550_v4  ;;  %v21343_v3 = vld [vmem:[#allocation7 + $0x1390] sm:$0xff]  }
 0xa08   :  { %v19558_v2 = vpop.f32.mrf.mxu0  ;;  %v19578_v39 = vpop.f32.mrf.mxu1  ;;  %v21344_v4 = vld [vmem:[#allocation7 + $0x13d0] sm:$0xff]  }
 0xa09   :  { %14080 = vadd.xlane.f32.xlu1 %v13683_v10  ;;  %14082 = vadd.xlane.f32.xlu0 %v13684_v61  ;;  %v21341_v61 = vld [vmem:[#allocation7 + $0x1398] sm:$0xff]   ;;  %v21345_v10 = vld [vmem:[#allocation7 + $0x1388] sm:$0xff]   ;;  %v21347_v2 = vld [vmem:[#allocation7 + $0x1380] sm:$0xff]  }
 0xa0a   :  { %v21349_v39 = vld [vmem:[#allocation7 + $0x1438] sm:$0xff]  }
 0xa0b   :  { %19702 = vmatpush3.bf16.xpose.msra.mxu0 %v21335_v14  ;;  %19722 = vmatpush3.bf16.xpose.msra.mxu1 %v21336_v31  ;;  %v21346_v14 = vld [vmem:[#allocation7 + $0x13c8] sm:$0xff]   ;;  %v21348_v31 = vld [vmem:[#allocation7 + $0x13c0] sm:$0xff]  }
 0xa0c   :  { %19703 = vmatprep.subr.bf16.mxu0 %v24763_v1  ;;  %19723 = vmatprep.subr.bf16.mxu1 %v24763_v1 }
 0xa0d   :  { %14084 = vadd.xlane.f32.xlu1 %v13685_v43  ;;  %v21350_v43 = vld [vmem:[#allocation7 + $0x1478] sm:$0xff]  }
 0xa13   :  { %19704 = vmatpush3.bf16.xpose.msra.mxu0 %v21337_v45  ;;  %19724 = vmatpush3.bf16.xpose.msra.mxu1 %v21338_v46 }
 0xa14   :  { %19705 = vmatprep.subr.bf16.mxu0 %v24763_v1  ;;  %19725 = vmatprep.subr.bf16.mxu1 %v24763_v1 }
 0xa1b   :  { %19706 = vmatpush3.bf16.xpose.msra.mxu0 %v21339_v49  ;;  %19726 = vmatpush3.bf16.xpose.msra.mxu1 %v21340_v51 }
 0xa1c   :  { %19707 = vmatprep.subr.bf16.mxu0 %v24763_v1  ;;  %19727 = vmatprep.subr.bf16.mxu1 %v24763_v1 }
 0xa23   :  { %19708 = vmatpush3.bf16.xpose.msra.mxu0 %v21341_v61  ;;  %19728 = vmatpush3.bf16.xpose.msra.mxu1 %v21342_v50  ;;  %v23064_v61 = vpop.xlane.xlu0 %13890 }
 0xa24   :  { %19709 = vmatprep.subr.bf16.mxu0 %v24763_v1  ;;  %19729 = vmatprep.subr.bf16.mxu1 %v24763_v1  ;;  %24768 = vst [vmem:[#allocation17_spill] sm:$0xff] %v23064_v61 }
 0xa2b   :  { %19710 = vmatpush3.bf16.xpose.msra.mxu0 %v21343_v3  ;;  %19730 = vmatpush3.bf16.xpose.msra.mxu1 %v21344_v4 }
 0xa2c   :  { %19711 = vmatprep.subr.bf16.mxu0 %v24763_v1  ;;  %19731 = vmatprep.subr.bf16.mxu1 %v24763_v1 }
 0xa33   :  { %19712 = vmatpush3.bf16.xpose.msra.mxu0 %v21345_v10  ;;  %19732 = vmatpush3.bf16.xpose.msra.mxu1 %v21346_v14 }
 0xa34   :  { %19713 = vmatprep.subr.bf16.mxu0 %v24763_v1  ;;  %19733 = vmatprep.subr.bf16.mxu1 %v24763_v1 }
 0xa3b   :  { %19714 = vmatpush3.bf16.xpose.msra.mxu0 %v21347_v2  ;;  %19734 = vmatpush3.bf16.xpose.msra.mxu1 %v21348_v31  ;;  %v21351_v2 = vld [vmem:[#allocation7 + $0x1430] sm:$0xff]   ;;  %v23073_v31 = vpop.xlane.xlu1 %13892 }
 0xa3c   :  { %19739 = vmatprep.subr.bf16.mxu0 %v24763_v1  ;;  %19759 = vmatprep.subr.bf16.mxu1 %v24763_v1  ;;  %24769 = vst [vmem:[#allocation18_spill] sm:$0xff] %v23073_v31  ;;  %v21370_v31 = vld [vmem:[#allocation7 + $0x14e8] sm:$0xff]  }
 0xa42   :  { %v8636_v45 = vpop.f32.mrf.mxu0  ;;  %19716 = vmatmul.mubr.bf16.vlgmr.msra.gmra.mxu0 %v22956_v53  ;;  %v8725_v49 = vpop.f32.mrf.mxu1  ;;  %19736 = vmatmul.mubr.bf16.vlgmr.msra.gmra.mxu1 %v22956_v53 }
 0xa43   :  { %v13686_v46 = vmul.f32 %v22014_v7, %v8636_v45  ;;  %19740 = vmatpush3.bf16.xpose.msra.mxu0 %v21349_v39  ;;  %19760 = vmatpush3.bf16.xpose.msra.mxu1 %v21350_v43  ;;  %v13688_v50 = vmul.f32 %v22014_v7, %v8725_v49  ;;  %v21352_v43 = vld [vmem:[#allocation7 + $0x1470] sm:$0xff]   ;;  %v23075_v45 = vpop.xlane.xlu0 %13894 }
 0xa44   :  { %v19597_v51 = vpop.f32.mrf.mxu0  ;;  %19741 = vmatprep.subr.bf16.mxu0 %v24763_v1  ;;  %v19617_v3 = vpop.f32.mrf.mxu1  ;;  %19761 = vmatprep.subr.bf16.mxu1 %v24763_v1  ;;  %24770 = vst [vmem:[#allocation19_spill] sm:$0xff] %v23075_v45 }
 0xa45   :  { %14086 = vadd.xlane.f32.xlu0 %v13686_v46  ;;  %19755 = vmatprep.mubr.msk.bf16.mxu0 %vm21861_vm0, %v24763_v1  ;;  %v23079_v51 = vpop.xlane.xlu1 %13896  ;;  %v21353_v3 = vld [vmem:[#allocation7 + $0x1428] sm:$0xff]  }
 0xa46   :  { %v8639_v4 = vpop.f32.mrf.mxu0  ;;  %19775 = vmatprep.mubr.msk.bf16.mxu1 %vm21861_vm0, %v24763_v1  ;;  %v8728_v10 = vpop.f32.mrf.mxu1  ;;  %24771 = vst [vmem:[#allocation20_spill] sm:$0xff] %v23079_v51 }
 0xa47   :  { %v13687_v14 = vmul.f32 %v22021_v12, %v8639_v4  ;;  %v13689_v49 = vmul.f32 %v22021_v12, %v8728_v10  ;;  %v21354_v4 = vld [vmem:[#allocation7 + $0x1468] sm:$0xff]   ;;  %v21357_v10 = vld [vmem:[#allocation7 + $0x1418] sm:$0xff]  }
 0xa48   :  { %v19598_v39 = vpop.f32.mrf.mxu0  ;;  %v19618_v46 = vpop.f32.mrf.mxu1 }
 0xa49   :  { %14088 = vadd.xlane.f32.xlu1 %v13687_v14  ;;  %14090 = vadd.xlane.f32.xlu0 %v13688_v50  ;;  %v21355_v50 = vld [vmem:[#allocation7 + $0x1420] sm:$0xff]   ;;  %v21359_v39 = vld [vmem:[#allocation7 + $0x1410] sm:$0xff]   ;;  %v21361_v46 = vld [vmem:[#allocation7 + $0x1408] sm:$0xff]  }
 0xa4a   :  { %v21356_v14 = vld [vmem:[#allocation7 + $0x1460] sm:$0xff]  }
 0xa4b   :  { %19742 = vmatpush3.bf16.xpose.msra.mxu0 %v21351_v2  ;;  %19762 = vmatpush3.bf16.xpose.msra.mxu1 %v21352_v43  ;;  %v21358_v2 = vld [vmem:[#allocation7 + $0x1458] sm:$0xff]   ;;  %v21360_v43 = vld [vmem:[#allocation7 + $0x1450] sm:$0xff]  }
 0xa4c   :  { %19743 = vmatprep.subr.bf16.mxu0 %v24763_v1  ;;  %19763 = vmatprep.subr.bf16.mxu1 %v24763_v1 }
 0xa4d   :  { %14092 = vadd.xlane.f32.xlu1 %v13689_v49  ;;  %v21362_v49 = vld [vmem:[#allocation7 + $0x1448] sm:$0xff]  }
 0xa53   :  { %19744 = vmatpush3.bf16.xpose.msra.mxu0 %v21353_v3  ;;  %19764 = vmatpush3.bf16.xpose.msra.mxu1 %v21354_v4  ;;  %v21363_v3 = vld [vmem:[#allocation7 + $0x1400] sm:$0xff]  }
 0xa54   :  { %19745 = vmatprep.subr.bf16.mxu0 %v24763_v1  ;;  %19765 = vmatprep.subr.bf16.mxu1 %v24763_v1  ;;  %v21364_v4 = vld [vmem:[#allocation7 + $0x1440] sm:$0xff]  }
 0xa5b   :  { %19746 = vmatpush3.bf16.xpose.msra.mxu0 %v21355_v50  ;;  %19766 = vmatpush3.bf16.xpose.msra.mxu1 %v21356_v14  ;;  %v21365_v50 = vld [vmem:[#allocation7 + $0x14b8] sm:$0xff]  }
 0xa5c   :  { %19747 = vmatprep.subr.bf16.mxu0 %v24763_v1  ;;  %19767 = vmatprep.subr.bf16.mxu1 %v24763_v1  ;;  %v21366_v14 = vld [vmem:[#allocation7 + $0x14f8] sm:$0xff]  }
 0xa63   :  { %19748 = vmatpush3.bf16.xpose.msra.mxu0 %v21357_v10  ;;  %19768 = vmatpush3.bf16.xpose.msra.mxu1 %v21358_v2 }
 0xa64   :  { %19749 = vmatprep.subr.bf16.mxu0 %v24763_v1  ;;  %19769 = vmatprep.subr.bf16.mxu1 %v24763_v1 }
 0xa6b   :  { %19750 = vmatpush3.bf16.xpose.msra.mxu0 %v21359_v39  ;;  %19770 = vmatpush3.bf16.xpose.msra.mxu1 %v21360_v43 }
 0xa6c   :  { %19751 = vmatprep.subr.bf16.mxu0 %v24763_v1  ;;  %19771 = vmatprep.subr.bf16.mxu1 %v24763_v1 }
 0xa73   :  { %19752 = vmatpush3.bf16.xpose.msra.mxu0 %v21361_v46  ;;  %19772 = vmatpush3.bf16.xpose.msra.mxu1 %v21362_v49  ;;  %v23098_v46 = vpop.xlane.xlu0 %13898 }
 0xa74   :  { %19753 = vmatprep.subr.bf16.mxu0 %v24763_v1  ;;  %19773 = vmatprep.subr.bf16.mxu1 %v24763_v1  ;;  %24772 = vst [vmem:[#allocation21_spill] sm:$0xff] %v23098_v46 }
 0xa7b   :  { %19754 = vmatpush3.bf16.xpose.msra.mxu0 %v21363_v3  ;;  %19774 = vmatpush3.bf16.xpose.msra.mxu1 %v21364_v4 }
 0xa7c   :  { %19779 = vmatprep.subr.bf16.mxu0 %v24763_v1  ;;  %19799 = vmatprep.subr.bf16.mxu1 %v24763_v1 }
 0xa82   :  { %v8814_v10 = vpop.f32.mrf.mxu0  ;;  %19756 = vmatmul.mubr.bf16.vlgmr.msra.gmra.mxu0 %v22956_v53  ;;  %v8903_v39 = vpop.f32.mrf.mxu1  ;;  %19776 = vmatmul.mubr.bf16.vlgmr.msra.gmra.mxu1 %v22956_v53 }
 0xa83   :  { %v13690_v2 = vmul.f32 %v22014_v7, %v8814_v10  ;;  %19780 = vmatpush3.bf16.xpose.msra.mxu0 %v21365_v50  ;;  %19800 = vmatpush3.bf16.xpose.msra.mxu1 %v21366_v14  ;;  %v13692_v49 = vmul.f32 %v22014_v7, %v8903_v39  ;;  %v21367_v10 = vld [vmem:[#allocation7 + $0x14b0] sm:$0xff]   ;;  %v23109_v39 = vpop.xlane.xlu0 %13902 }
 0xa84   :  { %v19637_v43 = vpop.f32.mrf.mxu0  ;;  %19781 = vmatprep.subr.bf16.mxu0 %v24763_v1  ;;  %v19657_v3 = vpop.f32.mrf.mxu1  ;;  %19801 = vmatprep.subr.bf16.mxu1 %v24763_v1  ;;  %24774 = vst [vmem:[#allocation23_spill] sm:$0xff] %v23109_v39  ;;  %v21384_v39 = vld [vmem:[#allocation7 + $0x1570] sm:$0xff]  }
 0xa85   :  { %14094 = vadd.xlane.f32.xlu0 %v13690_v2  ;;  %19795 = vmatprep.mubr.msk.bf16.mxu0 %vm21861_vm0, %v24763_v1  ;;  %v23107_v43 = vpop.xlane.xlu1 %13900 }
 0xa86   :  { %v8817_v4 = vpop.f32.mrf.mxu0  ;;  %19815 = vmatprep.mubr.msk.bf16.mxu1 %vm21861_vm0, %v24763_v1  ;;  %v8906_v50 = vpop.f32.mrf.mxu1  ;;  %24773 = vst [vmem:[#allocation22_spill] sm:$0xff] %v23107_v43  ;;  %v21466_v43 = vld [vmem:[#allocation7 + $0x17e8] sm:$0xff]  }
 0xa87   :  { %v13691_v14 = vmul.f32 %v22021_v12, %v8817_v4  ;;  %v13693_v3 = vmul.f32 %v22021_v12, %v8906_v50  ;;  %v21369_v4 = vld [vmem:[#allocation7 + $0x14a8] sm:$0xff]   ;;  %v21374_v50 = vld [vmem:[#allocation7 + $0x14d8] sm:$0xff]  }
 0xa88   :  { %v19638_v61 = vpop.f32.mrf.mxu0  ;;  %v19658_v2 = vpop.f32.mrf.mxu1 }
 0xa89   :  { %14096 = vadd.xlane.f32.xlu1 %v13691_v14  ;;  %14098 = vadd.xlane.f32.xlu0 %v13692_v49  ;;  %v23113_v45 = vpop.xlane.xlu1 %13904  ;;  %v21371_v61 = vld [vmem:[#allocation7 + $0x14a0] sm:$0xff]   ;;  %v21376_v14 = vld [vmem:[#allocation7 + $0x14d0] sm:$0xff]   ;;  %v21378_v2 = vld [vmem:[#allocation7 + $0x14c8] sm:$0xff]  }
 0xa8a   :  { %24775 = vst [vmem:[#allocation24_spill] sm:$0xff] %v23113_v45  ;;  %v21372_v49 = vld [vmem:[#allocation7 + $0x14e0] sm:$0xff]  }
 0xa8b   :  { %19782 = vmatpush3.bf16.xpose.msra.mxu0 %v21367_v10  ;;  %19802 = vmatpush3.bf16.xpose.msra.mxu1 %v21368_v33  ;;  %v21373_v33 = vld [vmem:[#allocation7 + $0x1498] sm:$0xff]   ;;  %v21377_v10 = vld [vmem:[#allocation7 + $0x1488] sm:$0xff]   ;;  %v21452_v45 = vld [vmem:[#allocation7 + $0x1760] sm:$0xff]  }
 0xa8c   :  { %19783 = vmatprep.subr.bf16.mxu0 %v24763_v1  ;;  %19803 = vmatprep.subr.bf16.mxu1 %v24763_v1 }
 0xa8d   :  { %14100 = vadd.xlane.f32.xlu1 %v13693_v3  ;;  %v21379_v3 = vld [vmem:[#allocation7 + $0x1480] sm:$0xff]  }
 0xa93   :  { %19784 = vmatpush3.bf16.xpose.msra.mxu0 %v21369_v4  ;;  %19804 = vmatpush3.bf16.xpose.msra.mxu1 %v21370_v31  ;;  %v21375_v31 = vld [vmem:[#allocation7 + $0x1490] sm:$0xff]   ;;  %v21380_v4 = vld [vmem:[#allocation7 + $0x14c0] sm:$0xff]  }
 0xa94   :  { %19785 = vmatprep.subr.bf16.mxu0 %v24763_v1  ;;  %19805 = vmatprep.subr.bf16.mxu1 %v24763_v1 }
 0xa9b   :  { %19786 = vmatpush3.bf16.xpose.msra.mxu0 %v21371_v61  ;;  %19806 = vmatpush3.bf16.xpose.msra.mxu1 %v21372_v49  ;;  %v21381_v61 = vld [vmem:[#allocation7 + $0x1538] sm:$0xff]  }
 0xa9c   :  { %19787 = vmatprep.subr.bf16.mxu0 %v24763_v1  ;;  %19807 = vmatprep.subr.bf16.mxu1 %v24763_v1  ;;  %v21382_v49 = vld [vmem:[#allocation7 + $0x1578] sm:$0xff]  }
 0xaa3   :  { %19788 = vmatpush3.bf16.xpose.msra.mxu0 %v21373_v33  ;;  %19808 = vmatpush3.bf16.xpose.msra.mxu1 %v21374_v50 }
 0xaa4   :  { %19789 = vmatprep.subr.bf16.mxu0 %v24763_v1  ;;  %19809 = vmatprep.subr.bf16.mxu1 %v24763_v1 }
 0xaab   :  { %19790 = vmatpush3.bf16.xpose.msra.mxu0 %v21375_v31  ;;  %19810 = vmatpush3.bf16.xpose.msra.mxu1 %v21376_v14 }
 0xaac   :  { %19791 = vmatprep.subr.bf16.mxu0 %v24763_v1  ;;  %19811 = vmatprep.subr.bf16.mxu1 %v24763_v1 }
 0xab3   :  { %19792 = vmatpush3.bf16.xpose.msra.mxu0 %v21377_v10  ;;  %19812 = vmatpush3.bf16.xpose.msra.mxu1 %v21378_v2  ;;  %v23132_v10 = vpop.xlane.xlu0 %13906 }
 0xab4   :  { %19793 = vmatprep.subr.bf16.mxu0 %v24763_v1  ;;  %19813 = vmatprep.subr.bf16.mxu1 %v24763_v1  ;;  %24776 = vst [vmem:[#allocation25_spill] sm:$0xff] %v23132_v10 }
 0xabb   :  { %19794 = vmatpush3.bf16.xpose.msra.mxu0 %v21379_v3  ;;  %19814 = vmatpush3.bf16.xpose.msra.mxu1 %v21380_v4 }
 0xabc   :  { %19819 = vmatprep.subr.bf16.mxu0 %v24763_v1  ;;  %19839 = vmatprep.subr.bf16.mxu1 %v24763_v1 }
 0xac2   :  { %v8992_v33 = vpop.f32.mrf.mxu0  ;;  %19796 = vmatmul.mubr.bf16.vlgmr.msra.gmra.mxu0 %v22956_v53  ;;  %v9081_v31 = vpop.f32.mrf.mxu1  ;;  %19816 = vmatmul.mubr.bf16.vlgmr.msra.gmra.mxu1 %v22956_v53 }
 0xac3   :  { %v13694_v50 = vmul.f32 %v22014_v7, %v8992_v33  ;;  %19820 = vmatpush3.bf16.xpose.msra.mxu0 %v21381_v61  ;;  %19840 = vmatpush3.bf16.xpose.msra.mxu1 %v21382_v49  ;;  %v13696_v2 = vmul.f32 %v22014_v7, %v9081_v31  ;;  %v21383_v33 = vld [vmem:[#allocation7 + $0x1530] sm:$0xff]   ;;  %v23143_v31 = vpop.xlane.xlu0 %13910 }
 0xac4   :  { %v19677_v14 = vpop.f32.mrf.mxu0  ;;  %19821 = vmatprep.subr.bf16.mxu0 %v24763_v1  ;;  %v19697_v3 = vpop.f32.mrf.mxu1  ;;  %19841 = vmatprep.subr.bf16.mxu1 %v24763_v1  ;;  %24778 = vst [vmem:[#allocation27_spill] sm:$0xff] %v23143_v31 }
 0xac5   :  { %14102 = vadd.xlane.f32.xlu0 %v13694_v50  ;;  %19835 = vmatprep.mubr.msk.bf16.mxu0 %vm21861_vm0, %v24763_v1  ;;  %v23141_v14 = vpop.xlane.xlu1 %13908 }
 0xac6   :  { %v8995_v4 = vpop.f32.mrf.mxu0  ;;  %19855 = vmatprep.mubr.msk.bf16.mxu1 %vm21861_vm0, %v24763_v1  ;;  %v9084_v61 = vpop.f32.mrf.mxu1  ;;  %24777 = vst [vmem:[#allocation26_spill] sm:$0xff] %v23141_v14 }
 0xac7   :  { %v13695_v49 = vmul.f32 %v22021_v12, %v8995_v4  ;;  %v13697_v3 = vmul.f32 %v22021_v12, %v9084_v61  ;;  %v21385_v4 = vld [vmem:[#allocation7 + $0x1528] sm:$0xff]   ;;  %v23150_v14 = vpop.xlane.xlu0 %13914  ;;  %v21388_v61 = vld [vmem:[#allocation7 + $0x1560] sm:$0xff]  }
 0xac8   :  { %v19678_v10 = vpop.f32.mrf.mxu0  ;;  %v19698_v50 = vpop.f32.mrf.mxu1  ;;  %24780 = vst [vmem:[#allocation29_spill] sm:$0xff] %v23150_v14 }
 0xac9   :  { %14104 = vadd.xlane.f32.xlu1 %v13695_v49  ;;  %14106 = vadd.xlane.f32.xlu0 %v13696_v2  ;;  %v23147_v44 = vpop.xlane.xlu1 %13912  ;;  %v21386_v10 = vld [vmem:[#allocation7 + $0x1568] sm:$0xff]   ;;  %v21387_v2 = vld [vmem:[#allocation7 + $0x1520] sm:$0xff]  }
 0xaca   :  { %24779 = vst [vmem:[#allocation28_spill] sm:$0xff] %v23147_v44 }
 0xacb   :  { %19822 = vmatpush3.bf16.xpose.msra.mxu0 %v21383_v33  ;;  %19842 = vmatpush3.bf16.xpose.msra.mxu1 %v21384_v39  ;;  %v23154_v49 = vpop.xlane.xlu0 %13918 }
 0xacc   :  { %19823 = vmatprep.subr.bf16.mxu0 %v24763_v1  ;;  %19843 = vmatprep.subr.bf16.mxu1 %v24763_v1  ;;  %24782 = vst [vmem:[#allocation31_spill] sm:$0xff] %v23154_v49 }
 0xacd   :  { %14108 = vadd.xlane.f32.xlu1 %v13697_v3  ;;  %v23152_v46 = vpop.xlane.xlu1 %13916 }
 0xace   :  { %24781 = vst [vmem:[#allocation30_spill] sm:$0xff] %v23152_v46 }
 0xacf   :  { %v23160_v33 = vpop.xlane.xlu0 %13922 }
 0xad0   :  { %24784 = vst [vmem:[#allocation33_spill] sm:$0xff] %v23160_v33 }
 0xad1   :  { %v23158_v39 = vpop.xlane.xlu1 %13920 }
 0xad2   :  { %24783 = vst [vmem:[#allocation32_spill] sm:$0xff] %v23158_v39 }
 0xad3   :  { %19824 = vmatpush3.bf16.xpose.msra.mxu0 %v21385_v4  ;;  %19844 = vmatpush3.bf16.xpose.msra.mxu1 %v21386_v10  ;;  %v23166_v3 = vpop.xlane.xlu0 %13926  ;;  %v21389_v4 = vld [vmem:[#allocation7 + $0x1518] sm:$0xff]  }
 0xad4   :  { %19825 = vmatprep.subr.bf16.mxu0 %v24763_v1  ;;  %19845 = vmatprep.subr.bf16.mxu1 %v24763_v1  ;;  %24786 = vst [vmem:[#allocation35_spill] sm:$0xff] %v23166_v3  ;;  %v21390_v10 = vld [vmem:[#allocation7 + $0x1558] sm:$0xff]   ;;  %v21394_v3 = vld [vmem:[#allocation7 + $0x1548] sm:$0xff]  }
 0xad5   :  { %v23163_v50 = vpop.xlane.xlu1 %13924 }
 0xad6   :  { %24785 = vst [vmem:[#allocation34_spill] sm:$0xff] %v23163_v50  ;;  %v21392_v50 = vld [vmem:[#allocation7 + $0x1550] sm:$0xff]  }
 0xad7   :  { %v23170_v39 = vpop.xlane.xlu0 %13930 }
 0xad8   :  { %24788 = vst [vmem:[#allocation37_spill] sm:$0xff] %v23170_v39 }
 0xad9   :  { %v23168_v49 = vpop.xlane.xlu1 %13928 }
 0xada   :  { %24787 = vst [vmem:[#allocation36_spill] sm:$0xff] %v23168_v49 }
 0xadb   :  { %19826 = vmatpush3.bf16.xpose.msra.mxu0 %v21387_v2  ;;  %19846 = vmatpush3.bf16.xpose.msra.mxu1 %v21388_v61  ;;  %v21391_v61 = vld [vmem:[#allocation7 + $0x1510] sm:$0xff]   ;;  %v23176_v33 = vpop.xlane.xlu0 %13934 }
 0xadc   :  { %19827 = vmatprep.subr.bf16.mxu0 %v24763_v1  ;;  %19847 = vmatprep.subr.bf16.mxu1 %v24763_v1  ;;  %24790 = vst [vmem:[#allocation39_spill] sm:$0xff] %v23176_v33 }
 0xadd   :  { %v23174_v2 = vpop.xlane.xlu1 %13932 }
 0xade   :  { %24789 = vst [vmem:[#allocation38_spill] sm:$0xff] %v23174_v2 }
 0xae1   :  { %v23178_v14 = vpop.xlane.xlu1 %13936 }
 0xae2   :  { %24791 = vst [vmem:[#allocation40_spill] sm:$0xff] %v23178_v14  ;;  %v21396_v14 = vld [vmem:[#allocation7 + $0x1540] sm:$0xff]  }
 0xae3   :  { %19828 = vmatpush3.bf16.xpose.msra.mxu0 %v21389_v4  ;;  %19848 = vmatpush3.bf16.xpose.msra.mxu1 %v21390_v10  ;;  %v23182_v4 = vpop.xlane.xlu0 %13938  ;;  %v21393_v10 = vld [vmem:[#allocation7 + $0x1508] sm:$0xff]  }
 0xae4   :  { %19829 = vmatprep.subr.bf16.mxu0 %v24763_v1  ;;  %19849 = vmatprep.subr.bf16.mxu1 %v24763_v1  ;;  %24792 = vst [vmem:[#allocation41_spill] sm:$0xff] %v23182_v4 }
 0xae5   :  { %v23184_v39 = vpop.xlane.xlu1 %13940 }
 0xae6   :  { %24793 = vst [vmem:[#allocation42_spill] sm:$0xff] %v23184_v39 }
 0xae7   :  { %v23186_v49 = vpop.xlane.xlu0 %13942 }
 0xae8   :  { %24794 = vst [vmem:[#allocation43_spill] sm:$0xff] %v23186_v49  ;;  %v21398_v49 = vld [vmem:[#allocation7 + $0x15f8] sm:$0xff]  }
 0xae9   :  { %v23189_v33 = vpop.xlane.xlu1 %13944 }
 0xaea   :  { %24795 = vst [vmem:[#allocation44_spill] sm:$0xff] %v23189_v33 }
 0xaeb   :  { %19830 = vmatpush3.bf16.xpose.msra.mxu0 %v21391_v61  ;;  %19850 = vmatpush3.bf16.xpose.msra.mxu1 %v21392_v50  ;;  %v21395_v50 = vld [vmem:[#allocation7 + $0x1500] sm:$0xff]   ;;  %v23192_v61 = vpop.xlane.xlu0 %13946 }
 0xaec   :  { %19831 = vmatprep.subr.bf16.mxu0 %v24763_v1  ;;  %19851 = vmatprep.subr.bf16.mxu1 %v24763_v1  ;;  %24796 = vst [vmem:[#allocation45_spill] sm:$0xff] %v23192_v61 }
 0xaed   :  { %v23194_v2 = vpop.xlane.xlu1 %13948 }
 0xaee   :  { %24797 = vst [vmem:[#allocation46_spill] sm:$0xff] %v23194_v2 }
 0xaef   :  { %v23196_v4 = vpop.xlane.xlu0 %13950 }
 0xaf0   :  { %24798 = vst [vmem:[#allocation47_spill] sm:$0xff] %v23196_v4 }
 0xaf3   :  { %19832 = vmatpush3.bf16.xpose.msra.mxu0 %v21393_v10  ;;  %19852 = vmatpush3.bf16.xpose.msra.mxu1 %v21394_v3  ;;  %v23200_v3 = vpop.xlane.xlu1 %13952  ;;  %v21397_v10 = vld [vmem:[#allocation7 + $0x15b8] sm:$0xff]   ;;  %v23202_v33 = vpop.xlane.xlu0 %13954 }
 0xaf4   :  { %19833 = vmatprep.subr.bf16.mxu0 %v24763_v1  ;;  %19853 = vmatprep.subr.bf16.mxu1 %v24763_v1  ;;  %24799 = vst [vmem:[#allocation48_spill] sm:$0xff] %v23200_v3  ;;  %24800 = vst [vmem:[#allocation49_spill] sm:$0xff] %v23202_v33 }
 0xaf7   :  { %v23212_v33 = vpop.xlane.xlu0 %13958 }
 0xaf8   :  { %24802 = vst [vmem:[#allocation51_spill] sm:$0xff] %v23212_v33 }
 0xafb   :  { %19834 = vmatpush3.bf16.xpose.msra.mxu0 %v21395_v50  ;;  %19854 = vmatpush3.bf16.xpose.msra.mxu1 %v21396_v14  ;;  %v23208_v50 = vpop.xlane.xlu1 %13956 }
 0xafc   :  { %19859 = vmatprep.subr.bf16.mxu0 %v24763_v1  ;;  %19879 = vmatprep.subr.bf16.mxu1 %v24763_v1  ;;  %24801 = vst [vmem:[#allocation50_spill] sm:$0xff] %v23208_v50  ;;  %v23222_v50 = vpop.xlane.xlu0 %13962 }
 0xafd   :  { %24804 = vst [vmem:[#allocation53_spill] sm:$0xff] %v23222_v50 }
 0xb00   :  { %v23228_v33 = vpop.xlane.xlu0 %13966 }
 0xb01   :  { %24806 = vst [vmem:[#allocation55_spill] sm:$0xff] %v23228_v33  ;;  %v21406_v33 = vld [vmem:[#allocation7 + $0x15d8] sm:$0xff]  }
 0xb02   :  { %v9170_v39 = vpop.f32.mrf.mxu0  ;;  %19836 = vmatmul.mubr.bf16.vlgmr.msra.gmra.mxu0 %v22956_v53  ;;  %v9259_v2 = vpop.f32.mrf.mxu1  ;;  %19856 = vmatmul.mubr.bf16.vlgmr.msra.gmra.mxu1 %v22956_v53 }
 0xb03   :  { %v13698_v61 = vmul.f32 %v22014_v7, %v9170_v39  ;;  %19860 = vmatpush3.bf16.xpose.msra.mxu0 %v21397_v10  ;;  %19880 = vmatpush3.bf16.xpose.msra.mxu1 %v21398_v49  ;;  %v13700_v4 = vmul.f32 %v22014_v7, %v9259_v2  ;;  %v21399_v39 = vld [vmem:[#allocation7 + $0x15b0] sm:$0xff]   ;;  %v23219_v2 = vpop.xlane.xlu1 %13960 }
 0xb04   :  { %v19717_v14 = vpop.f32.mrf.mxu0  ;;  %19861 = vmatprep.subr.bf16.mxu0 %v24763_v1  ;;  %v19737_v3 = vpop.f32.mrf.mxu1  ;;  %19881 = vmatprep.subr.bf16.mxu1 %v24763_v1  ;;  %24803 = vst [vmem:[#allocation52_spill] sm:$0xff] %v23219_v2  ;;  %v21402_v2 = vld [vmem:[#allocation7 + $0x15e8] sm:$0xff]  }
 0xb05   :  { %14110 = vadd.xlane.f32.xlu0 %v13698_v61  ;;  %19875 = vmatprep.mubr.msk.bf16.mxu0 %vm21861_vm0, %v24763_v1  ;;  %v21400_v14 = vld [vmem:[#allocation7 + $0x15f0] sm:$0xff]  }
 0xb06   :  { %v9173_v31 = vpop.f32.mrf.mxu0  ;;  %19895 = vmatprep.mubr.msk.bf16.mxu1 %vm21861_vm0, %v24763_v1  ;;  %v9262_v53 = vpop.f32.mrf.mxu1 }
 0xb07   :  { %v13699_v49 = vmul.f32 %v22021_v12, %v9173_v31  ;;  %v13701_v3 = vmul.f32 %v22021_v12, %v9262_v53  ;;  %v23226_v31 = vpop.xlane.xlu1 %13964  ;;  %v21403_v53 = vld [vmem:[#allocation7 + $0x15a0] sm:$0xff]  }
 0xb08   :  { %v19718_v10 = vpop.f32.mrf.mxu0  ;;  %v19738_v61 = vpop.f32.mrf.mxu1  ;;  %24805 = vst [vmem:[#allocation54_spill] sm:$0xff] %v23226_v31  ;;  %v21416_v31 = vld [vmem:[#allocation7 + $0x1670] sm:$0xff]  }
 0xb09   :  { %14112 = vadd.xlane.f32.xlu1 %v13699_v49  ;;  %14114 = vadd.xlane.f32.xlu0 %v13700_v4  ;;  %v21401_v10 = vld [vmem:[#allocation7 + $0x15a8] sm:$0xff]   ;;  %v23234_v4 = vpop.xlane.xlu0 %13970  ;;  %v21404_v49 = vld [vmem:[#allocation7 + $0x15e0] sm:$0xff]  }
 0xb0a   :  { %24808 = vst [vmem:[#allocation57_spill] sm:$0xff] %v23234_v4 }
 0xb0b   :  { %19862 = vmatpush3.bf16.xpose.msra.mxu0 %v21399_v39  ;;  %19882 = vmatpush3.bf16.xpose.msra.mxu1 %v21400_v14  ;;  %v23230_v61 = vpop.xlane.xlu1 %13968 }
 0xb0c   :  { %19863 = vmatprep.subr.bf16.mxu0 %v24763_v1  ;;  %19883 = vmatprep.subr.bf16.mxu1 %v24763_v1  ;;  %24807 = vst [vmem:[#allocation56_spill] sm:$0xff] %v23230_v61  ;;  %v23282_v61 = vld [vmem:[#allocation5] sm:$0xff]  }
 0xb0d   :  { %14116 = vadd.xlane.f32.xlu1 %v13701_v3  ;;  %v23238_v14 = vpop.xlane.xlu0 %13974 }
 0xb0e   :  { %24810 = vst [vmem:[#allocation59_spill] sm:$0xff] %v23238_v14  ;;  %v21408_v14 = vld [vmem:[#allocation7 + $0x15d0] sm:$0xff]  }
 0xb0f   :  { %v23236_v39 = vpop.xlane.xlu1 %13972 }
 0xb10   :  { %24809 = vst [vmem:[#allocation58_spill] sm:$0xff] %v23236_v39 }
 0xb13   :  { %19864 = vmatpush3.bf16.xpose.msra.mxu0 %v21401_v10  ;;  %19884 = vmatpush3.bf16.xpose.msra.mxu1 %v21402_v2  ;;  %v23241_v3 = vpop.xlane.xlu1 %13976  ;;  %v21405_v2 = vld [vmem:[#allocation7 + $0x1598] sm:$0xff]   ;;  %v23244_v10 = vpop.xlane.xlu0 %13978 }
 0xb14   :  { %19865 = vmatprep.subr.bf16.mxu0 %v24763_v1  ;;  %19885 = vmatprep.subr.bf16.mxu1 %v24763_v1  ;;  %24811 = vst [vmem:[#allocation60_spill] sm:$0xff] %v23241_v3  ;;  %24812 = vst [vmem:[#allocation61_spill] sm:$0xff] %v23244_v10 }
 0xb17   :  { %v23246_v50 = vpop.xlane.xlu1 %13980  ;;  %v23248_v4 = vpop.xlane.xlu0 %13982 }
 0xb18   :  { %24813 = vst [vmem:[#allocation62_spill] sm:$0xff] %v23246_v50  ;;  %24814 = vst [vmem:[#allocation63_spill] sm:$0xff] %v23248_v4  ;;  %v21410_v4 = vld [vmem:[#allocation7 + $0x15c8] sm:$0xff]  }
 0xb1b   :  { %19866 = vmatpush3.bf16.xpose.msra.mxu0 %v21403_v53  ;;  %19886 = vmatpush3.bf16.xpose.msra.mxu1 %v21404_v49  ;;  %v23252_v53 = vpop.xlane.xlu1 %13984  ;;  %v21407_v49 = vld [vmem:[#allocation7 + $0x1590] sm:$0xff]   ;;  %v23254_v3 = vpop.xlane.xlu0 %13986 }
 0xb1c   :  { %19867 = vmatprep.subr.bf16.mxu0 %v24763_v1  ;;  %19887 = vmatprep.subr.bf16.mxu1 %v24763_v1  ;;  %24815 = vst [vmem:[#allocation64_spill] sm:$0xff] %v23252_v53  ;;  %24816 = vst [vmem:[#allocation65_spill] sm:$0xff] %v23254_v3 }
 0xb1f   :  { %v23257_v10 = vpop.xlane.xlu1 %13988 }
 0xb20   :  { %24817 = vst [vmem:[#allocation66_spill] sm:$0xff] %v23257_v10  ;;  %v21412_v10 = vld [vmem:[#allocation7 + $0x15c0] sm:$0xff]  }
 0xb23   :  { %19868 = vmatpush3.bf16.xpose.msra.mxu0 %v21405_v2  ;;  %19888 = vmatpush3.bf16.xpose.msra.mxu1 %v21406_v33  ;;  %v23260_v2 = vpop.xlane.xlu0 %13990  ;;  %v21409_v33 = vld [vmem:[#allocation7 + $0x1588] sm:$0xff]   ;;  %v23262_v50 = vpop.xlane.xlu1 %13992 }
 0xb24   :  { %19869 = vmatprep.subr.bf16.mxu0 %v24763_v1  ;;  %19889 = vmatprep.subr.bf16.mxu1 %v24763_v1  ;;  %24818 = vst [vmem:[#allocation67_spill] sm:$0xff] %v23260_v2  ;;  %24819 = vst [vmem:[#allocation68_spill] sm:$0xff] %v23262_v50  ;;  %v21414_v2 = vld [vmem:[#allocation7 + $0x1678] sm:$0xff]  }
 0xb27   :  { %v23264_v53 = vpop.xlane.xlu0 %13994 }
 0xb28   :  { %24820 = vst [vmem:[#allocation69_spill] sm:$0xff] %v23264_v53 }
 0xb2b   :  { %19870 = vmatpush3.bf16.xpose.msra.mxu0 %v21407_v49  ;;  %19890 = vmatpush3.bf16.xpose.msra.mxu1 %v21408_v14  ;;  %v23268_v14 = vpop.xlane.xlu1 %13996  ;;  %v21411_v49 = vld [vmem:[#allocation7 + $0x1580] sm:$0xff]   ;;  %v23270_v3 = vpop.xlane.xlu0 %13998 }
 0xb2c   :  { %19871 = vmatprep.subr.bf16.mxu0 %v24763_v1  ;;  %19891 = vmatprep.subr.bf16.mxu1 %v24763_v1  ;;  %24821 = vst [vmem:[#allocation70_spill] sm:$0xff] %v23268_v14  ;;  %24822 = vst [vmem:[#allocation71_spill] sm:$0xff] %v23270_v3 }
 0xb2f   :  { %v23272_v39 = vpop.xlane.xlu1 %14000 }
 0xb30   :  { %24823 = vst [vmem:[#allocation72_spill] sm:$0xff] %v23272_v39 }
 0xb33   :  { %19872 = vmatpush3.bf16.xpose.msra.mxu0 %v21409_v33  ;;  %19892 = vmatpush3.bf16.xpose.msra.mxu1 %v21410_v4  ;;  %v23276_v33 = vpop.xlane.xlu0 %14002  ;;  %v21413_v4 = vld [vmem:[#allocation7 + $0x1638] sm:$0xff]   ;;  %v23278_v53 = vpop.xlane.xlu1 %14004 }
 0xb34   :  { %19873 = vmatprep.subr.bf16.mxu0 %v24763_v1  ;;  %19893 = vmatprep.subr.bf16.mxu1 %v24763_v1  ;;  %24824 = vst [vmem:[#allocation73_spill] sm:$0xff] %v23276_v33  ;;  %24825 = vst [vmem:[#allocation74_spill] sm:$0xff] %v23278_v53  ;;  %v24827_v33 = vmov 0.0  }
 0xb37   :  { %v23280_v50 = vpop.xlane.xlu0 %14006  ;;  %v23288_v3 = vpop.xlane.xlu1 %14008 }
 0xb38   :  { %24826 = vst [vmem:[#allocation75_spill] sm:$0xff] %v23280_v50  ;;  %24828 = vst [vmem:[#allocation76_spill] sm:$0xff] %v23288_v3 }
 0xb3b   :  { %19874 = vmatpush3.bf16.xpose.msra.mxu0 %v21411_v49  ;;  %19894 = vmatpush3.bf16.xpose.msra.mxu1 %v21412_v10 }
 0xb3c   :  { %19899 = vmatprep.subr.bf16.mxu0 %v24763_v1  ;;  %19919 = vmatprep.subr.bf16.mxu1 %v24763_v1 }
 0xb42   :  { %v9348_v14 = vpop.f32.mrf.mxu0  ;;  %19876 = vmatmul.mubr.bf16.vlgmr.msra.gmra.mxu0 %v23282_v61  ;;  %v9437_v10 = vpop.f32.mrf.mxu1  ;;  %19896 = vmatmul.mubr.bf16.vlgmr.msra.gmra.mxu1 %v23282_v61 }
 0xb43   :  { %v13702_v49 = vmul.f32 %v22014_v7, %v9348_v14  ;;  %19900 = vmatpush3.bf16.xpose.msra.mxu0 %v21413_v4  ;;  %19920 = vmatpush3.bf16.xpose.msra.mxu1 %v21414_v2  ;;  %v13704_v53 = vmul.f32 %v22014_v7, %v9437_v10  ;;  %v21415_v2 = vld [vmem:[#allocation7 + $0x1630] sm:$0xff]   ;;  %v23297_v4 = vpop.xlane.xlu0 %14010 }
 0xb44   :  { %v19757_v1 = vpop.f32.mrf.mxu0  ;;  %19901 = vmatprep.subr.bf16.mxu0 %v24827_v33  ;;  %v19777_v50 = vpop.f32.mrf.mxu1  ;;  %19921 = vmatprep.subr.bf16.mxu1 %v24827_v33  ;;  %24829 = vst [vmem:[#allocation77_spill] sm:$0xff] %v23297_v4  ;;  %v21418_v4 = vld [vmem:[#allocation7 + $0x1668] sm:$0xff]  }
 0xb45   :  { %14118 = vadd.xlane.f32.xlu0 %v13702_v49  ;;  %19915 = vmatprep.mubr.msk.bf16.mxu0 %vm21861_vm0, %v24827_v33  ;;  %v23299_v50 = vpop.xlane.xlu1 %14012 }
 0xb46   :  { %v9351_v39 = vpop.f32.mrf.mxu0  ;;  %19935 = vmatprep.mubr.msk.bf16.mxu1 %vm21861_vm0, %v24827_v33  ;;  %v9440_v14 = vpop.f32.mrf.mxu1  ;;  %24830 = vst [vmem:[#allocation78_spill] sm:$0xff] %v23299_v50 }
 0xb47   :  { %v13703_v1 = vmul.f32 %v22021_v12, %v9351_v39  ;;  %v13705_v49 = vmul.f32 %v22021_v12, %v9440_v14  ;;  %v23302_v46 = vpop.xlane.xlu0 %14014  ;;  %v21419_v14 = vld [vmem:[#allocation7 + $0x1620] sm:$0xff]  }
 0xb48   :  { %v19758_v3 = vpop.f32.mrf.mxu0  ;;  %v19778_v10 = vpop.f32.mrf.mxu1  ;;  %24831 = vst [vmem:[#allocation79_spill] sm:$0xff] %v23302_v46  ;;  %v21422_v46 = vld [vmem:[#allocation7 + $0x1658] sm:$0xff]  }
 0xb49   :  { %14120 = vadd.xlane.f32.xlu1 %v13703_v1  ;;  %14122 = vadd.xlane.f32.xlu0 %v13704_v53  ;;  %v23306_v39 = vpop.xlane.xlu1 %14016  ;;  %v21417_v3 = vld [vmem:[#allocation7 + $0x1628] sm:$0xff]   ;;  %v21420_v1 = vld [vmem:[#allocation7 + $0x1660] sm:$0xff]  }
 0xb4a   :  { %24832 = vst [vmem:[#allocation80_spill] sm:$0xff] %v23306_v39  ;;  %v21424_v39 = vld [vmem:[#allocation7 + $0x1650] sm:$0xff]  }
 0xb4b   :  { %19902 = vmatpush3.bf16.xpose.msra.mxu0 %v21415_v2  ;;  %19922 = vmatpush3.bf16.xpose.msra.mxu1 %v21416_v31  ;;  %v23308_v10 = vpop.xlane.xlu0 %14018 }
 0xb4c   :  { %19903 = vmatprep.subr.bf16.mxu0 %v24827_v33  ;;  %19923 = vmatprep.subr.bf16.mxu1 %v24827_v33  ;;  %24833 = vst [vmem:[#allocation81_spill] sm:$0xff] %v23308_v10 }
 0xb4d   :  { %14124 = vadd.xlane.f32.xlu1 %v13705_v49  ;;  %v23311_v53 = vpop.xlane.xlu1 %14020 }
 0xb4e   :  { %24834 = vst [vmem:[#allocation82_spill] sm:$0xff] %v23311_v53 }
 0xb4f   :  { %v23314_v31 = vpop.xlane.xlu0 %14022 }
 0xb50   :  { %24835 = vst [vmem:[#allocation83_spill] sm:$0xff] %v23314_v31 }
 0xb51   :  { %v23316_v2 = vpop.xlane.xlu1 %14024 }
 0xb52   :  { %24836 = vst [vmem:[#allocation84_spill] sm:$0xff] %v23316_v2 }
 0xb53   :  { %19904 = vmatpush3.bf16.xpose.msra.mxu0 %v21417_v3  ;;  %19924 = vmatpush3.bf16.xpose.msra.mxu1 %v21418_v4  ;;  %v23318_v49 = vpop.xlane.xlu0 %14026  ;;  %v21421_v3 = vld [vmem:[#allocation7 + $0x1618] sm:$0xff]  }
 0xb54   :  { %19905 = vmatprep.subr.bf16.mxu0 %v24827_v33  ;;  %19925 = vmatprep.subr.bf16.mxu1 %v24827_v33  ;;  %24837 = vst [vmem:[#allocation85_spill] sm:$0xff] %v23318_v49  ;;  %v21426_v49 = vld [vmem:[#allocation7 + $0x1648] sm:$0xff]  }
 0xb55   :  { %v23322_v4 = vpop.xlane.xlu1 %14028 }
 0xb56   :  { %24838 = vst [vmem:[#allocation86_spill] sm:$0xff] %v23322_v4 }
 0xb57   :  { %v23324_v10 = vpop.xlane.xlu0 %14030 }
 0xb58   :  { %24839 = vst [vmem:[#allocation87_spill] sm:$0xff] %v23324_v10 }
 0xb59   :  { %v23326_v53 = vpop.xlane.xlu1 %14032 }
 0xb5a   :  { %24840 = vst [vmem:[#allocation88_spill] sm:$0xff] %v23326_v53 }
 0xb5b   :  { %19906 = vmatpush3.bf16.xpose.msra.mxu0 %v21419_v14  ;;  %19926 = vmatpush3.bf16.xpose.msra.mxu1 %v21420_v1  ;;  %v23330_v14 = vpop.xlane.xlu0 %14034  ;;  %v21423_v1 = vld [vmem:[#allocation7 + $0x1610] sm:$0xff]  }
 0xb5c   :  { %19907 = vmatprep.subr.bf16.mxu0 %v24827_v33  ;;  %19927 = vmatprep.subr.bf16.mxu1 %v24827_v33  ;;  %24841 = vst [vmem:[#allocation89_spill] sm:$0xff] %v23330_v14 }
 0xb5d   :  { %v23332_v31 = vpop.xlane.xlu1 %14036 }
 0xb5e   :  { %24842 = vst [vmem:[#allocation90_spill] sm:$0xff] %v23332_v31 }
 0xb5f   :  { %v23334_v50 = vpop.xlane.xlu0 %14038 }
 0xb60   :  { %24843 = vst [vmem:[#allocation91_spill] sm:$0xff] %v23334_v50  ;;  %v21428_v50 = vld [vmem:[#allocation7 + $0x1640] sm:$0xff]  }
 0xb61   :  { %v23337_v10 = vpop.xlane.xlu1 %14040 }
 0xb62   :  { %24844 = vst [vmem:[#allocation92_spill] sm:$0xff] %v23337_v10 }
 0xb63   :  { %19908 = vmatpush3.bf16.xpose.msra.mxu0 %v21421_v3  ;;  %19928 = vmatpush3.bf16.xpose.msra.mxu1 %v21422_v46  ;;  %v21425_v46 = vld [vmem:[#allocation7 + $0x1608] sm:$0xff]   ;;  %v23340_v3 = vpop.xlane.xlu0 %14042 }
 0xb64   :  { %19909 = vmatprep.subr.bf16.mxu0 %v24827_v33  ;;  %19929 = vmatprep.subr.bf16.mxu1 %v24827_v33  ;;  %24845 = vst [vmem:[#allocation93_spill] sm:$0xff] %v23340_v3 }
 0xb65   :  { %v23342_v2 = vpop.xlane.xlu1 %14044 }
 0xb66   :  { %24846 = vst [vmem:[#allocation94_spill] sm:$0xff] %v23342_v2 }
 0xb67   :  { %v23344_v14 = vpop.xlane.xlu0 %14046 }
 0xb68   :  { %24847 = vst [vmem:[#allocation95_spill] sm:$0xff] %v23344_v14  ;;  %v21430_v14 = vld [vmem:[#allocation7 + $0x16f8] sm:$0xff]  }
 0xb6b   :  { %19910 = vmatpush3.bf16.xpose.msra.mxu0 %v21423_v1  ;;  %19930 = vmatpush3.bf16.xpose.msra.mxu1 %v21424_v39  ;;  %v23348_v39 = vpop.xlane.xlu1 %14048  ;;  %v21427_v1 = vld [vmem:[#allocation7 + $0x1600] sm:$0xff]   ;;  %v23350_v10 = vpop.xlane.xlu0 %14050 }
 0xb6c   :  { %19911 = vmatprep.subr.bf16.mxu0 %v24827_v33  ;;  %19931 = vmatprep.subr.bf16.mxu1 %v24827_v33  ;;  %24848 = vst [vmem:[#allocation96_spill] sm:$0xff] %v23348_v39  ;;  %24849 = vst [vmem:[#allocation97_spill] sm:$0xff] %v23350_v10 }
 0xb6f   :  { %v23353_v3 = vpop.xlane.xlu1 %14052 }
 0xb70   :  { %24850 = vst [vmem:[#allocation98_spill] sm:$0xff] %v23353_v3 }
 0xb73   :  { %19912 = vmatpush3.bf16.xpose.msra.mxu0 %v21425_v46  ;;  %19932 = vmatpush3.bf16.xpose.msra.mxu1 %v21426_v49  ;;  %v23356_v46 = vpop.xlane.xlu0 %14054  ;;  %v21429_v49 = vld [vmem:[#allocation7 + $0x16b8] sm:$0xff]   ;;  %v23358_v2 = vpop.xlane.xlu1 %14056 }
 0xb74   :  { %19913 = vmatprep.subr.bf16.mxu0 %v24827_v33  ;;  %19933 = vmatprep.subr.bf16.mxu1 %v24827_v33  ;;  %24851 = vst [vmem:[#allocation99_spill] sm:$0xff] %v23356_v46  ;;  %24852 = vst [vmem:[#allocation100_spill] sm:$0xff] %v23358_v2 }
 0xb7b   :  { %19914 = vmatpush3.bf16.xpose.msra.mxu0 %v21427_v1  ;;  %19934 = vmatpush3.bf16.xpose.msra.mxu1 %v21428_v50  ;;  %v23363_v50 = vpop.xlane.xlu0 %14058 }
 0xb7c   :  { %19939 = vmatprep.subr.bf16.mxu0 %v24827_v33  ;;  %19959 = vmatprep.subr.bf16.mxu1 %v24827_v33  ;;  %24853 = vst [vmem:[#allocation101_spill] sm:$0xff] %v23363_v50 }
 0xb7f   :  { %v23375_v50 = vpop.xlane.xlu0 %14062 }
 0xb80   :  { %24855 = vst [vmem:[#allocation103_spill] sm:$0xff] %v23375_v50  ;;  %v21434_v50 = vld [vmem:[#allocation7 + $0x16e8] sm:$0xff]  }
 0xb82   :  { %v9526_v31 = vpop.f32.mrf.mxu0  ;;  %19916 = vmatmul.mubr.bf16.vlgmr.msra.gmra.mxu0 %v23282_v61  ;;  %v9615_v10 = vpop.f32.mrf.mxu1  ;;  %19936 = vmatmul.mubr.bf16.vlgmr.msra.gmra.mxu1 %v23282_v61 }
 0xb83   :  { %v13706_v39 = vmul.f32 %v22014_v7, %v9526_v31  ;;  %19940 = vmatpush3.bf16.xpose.msra.mxu0 %v21429_v49  ;;  %19960 = vmatpush3.bf16.xpose.msra.mxu1 %v21430_v14  ;;  %v13708_v46 = vmul.f32 %v22014_v7, %v9615_v10  ;;  %v23372_v31 = vpop.xlane.xlu1 %14060 }
 0xb84   :  { %v19797_v1 = vpop.f32.mrf.mxu0  ;;  %19941 = vmatprep.subr.bf16.mxu0 %v24827_v33  ;;  %v19817_v3 = vpop.f32.mrf.mxu1  ;;  %19961 = vmatprep.subr.bf16.mxu1 %v24827_v33  ;;  %24854 = vst [vmem:[#allocation102_spill] sm:$0xff] %v23372_v31  ;;  %v21433_v31 = vld [vmem:[#allocation7 + $0x16a8] sm:$0xff]  }
 0xb85   :  { %14126 = vadd.xlane.f32.xlu0 %v13706_v39  ;;  %19955 = vmatprep.mubr.msk.bf16.mxu0 %vm21861_vm0, %v24827_v33  ;;  %v21431_v1 = vld [vmem:[#allocation7 + $0x16b0] sm:$0xff]  }
 0xb86   :  { %v9529_v2 = vpop.f32.mrf.mxu0  ;;  %19975 = vmatprep.mubr.msk.bf16.mxu1 %vm21861_vm0, %v24827_v33  ;;  %v9618_v49 = vpop.f32.mrf.mxu1  ;;  %v21432_v3 = vld [vmem:[#allocation7 + $0x16f0] sm:$0xff]  }
 0xb87   :  { %v13707_v14 = vmul.f32 %v22021_v12, %v9529_v2  ;;  %v23377_v53 = vpop.xlane.xlu1 %14064  ;;  %v13709_v4 = vmul.f32 %v22021_v12, %v9618_v49  ;;  %v23382_v2 = vpop.xlane.xlu0 %14066  ;;  %v21435_v49 = vld [vmem:[#allocation7 + $0x16a0] sm:$0xff]  }
 0xb88   :  { %v19798_v10 = vpop.f32.mrf.mxu0  ;;  %v19818_v39 = vpop.f32.mrf.mxu1  ;;  %24856 = vst [vmem:[#allocation104_spill] sm:$0xff] %v23377_v53  ;;  %24857 = vst [vmem:[#allocation105_spill] sm:$0xff] %v23382_v2 }
 0xb89   :  { %14128 = vadd.xlane.f32.xlu1 %v13707_v14  ;;  %14130 = vadd.xlane.f32.xlu0 %v13708_v46  ;;  %v21436_v14 = vld [vmem:[#allocation7 + $0x16e0] sm:$0xff]  }
 0xb8b   :  { %19942 = vmatpush3.bf16.xpose.msra.mxu0 %v21431_v1  ;;  %19962 = vmatpush3.bf16.xpose.msra.mxu1 %v21432_v3  ;;  %v23384_v10 = vpop.xlane.xlu1 %14068  ;;  %v23386_v39 = vpop.xlane.xlu0 %14070 }
 0xb8c   :  { %19943 = vmatprep.subr.bf16.mxu0 %v24827_v33  ;;  %19963 = vmatprep.subr.bf16.mxu1 %v24827_v33  ;;  %24858 = vst [vmem:[#allocation106_spill] sm:$0xff] %v23384_v10  ;;  %24859 = vst [vmem:[#allocation107_spill] sm:$0xff] %v23386_v39  ;;  %v21438_v39 = vld [vmem:[#allocation7 + $0x16d8] sm:$0xff]  }
 0xb8d   :  { %14132 = vadd.xlane.f32.xlu1 %v13709_v4 }
 0xb8f   :  { %v23389_v46 = vpop.xlane.xlu1 %14072  ;;  %v23392_v4 = vpop.xlane.xlu0 %14074 }
 0xb90   :  { %24860 = vst [vmem:[#allocation108_spill] sm:$0xff] %v23389_v46  ;;  %24861 = vst [vmem:[#allocation109_spill] sm:$0xff] %v23392_v4 }
 0xb93   :  { %19944 = vmatpush3.bf16.xpose.msra.mxu0 %v21433_v31  ;;  %19964 = vmatpush3.bf16.xpose.msra.mxu1 %v21434_v50  ;;  %v23394_v1 = vpop.xlane.xlu1 %14076  ;;  %v23396_v3 = vpop.xlane.xlu0 %14078  ;;  %v21437_v31 = vld [vmem:[#allocation7 + $0x1698] sm:$0xff]  }
 0xb94   :  { %19945 = vmatprep.subr.bf16.mxu0 %v24827_v33  ;;  %19965 = vmatprep.subr.bf16.mxu1 %v24827_v33  ;;  %24862 = vst [vmem:[#allocation110_spill] sm:$0xff] %v23394_v1  ;;  %24863 = vst [vmem:[#allocation111_spill] sm:$0xff] %v23396_v3  ;;  %v21440_v3 = vld [vmem:[#allocation7 + $0x16d0] sm:$0xff]  }
 0xb97   :  { %v23400_v50 = vpop.xlane.xlu1 %14080  ;;  %v23402_v2 = vpop.xlane.xlu0 %14082 }
 0xb98   :  { %24864 = vst [vmem:[#allocation112_spill] sm:$0xff] %v23400_v50  ;;  %24865 = vst [vmem:[#allocation113_spill] sm:$0xff] %v23402_v2  ;;  %v21442_v2 = vld [vmem:[#allocation7 + $0x16c8] sm:$0xff]  }
 0xb9b   :  { %19946 = vmatpush3.bf16.xpose.msra.mxu0 %v21435_v49  ;;  %19966 = vmatpush3.bf16.xpose.msra.mxu1 %v21436_v14  ;;  %v23405_v4 = vpop.xlane.xlu1 %14084  ;;  %v23408_v49 = vpop.xlane.xlu0 %14086  ;;  %v21439_v14 = vld [vmem:[#allocation7 + $0x1690] sm:$0xff]  }
 0xb9c   :  { %19947 = vmatprep.subr.bf16.mxu0 %v24827_v33  ;;  %19967 = vmatprep.subr.bf16.mxu1 %v24827_v33  ;;  %24866 = vst [vmem:[#allocation114_spill] sm:$0xff] %v23405_v4  ;;  %24867 = vst [vmem:[#allocation115_spill] sm:$0xff] %v23408_v49  ;;  %v21444_v49 = vld [vmem:[#allocation7 + $0x16c0] sm:$0xff]  }
 0xb9f   :  { %v23410_v1 = vpop.xlane.xlu1 %14088  ;;  %v23412_v50 = vpop.xlane.xlu0 %14090 }
 0xba0   :  { %24868 = vst [vmem:[#allocation116_spill] sm:$0xff] %v23410_v1  ;;  %24869 = vst [vmem:[#allocation117_spill] sm:$0xff] %v23412_v50 }
 0xba3   :  { %19948 = vmatpush3.bf16.xpose.msra.mxu0 %v21437_v31  ;;  %19968 = vmatpush3.bf16.xpose.msra.mxu1 %v21438_v39  ;;  %v23416_v39 = vpop.xlane.xlu1 %14092  ;;  %v21441_v31 = vld [vmem:[#allocation7 + $0x1688] sm:$0xff]   ;;  %v23418_v4 = vpop.xlane.xlu0 %14094 }
 0xba4   :  { %19949 = vmatprep.subr.bf16.mxu0 %v24827_v33  ;;  %19969 = vmatprep.subr.bf16.mxu1 %v24827_v33  ;;  %24870 = vst [vmem:[#allocation118_spill] sm:$0xff] %v23416_v39  ;;  %24871 = vst [vmem:[#allocation119_spill] sm:$0xff] %v23418_v4 }
 0xba7   :  { %v23420_v46 = vpop.xlane.xlu1 %14096 }
 0xba8   :  { %24872 = vst [vmem:[#allocation120_spill] sm:$0xff] %v23420_v46  ;;  %v21446_v46 = vld [vmem:[#allocation7 + $0x1778] sm:$0xff]  }
 0xbab   :  { %19950 = vmatpush3.bf16.xpose.msra.mxu0 %v21439_v14  ;;  %19970 = vmatpush3.bf16.xpose.msra.mxu1 %v21440_v3  ;;  %v23424_v14 = vpop.xlane.xlu0 %14098  ;;  %v21443_v3 = vld [vmem:[#allocation7 + $0x1680] sm:$0xff]   ;;  %v23426_v50 = vpop.xlane.xlu1 %14100 }
 0xbac   :  { %19951 = vmatprep.subr.bf16.mxu0 %v24827_v33  ;;  %19971 = vmatprep.subr.bf16.mxu1 %v24827_v33  ;;  %24873 = vst [vmem:[#allocation121_spill] sm:$0xff] %v23424_v14  ;;  %24874 = vst [vmem:[#allocation122_spill] sm:$0xff] %v23426_v50 }
 0xbaf   :  { %v23428_v1 = vpop.xlane.xlu0 %14102  ;;  %v23431_v4 = vpop.xlane.xlu1 %14104 }
 0xbb0   :  { %24875 = vst [vmem:[#allocation123_spill] sm:$0xff] %v23428_v1  ;;  %24876 = vst [vmem:[#allocation124_spill] sm:$0xff] %v23431_v4 }
 0xbb3   :  { %19952 = vmatpush3.bf16.xpose.msra.mxu0 %v21441_v31  ;;  %19972 = vmatpush3.bf16.xpose.msra.mxu1 %v21442_v2  ;;  %v21445_v2 = vld [vmem:[#allocation7 + $0x1738] sm:$0xff]   ;;  %v23434_v31 = vpop.xlane.xlu0 %14106  ;;  %v23437_v14 = vpop.xlane.xlu1 %14108 }
 0xbb4   :  { %19953 = vmatprep.subr.bf16.mxu0 %v24827_v33  ;;  %19973 = vmatprep.subr.bf16.mxu1 %v24827_v33  ;;  %24877 = vst [vmem:[#allocation125_spill] sm:$0xff] %v23434_v31  ;;  %24878 = vst [vmem:[#allocation126_spill] sm:$0xff] %v23437_v14  ;;  %v21448_v14 = vld [vmem:[#allocation7 + $0x1770] sm:$0xff]  }
 0xbbb   :  { %19954 = vmatpush3.bf16.xpose.msra.mxu0 %v21443_v3  ;;  %19974 = vmatpush3.bf16.xpose.msra.mxu1 %v21444_v49  ;;  %v23441_v49 = vpop.xlane.xlu0 %14110 }
 0xbbc   :  { %19979 = vmatprep.subr.bf16.mxu0 %v24827_v33  ;;  %19999 = vmatprep.subr.bf16.mxu1 %v24827_v33  ;;  %24879 = vst [vmem:[#allocation127_spill] sm:$0xff] %v23441_v49 }
 0xbc2   :  { %v9704_v39 = vpop.f32.mrf.mxu0  ;;  %19956 = vmatmul.mubr.bf16.vlgmr.msra.gmra.mxu0 %v23282_v61  ;;  %v9793_v1 = vpop.f32.mrf.mxu1  ;;  %19976 = vmatmul.mubr.bf16.vlgmr.msra.gmra.mxu1 %v23282_v61 }
 0xbc3   :  { %v13710_v50 = vmul.f32 %v22014_v7, %v9704_v39  ;;  %19980 = vmatpush3.bf16.xpose.msra.mxu0 %v21445_v2  ;;  %20000 = vmatpush3.bf16.xpose.msra.mxu1 %v21446_v46  ;;  %v13712_v31 = vmul.f32 %v22014_v7, %v9793_v1  ;;  %v21447_v46 = vld [vmem:[#allocation7 + $0x1730] sm:$0xff]   ;;  %v14566_v1 = vlaneseq }
 0xbc4   :  { %v19837_v3 = vpop.f32.mrf.mxu0  ;;  %19981 = vmatprep.subr.bf16.mxu0 %v24827_v33  ;;  %v19857_v4 = vpop.f32.mrf.mxu1  ;;  %20001 = vmatprep.subr.bf16.mxu1 %v24827_v33 }
 0xbc5   :  { %14134 = vadd.xlane.f32.xlu0 %v13710_v50  ;;  %19995 = vmatprep.mubr.msk.bf16.mxu0 %vm21861_vm0, %v24827_v33  ;;  %v23451_v3 = vpop.xlane.xlu1 %14112  ;;  %v23453_v50 = vpop.xlane.xlu0 %14114  ;;  %v14567_v44 = vand.u32 127, %v14566_v1 }
 0xbc6   :  { %v9707_v10 = vpop.f32.mrf.mxu0  ;;  %20015 = vmatprep.mubr.msk.bf16.mxu1 %vm21861_vm0, %v24827_v33  ;;  %v9796_v39 = vpop.f32.mrf.mxu1  ;;  %24880 = vst [vmem:[#allocation128_spill] sm:$0xff] %v23451_v3  ;;  %24881 = vst [vmem:[#allocation129_spill] sm:$0xff] %v23453_v50  ;;  %v21449_v3 = vld [vmem:[#allocation7 + $0x1728] sm:$0xff]  }
 0xbc7   :  { %v13711_v2 = vmul.f32 %v22021_v12, %v9707_v10  ;;  %v13713_v53 = vmul.f32 %v22021_v12, %v9796_v39 }
 0xbc8   :  { %v19838_v49 = vpop.f32.mrf.mxu0  ;;  %v19858_v4 = vpop.f32.mrf.mxu1 }
 0xbc9   :  { %14136 = vadd.xlane.f32.xlu1 %v13711_v2  ;;  %14138 = vadd.xlane.f32.xlu0 %v13712_v31  ;;  %v23458_v10 = vpop.xlane.xlu1 %14116  ;;  %v21450_v4 = vld [vmem:[#allocation7 + $0x1768] sm:$0xff]   ;;  %v14569_v2 = vshrl.u32 %v14566_v1, 7  ;;  %v14572_v31 = vadd.s32 4294967288, %v14567_v44  ;;  %v21451_v1 = vld [vmem:[#allocation7 + $0x1720] sm:$0xff]  }
 0xbca   :  { %24882 = vst [vmem:[#allocation130_spill] sm:$0xff] %v23458_v10 }
 0xbcb   :  { %19982 = vmatpush3.bf16.xpose.msra.mxu0 %v21447_v46  ;;  %20002 = vmatpush3.bf16.xpose.msra.mxu1 %v21448_v14  ;;  %v23465_v14 = vsub.s32 %v14567_v44, %v14569_v2  ;;  %v21453_v44 = vld [vmem:[#allocation7 + $0x1718] sm:$0xff]  }
 0xbcc   :  { %19983 = vmatprep.subr.bf16.mxu0 %v24827_v33  ;;  %20003 = vmatprep.subr.bf16.mxu1 %v24827_v33 }
 0xbcd   :  { %14140 = vadd.xlane.f32.xlu1 %v13713_v53  ;;  %v23467_v53 = vsub.s32 %v14572_v31, %v14569_v2  ;;  %v21455_v2 = vld [vmem:[#allocation7 + $0x1710] sm:$0xff]  }
 0xbce   :  { %v23460_v49 = vpop.xlane.xlu0 %14118  ;;  %v21456_v31 = vld [vmem:[#allocation7 + $0x1750] sm:$0xff]  }
 0xbd2   :  { %v23462_v51 = vpop.xlane.xlu1 %14120  ;;  %v14123_v39 = vpop.xlane.xlu0 %14122 }
 0xbd3   :  { %19984 = vmatpush3.bf16.xpose.msra.mxu0 %v21449_v3  ;;  %20004 = vmatpush3.bf16.xpose.msra.mxu1 %v21450_v4  ;;  %v15302_v50 = vrot.slane %v14123_v39, %v23465_v14  ;;  %v21454_v4 = vld [vmem:[#allocation7 + $0x1758] sm:$0xff]   ;;  %v21460_v39 = vld [vmem:[#allocation7 + $0x1740] sm:$0xff]  }
 0xbd4   :  { %19985 = vmatprep.subr.bf16.mxu0 %v24827_v33  ;;  %20005 = vmatprep.subr.bf16.mxu1 %v24827_v33 }
 0xbd6   :  { %v14125_v46 = vpop.xlane.xlu1 %14124 }
 0xbd7   :  { %v15306_v10 = vrot.slane %v14125_v46, %v23467_v53  ;;  %v21461_v46 = vld [vmem:[#allocation7 + $0x17b8] sm:$0xff]  }
 0xbd9   :  { %v23473_v3 = vsel %vm14577_vm1, %v15306_v10, %v15302_v50  ;;  %v21458_v50 = vld [vmem:[#allocation7 + $0x1748] sm:$0xff]   ;;  %v21459_v10 = vld [vmem:[#allocation7 + $0x1700] sm:$0xff]  }
 0xbdb   :  { %19986 = vmatpush3.bf16.xpose.msra.mxu0 %v21451_v1  ;;  %20006 = vmatpush3.bf16.xpose.msra.mxu1 %v21452_v45  ;;  %v21457_v45 = vld [vmem:[#allocation7 + $0x1708] sm:$0xff]   ;;  %v21462_v1 = vld [vmem:[#allocation7 + $0x17f8] sm:$0xff]  }
 0xbdc   :  { %19987 = vmatprep.subr.bf16.mxu0 %v24827_v33  ;;  %20007 = vmatprep.subr.bf16.mxu1 %v24827_v33 }
 0xbe3   :  { %19988 = vmatpush3.bf16.xpose.msra.mxu0 %v21453_v44  ;;  %20008 = vmatpush3.bf16.xpose.msra.mxu1 %v21454_v4 }
 0xbe4   :  { %19989 = vmatprep.subr.bf16.mxu0 %v24827_v33  ;;  %20009 = vmatprep.subr.bf16.mxu1 %v24827_v33 }
 0xbeb   :  { %19990 = vmatpush3.bf16.xpose.msra.mxu0 %v21455_v2  ;;  %20010 = vmatpush3.bf16.xpose.msra.mxu1 %v21456_v31 }
 0xbec   :  { %19991 = vmatprep.subr.bf16.mxu0 %v24827_v33  ;;  %20011 = vmatprep.subr.bf16.mxu1 %v24827_v33 }
 0xbf3   :  { %19992 = vmatpush3.bf16.xpose.msra.mxu0 %v21457_v45  ;;  %20012 = vmatpush3.bf16.xpose.msra.mxu1 %v21458_v50 }
 0xbf4   :  { %19993 = vmatprep.subr.bf16.mxu0 %v24827_v33  ;;  %20013 = vmatprep.subr.bf16.mxu1 %v24827_v33 }
 0xbfb   :  { %19994 = vmatpush3.bf16.xpose.msra.mxu0 %v21459_v10  ;;  %20014 = vmatpush3.bf16.xpose.msra.mxu1 %v21460_v39 }
 0xbfc   :  { %20019 = vmatprep.subr.bf16.mxu0 %v24827_v33  ;;  %20039 = vmatprep.subr.bf16.mxu1 %v24827_v33 }
 0xc02   :  { %v9882_v44 = vpop.f32.mrf.mxu0  ;;  %19996 = vmatmul.mubr.bf16.vlgmr.msra.gmra.mxu0 %v23282_v61  ;;  %v9971_v2 = vpop.f32.mrf.mxu1  ;;  %20016 = vmatmul.mubr.bf16.vlgmr.msra.gmra.mxu1 %v23282_v61 }
 0xc03   :  { %v13714_v4 = vmul.f32 %v22014_v7, %v9882_v44  ;;  %20020 = vmatpush3.bf16.xpose.msra.mxu0 %v21461_v46  ;;  %20040 = vmatpush3.bf16.xpose.msra.mxu1 %v21462_v1  ;;  %v13716_v45 = vmul.f32 %v22014_v7, %v9971_v2  ;;  %v21463_v1 = vld [vmem:[#allocation7 + $0x17b0] sm:$0xff]  }
 0xc04   :  { %v19877_v31 = vpop.f32.mrf.mxu0  ;;  %20021 = vmatprep.subr.bf16.mxu0 %v24827_v33  ;;  %v19897_v50 = vpop.f32.mrf.mxu1  ;;  %20041 = vmatprep.subr.bf16.mxu1 %v24827_v33 }
 0xc05   :  { %14142 = vadd.xlane.f32.xlu0 %v13714_v4  ;;  %20035 = vmatprep.mubr.msk.bf16.mxu0 %vm21861_vm0, %v24827_v33  ;;  %v21464_v31 = vld [vmem:[#allocation7 + $0x17f0] sm:$0xff]   ;;  %v21465_v50 = vld [vmem:[#allocation7 + $0x17a8] sm:$0xff]  }
 0xc06   :  { %v9885_v10 = vpop.f32.mrf.mxu0  ;;  %20055 = vmatprep.mubr.msk.bf16.mxu1 %vm21861_vm0, %v24827_v33  ;;  %v9974_v39 = vpop.f32.mrf.mxu1 }
 0xc07   :  { %v13715_v46 = vmul.f32 %v22021_v12, %v9885_v10  ;;  %v13717_v4 = vmul.f32 %v22021_v12, %v9974_v39  ;;  %v15297_v10 = vrot.slane %v23462_v51, %v23467_v53 }
 0xc08   :  { %v19878_v44 = vpop.f32.mrf.mxu0  ;;  %v19898_v59 = vpop.f32.mrf.mxu1 }
 0xc09   :  { %14144 = vadd.xlane.f32.xlu1 %v13715_v46  ;;  %14146 = vadd.xlane.f32.xlu0 %v13716_v45  ;;  %v15293_v59 = vrot.slane %v23460_v49, %v23465_v14 }
 0xc0b   :  { %20022 = vmatpush3.bf16.xpose.msra.mxu0 %v21463_v1  ;;  %20042 = vmatpush3.bf16.xpose.msra.mxu1 %v21464_v31  ;;  %v15298_v1 = vsel %vm14577_vm1, %v15297_v10, %v15293_v59  ;;  %v21467_v10 = vld [vmem:[#allocation7 + $0x17a0] sm:$0xff]  }
 0xc0c   :  { %20023 = vmatprep.subr.bf16.mxu0 %v24827_v33  ;;  %20043 = vmatprep.subr.bf16.mxu1 %v24827_v33  ;;  %v15799_v51 = vsel %vm15722_vm2, %v23473_v3, %v15298_v1  ;;  %v21469_v3 = vld [vmem:[#allocation7 + $0x1798] sm:$0xff]   ;;  %v21472_v1 = vld [vmem:[#allocation7 + $0x17d0] sm:$0xff]  }
 0xc0d   :  { %14148 = vadd.xlane.f32.xlu1 %v13717_v4 }
 0xc0e   :  { %v14127_v2 = vpop.xlane.xlu0 %14126 }
 0xc0f   :  { %v15311_v45 = vrot.slane %v14127_v2, %v23465_v14 }
 0xc12   :  { %v14129_v46 = vpop.xlane.xlu1 %14128  ;;  %v14131_v44 = vpop.xlane.xlu0 %14130 }
 0xc13   :  { %v15315_v39 = vrot.slane %v14129_v46, %v23467_v53  ;;  %20024 = vmatpush3.bf16.xpose.msra.mxu0 %v21465_v50  ;;  %20044 = vmatpush3.bf16.xpose.msra.mxu1 %v21466_v43  ;;  %v15320_v2 = vrot.slane %v14131_v44, %v23465_v14  ;;  %v21468_v43 = vld [vmem:[#allocation7 + $0x17e0] sm:$0xff]   ;;  %v21473_v44 = vld [vmem:[#allocation7 + $0x1788] sm:$0xff]  }
 0xc14   :  { %20025 = vmatprep.subr.bf16.mxu0 %v24827_v33  ;;  %20045 = vmatprep.subr.bf16.mxu1 %v24827_v33 }
 0xc15   :  { %v15316_v31 = vsel %vm14577_vm1, %v15315_v39, %v15311_v45  ;;  %v21470_v45 = vld [vmem:[#allocation7 + $0x17d8] sm:$0xff]   ;;  %v21471_v39 = vld [vmem:[#allocation7 + $0x1790] sm:$0xff]  }
 0xc16   :  { %v15800_v49 = vsel %vm15724_vm3, %v15316_v31, %v15799_v51  ;;  %v14133_v4 = vpop.xlane.xlu1 %14132  ;;  %v21474_v51 = vld [vmem:[#allocation7 + $0x17c8] sm:$0xff]   ;;  %v21475_v31 = vld [vmem:[#allocation7 + $0x1780] sm:$0xff]  }
 0xc17   :  { %v15324_v50 = vrot.slane %v14133_v4, %v23467_v53  ;;  %v21477_v4 = vld [vmem:[#allocation7 + $0x1838] sm:$0xff]  }
 0xc19   :  { %v15325_v59 = vsel %vm14577_vm1, %v15324_v50, %v15320_v2  ;;  %v21478_v2 = vld [vmem:[#allocation7 + $0x1878] sm:$0xff]  }
 0xc1a   :  { %v23516_v46 = vsel %vm15726_vm4, %v15325_v59, %v15800_v49  ;;  %v21476_v49 = vld [vmem:[#allocation7 + $0x17c0] sm:$0xff]  }
 0xc1b   :  { %20026 = vmatpush3.bf16.xpose.msra.mxu0 %v21467_v10  ;;  %20046 = vmatpush3.bf16.xpose.msra.mxu1 %v21468_v43 }
 0xc1c   :  { %20027 = vmatprep.subr.bf16.mxu0 %v24827_v33  ;;  %20047 = vmatprep.subr.bf16.mxu1 %v24827_v33 }
 0xc23   :  { %20028 = vmatpush3.bf16.xpose.msra.mxu0 %v21469_v3  ;;  %20048 = vmatpush3.bf16.xpose.msra.mxu1 %v21470_v45 }
 0xc24   :  { %20029 = vmatprep.subr.bf16.mxu0 %v24827_v33  ;;  %20049 = vmatprep.subr.bf16.mxu1 %v24827_v33 }
 0xc2b   :  { %20030 = vmatpush3.bf16.xpose.msra.mxu0 %v21471_v39  ;;  %20050 = vmatpush3.bf16.xpose.msra.mxu1 %v21472_v1 }
 0xc2c   :  { %20031 = vmatprep.subr.bf16.mxu0 %v24827_v33  ;;  %20051 = vmatprep.subr.bf16.mxu1 %v24827_v33 }
 0xc33   :  { %20032 = vmatpush3.bf16.xpose.msra.mxu0 %v21473_v44  ;;  %20052 = vmatpush3.bf16.xpose.msra.mxu1 %v21474_v51  ;;  %v21479_v51 = vld [vmem:[#allocation7 + $0x1830] sm:$0xff]  }
 0xc34   :  { %20033 = vmatprep.subr.bf16.mxu0 %v24827_v33  ;;  %20053 = vmatprep.subr.bf16.mxu1 %v24827_v33 }
 0xc3b   :  { %20034 = vmatpush3.bf16.xpose.msra.mxu0 %v21475_v31  ;;  %20054 = vmatpush3.bf16.xpose.msra.mxu1 %v21476_v49  ;;  %v21480_v49 = vld [vmem:[#allocation7 + $0x1870] sm:$0xff]  }
 0xc3c   :  { %20059 = vmatprep.subr.bf16.mxu0 %v24827_v33  ;;  %20079 = vmatprep.subr.bf16.mxu1 %v24827_v33 }
 0xc42   :  { %v10060_v50 = vpop.f32.mrf.mxu0  ;;  %20036 = vmatmul.mubr.bf16.vlgmr.msra.gmra.mxu0 %v23282_v61  ;;  %v10149_v43 = vpop.f32.mrf.mxu1  ;;  %20056 = vmatmul.mubr.bf16.vlgmr.msra.gmra.mxu1 %v23282_v61 }
 0xc43   :  { %v13718_v10 = vmul.f32 %v22014_v7, %v10060_v50  ;;  %20060 = vmatpush3.bf16.xpose.msra.mxu0 %v21477_v4  ;;  %20080 = vmatpush3.bf16.xpose.msra.mxu1 %v21478_v2  ;;  %v13720_v3 = vmul.f32 %v22014_v7, %v10149_v43  ;;  %v21482_v43 = vld [vmem:[#allocation7 + $0x1868] sm:$0xff]  }
 0xc44   :  { %v19917_v59 = vpop.f32.mrf.mxu0  ;;  %20061 = vmatprep.subr.bf16.mxu0 %v24827_v33  ;;  %v19937_v45 = vpop.f32.mrf.mxu1  ;;  %20081 = vmatprep.subr.bf16.mxu1 %v24827_v33 }
 0xc45   :  { %14150 = vadd.xlane.f32.xlu0 %v13718_v10  ;;  %20075 = vmatprep.mubr.msk.bf16.mxu0 %vm21861_vm0, %v24827_v33  ;;  %v21481_v10 = vld [vmem:[#allocation7 + $0x1828] sm:$0xff]  }
 0xc46   :  { %v10063_v39 = vpop.f32.mrf.mxu0  ;;  %20095 = vmatprep.mubr.msk.bf16.mxu1 %vm21861_vm0, %v24827_v33  ;;  %v10152_v1 = vpop.f32.mrf.mxu1 }
 0xc47   :  { %v13719_v44 = vmul.f32 %v22021_v12, %v10063_v39  ;;  %v13721_v2 = vmul.f32 %v22021_v12, %v10152_v1 }
 0xc48   :  { %v19918_v31 = vpop.f32.mrf.mxu0  ;;  %v19938_v4 = vpop.f32.mrf.mxu1 }
 0xc49   :  { %14152 = vadd.xlane.f32.xlu1 %v13719_v44  ;;  %14154 = vadd.xlane.f32.xlu0 %v13720_v3  ;;  %v21483_v4 = vld [vmem:[#allocation7 + $0x1820] sm:$0xff]  }
 0xc4b   :  { %20062 = vmatpush3.bf16.xpose.msra.mxu0 %v21479_v51  ;;  %20082 = vmatpush3.bf16.xpose.msra.mxu1 %v21480_v49 }
 0xc4c   :  { %20063 = vmatprep.subr.bf16.mxu0 %v24827_v33  ;;  %20083 = vmatprep.subr.bf16.mxu1 %v24827_v33 }
 0xc4d   :  { %14156 = vadd.xlane.f32.xlu1 %v13721_v2  ;;  %v21484_v2 = vld [vmem:[#allocation7 + $0x1860] sm:$0xff]  }
 0xc4e   :  { %v14135_v50 = vpop.xlane.xlu0 %14134 }
 0xc4f   :  { %v15329_v45 = vrot.slane %v14135_v50, %v23465_v14 }
 0xc52   :  { %v14137_v59 = vpop.xlane.xlu1 %14136  ;;  %v14139_v3 = vpop.xlane.xlu0 %14138 }
 0xc53   :  { %v15333_v39 = vrot.slane %v14137_v59, %v23467_v53  ;;  %20064 = vmatpush3.bf16.xpose.msra.mxu0 %v21481_v10  ;;  %20084 = vmatpush3.bf16.xpose.msra.mxu1 %v21482_v43  ;;  %v15338_v31 = vrot.slane %v14139_v3, %v23465_v14  ;;  %v21486_v43 = vld [vmem:[#allocation7 + $0x1858] sm:$0xff]   ;;  %v21487_v59 = vld [vmem:[#allocation7 + $0x1810] sm:$0xff]   ;;  %v21490_v3 = vld [vmem:[#allocation7 + $0x1848] sm:$0xff]  }
 0xc54   :  { %20065 = vmatprep.subr.bf16.mxu0 %v24827_v33  ;;  %20085 = vmatprep.subr.bf16.mxu1 %v24827_v33 }
 0xc55   :  { %v15334_v1 = vsel %vm14577_vm1, %v15333_v39, %v15329_v45  ;;  %v21488_v45 = vld [vmem:[#allocation7 + $0x1850] sm:$0xff]   ;;  %v21489_v39 = vld [vmem:[#allocation7 + $0x1808] sm:$0xff]  }
 0xc56   :  { %v15802_v44 = vsel %vm15728_vm5, %v15334_v1, %v23516_v46  ;;  %v14141_v51 = vpop.xlane.xlu1 %14140  ;;  %v21485_v46 = vld [vmem:[#allocation7 + $0x1818] sm:$0xff]   ;;  %v21491_v1 = vld [vmem:[#allocation7 + $0x1800] sm:$0xff]  }
 0xc57   :  { %v15342_v49 = vrot.slane %v14141_v51, %v23467_v53  ;;  %v21493_v51 = vld [vmem:[#allocation7 + $0x18b8] sm:$0xff]  }
 0xc59   :  { %v15343_v50 = vsel %vm14577_vm1, %v15342_v49, %v15338_v31  ;;  %v21494_v31 = vld [vmem:[#allocation7 + $0x18f8] sm:$0xff]  }
 0xc5a   :  { %v23553_v10 = vsel %vm15730_vm6, %v15343_v50, %v15802_v44  ;;  %v21492_v44 = vld [vmem:[#allocation7 + $0x1840] sm:$0xff]  }
 0xc5b   :  { %20066 = vmatpush3.bf16.xpose.msra.mxu0 %v21483_v4  ;;  %20086 = vmatpush3.bf16.xpose.msra.mxu1 %v21484_v2 }
 0xc5c   :  { %20067 = vmatprep.subr.bf16.mxu0 %v24827_v33  ;;  %20087 = vmatprep.subr.bf16.mxu1 %v24827_v33 }
 0xc63   :  { %20068 = vmatpush3.bf16.xpose.msra.mxu0 %v21485_v46  ;;  %20088 = vmatpush3.bf16.xpose.msra.mxu1 %v21486_v43 }
 0xc64   :  { %20069 = vmatprep.subr.bf16.mxu0 %v24827_v33  ;;  %20089 = vmatprep.subr.bf16.mxu1 %v24827_v33 }
 0xc6b   :  { %20070 = vmatpush3.bf16.xpose.msra.mxu0 %v21487_v59  ;;  %20090 = vmatpush3.bf16.xpose.msra.mxu1 %v21488_v45 }
 0xc6c   :  { %20071 = vmatprep.subr.bf16.mxu0 %v24827_v33  ;;  %20091 = vmatprep.subr.bf16.mxu1 %v24827_v33 }
 0xc73   :  { %20072 = vmatpush3.bf16.xpose.msra.mxu0 %v21489_v39  ;;  %20092 = vmatpush3.bf16.xpose.msra.mxu1 %v21490_v3  ;;  %v21495_v39 = vld [vmem:[#allocation7 + $0x18b0] sm:$0xff]  }
 0xc74   :  { %20073 = vmatprep.subr.bf16.mxu0 %v24827_v33  ;;  %20093 = vmatprep.subr.bf16.mxu1 %v24827_v33 }
 0xc7b   :  { %20074 = vmatpush3.bf16.xpose.msra.mxu0 %v21491_v1  ;;  %20094 = vmatpush3.bf16.xpose.msra.mxu1 %v21492_v44  ;;  %v21496_v1 = vld [vmem:[#allocation7 + $0x18f0] sm:$0xff]  }
 0xc7c   :  { %20099 = vmatprep.subr.bf16.mxu0 %v24827_v33  ;;  %20119 = vmatprep.subr.bf16.mxu1 %v24827_v33 }
 0xc82   :  { %v10238_v49 = vpop.f32.mrf.mxu0  ;;  %20076 = vmatmul.mubr.bf16.vlgmr.msra.gmra.mxu0 %v23282_v61  ;;  %v10327_v2 = vpop.f32.mrf.mxu1  ;;  %20096 = vmatmul.mubr.bf16.vlgmr.msra.gmra.mxu1 %v23282_v61 }
 0xc83   :  { %v13722_v4 = vmul.f32 %v22014_v7, %v10238_v49  ;;  %20100 = vmatpush3.bf16.xpose.msra.mxu0 %v21493_v51  ;;  %20120 = vmatpush3.bf16.xpose.msra.mxu1 %v21494_v31  ;;  %v13724_v46 = vmul.f32 %v22014_v7, %v10327_v2  ;;  %v21497_v49 = vld [vmem:[#allocation7 + $0x18a8] sm:$0xff]  }
 0xc84   :  { %v19957_v50 = vpop.f32.mrf.mxu0  ;;  %20101 = vmatprep.subr.bf16.mxu0 %v24827_v33  ;;  %v19977_v43 = vpop.f32.mrf.mxu1  ;;  %20121 = vmatprep.subr.bf16.mxu1 %v24827_v33 }
 0xc85   :  { %14158 = vadd.xlane.f32.xlu0 %v13722_v4  ;;  %20115 = vmatprep.mubr.msk.bf16.mxu0 %vm21861_vm0, %v24827_v33  ;;  %v21498_v4 = vld [vmem:[#allocation7 + $0x18e8] sm:$0xff]  }
 0xc86   :  { %v10241_v59 = vpop.f32.mrf.mxu0  ;;  %20135 = vmatprep.mubr.msk.bf16.mxu1 %vm21861_vm0, %v24827_v33  ;;  %v10330_v45 = vpop.f32.mrf.mxu1 }
 0xc87   :  { %v13723_v61 = vmul.f32 %v22021_v12, %v10241_v59  ;;  %v13725_v51 = vmul.f32 %v22021_v12, %v10330_v45 }
 0xc88   :  { %v19958_v3 = vpop.f32.mrf.mxu0  ;;  %v19978_v44 = vpop.f32.mrf.mxu1 }
 0xc89   :  { %14160 = vadd.xlane.f32.xlu1 %v13723_v61  ;;  %14162 = vadd.xlane.f32.xlu0 %v13724_v46  ;;  %v21500_v44 = vld [vmem:[#allocation7 + $0x18e0] sm:$0xff]  }
 0xc8b   :  { %20102 = vmatpush3.bf16.xpose.msra.mxu0 %v21495_v39  ;;  %20122 = vmatpush3.bf16.xpose.msra.mxu1 %v21496_v1  ;;  %v21499_v1 = vld [vmem:[#allocation7 + $0x18a0] sm:$0xff]  }
 0xc8c   :  { %20103 = vmatprep.subr.bf16.mxu0 %v24827_v33  ;;  %20123 = vmatprep.subr.bf16.mxu1 %v24827_v33 }
 0xc8d   :  { %14164 = vadd.xlane.f32.xlu1 %v13725_v51 }
 0xc8e   :  { %v14143_v31 = vpop.xlane.xlu0 %14142 }
 0xc8f   :  { %v15347_v50 = vrot.slane %v14143_v31, %v23465_v14 }
 0xc92   :  { %v14145_v2 = vpop.xlane.xlu1 %14144  ;;  %v14147_v46 = vpop.xlane.xlu0 %14146 }
 0xc93   :  { %v15351_v43 = vrot.slane %v14145_v2, %v23467_v53  ;;  %20104 = vmatpush3.bf16.xpose.msra.mxu0 %v21497_v49  ;;  %20124 = vmatpush3.bf16.xpose.msra.mxu1 %v21498_v4  ;;  %v15356_v39 = vrot.slane %v14147_v46, %v23465_v14  ;;  %v21501_v49 = vld [vmem:[#allocation7 + $0x1898] sm:$0xff]   ;;  %v21503_v4 = vld [vmem:[#allocation7 + $0x1890] sm:$0xff]   ;;  %v21507_v46 = vld [vmem:[#allocation7 + $0x1880] sm:$0xff]  }
 0xc94   :  { %20105 = vmatprep.subr.bf16.mxu0 %v24827_v33  ;;  %20125 = vmatprep.subr.bf16.mxu1 %v24827_v33  ;;  %v21504_v2 = vld [vmem:[#allocation7 + $0x18d0] sm:$0xff]  }
 0xc95   :  { %v15352_v59 = vsel %vm14577_vm1, %v15351_v43, %v15347_v50  ;;  %v21505_v50 = vld [vmem:[#allocation7 + $0x1888] sm:$0xff]  }
 0xc96   :  { %v14149_v45 = vpop.xlane.xlu1 %14148  ;;  %v15804_v61 = vsel %vm15732_vm7, %v15352_v59, %v23553_v10  ;;  %v21502_v10 = vld [vmem:[#allocation7 + $0x18d8] sm:$0xff]   ;;  %v21506_v43 = vld [vmem:[#allocation7 + $0x18c8] sm:$0xff]   ;;  %v21508_v59 = vld [vmem:[#allocation7 + $0x18c0] sm:$0xff]  }
 0xc97   :  { %v15360_v3 = vrot.slane %v14149_v45, %v23467_v53  ;;  %v21509_v45 = vld [vmem:[#allocation7 + $0x1938] sm:$0xff]  }
 0xc99   :  { %v15361_v51 = vsel %vm14577_vm1, %v15360_v3, %v15356_v39  ;;  %v23602_v3 = vld [vmem:[#allocation5] sm:$0xff]  }
 0xc9a   :  { %v23590_v31 = vsel %vm15734_vm8, %v15361_v51, %v15804_v61  ;;  %v21510_v61 = vld [vmem:[#allocation7 + $0x1978] sm:$0xff]  }
 0xc9b   :  { %20106 = vmatpush3.bf16.xpose.msra.mxu0 %v21499_v1  ;;  %20126 = vmatpush3.bf16.xpose.msra.mxu1 %v21500_v44 }
 0xc9c   :  { %20107 = vmatprep.subr.bf16.mxu0 %v24827_v33  ;;  %20127 = vmatprep.subr.bf16.mxu1 %v24827_v33 }
 0xca3   :  { %20108 = vmatpush3.bf16.xpose.msra.mxu0 %v21501_v49  ;;  %20128 = vmatpush3.bf16.xpose.msra.mxu1 %v21502_v10 }
 0xca4   :  { %20109 = vmatprep.subr.bf16.mxu0 %v24827_v33  ;;  %20129 = vmatprep.subr.bf16.mxu1 %v24827_v33 }
 0xcab   :  { %20110 = vmatpush3.bf16.xpose.msra.mxu0 %v21503_v4  ;;  %20130 = vmatpush3.bf16.xpose.msra.mxu1 %v21504_v2 }
 0xcac   :  { %20111 = vmatprep.subr.bf16.mxu0 %v24827_v33  ;;  %20131 = vmatprep.subr.bf16.mxu1 %v24827_v33 }
 0xcb3   :  { %20112 = vmatpush3.bf16.xpose.msra.mxu0 %v21505_v50  ;;  %20132 = vmatpush3.bf16.xpose.msra.mxu1 %v21506_v43  ;;  %v21511_v43 = vld [vmem:[#allocation7 + $0x1930] sm:$0xff]  }
 0xcb4   :  { %20113 = vmatprep.subr.bf16.mxu0 %v24827_v33  ;;  %20133 = vmatprep.subr.bf16.mxu1 %v24827_v33 }
 0xcbb   :  { %20114 = vmatpush3.bf16.xpose.msra.mxu0 %v21507_v46  ;;  %20134 = vmatpush3.bf16.xpose.msra.mxu1 %v21508_v59  ;;  %v21512_v59 = vld [vmem:[#allocation7 + $0x1970] sm:$0xff]  }
 0xcbc   :  { %20139 = vmatprep.subr.bf16.mxu0 %v24827_v33  ;;  %20159 = vmatprep.subr.bf16.mxu1 %v24827_v33 }
 0xcc2   :  { %v10416_v39 = vpop.f32.mrf.mxu0  ;;  %20116 = vmatmul.mubr.bf16.vlgmr.msra.gmra.mxu0 %v23602_v3  ;;  %v10505_v44 = vpop.f32.mrf.mxu1  ;;  %20136 = vmatmul.mubr.bf16.vlgmr.msra.gmra.mxu1 %v23602_v3 }
 0xcc3   :  { %v13726_v1 = vmul.f32 %v22014_v7, %v10416_v39  ;;  %20140 = vmatpush3.bf16.xpose.msra.mxu0 %v21509_v45  ;;  %20160 = vmatpush3.bf16.xpose.msra.mxu1 %v21510_v61  ;;  %v13728_v49 = vmul.f32 %v22014_v7, %v10505_v44  ;;  %v21514_v44 = vld [vmem:[#allocation7 + $0x1968] sm:$0xff]  }
 0xcc4   :  { %v19997_v51 = vpop.f32.mrf.mxu0  ;;  %20141 = vmatprep.subr.bf16.mxu0 %v24827_v33  ;;  %v20017_v10 = vpop.f32.mrf.mxu1  ;;  %20161 = vmatprep.subr.bf16.mxu1 %v24827_v33 }
 0xcc5   :  { %14166 = vadd.xlane.f32.xlu0 %v13726_v1  ;;  %20155 = vmatprep.mubr.msk.bf16.mxu0 %vm21861_vm0, %v24827_v33  ;;  %v21513_v1 = vld [vmem:[#allocation7 + $0x1928] sm:$0xff]  }
 0xcc6   :  { %v10419_v4 = vpop.f32.mrf.mxu0  ;;  %20175 = vmatprep.mubr.msk.bf16.mxu1 %vm21861_vm0, %v24827_v33  ;;  %v10508_v2 = vpop.f32.mrf.mxu1 }
 0xcc7   :  { %v13727_v50 = vmul.f32 %v22021_v12, %v10419_v4  ;;  %v13729_v61 = vmul.f32 %v22021_v12, %v10508_v2 }
 0xcc8   :  { %v19998_v46 = vpop.f32.mrf.mxu0  ;;  %v20018_v45 = vpop.f32.mrf.mxu1 }
 0xcc9   :  { %14168 = vadd.xlane.f32.xlu1 %v13727_v50  ;;  %14170 = vadd.xlane.f32.xlu0 %v13728_v49  ;;  %v21516_v45 = vld [vmem:[#allocation7 + $0x1960] sm:$0xff]  }
 0xccb   :  { %20142 = vmatpush3.bf16.xpose.msra.mxu0 %v21511_v43  ;;  %20162 = vmatpush3.bf16.xpose.msra.mxu1 %v21512_v59  ;;  %v21515_v59 = vld [vmem:[#allocation7 + $0x1920] sm:$0xff]  }
 0xccc   :  { %20143 = vmatprep.subr.bf16.mxu0 %v24827_v33  ;;  %20163 = vmatprep.subr.bf16.mxu1 %v24827_v33 }
 0xccd   :  { %14172 = vadd.xlane.f32.xlu1 %v13729_v61 }
 0xcce   :  { %v14151_v39 = vpop.xlane.xlu0 %14150 }
 0xccf   :  { %v15365_v10 = vrot.slane %v14151_v39, %v23465_v14 }
 0xcd2   :  { %v14153_v51 = vpop.xlane.xlu1 %14152  ;;  %v14155_v49 = vpop.xlane.xlu0 %14154 }
 0xcd3   :  { %v15369_v4 = vrot.slane %v14153_v51, %v23467_v53  ;;  %20144 = vmatpush3.bf16.xpose.msra.mxu0 %v21513_v1  ;;  %20164 = vmatpush3.bf16.xpose.msra.mxu1 %v21514_v44  ;;  %v15374_v43 = vrot.slane %v14155_v49, %v23465_v14  ;;  %v21517_v1 = vld [vmem:[#allocation7 + $0x1918] sm:$0xff]   ;;  %v21519_v51 = vld [vmem:[#allocation7 + $0x1910] sm:$0xff]   ;;  %v21522_v49 = vld [vmem:[#allocation7 + $0x1948] sm:$0xff]  }
 0xcd4   :  { %20145 = vmatprep.subr.bf16.mxu0 %v24827_v33  ;;  %20165 = vmatprep.subr.bf16.mxu1 %v24827_v33  ;;  %v21518_v44 = vld [vmem:[#allocation7 + $0x1958] sm:$0xff]  }
 0xcd5   :  { %v15370_v2 = vsel %vm14577_vm1, %v15369_v4, %v15365_v10  ;;  %v21520_v10 = vld [vmem:[#allocation7 + $0x1950] sm:$0xff]   ;;  %v21521_v4 = vld [vmem:[#allocation7 + $0x1908] sm:$0xff]  }
 0xcd6   :  { %v14157_v50 = vpop.xlane.xlu1 %14156 }
 0xcd7   :  { %v15378_v46 = vrot.slane %v14157_v50, %v23467_v53  ;;  %v21524_v50 = vld [vmem:[#allocation7 + $0x1940] sm:$0xff]  }
 0xcd9   :  { %v15379_v61 = vsel %vm14577_vm1, %v15378_v46, %v15374_v43  ;;  %v21525_v43 = vld [vmem:[#allocation7 + $0x19b8] sm:$0xff]  }
 0xcda   :  { %v23627_v39 = vsel %vm15722_vm2, %v15379_v61, %v15370_v2  ;;  %v21523_v2 = vld [vmem:[#allocation7 + $0x1900] sm:$0xff]   ;;  %v21526_v46 = vld [vmem:[#allocation7 + $0x19f8] sm:$0xff]  }
 0xcdb   :  { %20146 = vmatpush3.bf16.xpose.msra.mxu0 %v21515_v59  ;;  %20166 = vmatpush3.bf16.xpose.msra.mxu1 %v21516_v45 }
 0xcdc   :  { %20147 = vmatprep.subr.bf16.mxu0 %v24827_v33  ;;  %20167 = vmatprep.subr.bf16.mxu1 %v24827_v33 }
 0xce3   :  { %20148 = vmatpush3.bf16.xpose.msra.mxu0 %v21517_v1  ;;  %20168 = vmatpush3.bf16.xpose.msra.mxu1 %v21518_v44 }
 0xce4   :  { %20149 = vmatprep.subr.bf16.mxu0 %v24827_v33  ;;  %20169 = vmatprep.subr.bf16.mxu1 %v24827_v33 }
 0xceb   :  { %20150 = vmatpush3.bf16.xpose.msra.mxu0 %v21519_v51  ;;  %20170 = vmatpush3.bf16.xpose.msra.mxu1 %v21520_v10 }
 0xcec   :  { %20151 = vmatprep.subr.bf16.mxu0 %v24827_v33  ;;  %20171 = vmatprep.subr.bf16.mxu1 %v24827_v33 }
 0xcf3   :  { %20152 = vmatpush3.bf16.xpose.msra.mxu0 %v21521_v4  ;;  %20172 = vmatpush3.bf16.xpose.msra.mxu1 %v21522_v49 }
 0xcf4   :  { %20153 = vmatprep.subr.bf16.mxu0 %v24827_v33  ;;  %20173 = vmatprep.subr.bf16.mxu1 %v24827_v33 }
 0xcfb   :  { %20154 = vmatpush3.bf16.xpose.msra.mxu0 %v21523_v2  ;;  %20174 = vmatpush3.bf16.xpose.msra.mxu1 %v21524_v50  ;;  %v21527_v2 = vld [vmem:[#allocation7 + $0x19b0] sm:$0xff]  }
 0xcfc   :  { %20179 = vmatprep.subr.bf16.mxu0 %v24827_v33  ;;  %20199 = vmatprep.subr.bf16.mxu1 %v24827_v33 }
 0xd02   :  { %v10594_v59 = vpop.f32.mrf.mxu0  ;;  %20156 = vmatmul.mubr.bf16.vlgmr.msra.gmra.mxu0 %v23602_v3  ;;  %v10683_v61 = vpop.f32.mrf.mxu1  ;;  %20176 = vmatmul.mubr.bf16.vlgmr.msra.gmra.mxu1 %v23602_v3 }
 0xd03   :  { %v13730_v45 = vmul.f32 %v22014_v7, %v10594_v59  ;;  %20180 = vmatpush3.bf16.xpose.msra.mxu0 %v21525_v43  ;;  %20200 = vmatpush3.bf16.xpose.msra.mxu1 %v21526_v46  ;;  %v13732_v44 = vmul.f32 %v22014_v7, %v10683_v61  ;;  %v21528_v43 = vld [vmem:[#allocation7 + $0x19f0] sm:$0xff]   ;;  %v21529_v61 = vld [vmem:[#allocation7 + $0x19a8] sm:$0xff]  }
 0xd04   :  { %v20037_v1 = vpop.f32.mrf.mxu0  ;;  %20181 = vmatprep.subr.bf16.mxu0 %v24827_v33  ;;  %v20057_v51 = vpop.f32.mrf.mxu1  ;;  %20201 = vmatprep.subr.bf16.mxu1 %v24827_v33 }
 0xd05   :  { %14174 = vadd.xlane.f32.xlu0 %v13730_v45  ;;  %20195 = vmatprep.mubr.msk.bf16.mxu0 %vm21861_vm0, %v24827_v33  ;;  %v21530_v1 = vld [vmem:[#allocation7 + $0x19e8] sm:$0xff]  }
 0xd06   :  { %v10597_v10 = vpop.f32.mrf.mxu0  ;;  %20215 = vmatprep.mubr.msk.bf16.mxu1 %vm21861_vm0, %v24827_v33  ;;  %v10686_v4 = vpop.f32.mrf.mxu1 }
 0xd07   :  { %v13731_v49 = vmul.f32 %v22021_v12, %v10597_v10  ;;  %v13733_v59 = vmul.f32 %v22021_v12, %v10686_v4 }
 0xd08   :  { %v20038_v50 = vpop.f32.mrf.mxu0  ;;  %v20058_v46 = vpop.f32.mrf.mxu1 }
 0xd09   :  { %14176 = vadd.xlane.f32.xlu1 %v13731_v49  ;;  %14178 = vadd.xlane.f32.xlu0 %v13732_v44 }
 0xd0b   :  { %20182 = vmatpush3.bf16.xpose.msra.mxu0 %v21527_v2  ;;  %20202 = vmatpush3.bf16.xpose.msra.mxu1 %v21528_v43 }
 0xd0c   :  { %20183 = vmatprep.subr.bf16.mxu0 %v24827_v33  ;;  %20203 = vmatprep.subr.bf16.mxu1 %v24827_v33 }
 0xd0d   :  { %14180 = vadd.xlane.f32.xlu1 %v13733_v59  ;;  %v21531_v59 = vld [vmem:[#allocation7 + $0x19a0] sm:$0xff]  }
 0xd0e   :  { %v14159_v45 = vpop.xlane.xlu0 %14158 }
 0xd0f   :  { %v15383_v10 = vrot.slane %v14159_v45, %v23465_v14  ;;  %v21532_v45 = vld [vmem:[#allocation7 + $0x19e0] sm:$0xff]  }
 0xd12   :  { %v14161_v51 = vpop.xlane.xlu1 %14160  ;;  %v14163_v44 = vpop.xlane.xlu0 %14162 }
 0xd13   :  { %v15387_v50 = vrot.slane %v14161_v51, %v23467_v53  ;;  %20184 = vmatpush3.bf16.xpose.msra.mxu0 %v21529_v61  ;;  %20204 = vmatpush3.bf16.xpose.msra.mxu1 %v21530_v1  ;;  %v15392_v43 = vrot.slane %v14163_v44, %v23465_v14  ;;  %v21533_v51 = vld [vmem:[#allocation7 + $0x1998] sm:$0xff]   ;;  %v21537_v44 = vld [vmem:[#allocation7 + $0x1988] sm:$0xff]  }
 0xd14   :  { %20185 = vmatprep.subr.bf16.mxu0 %v24827_v33  ;;  %20205 = vmatprep.subr.bf16.mxu1 %v24827_v33 }
 0xd15   :  { %v15388_v4 = vsel %vm14577_vm1, %v15387_v50, %v15383_v10  ;;  %v21535_v10 = vld [vmem:[#allocation7 + $0x1990] sm:$0xff]  }
 0xd16   :  { %v15807_v49 = vsel %vm15724_vm3, %v15388_v4, %v23627_v39  ;;  %v14165_v2 = vpop.xlane.xlu1 %14164  ;;  %v21534_v39 = vld [vmem:[#allocation7 + $0x19d8] sm:$0xff]   ;;  %v21536_v50 = vld [vmem:[#allocation7 + $0x19d0] sm:$0xff]   ;;  %v21538_v4 = vld [vmem:[#allocation7 + $0x19c8] sm:$0xff]  }
 0xd17   :  { %v15396_v46 = vrot.slane %v14165_v2, %v23467_v53  ;;  %v21540_v2 = vld [vmem:[#allocation7 + $0x19c0] sm:$0xff]  }
 0xd19   :  { %v15397_v61 = vsel %vm14577_vm1, %v15396_v46, %v15392_v43  ;;  %v21541_v43 = vld [vmem:[#allocation7 + $0x1a38] sm:$0xff]  }
 0xd1a   :  { %v23664_v1 = vsel %vm15726_vm4, %v15397_v61, %v15807_v49  ;;  %v21539_v49 = vld [vmem:[#allocation7 + $0x1980] sm:$0xff]   ;;  %v21542_v46 = vld [vmem:[#allocation7 + $0x1a78] sm:$0xff]  }
 0xd1b   :  { %20186 = vmatpush3.bf16.xpose.msra.mxu0 %v21531_v59  ;;  %20206 = vmatpush3.bf16.xpose.msra.mxu1 %v21532_v45 }
 0xd1c   :  { %20187 = vmatprep.subr.bf16.mxu0 %v24827_v33  ;;  %20207 = vmatprep.subr.bf16.mxu1 %v24827_v33 }
 0xd23   :  { %20188 = vmatpush3.bf16.xpose.msra.mxu0 %v21533_v51  ;;  %20208 = vmatpush3.bf16.xpose.msra.mxu1 %v21534_v39 }
 0xd24   :  { %20189 = vmatprep.subr.bf16.mxu0 %v24827_v33  ;;  %20209 = vmatprep.subr.bf16.mxu1 %v24827_v33 }
 0xd2b   :  { %20190 = vmatpush3.bf16.xpose.msra.mxu0 %v21535_v10  ;;  %20210 = vmatpush3.bf16.xpose.msra.mxu1 %v21536_v50 }
 0xd2c   :  { %20191 = vmatprep.subr.bf16.mxu0 %v24827_v33  ;;  %20211 = vmatprep.subr.bf16.mxu1 %v24827_v33 }
 0xd33   :  { %20192 = vmatpush3.bf16.xpose.msra.mxu0 %v21537_v44  ;;  %20212 = vmatpush3.bf16.xpose.msra.mxu1 %v21538_v4 }
 0xd34   :  { %20193 = vmatprep.subr.bf16.mxu0 %v24827_v33  ;;  %20213 = vmatprep.subr.bf16.mxu1 %v24827_v33 }
 0xd3b   :  { %20194 = vmatpush3.bf16.xpose.msra.mxu0 %v21539_v49  ;;  %20214 = vmatpush3.bf16.xpose.msra.mxu1 %v21540_v2  ;;  %v21543_v49 = vld [vmem:[#allocation7 + $0x1a30] sm:$0xff]  }
 0xd3c   :  { %20219 = vmatprep.subr.bf16.mxu0 %v24827_v33  ;;  %20239 = vmatprep.subr.bf16.mxu1 %v24827_v33 }
 0xd42   :  { %v10772_v59 = vpop.f32.mrf.mxu0  ;;  %20196 = vmatmul.mubr.bf16.vlgmr.msra.gmra.mxu0 %v23602_v3  ;;  %v10861_v61 = vpop.f32.mrf.mxu1  ;;  %20216 = vmatmul.mubr.bf16.vlgmr.msra.gmra.mxu1 %v23602_v3 }
 0xd43   :  { %v13734_v45 = vmul.f32 %v22014_v7, %v10772_v59  ;;  %20220 = vmatpush3.bf16.xpose.msra.mxu0 %v21541_v43  ;;  %20240 = vmatpush3.bf16.xpose.msra.mxu1 %v21542_v46  ;;  %v13736_v39 = vmul.f32 %v22014_v7, %v10861_v61  ;;  %v21544_v43 = vld [vmem:[#allocation7 + $0x1a70] sm:$0xff]   ;;  %v21545_v61 = vld [vmem:[#allocation7 + $0x1a28] sm:$0xff]  }
 0xd44   :  { %v20077_v51 = vpop.f32.mrf.mxu0  ;;  %20221 = vmatprep.subr.bf16.mxu0 %v24827_v33  ;;  %v20097_v10 = vpop.f32.mrf.mxu1  ;;  %20241 = vmatprep.subr.bf16.mxu1 %v24827_v33 }
 0xd45   :  { %14182 = vadd.xlane.f32.xlu0 %v13734_v45  ;;  %20235 = vmatprep.mubr.msk.bf16.mxu0 %vm21861_vm0, %v24827_v33  ;;  %v21546_v51 = vld [vmem:[#allocation7 + $0x1a68] sm:$0xff]  }
 0xd46   :  { %v10775_v50 = vpop.f32.mrf.mxu0  ;;  %20255 = vmatprep.mubr.msk.bf16.mxu1 %vm21861_vm0, %v24827_v33  ;;  %v10864_v44 = vpop.f32.mrf.mxu1 }
 0xd47   :  { %v13735_v4 = vmul.f32 %v22021_v12, %v10775_v50  ;;  %v13737_v59 = vmul.f32 %v22021_v12, %v10864_v44 }
 0xd48   :  { %v20078_v2 = vpop.f32.mrf.mxu0  ;;  %v20098_v46 = vpop.f32.mrf.mxu1 }
 0xd49   :  { %14184 = vadd.xlane.f32.xlu1 %v13735_v4  ;;  %14186 = vadd.xlane.f32.xlu0 %v13736_v39 }
 0xd4b   :  { %20222 = vmatpush3.bf16.xpose.msra.mxu0 %v21543_v49  ;;  %20242 = vmatpush3.bf16.xpose.msra.mxu1 %v21544_v43 }
 0xd4c   :  { %20223 = vmatprep.subr.bf16.mxu0 %v24827_v33  ;;  %20243 = vmatprep.subr.bf16.mxu1 %v24827_v33 }
 0xd4d   :  { %14188 = vadd.xlane.f32.xlu1 %v13737_v59  ;;  %v21547_v59 = vld [vmem:[#allocation7 + $0x1a20] sm:$0xff]  }
 0xd4e   :  { %v14167_v45 = vpop.xlane.xlu0 %14166 }
 0xd4f   :  { %v15401_v50 = vrot.slane %v14167_v45, %v23465_v14  ;;  %v21548_v45 = vld [vmem:[#allocation7 + $0x1a60] sm:$0xff]  }
 0xd52   :  { %v14169_v10 = vpop.xlane.xlu1 %14168  ;;  %v14171_v39 = vpop.xlane.xlu0 %14170 }
 0xd53   :  { %v15405_v2 = vrot.slane %v14169_v10, %v23467_v53  ;;  %20224 = vmatpush3.bf16.xpose.msra.mxu0 %v21545_v61  ;;  %20244 = vmatpush3.bf16.xpose.msra.mxu1 %v21546_v51  ;;  %v15410_v43 = vrot.slane %v14171_v39, %v23465_v14  ;;  %v21549_v10 = vld [vmem:[#allocation7 + $0x1a18] sm:$0xff]   ;;  %v21553_v39 = vld [vmem:[#allocation7 + $0x1a08] sm:$0xff]  }
 0xd54   :  { %20225 = vmatprep.subr.bf16.mxu0 %v24827_v33  ;;  %20245 = vmatprep.subr.bf16.mxu1 %v24827_v33 }
 0xd55   :  { %v15406_v44 = vsel %vm14577_vm1, %v15405_v2, %v15401_v50  ;;  %v21551_v50 = vld [vmem:[#allocation7 + $0x1a10] sm:$0xff]  }
 0xd56   :  { %v15809_v4 = vsel %vm15728_vm5, %v15406_v44, %v23664_v1  ;;  %v14173_v49 = vpop.xlane.xlu1 %14172  ;;  %v21550_v1 = vld [vmem:[#allocation7 + $0x1a58] sm:$0xff]   ;;  %v21552_v2 = vld [vmem:[#allocation7 + $0x1a50] sm:$0xff]   ;;  %v21554_v44 = vld [vmem:[#allocation7 + $0x1a48] sm:$0xff]  }
 0xd57   :  { %v15414_v46 = vrot.slane %v14173_v49, %v23467_v53  ;;  %v21556_v49 = vld [vmem:[#allocation7 + $0x1a40] sm:$0xff]  }
 0xd59   :  { %v15415_v61 = vsel %vm14577_vm1, %v15414_v46, %v15410_v43  ;;  %v21557_v43 = vld [vmem:[#allocation7 + $0x1ab8] sm:$0xff]  }
 0xd5a   :  { %v23701_v51 = vsel %vm15730_vm6, %v15415_v61, %v15809_v4  ;;  %v21555_v4 = vld [vmem:[#allocation7 + $0x1a00] sm:$0xff]   ;;  %v21558_v46 = vld [vmem:[#allocation7 + $0x1af8] sm:$0xff]  }
 0xd5b   :  { %20226 = vmatpush3.bf16.xpose.msra.mxu0 %v21547_v59  ;;  %20246 = vmatpush3.bf16.xpose.msra.mxu1 %v21548_v45 }
 0xd5c   :  { %20227 = vmatprep.subr.bf16.mxu0 %v24827_v33  ;;  %20247 = vmatprep.subr.bf16.mxu1 %v24827_v33 }
 0xd63   :  { %20228 = vmatpush3.bf16.xpose.msra.mxu0 %v21549_v10  ;;  %20248 = vmatpush3.bf16.xpose.msra.mxu1 %v21550_v1 }
 0xd64   :  { %20229 = vmatprep.subr.bf16.mxu0 %v24827_v33  ;;  %20249 = vmatprep.subr.bf16.mxu1 %v24827_v33 }
 0xd6b   :  { %20230 = vmatpush3.bf16.xpose.msra.mxu0 %v21551_v50  ;;  %20250 = vmatpush3.bf16.xpose.msra.mxu1 %v21552_v2 }
 0xd6c   :  { %20231 = vmatprep.subr.bf16.mxu0 %v24827_v33  ;;  %20251 = vmatprep.subr.bf16.mxu1 %v24827_v33 }
 0xd73   :  { %20232 = vmatpush3.bf16.xpose.msra.mxu0 %v21553_v39  ;;  %20252 = vmatpush3.bf16.xpose.msra.mxu1 %v21554_v44 }
 0xd74   :  { %20233 = vmatprep.subr.bf16.mxu0 %v24827_v33  ;;  %20253 = vmatprep.subr.bf16.mxu1 %v24827_v33 }
 0xd7b   :  { %20234 = vmatpush3.bf16.xpose.msra.mxu0 %v21555_v4  ;;  %20254 = vmatpush3.bf16.xpose.msra.mxu1 %v21556_v49  ;;  %v21559_v4 = vld [vmem:[#allocation7 + $0x1ab0] sm:$0xff]  }
 0xd7c   :  { %20259 = vmatprep.subr.bf16.mxu0 %v24827_v33  ;;  %20279 = vmatprep.subr.bf16.mxu1 %v24827_v33 }
 0xd82   :  { %v10950_v59 = vpop.f32.mrf.mxu0  ;;  %20236 = vmatmul.mubr.bf16.vlgmr.msra.gmra.mxu0 %v23602_v3  ;;  %v11039_v61 = vpop.f32.mrf.mxu1  ;;  %20256 = vmatmul.mubr.bf16.vlgmr.msra.gmra.mxu1 %v23602_v3 }
 0xd83   :  { %v13738_v45 = vmul.f32 %v22014_v7, %v10950_v59  ;;  %20260 = vmatpush3.bf16.xpose.msra.mxu0 %v21557_v43  ;;  %20280 = vmatpush3.bf16.xpose.msra.mxu1 %v21558_v46  ;;  %v13740_v1 = vmul.f32 %v22014_v7, %v11039_v61  ;;  %v21560_v43 = vld [vmem:[#allocation7 + $0x1af0] sm:$0xff]   ;;  %v21561_v61 = vld [vmem:[#allocation7 + $0x1aa8] sm:$0xff]  }
 0xd84   :  { %v20117_v10 = vpop.f32.mrf.mxu0  ;;  %20261 = vmatprep.subr.bf16.mxu0 %v24827_v33  ;;  %v20137_v50 = vpop.f32.mrf.mxu1  ;;  %20281 = vmatprep.subr.bf16.mxu1 %v24827_v33 }
 0xd85   :  { %14190 = vadd.xlane.f32.xlu0 %v13738_v45  ;;  %20275 = vmatprep.mubr.msk.bf16.mxu0 %vm21861_vm0, %v24827_v33  ;;  %v21562_v10 = vld [vmem:[#allocation7 + $0x1ae8] sm:$0xff]  }
 0xd86   :  { %v10953_v2 = vpop.f32.mrf.mxu0  ;;  %20295 = vmatprep.mubr.msk.bf16.mxu1 %vm21861_vm0, %v24827_v33  ;;  %v11042_v39 = vpop.f32.mrf.mxu1 }
 0xd87   :  { %v13739_v44 = vmul.f32 %v22021_v12, %v10953_v2  ;;  %v13741_v59 = vmul.f32 %v22021_v12, %v11042_v39 }
 0xd88   :  { %v20118_v49 = vpop.f32.mrf.mxu0  ;;  %v20138_v46 = vpop.f32.mrf.mxu1 }
 0xd89   :  { %14192 = vadd.xlane.f32.xlu1 %v13739_v44  ;;  %14194 = vadd.xlane.f32.xlu0 %v13740_v1 }
 0xd8b   :  { %20262 = vmatpush3.bf16.xpose.msra.mxu0 %v21559_v4  ;;  %20282 = vmatpush3.bf16.xpose.msra.mxu1 %v21560_v43 }
 0xd8c   :  { %20263 = vmatprep.subr.bf16.mxu0 %v24827_v33  ;;  %20283 = vmatprep.subr.bf16.mxu1 %v24827_v33 }
 0xd8d   :  { %14196 = vadd.xlane.f32.xlu1 %v13741_v59  ;;  %v21563_v59 = vld [vmem:[#allocation7 + $0x1aa0] sm:$0xff]  }
 0xd8e   :  { %v14175_v45 = vpop.xlane.xlu0 %14174 }
 0xd8f   :  { %v15419_v2 = vrot.slane %v14175_v45, %v23465_v14  ;;  %v21564_v45 = vld [vmem:[#allocation7 + $0x1ae0] sm:$0xff]  }
 0xd92   :  { %v14177_v50 = vpop.xlane.xlu1 %14176  ;;  %v14179_v1 = vpop.xlane.xlu0 %14178 }
 0xd93   :  { %v15423_v49 = vrot.slane %v14177_v50, %v23467_v53  ;;  %20264 = vmatpush3.bf16.xpose.msra.mxu0 %v21561_v61  ;;  %20284 = vmatpush3.bf16.xpose.msra.mxu1 %v21562_v10  ;;  %v15428_v43 = vrot.slane %v14179_v1, %v23465_v14  ;;  %v21565_v50 = vld [vmem:[#allocation7 + $0x1a98] sm:$0xff]   ;;  %v21569_v1 = vld [vmem:[#allocation7 + $0x1a88] sm:$0xff]  }
 0xd94   :  { %20265 = vmatprep.subr.bf16.mxu0 %v24827_v33  ;;  %20285 = vmatprep.subr.bf16.mxu1 %v24827_v33 }
 0xd95   :  { %v15424_v39 = vsel %vm14577_vm1, %v15423_v49, %v15419_v2  ;;  %v21566_v2 = vld [vmem:[#allocation7 + $0x1ad8] sm:$0xff]   ;;  %v21568_v49 = vld [vmem:[#allocation7 + $0x1ad0] sm:$0xff]  }
 0xd96   :  { %v14181_v44 = vpop.xlane.xlu1 %14180  ;;  %v15811_v4 = vsel %vm15732_vm7, %v15424_v39, %v23701_v51  ;;  %v21567_v51 = vld [vmem:[#allocation7 + $0x1a90] sm:$0xff]   ;;  %v21570_v39 = vld [vmem:[#allocation7 + $0x1ac8] sm:$0xff]  }
 0xd97   :  { %v15432_v46 = vrot.slane %v14181_v44, %v23467_v53  ;;  %v21571_v44 = vld [vmem:[#allocation7 + $0x1a80] sm:$0xff]  }
 0xd99   :  { %v15433_v61 = vsel %vm14577_vm1, %v15432_v46, %v15428_v43  ;;  %v21573_v43 = vld [vmem:[#allocation7 + $0x1b38] sm:$0xff]  }
 0xd9a   :  { %v23738_v10 = vsel %vm15734_vm8, %v15433_v61, %v15811_v4  ;;  %v21572_v4 = vld [vmem:[#allocation7 + $0x1ac0] sm:$0xff]   ;;  %v21574_v46 = vld [vmem:[#allocation7 + $0x1b78] sm:$0xff]  }
 0xd9b   :  { %24883 = vst [vmem:[#allocation131_spill] sm:$0xff] %v23738_v10  ;;  %20266 = vmatpush3.bf16.xpose.msra.mxu0 %v21563_v59  ;;  %20286 = vmatpush3.bf16.xpose.msra.mxu1 %v21564_v45 }
 0xd9c   :  { %20267 = vmatprep.subr.bf16.mxu0 %v24827_v33  ;;  %20287 = vmatprep.subr.bf16.mxu1 %v24827_v33 }
 0xda3   :  { %20268 = vmatpush3.bf16.xpose.msra.mxu0 %v21565_v50  ;;  %20288 = vmatpush3.bf16.xpose.msra.mxu1 %v21566_v2 }
 0xda4   :  { %20269 = vmatprep.subr.bf16.mxu0 %v24827_v33  ;;  %20289 = vmatprep.subr.bf16.mxu1 %v24827_v33 }
 0xdab   :  { %20270 = vmatpush3.bf16.xpose.msra.mxu0 %v21567_v51  ;;  %20290 = vmatpush3.bf16.xpose.msra.mxu1 %v21568_v49 }
 0xdac   :  { %20271 = vmatprep.subr.bf16.mxu0 %v24827_v33  ;;  %20291 = vmatprep.subr.bf16.mxu1 %v24827_v33 }
 0xdb3   :  { %20272 = vmatpush3.bf16.xpose.msra.mxu0 %v21569_v1  ;;  %20292 = vmatpush3.bf16.xpose.msra.mxu1 %v21570_v39 }
 0xdb4   :  { %20273 = vmatprep.subr.bf16.mxu0 %v24827_v33  ;;  %20293 = vmatprep.subr.bf16.mxu1 %v24827_v33 }
 0xdbb   :  { %20274 = vmatpush3.bf16.xpose.msra.mxu0 %v21571_v44  ;;  %20294 = vmatpush3.bf16.xpose.msra.mxu1 %v21572_v4  ;;  %v21575_v44 = vld [vmem:[#allocation7 + $0x1b30] sm:$0xff]  }
 0xdbc   :  { %20299 = vmatprep.subr.bf16.mxu0 %v24827_v33  ;;  %20319 = vmatprep.subr.bf16.mxu1 %v24827_v33 }
 0xdc2   :  { %v11128_v59 = vpop.f32.mrf.mxu0  ;;  %20276 = vmatmul.mubr.bf16.vlgmr.msra.gmra.mxu0 %v23602_v3  ;;  %v11217_v61 = vpop.f32.mrf.mxu1  ;;  %20296 = vmatmul.mubr.bf16.vlgmr.msra.gmra.mxu1 %v23602_v3 }
 0xdc3   :  { %v13742_v45 = vmul.f32 %v22014_v7, %v11128_v59  ;;  %20300 = vmatpush3.bf16.xpose.msra.mxu0 %v21573_v43  ;;  %20320 = vmatpush3.bf16.xpose.msra.mxu1 %v21574_v46  ;;  %v13744_v2 = vmul.f32 %v22014_v7, %v11217_v61  ;;  %v21576_v43 = vld [vmem:[#allocation7 + $0x1b70] sm:$0xff]   ;;  %v21577_v61 = vld [vmem:[#allocation7 + $0x1b28] sm:$0xff]  }
 0xdc4   :  { %v20157_v50 = vpop.f32.mrf.mxu0  ;;  %20301 = vmatprep.subr.bf16.mxu0 %v24827_v33  ;;  %v20177_v51 = vpop.f32.mrf.mxu1  ;;  %20321 = vmatprep.subr.bf16.mxu1 %v24827_v33 }
 0xdc5   :  { %14198 = vadd.xlane.f32.xlu0 %v13742_v45  ;;  %20315 = vmatprep.mubr.msk.bf16.mxu0 %vm21861_vm0, %v24827_v33  ;;  %v21578_v50 = vld [vmem:[#allocation7 + $0x1b68] sm:$0xff]  }
 0xdc6   :  { %v11131_v49 = vpop.f32.mrf.mxu0  ;;  %20335 = vmatprep.mubr.msk.bf16.mxu1 %vm21861_vm0, %v24827_v33  ;;  %v11220_v1 = vpop.f32.mrf.mxu1 }
 0xdc7   :  { %v13743_v39 = vmul.f32 %v22021_v12, %v11131_v49  ;;  %v13745_v59 = vmul.f32 %v22021_v12, %v11220_v1 }
 0xdc8   :  { %v20158_v4 = vpop.f32.mrf.mxu0  ;;  %v20178_v46 = vpop.f32.mrf.mxu1 }
 0xdc9   :  { %14200 = vadd.xlane.f32.xlu1 %v13743_v39  ;;  %14202 = vadd.xlane.f32.xlu0 %v13744_v2  ;;  %v21579_v46 = vld [vmem:[#allocation7 + $0x1b20] sm:$0xff]  }
 0xdcb   :  { %20302 = vmatpush3.bf16.xpose.msra.mxu0 %v21575_v44  ;;  %20322 = vmatpush3.bf16.xpose.msra.mxu1 %v21576_v43 }
 0xdcc   :  { %20303 = vmatprep.subr.bf16.mxu0 %v24827_v33  ;;  %20323 = vmatprep.subr.bf16.mxu1 %v24827_v33 }
 0xdcd   :  { %14204 = vadd.xlane.f32.xlu1 %v13745_v59  ;;  %v21580_v59 = vld [vmem:[#allocation7 + $0x1b60] sm:$0xff]  }
 0xdce   :  { %v14183_v45 = vpop.xlane.xlu0 %14182 }
 0xdcf   :  { %v15437_v49 = vrot.slane %v14183_v45, %v23465_v14 }
 0xdd2   :  { %v14185_v51 = vpop.xlane.xlu1 %14184  ;;  %v14187_v2 = vpop.xlane.xlu0 %14186 }
 0xdd3   :  { %v15441_v4 = vrot.slane %v14185_v51, %v23467_v53  ;;  %20304 = vmatpush3.bf16.xpose.msra.mxu0 %v21577_v61  ;;  %20324 = vmatpush3.bf16.xpose.msra.mxu1 %v21578_v50  ;;  %v15446_v44 = vrot.slane %v14187_v2, %v23465_v14  ;;  %v21581_v61 = vld [vmem:[#allocation7 + $0x1b18] sm:$0xff]   ;;  %v21585_v2 = vld [vmem:[#allocation7 + $0x1b08] sm:$0xff]  }
 0xdd4   :  { %20305 = vmatprep.subr.bf16.mxu0 %v24827_v33  ;;  %20325 = vmatprep.subr.bf16.mxu1 %v24827_v33  ;;  %v21582_v50 = vld [vmem:[#allocation7 + $0x1b58] sm:$0xff]  }
 0xdd5   :  { %v15442_v1 = vsel %vm14577_vm1, %v15441_v4, %v15437_v49  ;;  %v21583_v49 = vld [vmem:[#allocation7 + $0x1b10] sm:$0xff]  }
 0xdd6   :  { %v14189_v39 = vpop.xlane.xlu1 %14188  ;;  %v21584_v4 = vld [vmem:[#allocation7 + $0x1b50] sm:$0xff]  }
 0xdd7   :  { %v15450_v43 = vrot.slane %v14189_v39, %v23467_v53  ;;  %v21587_v39 = vld [vmem:[#allocation7 + $0x1b00] sm:$0xff]  }
 0xdd9   :  { %v15451_v45 = vsel %vm14577_vm1, %v15450_v43, %v15446_v44  ;;  %v21588_v44 = vld [vmem:[#allocation7 + $0x1b40] sm:$0xff]   ;;  %v21589_v43 = vld [vmem:[#allocation7 + $0x1bb8] sm:$0xff]  }
 0xdda   :  { %v23773_v51 = vsel %vm15722_vm2, %v15451_v45, %v15442_v1  ;;  %v21586_v1 = vld [vmem:[#allocation7 + $0x1b48] sm:$0xff]  }
 0xddb   :  { %20306 = vmatpush3.bf16.xpose.msra.mxu0 %v21579_v46  ;;  %20326 = vmatpush3.bf16.xpose.msra.mxu1 %v21580_v59  ;;  %v21590_v46 = vld [vmem:[#allocation7 + $0x1bf8] sm:$0xff]  }
 0xddc   :  { %20307 = vmatprep.subr.bf16.mxu0 %v24827_v33  ;;  %20327 = vmatprep.subr.bf16.mxu1 %v24827_v33 }
 0xde3   :  { %20308 = vmatpush3.bf16.xpose.msra.mxu0 %v21581_v61  ;;  %20328 = vmatpush3.bf16.xpose.msra.mxu1 %v21582_v50 }
 0xde4   :  { %20309 = vmatprep.subr.bf16.mxu0 %v24827_v33  ;;  %20329 = vmatprep.subr.bf16.mxu1 %v24827_v33 }
 0xdeb   :  { %20310 = vmatpush3.bf16.xpose.msra.mxu0 %v21583_v49  ;;  %20330 = vmatpush3.bf16.xpose.msra.mxu1 %v21584_v4 }
 0xdec   :  { %20311 = vmatprep.subr.bf16.mxu0 %v24827_v33  ;;  %20331 = vmatprep.subr.bf16.mxu1 %v24827_v33 }
 0xdf3   :  { %20312 = vmatpush3.bf16.xpose.msra.mxu0 %v21585_v2  ;;  %20332 = vmatpush3.bf16.xpose.msra.mxu1 %v21586_v1 }
 0xdf4   :  { %20313 = vmatprep.subr.bf16.mxu0 %v24827_v33  ;;  %20333 = vmatprep.subr.bf16.mxu1 %v24827_v33 }
 0xdfb   :  { %20314 = vmatpush3.bf16.xpose.msra.mxu0 %v21587_v39  ;;  %20334 = vmatpush3.bf16.xpose.msra.mxu1 %v21588_v44  ;;  %v21591_v44 = vld [vmem:[#allocation7 + $0x1bb0] sm:$0xff]  }
 0xdfc   :  { %20339 = vmatprep.subr.bf16.mxu0 %v24827_v33  ;;  %20359 = vmatprep.subr.bf16.mxu1 %v24827_v33 }
 0xe02   :  { %v11306_v59 = vpop.f32.mrf.mxu0  ;;  %20316 = vmatmul.mubr.bf16.vlgmr.msra.gmra.mxu0 %v23602_v3  ;;  %v11395_v61 = vpop.f32.mrf.mxu1  ;;  %20336 = vmatmul.mubr.bf16.vlgmr.msra.gmra.mxu1 %v23602_v3 }
 0xe03   :  { %v13746_v45 = vmul.f32 %v22014_v7, %v11306_v59  ;;  %20340 = vmatpush3.bf16.xpose.msra.mxu0 %v21589_v43  ;;  %20360 = vmatpush3.bf16.xpose.msra.mxu1 %v21590_v46  ;;  %v13748_v49 = vmul.f32 %v22014_v7, %v11395_v61  ;;  %v21592_v46 = vld [vmem:[#allocation7 + $0x1bf0] sm:$0xff]  }
 0xe04   :  { %v20197_v50 = vpop.f32.mrf.mxu0  ;;  %20341 = vmatprep.subr.bf16.mxu0 %v24827_v33  ;;  %v20217_v4 = vpop.f32.mrf.mxu1  ;;  %20361 = vmatprep.subr.bf16.mxu1 %v24827_v33 }
 0xe05   :  { %14206 = vadd.xlane.f32.xlu0 %v13746_v45  ;;  %20355 = vmatprep.mubr.msk.bf16.mxu0 %vm21861_vm0, %v24827_v33  ;;  %v21593_v50 = vld [vmem:[#allocation7 + $0x1ba8] sm:$0xff]  }
 0xe06   :  { %v11309_v2 = vpop.f32.mrf.mxu0  ;;  %20375 = vmatprep.mubr.msk.bf16.mxu1 %vm21861_vm0, %v24827_v33  ;;  %v11398_v1 = vpop.f32.mrf.mxu1  ;;  %v21594_v4 = vld [vmem:[#allocation7 + $0x1be8] sm:$0xff]  }
 0xe07   :  { %v13747_v39 = vmul.f32 %v22021_v12, %v11309_v2  ;;  %v13749_v45 = vmul.f32 %v22021_v12, %v11398_v1 }
 0xe08   :  { %v20198_v43 = vpop.f32.mrf.mxu0  ;;  %v20218_v59 = vpop.f32.mrf.mxu1 }
 0xe09   :  { %14208 = vadd.xlane.f32.xlu1 %v13747_v39  ;;  %14210 = vadd.xlane.f32.xlu0 %v13748_v49 }
 0xe0b   :  { %20342 = vmatpush3.bf16.xpose.msra.mxu0 %v21591_v44  ;;  %20362 = vmatpush3.bf16.xpose.msra.mxu1 %v21592_v46 }
 0xe0c   :  { %20343 = vmatprep.subr.bf16.mxu0 %v24827_v33  ;;  %20363 = vmatprep.subr.bf16.mxu1 %v24827_v33 }
 0xe0d   :  { %14212 = vadd.xlane.f32.xlu1 %v13749_v45  ;;  %v21595_v45 = vld [vmem:[#allocation7 + $0x1ba0] sm:$0xff]  }
 0xe0e   :  { %v14191_v61 = vpop.xlane.xlu0 %14190 }
 0xe0f   :  { %v15455_v2 = vrot.slane %v14191_v61, %v23465_v14  ;;  %v21596_v61 = vld [vmem:[#allocation7 + $0x1be0] sm:$0xff]  }
 0xe12   :  { %v14193_v10 = vpop.xlane.xlu1 %14192  ;;  %v14195_v49 = vpop.xlane.xlu0 %14194 }
 0xe13   :  { %v15459_v43 = vrot.slane %v14193_v10, %v23467_v53  ;;  %20344 = vmatpush3.bf16.xpose.msra.mxu0 %v21593_v50  ;;  %20364 = vmatpush3.bf16.xpose.msra.mxu1 %v21594_v4  ;;  %v15464_v46 = vrot.slane %v14195_v49, %v23465_v14  ;;  %v21597_v4 = vld [vmem:[#allocation7 + $0x1b98] sm:$0xff]   ;;  %v21601_v49 = vld [vmem:[#allocation7 + $0x1b88] sm:$0xff]  }
 0xe14   :  { %20345 = vmatprep.subr.bf16.mxu0 %v24827_v33  ;;  %20365 = vmatprep.subr.bf16.mxu1 %v24827_v33 }
 0xe15   :  { %v15460_v1 = vsel %vm14577_vm1, %v15459_v43, %v15455_v2  ;;  %v21599_v2 = vld [vmem:[#allocation7 + $0x1b90] sm:$0xff]  }
 0xe16   :  { %v15814_v39 = vsel %vm15724_vm3, %v15460_v1, %v23773_v51  ;;  %v14197_v44 = vpop.xlane.xlu1 %14196  ;;  %v21598_v51 = vld [vmem:[#allocation7 + $0x1bd8] sm:$0xff]   ;;  %v21600_v43 = vld [vmem:[#allocation7 + $0x1bd0] sm:$0xff]   ;;  %v21602_v1 = vld [vmem:[#allocation7 + $0x1bc8] sm:$0xff]  }
 0xe17   :  { %v15468_v59 = vrot.slane %v14197_v44, %v23467_v53  ;;  %v21604_v44 = vld [vmem:[#allocation7 + $0x1bc0] sm:$0xff]  }
 0xe19   :  { %v15469_v10 = vsel %vm14577_vm1, %v15468_v59, %v15464_v46  ;;  %v21605_v46 = vld [vmem:[#allocation7 + $0x1c38] sm:$0xff]  }
 0xe1a   :  { %v23810_v50 = vsel %vm15726_vm4, %v15469_v10, %v15814_v39  ;;  %v21603_v39 = vld [vmem:[#allocation7 + $0x1b80] sm:$0xff]   ;;  %v21606_v59 = vld [vmem:[#allocation7 + $0x1c78] sm:$0xff]  }
 0xe1b   :  { %20346 = vmatpush3.bf16.xpose.msra.mxu0 %v21595_v45  ;;  %20366 = vmatpush3.bf16.xpose.msra.mxu1 %v21596_v61 }
 0xe1c   :  { %20347 = vmatprep.subr.bf16.mxu0 %v24827_v33  ;;  %20367 = vmatprep.subr.bf16.mxu1 %v24827_v33 }
 0xe23   :  { %20348 = vmatpush3.bf16.xpose.msra.mxu0 %v21597_v4  ;;  %20368 = vmatpush3.bf16.xpose.msra.mxu1 %v21598_v51 }
 0xe24   :  { %20349 = vmatprep.subr.bf16.mxu0 %v24827_v33  ;;  %20369 = vmatprep.subr.bf16.mxu1 %v24827_v33 }
 0xe2b   :  { %20350 = vmatpush3.bf16.xpose.msra.mxu0 %v21599_v2  ;;  %20370 = vmatpush3.bf16.xpose.msra.mxu1 %v21600_v43 }
 0xe2c   :  { %20351 = vmatprep.subr.bf16.mxu0 %v24827_v33  ;;  %20371 = vmatprep.subr.bf16.mxu1 %v24827_v33 }
 0xe33   :  { %20352 = vmatpush3.bf16.xpose.msra.mxu0 %v21601_v49  ;;  %20372 = vmatpush3.bf16.xpose.msra.mxu1 %v21602_v1  ;;  %v21607_v1 = vld [vmem:[#allocation7 + $0x1c30] sm:$0xff]  }
 0xe34   :  { %20353 = vmatprep.subr.bf16.mxu0 %v24827_v33  ;;  %20373 = vmatprep.subr.bf16.mxu1 %v24827_v33 }
 0xe3b   :  { %20354 = vmatpush3.bf16.xpose.msra.mxu0 %v21603_v39  ;;  %20374 = vmatpush3.bf16.xpose.msra.mxu1 %v21604_v44  ;;  %v21608_v44 = vld [vmem:[#allocation7 + $0x1c70] sm:$0xff]  }
 0xe3c   :  { %20379 = vmatprep.subr.bf16.mxu0 %v24827_v33  ;;  %20399 = vmatprep.subr.bf16.mxu1 %v24827_v33 }
 0xe42   :  { %v11484_v45 = vpop.f32.mrf.mxu0  ;;  %20356 = vmatmul.mubr.bf16.vlgmr.msra.gmra.mxu0 %v23602_v3  ;;  %v11573_v10 = vpop.f32.mrf.mxu1  ;;  %20376 = vmatmul.mubr.bf16.vlgmr.msra.gmra.mxu1 %v23602_v3 }
 0xe43   :  { %v13750_v61 = vmul.f32 %v22014_v7, %v11484_v45  ;;  %20380 = vmatpush3.bf16.xpose.msra.mxu0 %v21605_v46  ;;  %20400 = vmatpush3.bf16.xpose.msra.mxu1 %v21606_v59  ;;  %v13752_v51 = vmul.f32 %v22014_v7, %v11573_v10  ;;  %v21609_v45 = vld [vmem:[#allocation7 + $0x1c28] sm:$0xff]  }
 0xe44   :  { %v20237_v4 = vpop.f32.mrf.mxu0  ;;  %20381 = vmatprep.subr.bf16.mxu0 %v24827_v33  ;;  %v20257_v2 = vpop.f32.mrf.mxu1  ;;  %20401 = vmatprep.subr.bf16.mxu1 %v24827_v33  ;;  %v21610_v10 = vld [vmem:[#allocation7 + $0x1c68] sm:$0xff]  }
 0xe45   :  { %14214 = vadd.xlane.f32.xlu0 %v13750_v61  ;;  %20395 = vmatprep.mubr.msk.bf16.mxu0 %vm21861_vm0, %v24827_v33 }
 0xe46   :  { %v11487_v43 = vpop.f32.mrf.mxu0  ;;  %20415 = vmatprep.mubr.msk.bf16.mxu1 %vm21861_vm0, %v24827_v33  ;;  %v11576_v49 = vpop.f32.mrf.mxu1 }
 0xe47   :  { %v13751_v3 = vmul.f32 %v22021_v12, %v11487_v43  ;;  %v13753_v59 = vmul.f32 %v22021_v12, %v11576_v49 }
 0xe48   :  { %v20238_v39 = vpop.f32.mrf.mxu0  ;;  %v20258_v46 = vpop.f32.mrf.mxu1 }
 0xe49   :  { %14216 = vadd.xlane.f32.xlu1 %v13751_v3  ;;  %14218 = vadd.xlane.f32.xlu0 %v13752_v51  ;;  %v21611_v3 = vld [vmem:[#allocation7 + $0x1c20] sm:$0xff]   ;;  %v21613_v39 = vld [vmem:[#allocation7 + $0x1c18] sm:$0xff]   ;;  %v21615_v46 = vld [vmem:[#allocation7 + $0x1c10] sm:$0xff]  }
 0xe4b   :  { %20382 = vmatpush3.bf16.xpose.msra.mxu0 %v21607_v1  ;;  %20402 = vmatpush3.bf16.xpose.msra.mxu1 %v21608_v44  ;;  %v21612_v1 = vld [vmem:[#allocation7 + $0x1c60] sm:$0xff]   ;;  %v21614_v44 = vld [vmem:[#allocation7 + $0x1c58] sm:$0xff]  }
 0xe4c   :  { %20383 = vmatprep.subr.bf16.mxu0 %v24827_v33  ;;  %20403 = vmatprep.subr.bf16.mxu1 %v24827_v33 }
 0xe4d   :  { %14220 = vadd.xlane.f32.xlu1 %v13753_v59  ;;  %v21616_v59 = vld [vmem:[#allocation7 + $0x1c50] sm:$0xff]  }
 0xe4e   :  { %v14199_v61 = vpop.xlane.xlu0 %14198 }
 0xe4f   :  { %v15473_v2 = vrot.slane %v14199_v61, %v23465_v14  ;;  %v21619_v61 = vld [vmem:[#allocation7 + $0x1c00] sm:$0xff]  }
 0xe52   :  { %v14201_v4 = vpop.xlane.xlu1 %14200 }
 0xe53   :  { %v15477_v43 = vrot.slane %v14201_v4, %v23467_v53  ;;  %20384 = vmatpush3.bf16.xpose.msra.mxu0 %v21609_v45  ;;  %20404 = vmatpush3.bf16.xpose.msra.mxu1 %v21610_v10  ;;  %v21618_v45 = vld [vmem:[#allocation7 + $0x1c48] sm:$0xff]   ;;  %v21620_v10 = vld [vmem:[#allocation7 + $0x1c40] sm:$0xff]   ;;  %v21621_v4 = vld [vmem:[#allocation7 + $0x1cb8] sm:$0xff]  }
 0xe54   :  { %20385 = vmatprep.subr.bf16.mxu0 %v24827_v33  ;;  %20405 = vmatprep.subr.bf16.mxu1 %v24827_v33 }
 0xe55   :  { %v15478_v51 = vsel %vm14577_vm1, %v15477_v43, %v15473_v2  ;;  %v21622_v2 = vld [vmem:[#allocation7 + $0x1cf8] sm:$0xff]  }
 0xe56   :  { %v23843_v49 = vsel %vm15728_vm5, %v15478_v51, %v23810_v50  ;;  %v21617_v50 = vld [vmem:[#allocation7 + $0x1c08] sm:$0xff]   ;;  %v23855_v51 = vld [vmem:[#allocation5] sm:$0xff]  }
 0xe5b   :  { %20386 = vmatpush3.bf16.xpose.msra.mxu0 %v21611_v3  ;;  %20406 = vmatpush3.bf16.xpose.msra.mxu1 %v21612_v1 }
 0xe5c   :  { %20387 = vmatprep.subr.bf16.mxu0 %v24827_v33  ;;  %20407 = vmatprep.subr.bf16.mxu1 %v24827_v33 }
 0xe63   :  { %20388 = vmatpush3.bf16.xpose.msra.mxu0 %v21613_v39  ;;  %20408 = vmatpush3.bf16.xpose.msra.mxu1 %v21614_v44 }
 0xe64   :  { %20389 = vmatprep.subr.bf16.mxu0 %v24827_v33  ;;  %20409 = vmatprep.subr.bf16.mxu1 %v24827_v33 }
 0xe6b   :  { %20390 = vmatpush3.bf16.xpose.msra.mxu0 %v21615_v46  ;;  %20410 = vmatpush3.bf16.xpose.msra.mxu1 %v21616_v59 }
 0xe6c   :  { %20391 = vmatprep.subr.bf16.mxu0 %v24827_v33  ;;  %20411 = vmatprep.subr.bf16.mxu1 %v24827_v33 }
 0xe73   :  { %20392 = vmatpush3.bf16.xpose.msra.mxu0 %v21617_v50  ;;  %20412 = vmatpush3.bf16.xpose.msra.mxu1 %v21618_v45 }
 0xe74   :  { %20393 = vmatprep.subr.bf16.mxu0 %v24827_v33  ;;  %20413 = vmatprep.subr.bf16.mxu1 %v24827_v33 }
 0xe7b   :  { %20394 = vmatpush3.bf16.xpose.msra.mxu0 %v21619_v61  ;;  %20414 = vmatpush3.bf16.xpose.msra.mxu1 %v21620_v10  ;;  %v21623_v61 = vld [vmem:[#allocation7 + $0x1cb0] sm:$0xff]  }
 0xe7c   :  { %20419 = vmatprep.subr.bf16.mxu0 %v24827_v33  ;;  %20439 = vmatprep.subr.bf16.mxu1 %v24827_v33 }
 0xe82   :  { %v11662_v43 = vpop.f32.mrf.mxu0  ;;  %20396 = vmatmul.mubr.bf16.vlgmr.msra.gmra.mxu0 %v23855_v51  ;;  %v11751_v1 = vpop.f32.mrf.mxu1  ;;  %20416 = vmatmul.mubr.bf16.vlgmr.msra.gmra.mxu1 %v23855_v51 }
 0xe83   :  { %v13754_v3 = vmul.f32 %v22014_v7, %v11662_v43  ;;  %20420 = vmatpush3.bf16.xpose.msra.mxu0 %v21621_v4  ;;  %20440 = vmatpush3.bf16.xpose.msra.mxu1 %v21622_v2  ;;  %v13756_v44 = vmul.f32 %v22014_v7, %v11751_v1  ;;  %v21624_v4 = vld [vmem:[#allocation7 + $0x1cf0] sm:$0xff]   ;;  %v21626_v1 = vld [vmem:[#allocation7 + $0x1ce8] sm:$0xff]  }
 0xe84   :  { %v20277_v39 = vpop.f32.mrf.mxu0  ;;  %20421 = vmatprep.subr.bf16.mxu0 %v24827_v33  ;;  %v20297_v46 = vpop.f32.mrf.mxu1  ;;  %20441 = vmatprep.subr.bf16.mxu1 %v24827_v33 }
 0xe85   :  { %14222 = vadd.xlane.f32.xlu0 %v13754_v3  ;;  %20435 = vmatprep.mubr.msk.bf16.mxu0 %vm21861_vm0, %v24827_v33  ;;  %v21625_v3 = vld [vmem:[#allocation7 + $0x1ca8] sm:$0xff]   ;;  %v21627_v39 = vld [vmem:[#allocation7 + $0x1ca0] sm:$0xff]  }
 0xe86   :  { %v11665_v59 = vpop.f32.mrf.mxu0  ;;  %20455 = vmatprep.mubr.msk.bf16.mxu1 %vm21861_vm0, %v24827_v33  ;;  %v11754_v50 = vpop.f32.mrf.mxu1  ;;  %v21628_v46 = vld [vmem:[#allocation7 + $0x1ce0] sm:$0xff]  }
 0xe87   :  { %v13755_v45 = vmul.f32 %v22021_v12, %v11665_v59  ;;  %v13757_v43 = vmul.f32 %v22021_v12, %v11754_v50  ;;  %v21630_v59 = vld [vmem:[#allocation7 + $0x1cd8] sm:$0xff]   ;;  %v21631_v50 = vld [vmem:[#allocation7 + $0x1c90] sm:$0xff]  }
 0xe88   :  { %v20278_v10 = vpop.f32.mrf.mxu0  ;;  %v20298_v2 = vpop.f32.mrf.mxu1 }
 0xe89   :  { %14224 = vadd.xlane.f32.xlu1 %v13755_v45  ;;  %14226 = vadd.xlane.f32.xlu0 %v13756_v44  ;;  %v21629_v44 = vld [vmem:[#allocation7 + $0x1c98] sm:$0xff]   ;;  %v21632_v45 = vld [vmem:[#allocation7 + $0x1cd0] sm:$0xff]   ;;  %v21634_v10 = vld [vmem:[#allocation7 + $0x1cc8] sm:$0xff]  }
 0xe8a   :  { %v21636_v2 = vld [vmem:[#allocation7 + $0x1cc0] sm:$0xff]  }
 0xe8b   :  { %20422 = vmatpush3.bf16.xpose.msra.mxu0 %v21623_v61  ;;  %20442 = vmatpush3.bf16.xpose.msra.mxu1 %v21624_v4  ;;  %v21633_v61 = vld [vmem:[#allocation7 + $0x1c88] sm:$0xff]   ;;  %v21635_v4 = vld [vmem:[#allocation7 + $0x1c80] sm:$0xff]  }
 0xe8c   :  { %20423 = vmatprep.subr.bf16.mxu0 %v24827_v33  ;;  %20443 = vmatprep.subr.bf16.mxu1 %v24827_v33 }
 0xe8d   :  { %14228 = vadd.xlane.f32.xlu1 %v13757_v43  ;;  %v21637_v43 = vld [vmem:[#allocation7 + $0x1d38] sm:$0xff]  }
 0xe93   :  { %20424 = vmatpush3.bf16.xpose.msra.mxu0 %v21625_v3  ;;  %20444 = vmatpush3.bf16.xpose.msra.mxu1 %v21626_v1  ;;  %v21638_v3 = vld [vmem:[#allocation7 + $0x1d78] sm:$0xff]  }
 0xe94   :  { %20425 = vmatprep.subr.bf16.mxu0 %v24827_v33  ;;  %20445 = vmatprep.subr.bf16.mxu1 %v24827_v33 }
 0xe9b   :  { %20426 = vmatpush3.bf16.xpose.msra.mxu0 %v21627_v39  ;;  %20446 = vmatpush3.bf16.xpose.msra.mxu1 %v21628_v46 }
 0xe9c   :  { %20427 = vmatprep.subr.bf16.mxu0 %v24827_v33  ;;  %20447 = vmatprep.subr.bf16.mxu1 %v24827_v33 }
 0xea3   :  { %20428 = vmatpush3.bf16.xpose.msra.mxu0 %v21629_v44  ;;  %20448 = vmatpush3.bf16.xpose.msra.mxu1 %v21630_v59 }
 0xea4   :  { %20429 = vmatprep.subr.bf16.mxu0 %v24827_v33  ;;  %20449 = vmatprep.subr.bf16.mxu1 %v24827_v33 }
 0xeab   :  { %20430 = vmatpush3.bf16.xpose.msra.mxu0 %v21631_v50  ;;  %20450 = vmatpush3.bf16.xpose.msra.mxu1 %v21632_v45 }
 0xeac   :  { %20431 = vmatprep.subr.bf16.mxu0 %v24827_v33  ;;  %20451 = vmatprep.subr.bf16.mxu1 %v24827_v33 }
 0xeb3   :  { %20432 = vmatpush3.bf16.xpose.msra.mxu0 %v21633_v61  ;;  %20452 = vmatpush3.bf16.xpose.msra.mxu1 %v21634_v10 }
 0xeb4   :  { %20433 = vmatprep.subr.bf16.mxu0 %v24827_v33  ;;  %20453 = vmatprep.subr.bf16.mxu1 %v24827_v33 }
 0xebb   :  { %20434 = vmatpush3.bf16.xpose.msra.mxu0 %v21635_v4  ;;  %20454 = vmatpush3.bf16.xpose.msra.mxu1 %v21636_v2  ;;  %v21639_v4 = vld [vmem:[#allocation7 + $0x1d30] sm:$0xff]  }
 0xebc   :  { %20459 = vmatprep.subr.bf16.mxu0 %v24827_v33  ;;  %20479 = vmatprep.subr.bf16.mxu1 %v24827_v33 }
 0xec2   :  { %v11840_v1 = vpop.f32.mrf.mxu0  ;;  %20436 = vmatmul.mubr.bf16.vlgmr.msra.gmra.mxu0 %v23855_v51  ;;  %v11929_v46 = vpop.f32.mrf.mxu1  ;;  %20456 = vmatmul.mubr.bf16.vlgmr.msra.gmra.mxu1 %v23855_v51 }
 0xec3   :  { %v13758_v39 = vmul.f32 %v22014_v7, %v11840_v1  ;;  %20460 = vmatpush3.bf16.xpose.msra.mxu0 %v21637_v43  ;;  %20480 = vmatpush3.bf16.xpose.msra.mxu1 %v21638_v3  ;;  %v13760_v59 = vmul.f32 %v22014_v7, %v11929_v46  ;;  %v21640_v43 = vld [vmem:[#allocation7 + $0x1d70] sm:$0xff]   ;;  %v21642_v46 = vld [vmem:[#allocation7 + $0x1d68] sm:$0xff]  }
 0xec4   :  { %v20317_v44 = vpop.f32.mrf.mxu0  ;;  %20461 = vmatprep.subr.bf16.mxu0 %v24827_v33  ;;  %v20337_v50 = vpop.f32.mrf.mxu1  ;;  %20481 = vmatprep.subr.bf16.mxu1 %v24827_v33 }
 0xec5   :  { %14230 = vadd.xlane.f32.xlu0 %v13758_v39  ;;  %20475 = vmatprep.mubr.msk.bf16.mxu0 %vm21861_vm0, %v24827_v33  ;;  %v21641_v39 = vld [vmem:[#allocation7 + $0x1d28] sm:$0xff]   ;;  %v21643_v44 = vld [vmem:[#allocation7 + $0x1d20] sm:$0xff]  }
 0xec6   :  { %v11843_v45 = vpop.f32.mrf.mxu0  ;;  %20495 = vmatprep.mubr.msk.bf16.mxu1 %vm21861_vm0, %v24827_v33  ;;  %v11932_v61 = vpop.f32.mrf.mxu1  ;;  %v21644_v50 = vld [vmem:[#allocation7 + $0x1d60] sm:$0xff]  }
 0xec7   :  { %v13759_v10 = vmul.f32 %v22021_v12, %v11843_v45  ;;  %v13761_v1 = vmul.f32 %v22021_v12, %v11932_v61  ;;  %v21646_v45 = vld [vmem:[#allocation7 + $0x1d58] sm:$0xff]   ;;  %v21647_v61 = vld [vmem:[#allocation7 + $0x1d10] sm:$0xff]  }
 0xec8   :  { %v20318_v2 = vpop.f32.mrf.mxu0  ;;  %v20338_v3 = vpop.f32.mrf.mxu1 }
 0xec9   :  { %14232 = vadd.xlane.f32.xlu1 %v13759_v10  ;;  %14234 = vadd.xlane.f32.xlu0 %v13760_v59  ;;  %v21645_v59 = vld [vmem:[#allocation7 + $0x1d18] sm:$0xff]   ;;  %v21648_v10 = vld [vmem:[#allocation7 + $0x1d50] sm:$0xff]   ;;  %v21650_v2 = vld [vmem:[#allocation7 + $0x1d48] sm:$0xff]  }
 0xeca   :  { %v21652_v3 = vld [vmem:[#allocation7 + $0x1d40] sm:$0xff]  }
 0xecb   :  { %20462 = vmatpush3.bf16.xpose.msra.mxu0 %v21639_v4  ;;  %20482 = vmatpush3.bf16.xpose.msra.mxu1 %v21640_v43  ;;  %v21649_v4 = vld [vmem:[#allocation7 + $0x1d08] sm:$0xff]   ;;  %v21651_v43 = vld [vmem:[#allocation7 + $0x1d00] sm:$0xff]  }
 0xecc   :  { %20463 = vmatprep.subr.bf16.mxu0 %v24827_v33  ;;  %20483 = vmatprep.subr.bf16.mxu1 %v24827_v33 }
 0xecd   :  { %14236 = vadd.xlane.f32.xlu1 %v13761_v1  ;;  %v21653_v1 = vld [vmem:[#allocation7 + $0x1db8] sm:$0xff]  }
 0xed3   :  { %20464 = vmatpush3.bf16.xpose.msra.mxu0 %v21641_v39  ;;  %20484 = vmatpush3.bf16.xpose.msra.mxu1 %v21642_v46  ;;  %v21654_v39 = vld [vmem:[#allocation7 + $0x1df8] sm:$0xff]  }
 0xed4   :  { %20465 = vmatprep.subr.bf16.mxu0 %v24827_v33  ;;  %20485 = vmatprep.subr.bf16.mxu1 %v24827_v33 }
 0xedb   :  { %20466 = vmatpush3.bf16.xpose.msra.mxu0 %v21643_v44  ;;  %20486 = vmatpush3.bf16.xpose.msra.mxu1 %v21644_v50 }
 0xedc   :  { %20467 = vmatprep.subr.bf16.mxu0 %v24827_v33  ;;  %20487 = vmatprep.subr.bf16.mxu1 %v24827_v33 }
 0xee3   :  { %20468 = vmatpush3.bf16.xpose.msra.mxu0 %v21645_v59  ;;  %20488 = vmatpush3.bf16.xpose.msra.mxu1 %v21646_v45 }
 0xee4   :  { %20469 = vmatprep.subr.bf16.mxu0 %v24827_v33  ;;  %20489 = vmatprep.subr.bf16.mxu1 %v24827_v33 }
 0xeeb   :  { %20470 = vmatpush3.bf16.xpose.msra.mxu0 %v21647_v61  ;;  %20490 = vmatpush3.bf16.xpose.msra.mxu1 %v21648_v10 }
 0xeec   :  { %20471 = vmatprep.subr.bf16.mxu0 %v24827_v33  ;;  %20491 = vmatprep.subr.bf16.mxu1 %v24827_v33 }
 0xef3   :  { %20472 = vmatpush3.bf16.xpose.msra.mxu0 %v21649_v4  ;;  %20492 = vmatpush3.bf16.xpose.msra.mxu1 %v21650_v2 }
 0xef4   :  { %20473 = vmatprep.subr.bf16.mxu0 %v24827_v33  ;;  %20493 = vmatprep.subr.bf16.mxu1 %v24827_v33 }
 0xefb   :  { %20474 = vmatpush3.bf16.xpose.msra.mxu0 %v21651_v43  ;;  %20494 = vmatpush3.bf16.xpose.msra.mxu1 %v21652_v3  ;;  %v21655_v43 = vld [vmem:[#allocation7 + $0x1db0] sm:$0xff]  }
 0xefc   :  { %20499 = vmatprep.subr.bf16.mxu0 %v24827_v33  ;;  %20519 = vmatprep.subr.bf16.mxu1 %v24827_v33 }
 0xf02   :  { %v12018_v46 = vpop.f32.mrf.mxu0  ;;  %20476 = vmatmul.mubr.bf16.vlgmr.msra.gmra.mxu0 %v23855_v51  ;;  %v12107_v50 = vpop.f32.mrf.mxu1  ;;  %20496 = vmatmul.mubr.bf16.vlgmr.msra.gmra.mxu1 %v23855_v51 }
 0xf03   :  { %v13762_v44 = vmul.f32 %v22014_v7, %v12018_v46  ;;  %20500 = vmatpush3.bf16.xpose.msra.mxu0 %v21653_v1  ;;  %20520 = vmatpush3.bf16.xpose.msra.mxu1 %v21654_v39  ;;  %v13764_v45 = vmul.f32 %v22014_v7, %v12107_v50  ;;  %v21656_v1 = vld [vmem:[#allocation7 + $0x1df0] sm:$0xff]   ;;  %v21658_v50 = vld [vmem:[#allocation7 + $0x1de8] sm:$0xff]  }
 0xf04   :  { %v20357_v59 = vpop.f32.mrf.mxu0  ;;  %20501 = vmatprep.subr.bf16.mxu0 %v24827_v33  ;;  %v20377_v61 = vpop.f32.mrf.mxu1  ;;  %20521 = vmatprep.subr.bf16.mxu1 %v24827_v33 }
 0xf05   :  { %14238 = vadd.xlane.f32.xlu0 %v13762_v44  ;;  %20515 = vmatprep.mubr.msk.bf16.mxu0 %vm21861_vm0, %v24827_v33  ;;  %v21657_v44 = vld [vmem:[#allocation7 + $0x1da8] sm:$0xff]   ;;  %v21659_v59 = vld [vmem:[#allocation7 + $0x1da0] sm:$0xff]  }
 0xf06   :  { %v12021_v10 = vpop.f32.mrf.mxu0  ;;  %20535 = vmatprep.mubr.msk.bf16.mxu1 %vm21861_vm0, %v24827_v33  ;;  %v12110_v4 = vpop.f32.mrf.mxu1  ;;  %v21660_v61 = vld [vmem:[#allocation7 + $0x1de0] sm:$0xff]  }
 0xf07   :  { %v13763_v2 = vmul.f32 %v22021_v12, %v12021_v10  ;;  %v13765_v46 = vmul.f32 %v22021_v12, %v12110_v4  ;;  %v21662_v10 = vld [vmem:[#allocation7 + $0x1dd8] sm:$0xff]   ;;  %v21663_v4 = vld [vmem:[#allocation7 + $0x1d90] sm:$0xff]  }
 0xf08   :  { %v20358_v3 = vpop.f32.mrf.mxu0  ;;  %v20378_v39 = vpop.f32.mrf.mxu1 }
 0xf09   :  { %14240 = vadd.xlane.f32.xlu1 %v13763_v2  ;;  %14242 = vadd.xlane.f32.xlu0 %v13764_v45  ;;  %v21661_v45 = vld [vmem:[#allocation7 + $0x1d98] sm:$0xff]   ;;  %v21664_v2 = vld [vmem:[#allocation7 + $0x1dd0] sm:$0xff]   ;;  %v21666_v3 = vld [vmem:[#allocation7 + $0x1dc8] sm:$0xff]  }
 0xf0a   :  { %v21668_v39 = vld [vmem:[#allocation7 + $0x1dc0] sm:$0xff]  }
 0xf0b   :  { %20502 = vmatpush3.bf16.xpose.msra.mxu0 %v21655_v43  ;;  %20522 = vmatpush3.bf16.xpose.msra.mxu1 %v21656_v1  ;;  %v21665_v43 = vld [vmem:[#allocation7 + $0x1d88] sm:$0xff]   ;;  %v21667_v1 = vld [vmem:[#allocation7 + $0x1d80] sm:$0xff]  }
 0xf0c   :  { %20503 = vmatprep.subr.bf16.mxu0 %v24827_v33  ;;  %20523 = vmatprep.subr.bf16.mxu1 %v24827_v33 }
 0xf0d   :  { %14244 = vadd.xlane.f32.xlu1 %v13765_v46  ;;  %v21669_v46 = vld [vmem:[#allocation7 + $0x1e38] sm:$0xff]  }
 0xf13   :  { %20504 = vmatpush3.bf16.xpose.msra.mxu0 %v21657_v44  ;;  %20524 = vmatpush3.bf16.xpose.msra.mxu1 %v21658_v50  ;;  %v21670_v44 = vld [vmem:[#allocation7 + $0x1e78] sm:$0xff]  }
 0xf14   :  { %20505 = vmatprep.subr.bf16.mxu0 %v24827_v33  ;;  %20525 = vmatprep.subr.bf16.mxu1 %v24827_v33 }
 0xf1b   :  { %20506 = vmatpush3.bf16.xpose.msra.mxu0 %v21659_v59  ;;  %20526 = vmatpush3.bf16.xpose.msra.mxu1 %v21660_v61 }
 0xf1c   :  { %20507 = vmatprep.subr.bf16.mxu0 %v24827_v33  ;;  %20527 = vmatprep.subr.bf16.mxu1 %v24827_v33 }
 0xf23   :  { %20508 = vmatpush3.bf16.xpose.msra.mxu0 %v21661_v45  ;;  %20528 = vmatpush3.bf16.xpose.msra.mxu1 %v21662_v10 }
 0xf24   :  { %20509 = vmatprep.subr.bf16.mxu0 %v24827_v33  ;;  %20529 = vmatprep.subr.bf16.mxu1 %v24827_v33 }
 0xf2b   :  { %20510 = vmatpush3.bf16.xpose.msra.mxu0 %v21663_v4  ;;  %20530 = vmatpush3.bf16.xpose.msra.mxu1 %v21664_v2 }
 0xf2c   :  { %20511 = vmatprep.subr.bf16.mxu0 %v24827_v33  ;;  %20531 = vmatprep.subr.bf16.mxu1 %v24827_v33 }
 0xf33   :  { %20512 = vmatpush3.bf16.xpose.msra.mxu0 %v21665_v43  ;;  %20532 = vmatpush3.bf16.xpose.msra.mxu1 %v21666_v3 }
 0xf34   :  { %20513 = vmatprep.subr.bf16.mxu0 %v24827_v33  ;;  %20533 = vmatprep.subr.bf16.mxu1 %v24827_v33 }
 0xf3b   :  { %20514 = vmatpush3.bf16.xpose.msra.mxu0 %v21667_v1  ;;  %20534 = vmatpush3.bf16.xpose.msra.mxu1 %v21668_v39  ;;  %v21671_v1 = vld [vmem:[#allocation7 + $0x1e30] sm:$0xff]  }
 0xf3c   :  { %20539 = vmatprep.subr.bf16.mxu0 %v24827_v33  ;;  %20559 = vmatprep.subr.bf16.mxu1 %v24827_v33 }
 0xf42   :  { %v12196_v50 = vpop.f32.mrf.mxu0  ;;  %20516 = vmatmul.mubr.bf16.vlgmr.msra.gmra.mxu0 %v23855_v51  ;;  %v12285_v61 = vpop.f32.mrf.mxu1  ;;  %20536 = vmatmul.mubr.bf16.vlgmr.msra.gmra.mxu1 %v23855_v51 }
 0xf43   :  { %v13766_v59 = vmul.f32 %v22014_v7, %v12196_v50  ;;  %20540 = vmatpush3.bf16.xpose.msra.mxu0 %v21669_v46  ;;  %20560 = vmatpush3.bf16.xpose.msra.mxu1 %v21670_v44  ;;  %v13768_v10 = vmul.f32 %v22014_v7, %v12285_v61  ;;  %v21672_v46 = vld [vmem:[#allocation7 + $0x1e70] sm:$0xff]   ;;  %v21674_v61 = vld [vmem:[#allocation7 + $0x1e68] sm:$0xff]  }
 0xf44   :  { %v20397_v45 = vpop.f32.mrf.mxu0  ;;  %20541 = vmatprep.subr.bf16.mxu0 %v24827_v33  ;;  %v20417_v4 = vpop.f32.mrf.mxu1  ;;  %20561 = vmatprep.subr.bf16.mxu1 %v24827_v33 }
 0xf45   :  { %14246 = vadd.xlane.f32.xlu0 %v13766_v59  ;;  %20555 = vmatprep.mubr.msk.bf16.mxu0 %vm21861_vm0, %v24827_v33  ;;  %v21673_v59 = vld [vmem:[#allocation7 + $0x1e28] sm:$0xff]   ;;  %v21675_v45 = vld [vmem:[#allocation7 + $0x1e20] sm:$0xff]  }
 0xf46   :  { %v12199_v2 = vpop.f32.mrf.mxu0  ;;  %20575 = vmatprep.mubr.msk.bf16.mxu1 %vm21861_vm0, %v24827_v33  ;;  %v12288_v43 = vpop.f32.mrf.mxu1  ;;  %v21676_v4 = vld [vmem:[#allocation7 + $0x1e60] sm:$0xff]  }
 0xf47   :  { %v13767_v3 = vmul.f32 %v22021_v12, %v12199_v2  ;;  %v13769_v50 = vmul.f32 %v22021_v12, %v12288_v43  ;;  %v21678_v2 = vld [vmem:[#allocation7 + $0x1e58] sm:$0xff]   ;;  %v21679_v43 = vld [vmem:[#allocation7 + $0x1e10] sm:$0xff]  }
 0xf48   :  { %v20398_v39 = vpop.f32.mrf.mxu0  ;;  %v20418_v44 = vpop.f32.mrf.mxu1 }
 0xf49   :  { %14248 = vadd.xlane.f32.xlu1 %v13767_v3  ;;  %14250 = vadd.xlane.f32.xlu0 %v13768_v10  ;;  %v21677_v10 = vld [vmem:[#allocation7 + $0x1e18] sm:$0xff]   ;;  %v21680_v3 = vld [vmem:[#allocation7 + $0x1e50] sm:$0xff]   ;;  %v21682_v39 = vld [vmem:[#allocation7 + $0x1e48] sm:$0xff]  }
 0xf4a   :  { %v21684_v44 = vld [vmem:[#allocation7 + $0x1e40] sm:$0xff]  }
 0xf4b   :  { %20542 = vmatpush3.bf16.xpose.msra.mxu0 %v21671_v1  ;;  %20562 = vmatpush3.bf16.xpose.msra.mxu1 %v21672_v46  ;;  %v21681_v1 = vld [vmem:[#allocation7 + $0x1e08] sm:$0xff]   ;;  %v21683_v46 = vld [vmem:[#allocation7 + $0x1e00] sm:$0xff]  }
 0xf4c   :  { %20543 = vmatprep.subr.bf16.mxu0 %v24827_v33  ;;  %20563 = vmatprep.subr.bf16.mxu1 %v24827_v33 }
 0xf4d   :  { %14252 = vadd.xlane.f32.xlu1 %v13769_v50  ;;  %v21685_v50 = vld [vmem:[#allocation7 + $0x1eb8] sm:$0xff]  }
 0xf53   :  { %20544 = vmatpush3.bf16.xpose.msra.mxu0 %v21673_v59  ;;  %20564 = vmatpush3.bf16.xpose.msra.mxu1 %v21674_v61  ;;  %v21686_v59 = vld [vmem:[#allocation7 + $0x1ef8] sm:$0xff]  }
 0xf54   :  { %20545 = vmatprep.subr.bf16.mxu0 %v24827_v33  ;;  %20565 = vmatprep.subr.bf16.mxu1 %v24827_v33 }
 0xf5b   :  { %20546 = vmatpush3.bf16.xpose.msra.mxu0 %v21675_v45  ;;  %20566 = vmatpush3.bf16.xpose.msra.mxu1 %v21676_v4 }
 0xf5c   :  { %20547 = vmatprep.subr.bf16.mxu0 %v24827_v33  ;;  %20567 = vmatprep.subr.bf16.mxu1 %v24827_v33 }
 0xf63   :  { %20548 = vmatpush3.bf16.xpose.msra.mxu0 %v21677_v10  ;;  %20568 = vmatpush3.bf16.xpose.msra.mxu1 %v21678_v2 }
 0xf64   :  { %20549 = vmatprep.subr.bf16.mxu0 %v24827_v33  ;;  %20569 = vmatprep.subr.bf16.mxu1 %v24827_v33 }
 0xf6b   :  { %20550 = vmatpush3.bf16.xpose.msra.mxu0 %v21679_v43  ;;  %20570 = vmatpush3.bf16.xpose.msra.mxu1 %v21680_v3 }
 0xf6c   :  { %20551 = vmatprep.subr.bf16.mxu0 %v24827_v33  ;;  %20571 = vmatprep.subr.bf16.mxu1 %v24827_v33 }
 0xf73   :  { %20552 = vmatpush3.bf16.xpose.msra.mxu0 %v21681_v1  ;;  %20572 = vmatpush3.bf16.xpose.msra.mxu1 %v21682_v39 }
 0xf74   :  { %20553 = vmatprep.subr.bf16.mxu0 %v24827_v33  ;;  %20573 = vmatprep.subr.bf16.mxu1 %v24827_v33 }
 0xf7b   :  { %20554 = vmatpush3.bf16.xpose.msra.mxu0 %v21683_v46  ;;  %20574 = vmatpush3.bf16.xpose.msra.mxu1 %v21684_v44  ;;  %v21687_v46 = vld [vmem:[#allocation7 + $0x1eb0] sm:$0xff]  }
 0xf7c   :  { %20579 = vmatprep.subr.bf16.mxu0 %v24827_v33  ;;  %20599 = vmatprep.subr.bf16.mxu1 %v24827_v33 }
 0xf82   :  { %v12374_v61 = vpop.f32.mrf.mxu0  ;;  %20556 = vmatmul.mubr.bf16.vlgmr.msra.gmra.mxu0 %v23855_v51  ;;  %v12463_v4 = vpop.f32.mrf.mxu1  ;;  %20576 = vmatmul.mubr.bf16.vlgmr.msra.gmra.mxu1 %v23855_v51 }
 0xf83   :  { %v13770_v45 = vmul.f32 %v22014_v7, %v12374_v61  ;;  %20580 = vmatpush3.bf16.xpose.msra.mxu0 %v21685_v50  ;;  %20600 = vmatpush3.bf16.xpose.msra.mxu1 %v21686_v59  ;;  %v13772_v2 = vmul.f32 %v22014_v7, %v12463_v4  ;;  %v21688_v50 = vld [vmem:[#allocation7 + $0x1ef0] sm:$0xff]   ;;  %v21690_v4 = vld [vmem:[#allocation7 + $0x1ee8] sm:$0xff]  }
 0xf84   :  { %v20437_v10 = vpop.f32.mrf.mxu0  ;;  %20581 = vmatprep.subr.bf16.mxu0 %v24827_v33  ;;  %v20457_v43 = vpop.f32.mrf.mxu1  ;;  %20601 = vmatprep.subr.bf16.mxu1 %v24827_v33 }
 0xf85   :  { %14254 = vadd.xlane.f32.xlu0 %v13770_v45  ;;  %20595 = vmatprep.mubr.msk.bf16.mxu0 %vm21861_vm0, %v24827_v33  ;;  %v21689_v45 = vld [vmem:[#allocation7 + $0x1ea8] sm:$0xff]   ;;  %v21691_v10 = vld [vmem:[#allocation7 + $0x1ea0] sm:$0xff]  }
 0xf86   :  { %v12377_v3 = vpop.f32.mrf.mxu0  ;;  %20615 = vmatprep.mubr.msk.bf16.mxu1 %vm21861_vm0, %v24827_v33  ;;  %v12466_v1 = vpop.f32.mrf.mxu1  ;;  %v21692_v43 = vld [vmem:[#allocation7 + $0x1ee0] sm:$0xff]  }
 0xf87   :  { %v13771_v39 = vmul.f32 %v22021_v12, %v12377_v3  ;;  %v13773_v61 = vmul.f32 %v22021_v12, %v12466_v1  ;;  %v21694_v3 = vld [vmem:[#allocation7 + $0x1ed8] sm:$0xff]   ;;  %v21695_v1 = vld [vmem:[#allocation7 + $0x1e90] sm:$0xff]  }
 0xf88   :  { %v20438_v44 = vpop.f32.mrf.mxu0  ;;  %v20458_v59 = vpop.f32.mrf.mxu1 }
 0xf89   :  { %14256 = vadd.xlane.f32.xlu1 %v13771_v39  ;;  %14258 = vadd.xlane.f32.xlu0 %v13772_v2  ;;  %v21693_v2 = vld [vmem:[#allocation7 + $0x1e98] sm:$0xff]   ;;  %v21696_v39 = vld [vmem:[#allocation7 + $0x1ed0] sm:$0xff]   ;;  %v21698_v44 = vld [vmem:[#allocation7 + $0x1ec8] sm:$0xff]  }
 0xf8a   :  { %v21700_v59 = vld [vmem:[#allocation7 + $0x1ec0] sm:$0xff]  }
 0xf8b   :  { %20582 = vmatpush3.bf16.xpose.msra.mxu0 %v21687_v46  ;;  %20602 = vmatpush3.bf16.xpose.msra.mxu1 %v21688_v50  ;;  %v21697_v46 = vld [vmem:[#allocation7 + $0x1e88] sm:$0xff]   ;;  %v21699_v50 = vld [vmem:[#allocation7 + $0x1e80] sm:$0xff]  }
 0xf8c   :  { %20583 = vmatprep.subr.bf16.mxu0 %v24827_v33  ;;  %20603 = vmatprep.subr.bf16.mxu1 %v24827_v33 }
 0xf8d   :  { %14260 = vadd.xlane.f32.xlu1 %v13773_v61  ;;  %v21701_v61 = vld [vmem:[#allocation7 + $0x1f38] sm:$0xff]  }
 0xf93   :  { %20584 = vmatpush3.bf16.xpose.msra.mxu0 %v21689_v45  ;;  %20604 = vmatpush3.bf16.xpose.msra.mxu1 %v21690_v4  ;;  %v21702_v45 = vld [vmem:[#allocation7 + $0x1f78] sm:$0xff]  }
 0xf94   :  { %20585 = vmatprep.subr.bf16.mxu0 %v24827_v33  ;;  %20605 = vmatprep.subr.bf16.mxu1 %v24827_v33 }
 0xf9b   :  { %20586 = vmatpush3.bf16.xpose.msra.mxu0 %v21691_v10  ;;  %20606 = vmatpush3.bf16.xpose.msra.mxu1 %v21692_v43 }
 0xf9c   :  { %20587 = vmatprep.subr.bf16.mxu0 %v24827_v33  ;;  %20607 = vmatprep.subr.bf16.mxu1 %v24827_v33 }
 0xfa3   :  { %20588 = vmatpush3.bf16.xpose.msra.mxu0 %v21693_v2  ;;  %20608 = vmatpush3.bf16.xpose.msra.mxu1 %v21694_v3 }
 0xfa4   :  { %20589 = vmatprep.subr.bf16.mxu0 %v24827_v33  ;;  %20609 = vmatprep.subr.bf16.mxu1 %v24827_v33 }
 0xfab   :  { %20590 = vmatpush3.bf16.xpose.msra.mxu0 %v21695_v1  ;;  %20610 = vmatpush3.bf16.xpose.msra.mxu1 %v21696_v39 }
 0xfac   :  { %20591 = vmatprep.subr.bf16.mxu0 %v24827_v33  ;;  %20611 = vmatprep.subr.bf16.mxu1 %v24827_v33 }
 0xfb3   :  { %20592 = vmatpush3.bf16.xpose.msra.mxu0 %v21697_v46  ;;  %20612 = vmatpush3.bf16.xpose.msra.mxu1 %v21698_v44 }
 0xfb4   :  { %20593 = vmatprep.subr.bf16.mxu0 %v24827_v33  ;;  %20613 = vmatprep.subr.bf16.mxu1 %v24827_v33 }
 0xfbb   :  { %20594 = vmatpush3.bf16.xpose.msra.mxu0 %v21699_v50  ;;  %20614 = vmatpush3.bf16.xpose.msra.mxu1 %v21700_v59  ;;  %v21703_v50 = vld [vmem:[#allocation7 + $0x1f30] sm:$0xff]  }
 0xfbc   :  { %20619 = vmatprep.subr.bf16.mxu0 %v24827_v33  ;;  %20639 = vmatprep.subr.bf16.mxu1 %v24827_v33 }
 0xfc2   :  { %v12552_v4 = vpop.f32.mrf.mxu0  ;;  %20596 = vmatmul.mubr.bf16.vlgmr.msra.gmra.mxu0 %v23855_v51  ;;  %v12641_v43 = vpop.f32.mrf.mxu1  ;;  %20616 = vmatmul.mubr.bf16.vlgmr.msra.gmra.mxu1 %v23855_v51 }
 0xfc3   :  { %v13774_v10 = vmul.f32 %v22014_v7, %v12552_v4  ;;  %20620 = vmatpush3.bf16.xpose.msra.mxu0 %v21701_v61  ;;  %20640 = vmatpush3.bf16.xpose.msra.mxu1 %v21702_v45  ;;  %v13776_v3 = vmul.f32 %v22014_v7, %v12641_v43  ;;  %v21704_v61 = vld [vmem:[#allocation7 + $0x1f70] sm:$0xff]   ;;  %v21706_v43 = vld [vmem:[#allocation7 + $0x1f68] sm:$0xff]  }
 0xfc4   :  { %v20477_v2 = vpop.f32.mrf.mxu0  ;;  %20621 = vmatprep.subr.bf16.mxu0 %v24827_v33  ;;  %v20497_v1 = vpop.f32.mrf.mxu1  ;;  %20641 = vmatprep.subr.bf16.mxu1 %v24827_v33 }
 0xfc5   :  { %14262 = vadd.xlane.f32.xlu0 %v13774_v10  ;;  %20635 = vmatprep.mubr.msk.bf16.mxu0 %vm21861_vm0, %v24827_v33  ;;  %v21705_v10 = vld [vmem:[#allocation7 + $0x1f28] sm:$0xff]   ;;  %v21707_v2 = vld [vmem:[#allocation7 + $0x1f20] sm:$0xff]  }
 0xfc6   :  { %v12555_v39 = vpop.f32.mrf.mxu0  ;;  %20655 = vmatprep.mubr.msk.bf16.mxu1 %vm21861_vm0, %v24827_v33  ;;  %v12644_v46 = vpop.f32.mrf.mxu1  ;;  %v21708_v1 = vld [vmem:[#allocation7 + $0x1f60] sm:$0xff]  }
 0xfc7   :  { %v13775_v44 = vmul.f32 %v22021_v12, %v12555_v39  ;;  %v13777_v4 = vmul.f32 %v22021_v12, %v12644_v46  ;;  %v21710_v39 = vld [vmem:[#allocation7 + $0x1f58] sm:$0xff]   ;;  %v21711_v46 = vld [vmem:[#allocation7 + $0x1f10] sm:$0xff]  }
 0xfc8   :  { %v20478_v59 = vpop.f32.mrf.mxu0  ;;  %v20498_v45 = vpop.f32.mrf.mxu1 }
 0xfc9   :  { %14264 = vadd.xlane.f32.xlu1 %v13775_v44  ;;  %14266 = vadd.xlane.f32.xlu0 %v13776_v3  ;;  %v21709_v3 = vld [vmem:[#allocation7 + $0x1f18] sm:$0xff]   ;;  %v21712_v44 = vld [vmem:[#allocation7 + $0x1f50] sm:$0xff]   ;;  %v21714_v59 = vld [vmem:[#allocation7 + $0x1f48] sm:$0xff]  }
 0xfca   :  { %v21716_v45 = vld [vmem:[#allocation7 + $0x1f40] sm:$0xff]  }
 0xfcb   :  { %20622 = vmatpush3.bf16.xpose.msra.mxu0 %v21703_v50  ;;  %20642 = vmatpush3.bf16.xpose.msra.mxu1 %v21704_v61  ;;  %v21713_v50 = vld [vmem:[#allocation7 + $0x1f08] sm:$0xff]   ;;  %v21715_v61 = vld [vmem:[#allocation7 + $0x1f00] sm:$0xff]  }
 0xfcc   :  { %20623 = vmatprep.subr.bf16.mxu0 %v24827_v33  ;;  %20643 = vmatprep.subr.bf16.mxu1 %v24827_v33 }
 0xfcd   :  { %14268 = vadd.xlane.f32.xlu1 %v13777_v4  ;;  %v21717_v4 = vld [vmem:[#allocation7 + $0x1fb8] sm:$0xff]  }
 0xfd3   :  { %20624 = vmatpush3.bf16.xpose.msra.mxu0 %v21705_v10  ;;  %20644 = vmatpush3.bf16.xpose.msra.mxu1 %v21706_v43  ;;  %v21718_v10 = vld [vmem:[#allocation7 + $0x1ff8] sm:$0xff]  }
 0xfd4   :  { %20625 = vmatprep.subr.bf16.mxu0 %v24827_v33  ;;  %20645 = vmatprep.subr.bf16.mxu1 %v24827_v33 }
 0xfdb   :  { %20626 = vmatpush3.bf16.xpose.msra.mxu0 %v21707_v2  ;;  %20646 = vmatpush3.bf16.xpose.msra.mxu1 %v21708_v1 }
 0xfdc   :  { %20627 = vmatprep.subr.bf16.mxu0 %v24827_v33  ;;  %20647 = vmatprep.subr.bf16.mxu1 %v24827_v33 }
 0xfe3   :  { %20628 = vmatpush3.bf16.xpose.msra.mxu0 %v21709_v3  ;;  %20648 = vmatpush3.bf16.xpose.msra.mxu1 %v21710_v39 }
 0xfe4   :  { %20629 = vmatprep.subr.bf16.mxu0 %v24827_v33  ;;  %20649 = vmatprep.subr.bf16.mxu1 %v24827_v33 }
 0xfeb   :  { %20630 = vmatpush3.bf16.xpose.msra.mxu0 %v21711_v46  ;;  %20650 = vmatpush3.bf16.xpose.msra.mxu1 %v21712_v44 }
 0xfec   :  { %20631 = vmatprep.subr.bf16.mxu0 %v24827_v33  ;;  %20651 = vmatprep.subr.bf16.mxu1 %v24827_v33 }
 0xff3   :  { %20632 = vmatpush3.bf16.xpose.msra.mxu0 %v21713_v50  ;;  %20652 = vmatpush3.bf16.xpose.msra.mxu1 %v21714_v59 }
 0xff4   :  { %20633 = vmatprep.subr.bf16.mxu0 %v24827_v33  ;;  %20653 = vmatprep.subr.bf16.mxu1 %v24827_v33 }
 0xffb   :  { %20634 = vmatpush3.bf16.xpose.msra.mxu0 %v21715_v61  ;;  %20654 = vmatpush3.bf16.xpose.msra.mxu1 %v21716_v45  ;;  %v21719_v61 = vld [vmem:[#allocation7 + $0x1fb0] sm:$0xff]  }
 0xffc   :  { %20659 = vmatprep.subr.bf16.mxu0 %v24827_v33  ;;  %20679 = vmatprep.subr.bf16.mxu1 %v24827_v33 }
0x1002   :  { %v12730_v43 = vpop.f32.mrf.mxu0  ;;  %20636 = vmatmul.mubr.bf16.vlgmr.msra.gmra.mxu0 %v23855_v51  ;;  %v12819_v1 = vpop.f32.mrf.mxu1  ;;  %20656 = vmatmul.mubr.bf16.vlgmr.msra.gmra.mxu1 %v23855_v51 }
0x1003   :  { %v13778_v2 = vmul.f32 %v22014_v7, %v12730_v43  ;;  %20660 = vmatpush3.bf16.xpose.msra.mxu0 %v21717_v4  ;;  %20680 = vmatpush3.bf16.xpose.msra.mxu1 %v21718_v10  ;;  %v13780_v39 = vmul.f32 %v22014_v7, %v12819_v1  ;;  %v21720_v4 = vld [vmem:[#allocation7 + $0x1ff0] sm:$0xff]   ;;  %v21722_v1 = vld [vmem:[#allocation7 + $0x1fe8] sm:$0xff]  }
0x1004   :  { %v20517_v3 = vpop.f32.mrf.mxu0  ;;  %20661 = vmatprep.subr.bf16.mxu0 %v24827_v33  ;;  %v20537_v46 = vpop.f32.mrf.mxu1  ;;  %20681 = vmatprep.subr.bf16.mxu1 %v24827_v33 }
0x1005   :  { %14270 = vadd.xlane.f32.xlu0 %v13778_v2  ;;  %20675 = vmatprep.mubr.msk.bf16.mxu0 %vm21861_vm0, %v24827_v33  ;;  %v21721_v2 = vld [vmem:[#allocation7 + $0x1fa8] sm:$0xff]   ;;  %v21723_v3 = vld [vmem:[#allocation7 + $0x1fa0] sm:$0xff]  }
0x1006   :  { %v12733_v44 = vpop.f32.mrf.mxu0  ;;  %20695 = vmatprep.mubr.msk.bf16.mxu1 %vm21861_vm0, %v24827_v33  ;;  %v12822_v50 = vpop.f32.mrf.mxu1  ;;  %v21724_v46 = vld [vmem:[#allocation7 + $0x1fe0] sm:$0xff]  }
0x1007   :  { %v13779_v59 = vmul.f32 %v22021_v12, %v12733_v44  ;;  %v13781_v43 = vmul.f32 %v22021_v12, %v12822_v50  ;;  %v21726_v44 = vld [vmem:[#allocation7 + $0x1fd8] sm:$0xff]   ;;  %v21727_v50 = vld [vmem:[#allocation7 + $0x1f90] sm:$0xff]  }
0x1008   :  { %v20518_v45 = vpop.f32.mrf.mxu0  ;;  %v20538_v10 = vpop.f32.mrf.mxu1 }
0x1009   :  { %14272 = vadd.xlane.f32.xlu1 %v13779_v59  ;;  %14274 = vadd.xlane.f32.xlu0 %v13780_v39  ;;  %v21725_v39 = vld [vmem:[#allocation7 + $0x1f98] sm:$0xff]   ;;  %v21728_v59 = vld [vmem:[#allocation7 + $0x1fd0] sm:$0xff]   ;;  %v21730_v45 = vld [vmem:[#allocation7 + $0x1fc8] sm:$0xff]  }
0x100a   :  { %v21732_v10 = vld [vmem:[#allocation7 + $0x1fc0] sm:$0xff]  }
0x100b   :  { %20662 = vmatpush3.bf16.xpose.msra.mxu0 %v21719_v61  ;;  %20682 = vmatpush3.bf16.xpose.msra.mxu1 %v21720_v4  ;;  %v21729_v61 = vld [vmem:[#allocation7 + $0x1f88] sm:$0xff]   ;;  %v21731_v4 = vld [vmem:[#allocation7 + $0x1f80] sm:$0xff]  }
0x100c   :  { %20663 = vmatprep.subr.bf16.mxu0 %v24827_v33  ;;  %20683 = vmatprep.subr.bf16.mxu1 %v24827_v33 }
0x100d   :  { %14276 = vadd.xlane.f32.xlu1 %v13781_v43 }
0x1013   :  { %20664 = vmatpush3.bf16.xpose.msra.mxu0 %v21721_v2  ;;  %20684 = vmatpush3.bf16.xpose.msra.mxu1 %v21722_v1 }
0x1014   :  { %20665 = vmatprep.subr.bf16.mxu0 %v24827_v33  ;;  %20685 = vmatprep.subr.bf16.mxu1 %v24827_v33 }
0x101b   :  { %20666 = vmatpush3.bf16.xpose.msra.mxu0 %v21723_v3  ;;  %20686 = vmatpush3.bf16.xpose.msra.mxu1 %v21724_v46 }
0x101c   :  { %20667 = vmatprep.subr.bf16.mxu0 %v24827_v33  ;;  %20687 = vmatprep.subr.bf16.mxu1 %v24827_v33 }
0x1023   :  { %20668 = vmatpush3.bf16.xpose.msra.mxu0 %v21725_v39  ;;  %20688 = vmatpush3.bf16.xpose.msra.mxu1 %v21726_v44 }
0x1024   :  { %20669 = vmatprep.subr.bf16.mxu0 %v24827_v33  ;;  %20689 = vmatprep.subr.bf16.mxu1 %v24827_v33 }
0x102b   :  { %20670 = vmatpush3.bf16.xpose.msra.mxu0 %v21727_v50  ;;  %20690 = vmatpush3.bf16.xpose.msra.mxu1 %v21728_v59 }
0x102c   :  { %20671 = vmatprep.subr.bf16.mxu0 %v24827_v33  ;;  %20691 = vmatprep.subr.bf16.mxu1 %v24827_v33 }
0x1033   :  { %20672 = vmatpush3.bf16.xpose.msra.mxu0 %v21729_v61  ;;  %20692 = vmatpush3.bf16.xpose.msra.mxu1 %v21730_v45 }
0x1034   :  { %20673 = vmatprep.subr.bf16.mxu0 %v24827_v33  ;;  %20693 = vmatprep.subr.bf16.mxu1 %v24827_v33 }
0x103b   :  { %20674 = vmatpush3.bf16.xpose.msra.mxu0 %v21731_v4  ;;  %20694 = vmatpush3.bf16.xpose.msra.mxu1 %v21732_v10 }
0x1042   :  { %v12908_v43 = vpop.f32.mrf.mxu0  ;;  %20676 = vmatmul.mubr.bf16.vlgmr.msra.gmra.mxu0 %v23855_v51  ;;  %v12997_v1 = vpop.f32.mrf.mxu1  ;;  %20696 = vmatmul.mubr.bf16.vlgmr.msra.gmra.mxu1 %v23855_v51 }
0x1043   :  { %v13782_v2 = vmul.f32 %v22014_v7, %v12908_v43  ;;  %v13784_v46 = vmul.f32 %v22014_v7, %v12997_v1 }
0x1044   :  { %v20557_v3 = vpop.f32.mrf.mxu0  ;;  %v20577_v39 = vpop.f32.mrf.mxu1 }
0x1045   :  { %14278 = vadd.xlane.f32.xlu0 %v13782_v2 }
0x1046   :  { %v12911_v44 = vpop.f32.mrf.mxu0  ;;  %v13000_v50 = vpop.f32.mrf.mxu1 }
0x1047   :  { %v13783_v33 = vmul.f32 %v22021_v12, %v12911_v44  ;;  %v13785_v45 = vmul.f32 %v22021_v12, %v13000_v50 }
0x1048   :  { %v20558_v59 = vpop.f32.mrf.mxu0  ;;  %v20578_v61 = vpop.f32.mrf.mxu1 }
0x1049   :  { %14280 = vadd.xlane.f32.xlu1 %v13783_v33  ;;  %14282 = vadd.xlane.f32.xlu0 %v13784_v46 }
0x104d   :  { %14284 = vadd.xlane.f32.xlu1 %v13785_v45 }
0x1082   :  { %v13086_v4 = vpop.f32.mrf.mxu0  ;;  %v13175_v51 = vpop.f32.mrf.mxu1 }
0x1083   :  { %v13786_v10 = vmul.f32 %v22014_v7, %v13086_v4  ;;  %v13788_v1 = vmul.f32 %v22014_v7, %v13175_v51 }
0x1084   :  { %v20597_v43 = vpop.f32.mrf.mxu0  ;;  %v20617_v3 = vpop.f32.mrf.mxu1 }
0x1085   :  { %14286 = vadd.xlane.f32.xlu0 %v13786_v10 }
0x1086   :  { %v13089_v2 = vpop.f32.mrf.mxu0  ;;  %v13178_v39 = vpop.f32.mrf.mxu1 }
0x1087   :  { %v13787_v44 = vmul.f32 %v22021_v12, %v13089_v2  ;;  %v13789_v46 = vmul.f32 %v22021_v12, %v13178_v39 }
0x1088   :  { %v20598_v59 = vpop.f32.mrf.mxu0  ;;  %v20618_v61 = vpop.f32.mrf.mxu1 }
0x1089   :  { %14288 = vadd.xlane.f32.xlu1 %v13787_v44  ;;  %14290 = vadd.xlane.f32.xlu0 %v13788_v1 }
0x108d   :  { %14292 = vadd.xlane.f32.xlu1 %v13789_v46 }
0x10c2   :  { %v13264_v50 = vpop.f32.mrf.mxu0  ;;  %v13353_v45 = vpop.f32.mrf.mxu1 }
0x10c3   :  { %v13790_v33 = vmul.f32 %v22014_v7, %v13264_v50  ;;  %v13792_v51 = vmul.f32 %v22014_v7, %v13353_v45  ;;  %v14582_v50 = vrot.slane %v22667_v36, %v23465_v14  ;;  %v14576_v45 = vrot.slane %v22688_v54, %v23467_v53 }
0x10c4   :  { %v20637_v4 = vpop.f32.mrf.mxu0  ;;  %v20657_v43 = vpop.f32.mrf.mxu1  ;;  %v14604_v36 = vrot.slane %v22731_v35, %v23467_v53  ;;  %v14613_v54 = vrot.slane %v22737_v41, %v23467_v53  ;;  %v14622_v35 = vrot.slane %v22765_v11, %v23467_v53 }
0x10c5   :  { %14294 = vadd.xlane.f32.xlu0 %v13790_v33  ;;  %v14586_v33 = vrot.slane %v22697_v58, %v23467_v53  ;;  %v14591_v58 = vrot.slane %v22699_v0, %v23465_v14  ;;  %v14609_v0 = vrot.slane %v22733_v34, %v23465_v14  ;;  %v24079_v41 = vpop.xlane.xlu1 %14204 }
0x10c6   :  { %v13267_v10 = vpop.f32.mrf.mxu0  ;;  %v13356_v3 = vpop.f32.mrf.mxu1 }
0x10c7   :  { %v13791_v2 = vmul.f32 %v22021_v12, %v13267_v10  ;;  %v13793_v1 = vmul.f32 %v22021_v12, %v13356_v3  ;;  %v14571_v3 = vrot.slane %v22663_v32, %v23465_v14  ;;  %v14600_v32 = vrot.slane %v22722_v27, %v23465_v14 }
0x10c8   :  { %v20638_v59 = vpop.f32.mrf.mxu0  ;;  %v20658_v61 = vpop.f32.mrf.mxu1  ;;  %v14631_v27 = vrot.slane %v22771_v17, %v23467_v53 }
0x10c9   :  { %14296 = vadd.xlane.f32.xlu1 %v13791_v2  ;;  %14298 = vadd.xlane.f32.xlu0 %v13792_v51  ;;  %v14595_v51 = vrot.slane %v22703_v5, %v23467_v53  ;;  %v14578_v61 = vsel %vm14577_vm1, %v14576_v45, %v14571_v3  ;;  %v24088_v45 = vpop.xlane.xlu0 %14202  ;;  %v14636_v3 = vrot.slane %v22790_v42, %v23465_v14 }
0x10ca   :  { %v14654_v42 = vrot.slane %v22824_v23, %v23465_v14  ;;  %v14672_v23 = vrot.slane %v22858_v8, %v23465_v14 }
0x10cd   :  { %14300 = vadd.xlane.f32.xlu1 %v13793_v1 }
0x1102   :  { %v13442_v39 = vpop.f32.mrf.mxu0  ;;  %v13531_v46 = vpop.f32.mrf.mxu1 }
0x1103   :  { %v13794_v44 = vmul.f32 %v22014_v7, %v13442_v39  ;;  %v13796_v43 = vmul.f32 %v22014_v7, %v13531_v46  ;;  %v14587_v7 = vsel %vm14577_vm1, %v14586_v33, %v14582_v50  ;;  %v14596_v39 = vsel %vm14577_vm1, %v14595_v51, %v14591_v58  ;;  %v24108_v58 = vpop.xlane.xlu0 %14206 }
0x1104   :  { %v20677_v4 = vpop.f32.mrf.mxu0  ;;  %v20697_v10 = vpop.f32.mrf.mxu1  ;;  %v14605_v46 = vsel %vm14577_vm1, %v14604_v36, %v14600_v32  ;;  %v14618_v50 = vrot.slane %v22756_v62, %v23465_v14  ;;  %v15723_v11 = vsel %vm15722_vm2, %v14587_v7, %v14578_v61  ;;  %v14614_v33 = vsel %vm14577_vm1, %v14613_v54, %v14609_v0 }
0x1105   :  { %14302 = vadd.xlane.f32.xlu0 %v13794_v44  ;;  %v15725_v4 = vsel %vm15724_vm3, %v14596_v39, %v15723_v11  ;;  %v14640_v62 = vrot.slane %v22799_v48, %v23467_v53  ;;  %v24098_v10 = vpop.xlane.xlu1 %14208  ;;  %v14649_v54 = vrot.slane %v22805_v56, %v23467_v53  ;;  %v14645_v61 = vrot.slane %v22801_v52, %v23465_v14 }
0x1106   :  { %v13445_v2 = vpop.f32.mrf.mxu0  ;;  %v13534_v5 = vpop.f32.mrf.mxu1  ;;  %v14623_v51 = vsel %vm14577_vm1, %v14622_v35, %v14618_v50  ;;  %v15727_v17 = vsel %vm15726_vm4, %v14605_v46, %v15725_v4  ;;  %v14730_v39 = vrot.slane %v22971_v20, %v23467_v53  ;;  %v14726_v20 = vrot.slane %v22962_v63, %v23465_v14 }
0x1107   :  { %v13795_v59 = vmul.f32 %v22021_v12, %v13445_v2  ;;  %v13797_v34 = vmul.f32 %v22021_v12, %v13534_v5  ;;  %v14658_v12 = vrot.slane %v22833_v30, %v23467_v53  ;;  %v15729_v2 = vsel %vm15728_vm5, %v14614_v33, %v15727_v17  ;;  %v24152_v46 = vpop.xlane.xlu0 %14210 }
0x1108   :  { %v20678_v1 = vpop.f32.mrf.mxu0  ;;  %v20698_v44 = vpop.f32.mrf.mxu1  ;;  %v15731_v48 = vsel %vm15730_vm6, %v14623_v51, %v15729_v2  ;;  %v14676_v30 = vrot.slane %v22867_v19, %v23467_v53  ;;  %v14663_v5 = vrot.slane %v22835_v37, %v23465_v14  ;;  %v14694_v19 = vrot.slane %v22901_v13, %v23467_v53  ;;  %v24884_v2 = vld [vmem:[#allocation22_spill] sm:$0xff] }
0x1109   :  { %14306 = vadd.xlane.f32.xlu0 %v13796_v43  ;;  %14304 = vadd.xlane.f32.xlu1 %v13795_v59  ;;  %v14627_v43 = vrot.slane %v22767_v9, %v23465_v14  ;;  %v14667_v9 = vrot.slane %v22839_v40, %v23467_v53  ;;  %v14641_v59 = vsel %vm14577_vm1, %v14640_v62, %v14636_v3  ;;  %v24135_v35 = vpop.xlane.xlu1 %14212 }
0x110a   :  { %v14685_v40 = vrot.slane %v22873_v28, %v23467_v53  ;;  %v14659_v56 = vsel %vm14577_vm1, %v14658_v12, %v14654_v42  ;;  %v14681_v37 = vrot.slane %v22869_v24, %v23465_v14  ;;  %v14703_v28 = vrot.slane %v22907_v22, %v23467_v53  ;;  %v24886_v42 = vld [vmem:[#allocation24_spill] sm:$0xff] }
0x110b   :  { %v14632_v36 = vsel %vm14577_vm1, %v14631_v27, %v14627_v43  ;;  %v14668_v32 = vsel %vm14577_vm1, %v14667_v9, %v14663_v5  ;;  %v14650_v1 = vsel %vm14577_vm1, %v14649_v54, %v14645_v61  ;;  %v14677_v8 = vsel %vm14577_vm1, %v14676_v30, %v14672_v23  ;;  %v24179_v62 = vpop.xlane.xlu0 %14214  ;;  %v24887_v5 = vld [vmem:[#allocation20_spill] sm:$0xff]  ;;  %v24889_v61 = vld [vmem:[#allocation26_spill] sm:$0xff] }
0x110c   :  { %v15733_v7 = vsel %vm15732_vm7, %v14632_v36, %v15731_v48  ;;  %v14690_v13 = vrot.slane %v22892_v60, %v23465_v14  ;;  %v15736_v24 = vsel %vm15722_vm2, %v14659_v56, %v14650_v1  ;;  %v14686_v0 = vsel %vm14577_vm1, %v14685_v40, %v14681_v37  ;;  %v24890_v37 = vld [vmem:[#allocation16_spill] sm:$0xff]  ;;  %v24891_v1 = vld [vmem:[#allocation23_spill] sm:$0xff] }
0x110d   :  { %14308 = vadd.xlane.f32.xlu1 %v13797_v34  ;;  %v24138_v52 = vsel %vm15734_vm8, %v14641_v59, %v15733_v7  ;;  %v14699_v22 = vrot.slane %v22903_v16, %v23465_v14  ;;  %v14739_v44 = vrot.slane %v22977_v38, %v23467_v53  ;;  %v15737_v50 = vsel %vm15724_vm3, %v14668_v32, %v15736_v24  ;;  %v24165_v33 = vpop.xlane.xlu1 %14216  ;;  %v24893_v24 = vld [vmem:[#allocation19_spill] sm:$0xff] }
0x110e   :  { %v14695_v27 = vsel %vm14577_vm1, %v14694_v19, %v14690_v13  ;;  %v14721_v60 = vrot.slane %v22941_v25, %v23467_v53  ;;  %v15738_v11 = vsel %vm15726_vm4, %v14677_v8, %v15737_v50  ;;  %v14735_v16 = vrot.slane %v22973_v29, %v23465_v14  ;;  %v24892_v13 = vld [vmem:[#allocation18_spill] sm:$0xff] }
0x110f   :  { %v14748_v38 = vrot.slane %v23005_v21, %v23467_v53  ;;  %v14704_v34 = vsel %vm14577_vm1, %v14703_v28, %v14699_v22  ;;  %v14712_v4 = vrot.slane %v22935_v6, %v23467_v53  ;;  %v14717_v25 = vrot.slane %v22937_v15, %v23465_v14 }
0x1110   :  { %v14731_v63 = vsel %vm14577_vm1, %v14730_v39, %v14726_v20  ;;  %v15739_v51 = vsel %vm15728_vm5, %v14686_v0, %v15738_v11  ;;  %v14740_v43 = vsel %vm14577_vm1, %v14739_v44, %v14735_v16  ;;  %v14744_v29 = vrot.slane %v22996_v26, %v23465_v14  ;;  %v24894_v44 = vld [vmem:[#allocation25_spill] sm:$0xff] }
0x1111   :  { %v14757_v21 = vrot.slane %v23011_v55, %v23467_v53  ;;  %v15740_v17 = vsel %vm15730_vm6, %v14695_v27, %v15739_v51  ;;  %v14708_v6 = vrot.slane %v22926_v57, %v23465_v14  ;;  %v14722_v15 = vsel %vm14577_vm1, %v14721_v60, %v14717_v25  ;;  %v24885_v57 = vld [vmem:[#allocation14_spill] sm:$0xff]  ;;  %v24207_v23 = vpop.xlane.xlu1 %14220  ;;  %v24222_v27 = vpop.xlane.xlu0 %14218  ;;  %v24895_v60 = vld [vmem:[#allocation15_spill] sm:$0xff]  ;;  %v24897_v51 = vld [vmem:[#allocation28_spill] sm:$0xff] }
0x1112   :  { %v14766_v3 = vrot.slane %v23039_v18, %v23467_v53  ;;  %v15741_v12 = vsel %vm15732_vm7, %v14704_v34, %v15740_v17  ;;  %v15743_v36 = vsel %vm15722_vm2, %v14731_v63, %v14722_v15  ;;  %v14749_v26 = vsel %vm14577_vm1, %v14748_v38, %v14744_v29  ;;  %v24896_v34 = vld [vmem:[#allocation17_spill] sm:$0xff]  ;;  %v24898_v17 = vld [vmem:[#allocation30_spill] sm:$0xff] }
0x1113   :  { %v14753_v55 = vrot.slane %v23007_v47, %v23465_v14  ;;  %v14802_v9 = vrot.slane %v24884_v2, %v23467_v53  ;;  %v15744_v48 = vsel %vm15724_vm3, %v14740_v43, %v15743_v36  ;;  %v14762_v54 = vrot.slane %v24885_v57, %v23465_v14  ;;  %v24888_v47 = vld [vmem:[#allocation21_spill] sm:$0xff]  ;;  %v24899_v36 = vld [vmem:[#allocation27_spill] sm:$0xff] }
0x1114   :  { %v14811_v18 = vrot.slane %v24886_v42, %v23467_v53  ;;  %v14713_v30 = vsel %vm14577_vm1, %v14712_v4, %v14708_v6  ;;  %v14793_v40 = vrot.slane %v24887_v5, %v23467_v53  ;;  %v14798_v7 = vrot.slane %v24888_v47, %v23465_v14  ;;  %v24904_v47 = vld [vmem:[#allocation36_spill] sm:$0xff] }
0x1115   :  { %v14758_v59 = vsel %vm14577_vm1, %v14757_v21, %v14753_v55  ;;  %v14820_v56 = vrot.slane %v24889_v61, %v23467_v53  ;;  %v15745_v19 = vsel %vm15726_vm4, %v14749_v26, %v15744_v48  ;;  %v14767_v32 = vsel %vm14577_vm1, %v14766_v3, %v14762_v54  ;;  %v24237_v29 = vpop.xlane.xlu1 %14224  ;;  %v24900_v55 = vld [vmem:[#allocation38_spill] sm:$0xff]  ;;  %v24901_v54 = vld [vmem:[#allocation29_spill] sm:$0xff] }
0x1116   :  { %v14775_v28 = vrot.slane %v24890_v37, %v23467_v53  ;;  %v14807_v8 = vrot.slane %v24891_v1, %v23465_v14  ;;  %v14784_v39 = vrot.slane %v24892_v13, %v23467_v53  ;;  %v14789_v0 = vrot.slane %v24893_v24, %v23465_v14  ;;  %v24905_v61 = vld [vmem:[#allocation37_spill] sm:$0xff] }
0x1117   :  { %v14803_v22 = vsel %vm14577_vm1, %v14802_v9, %v14798_v7  ;;  %v14816_v50 = vrot.slane %v24894_v44, %v23465_v14  ;;  %v14771_v20 = vrot.slane %v24895_v60, %v23465_v14  ;;  %v24228_v16 = vsel %vm15734_vm8, %v14713_v30, %v15741_v12  ;;  %v24249_v9 = vpop.xlane.xlu0 %14222 }
0x1118   :  { %v14812_v11 = vsel %vm14577_vm1, %v14811_v18, %v14807_v8  ;;  %v15746_v38 = vsel %vm15728_vm5, %v14758_v59, %v15745_v19  ;;  %v14780_v4 = vrot.slane %v24896_v34, %v23465_v14  ;;  %v14794_v25 = vsel %vm14577_vm1, %v14793_v40, %v14789_v0  ;;  %v24902_v18 = vld [vmem:[#allocation32_spill] sm:$0xff]  ;;  %v24906_v19 = vld [vmem:[#allocation42_spill] sm:$0xff]  ;;  %v24910_v0 = vld [vmem:[#allocation35_spill] sm:$0xff] }
0x1119   :  { %v14821_v63 = vsel %vm14577_vm1, %v14820_v56, %v14816_v50  ;;  %v14829_v43 = vrot.slane %v24897_v51, %v23467_v53  ;;  %v15750_v21 = vsel %vm15722_vm2, %v14803_v22, %v14794_v25  ;;  %v14838_v6 = vrot.slane %v24898_v17, %v23467_v53  ;;  %v24903_v59 = vld [vmem:[#allocation40_spill] sm:$0xff]  ;;  %v24908_v8 = vld [vmem:[#allocation34_spill] sm:$0xff]  ;;  %v24911_v50 = vld [vmem:[#allocation41_spill] sm:$0xff] }
0x111a   :  { %v14776_v15 = vsel %vm14577_vm1, %v14775_v28, %v14771_v20  ;;  %v15747_v3 = vsel %vm15730_vm6, %v14767_v32, %v15746_v38  ;;  %v15751_v12 = vsel %vm15724_vm3, %v14812_v11, %v15750_v21  ;;  %v14825_v26 = vrot.slane %v24899_v36, %v23465_v14  ;;  %v24907_v28 = vld [vmem:[#allocation31_spill] sm:$0xff]  ;;  %v24912_v20 = vld [vmem:[#allocation44_spill] sm:$0xff]  ;;  %v24280_v38 = vpop.xlane.xlu1 %14228  ;;  %v24913_v34 = vld [vmem:[#allocation33_spill] sm:$0xff] }
0x111b   :  { %v14874_v2 = vrot.slane %v24900_v55, %v23467_v53  ;;  %v14785_v48 = vsel %vm14577_vm1, %v14784_v39, %v14780_v4  ;;  %v15752_v57 = vsel %vm15726_vm4, %v14821_v63, %v15751_v12  ;;  %v14834_v42 = vrot.slane %v24901_v54, %v23465_v14  ;;  %v24909_v39 = vld [vmem:[#allocation39_spill] sm:$0xff]  ;;  %v24915_v12 = vld [vmem:[#allocation46_spill] sm:$0xff] }
0x111c   :  { %v14847_v30 = vrot.slane %v24902_v18, %v23467_v53  ;;  %v14883_v5 = vrot.slane %v24903_v59, %v23467_v53  ;;  %v14830_v40 = vsel %vm14577_vm1, %v14829_v43, %v14825_v26  ;;  %v14865_v7 = vrot.slane %v24904_v47, %v23467_v53  ;;  %v24914_v17 = vld [vmem:[#allocation43_spill] sm:$0xff]  ;;  %v24293_v26 = vpop.xlane.xlu0 %14226 }
0x111d   :  { %v14870_v56 = vrot.slane %v24905_v61, %v23465_v14  ;;  %v14892_v32 = vrot.slane %v24906_v19, %v23467_v53  ;;  %v14839_v37 = vsel %vm14577_vm1, %v14838_v6, %v14834_v42  ;;  %v14843_v1 = vrot.slane %v24907_v28, %v23465_v14  ;;  %v24920_v28 = vld [vmem:[#allocation53_spill] sm:$0xff] }
0x111e   :  { %v14856_v13 = vrot.slane %v24908_v8, %v23467_v53  ;;  %v14879_v24 = vrot.slane %v24909_v39, %v23465_v14  ;;  %v14861_v22 = vrot.slane %v24910_v0, %v23465_v14  ;;  %v14888_v60 = vrot.slane %v24911_v50, %v23465_v14  ;;  %v24305_v47 = vpop.xlane.xlu1 %14232  ;;  %v24921_v8 = vld [vmem:[#allocation58_spill] sm:$0xff] }
0x111f   :  { %v14875_v44 = vsel %vm14577_vm1, %v14874_v2, %v14870_v56  ;;  %v14901_v11 = vrot.slane %v24912_v20, %v23467_v53  ;;  %v14852_v4 = vrot.slane %v24913_v34, %v23465_v14  ;;  %v14848_v63 = vsel %vm14577_vm1, %v14847_v30, %v14843_v1  ;;  %v24916_v30 = vld [vmem:[#allocation45_spill] sm:$0xff] }
0x1120   :  { %v14884_v25 = vsel %vm14577_vm1, %v14883_v5, %v14879_v24  ;;  %v15753_v51 = vsel %vm15728_vm5, %v14830_v40, %v15752_v57  ;;  %v14866_v43 = vsel %vm14577_vm1, %v14865_v7, %v14861_v22  ;;  %v14893_v21 = vsel %vm14577_vm1, %v14892_v32, %v14888_v60  ;;  %v24917_v5 = vld [vmem:[#allocation54_spill] sm:$0xff]  ;;  %v24919_v32 = vld [vmem:[#allocation52_spill] sm:$0xff]  ;;  %v24321_v39 = vpop.xlane.xlu0 %14230  ;;  %v24924_v60 = vld [vmem:[#allocation51_spill] sm:$0xff] }
0x1121   :  { %v14897_v6 = vrot.slane %v24914_v17, %v23465_v14  ;;  %v14910_v36 = vrot.slane %v24915_v12, %v23467_v53  ;;  %v15757_v55 = vsel %vm15722_vm2, %v14875_v44, %v14866_v43  ;;  %v15748_v2 = vsel %vm15732_vm7, %v14776_v15, %v15747_v3  ;;  %v24918_v15 = vld [vmem:[#allocation56_spill] sm:$0xff]  ;;  %v24925_v34 = vld [vmem:[#allocation57_spill] sm:$0xff] }
0x1122   :  { %v14857_v54 = vsel %vm14577_vm1, %v14856_v13, %v14852_v4  ;;  %v15754_v57 = vsel %vm15730_vm6, %v14839_v37, %v15753_v51  ;;  %v15758_v42 = vsel %vm15724_vm3, %v14884_v25, %v15757_v55  ;;  %v14906_v59 = vrot.slane %v24916_v30, %v23465_v14  ;;  %v24922_v24 = vld [vmem:[#allocation48_spill] sm:$0xff]  ;;  %v24927_v51 = vld [vmem:[#allocation47_spill] sm:$0xff]  ;;  %v24931_v30 = vld [vmem:[#allocation49_spill] sm:$0xff] }
0x1123   :  { %v14902_v18 = vsel %vm14577_vm1, %v14901_v11, %v14897_v6  ;;  %v14946_v40 = vrot.slane %v24917_v5, %v23467_v53  ;;  %v15759_v7 = vsel %vm15726_vm4, %v14893_v21, %v15758_v42  ;;  %v14955_v3 = vrot.slane %v24918_v15, %v23467_v53  ;;  %v24926_v25 = vld [vmem:[#allocation60_spill] sm:$0xff]  ;;  %v24928_v21 = vld [vmem:[#allocation50_spill] sm:$0xff] }
0x1124   :  { %v24311_v61 = vsel %vm15734_vm8, %v14785_v48, %v15748_v2  ;;  %v15755_v56 = vsel %vm15732_vm7, %v14848_v63, %v15754_v57  ;;  %v14911_v19 = vsel %vm14577_vm1, %v14910_v36, %v14906_v59  ;;  %v14937_v37 = vrot.slane %v24919_v32, %v23467_v53  ;;  %v24923_v48 = vld [vmem:[#allocation55_spill] sm:$0xff]  ;;  %v24930_v57 = vld [vmem:[#allocation62_spill] sm:$0xff] }
0x1125   :  { %v14942_v1 = vrot.slane %v24920_v28, %v23465_v14  ;;  %v14964_v13 = vrot.slane %v24921_v8, %v23467_v53  ;;  %v14919_v0 = vrot.slane %v24922_v24, %v23467_v53  ;;  %v14951_v22 = vrot.slane %v24923_v48, %v23465_v14  ;;  %v24929_v2 = vld [vmem:[#allocation59_spill] sm:$0xff]  ;;  %v24936_v48 = vld [vmem:[#allocation66_spill] sm:$0xff] }
0x1126   :  { %v24328_v44 = vsel %vm15734_vm8, %v14857_v54, %v15755_v56  ;;  %v15760_v50 = vsel %vm15728_vm5, %v14902_v18, %v15759_v7  ;;  %v14933_v20 = vrot.slane %v24924_v60, %v23465_v14  ;;  %v14960_v4 = vrot.slane %v24925_v34, %v23465_v14  ;;  %v24350_v18 = vpop.xlane.xlu1 %14236  ;;  %v24937_v60 = vld [vmem:[#allocation68_spill] sm:$0xff] }
0x1127   :  { %v14947_v11 = vsel %vm14577_vm1, %v14946_v40, %v14942_v1  ;;  %v14973_v63 = vrot.slane %v24926_v25, %v23467_v53  ;;  %v14915_v43 = vrot.slane %v24927_v51, %v23465_v14  ;;  %v14928_v17 = vrot.slane %v24928_v21, %v23467_v53  ;;  %v24932_v40 = vld [vmem:[#allocation64_spill] sm:$0xff]  ;;  %v24364_v1 = vpop.xlane.xlu0 %14234  ;;  %v24940_v51 = vld [vmem:[#allocation65_spill] sm:$0xff] }
0x1128   :  { %v14956_v6 = vsel %vm14577_vm1, %v14955_v3, %v14951_v22  ;;  %v15761_v12 = vsel %vm15730_vm6, %v14911_v19, %v15760_v50  ;;  %v14938_v36 = vsel %vm14577_vm1, %v14937_v37, %v14933_v20  ;;  %v14965_v55 = vsel %vm14577_vm1, %v14964_v13, %v14960_v4  ;;  %v24933_v19 = vld [vmem:[#allocation61_spill] sm:$0xff]  ;;  %v24934_v37 = vld [vmem:[#allocation70_spill] sm:$0xff]  ;;  %v24935_v13 = vld [vmem:[#allocation63_spill] sm:$0xff] }
0x1129   :  { %v14969_v54 = vrot.slane %v24929_v2, %v23465_v14  ;;  %v14982_v42 = vrot.slane %v24930_v57, %v23467_v53  ;;  %v14924_v59 = vrot.slane %v24931_v30, %v23465_v14  ;;  %v15764_v5 = vsel %vm15722_vm2, %v14947_v11, %v14938_v36  ;;  %v24938_v11 = vld [vmem:[#allocation69_spill] sm:$0xff]  ;;  %v24939_v4 = vld [vmem:[#allocation72_spill] sm:$0xff]  ;;  %v24941_v36 = vld [vmem:[#allocation67_spill] sm:$0xff] }
0x112a   :  { %v14991_v7 = vrot.slane %v24932_v40, %v23467_v53  ;;  %v14920_v15 = vsel %vm14577_vm1, %v14919_v0, %v14915_v43  ;;  %v15765_v3 = vsel %vm15724_vm3, %v14956_v6, %v15764_v5  ;;  %v14978_v32 = vrot.slane %v24933_v19, %v23465_v14 }
0x112b   :  { %v14974_v56 = vsel %vm14577_vm1, %v14973_v63, %v14969_v54  ;;  %v15018_v28 = vrot.slane %v24934_v37, %v23467_v53  ;;  %v15766_v8 = vsel %vm15726_vm4, %v14965_v55, %v15765_v3  ;;  %v14987_v24 = vrot.slane %v24935_v13, %v23465_v14  ;;  %v24379_v63 = vpop.xlane.xlu1 %14240  ;;  %v24942_v54 = vld [vmem:[#allocation71_spill] sm:$0xff] }
0x112c   :  { %v15000_v0 = vrot.slane %v24936_v48, %v23467_v53  ;;  %v14929_v22 = vsel %vm14577_vm1, %v14928_v17, %v14924_v59  ;;  %v14983_v50 = vsel %vm14577_vm1, %v14982_v42, %v14978_v32  ;;  %v15009_v20 = vrot.slane %v24937_v60, %v23467_v53  ;;  %v24943_v42 = vld [vmem:[#allocation74_spill] sm:$0xff]  ;;  %v24394_v59 = vpop.xlane.xlu0 %14238 }
0x112d   :  { %v15014_v34 = vrot.slane %v24938_v11, %v23465_v14  ;;  %v15027_v25 = vrot.slane %v24939_v4, %v23467_v53  ;;  %v14996_v43 = vrot.slane %v24940_v51, %v23465_v14  ;;  %v15762_v21 = vsel %vm15732_vm7, %v14920_v15, %v15761_v12  ;;  %v24946_v32 = vld [vmem:[#allocation86_spill] sm:$0xff] }
0x112e   :  { %v14992_v17 = vsel %vm14577_vm1, %v14991_v7, %v14987_v24  ;;  %v15767_v6 = vsel %vm15728_vm5, %v14974_v56, %v15766_v8  ;;  %v15005_v55 = vrot.slane %v24941_v36, %v23465_v14  ;;  %v15023_v57 = vrot.slane %v24942_v54, %v23465_v14  ;;  %v24945_v56 = vld [vmem:[#allocation73_spill] sm:$0xff]  ;;  %v24947_v8 = vld [vmem:[#allocation75_spill] sm:$0xff]  ;;  %v24948_v24 = vld [vmem:[#allocation88_spill] sm:$0xff] }
0x112f   :  { %v15019_v2 = vsel %vm14577_vm1, %v15018_v28, %v15014_v34  ;;  %v15036_v30 = vrot.slane %v24943_v42, %v23467_v53  ;;  %v24399_v5 = vsel %vm15734_vm8, %v14929_v22, %v15762_v21  ;;  %v15001_v40 = vsel %vm14577_vm1, %v15000_v0, %v14996_v43  ;;  %v24951_v34 = vld [vmem:[#allocation90_spill] sm:$0xff] }
0x1130   :  { %v15768_v7 = vsel %vm15730_vm6, %v14983_v50, %v15767_v6  ;;  %v15010_v15 = vsel %vm14577_vm1, %v15009_v20, %v15005_v55  ;;  %v15028_v3 = vsel %vm14577_vm1, %v15027_v25, %v15023_v57  ;;  %v15032_v19 = vrot.slane %v24945_v56, %v23465_v14  ;;  %v24949_v50 = vld [vmem:[#allocation84_spill] sm:$0xff]  ;;  %v24950_v20 = vld [vmem:[#allocation85_spill] sm:$0xff]  ;;  %v24423_v25 = vpop.xlane.xlu1 %14244  ;;  %v24953_v6 = vld [vmem:[#allocation78_spill] sm:$0xff] }
0x1131   :  { %v15090_v37 = vrot.slane %v24946_v32, %v23467_v53  ;;  %v15771_v28 = vsel %vm15722_vm2, %v15019_v2, %v15010_v15  ;;  %v15041_v13 = vrot.slane %v24947_v8, %v23465_v14  ;;  %v15099_v48 = vrot.slane %v24948_v24, %v23467_v53  ;;  %v24954_v55 = vld [vmem:[#allocation83_spill] sm:$0xff]  ;;  %v24955_v57 = vld [vmem:[#allocation89_spill] sm:$0xff] }
0x1132   :  { %v15769_v0 = vsel %vm15732_vm7, %v14992_v17, %v15768_v7  ;;  %v15037_v22 = vsel %vm14577_vm1, %v15036_v30, %v15032_v19  ;;  %v15081_v60 = vrot.slane %v24949_v50, %v23467_v53  ;;  %v15086_v11 = vrot.slane %v24950_v20, %v23465_v14  ;;  %v24439_v30 = vpop.xlane.xlu0 %14242  ;;  %v24958_v56 = vld [vmem:[#allocation77_spill] sm:$0xff]  ;;  %v24960_v24 = vld [vmem:[#allocation79_spill] sm:$0xff] }
0x1133   :  { %v15108_v4 = vrot.slane %v24951_v34, %v23467_v53  ;;  %v15772_v51 = vsel %vm15724_vm3, %v15028_v3, %v15771_v28  ;;  %v24430_v17 = vsel %vm15734_vm8, %v15001_v40, %v15769_v0  ;;  %v15054_v36 = vrot.slane %v24953_v6, %v23467_v53  ;;  %v24957_v40 = vld [vmem:[#allocation82_spill] sm:$0xff]  ;;  %v24959_v28 = vld [vmem:[#allocation92_spill] sm:$0xff] }
0x1134   :  { %v15077_v2 = vrot.slane %v24954_v55, %v23465_v14  ;;  %v15091_v54 = vsel %vm14577_vm1, %v15090_v37, %v15086_v11  ;;  %v15104_v42 = vrot.slane %v24955_v57, %v23465_v14  ;;  %v15072_v15 = vrot.slane %v24957_v40, %v23467_v53  ;;  %v24962_v11 = vld [vmem:[#allocation91_spill] sm:$0xff]  ;;  %v24964_v6 = vld [vmem:[#allocation102_spill] sm:$0xff] }
0x1135   :  { %v15050_v19 = vrot.slane %v24958_v56, %v23465_v14  ;;  %v15117_v8 = vrot.slane %v24959_v28, %v23467_v53  ;;  %v15059_v0 = vrot.slane %v24960_v24, %v23465_v14  ;;  %v15113_v34 = vrot.slane %v24962_v11, %v23465_v14  ;;  %v24975_v11 = vld [vmem:[#allocation97_spill] sm:$0xff] }
0x1136   :  { %15857 = vxpose.xlu0.b32.start [1/16] (narrow) %v24138_v52, 16  ;;  %v24944_v52 = vld [vmem:[#allocation76_spill] sm:$0xff]  ;;  %v15082_v32 = vsel %vm14577_vm1, %v15081_v60, %v15077_v2  ;;  %v15109_v37 = vsel %vm14577_vm1, %v15108_v4, %v15104_v42  ;;  %v24963_v4 = vld [vmem:[#allocation94_spill] sm:$0xff]  ;;  %v15162_v55 = vrot.slane %v24964_v6, %v23467_v53 }
0x1137   :  { %v15045_v12 = vrot.slane %v24944_v52, %v23467_v53  ;;  %v15773_v52 = vsel %vm15726_vm4, %v15037_v22, %v15772_v51  ;;  %v24961_v22 = vld [vmem:[#allocation81_spill] sm:$0xff]  ;;  %v15055_v20 = vsel %vm14577_vm1, %v15054_v36, %v15050_v19  ;;  %v15126_v51 = vrot.slane %v24963_v4, %v23467_v53  ;;  %v24966_v42 = vld [vmem:[#allocation96_spill] sm:$0xff]  ;;  %v24976_v4 = vld [vmem:[#allocation99_spill] sm:$0xff] }
0x1138   :  { %v15118_v2 = vsel %vm14577_vm1, %v15117_v8, %v15113_v34  ;;  %v24972_v8 = vld [vmem:[#allocation95_spill] sm:$0xff]  ;;  %v15140_v34 = vrot.slane %v24975_v11, %v23465_v14  ;;  %v15149_v6 = vrot.slane %v24976_v4, %v23465_v14 }
0x1139   :  { %v15046_v43 = vsel %vm14577_vm1, %v15045_v12, %v15041_v13  ;;  %v24956_v12 = vld [vmem:[#allocation80_spill] sm:$0xff]  ;;  %v24454_v13 = vpop.xlane.xlu1 %14248  ;;  %v15131_v24 = vrot.slane %v24972_v8, %v23465_v14 }
0x113a   :  { %15858 = vxpose.xlu0.b32.cont [2/16] (narrow) %v24228_v16, 16  ;;  %v24952_v16 = vld [vmem:[#allocation87_spill] sm:$0xff]  ;;  %v15063_v7 = vrot.slane %v24956_v12, %v23467_v53  ;;  %v15774_v50 = vsel %vm15728_vm5, %v15046_v43, %v15773_v52  ;;  %v15135_v52 = vrot.slane %v24966_v42, %v23467_v53  ;;  %v24967_v12 = vld [vmem:[#allocation104_spill] sm:$0xff] }
0x113b   :  { %v15095_v21 = vrot.slane %v24952_v16, %v23465_v14  ;;  %v24468_v16 = vpop.xlane.xlu0 %14246  ;;  %v15171_v40 = vrot.slane %v24967_v12, %v23467_v53  ;;  %v24978_v12 = vld [vmem:[#allocation107_spill] sm:$0xff]  ;;  %v15775_v11 = vsel %vm15730_vm6, %v15055_v20, %v15774_v50 }
0x113c   :  { %v15064_v43 = vsel %vm14577_vm1, %v15063_v7, %v15059_v0  ;;  %v24970_v7 = vld [vmem:[#allocation101_spill] sm:$0xff]  ;;  %v24973_v0 = vld [vmem:[#allocation103_spill] sm:$0xff] }
0x113d   :  { %v15100_v3 = vsel %vm14577_vm1, %v15099_v48, %v15095_v21  ;;  %v15068_v48 = vrot.slane %v24961_v22, %v23465_v14  ;;  %v15167_v22 = vrot.slane %v24973_v0, %v23465_v14 }
0x113e   :  { %15859 = vxpose.xlu0.b32.cont [3/16] (narrow) %v24311_v61, 16  ;;  %v15778_v61 = vsel %vm15722_vm2, %v15091_v54, %v15082_v32  ;;  %v24965_v54 = vld [vmem:[#allocation93_spill] sm:$0xff]  ;;  %v24971_v32 = vld [vmem:[#allocation106_spill] sm:$0xff] }
0x113f   :  { %v15779_v60 = vsel %vm15724_vm3, %v15100_v3, %v15778_v61  ;;  %v15073_v36 = vsel %vm14577_vm1, %v15072_v15, %v15068_v48  ;;  %v15122_v57 = vrot.slane %v24965_v54, %v23465_v14  ;;  %v24968_v3 = vld [vmem:[#allocation98_spill] sm:$0xff]  ;;  %v15158_v15 = vrot.slane %v24970_v7, %v23465_v14  ;;  %v24974_v48 = vld [vmem:[#allocation108_spill] sm:$0xff] }
0x1140   :  { %v15780_v21 = vsel %vm15726_vm4, %v15109_v37, %v15779_v60  ;;  %v15144_v56 = vrot.slane %v24968_v3, %v23467_v53  ;;  %v15180_v37 = vrot.slane %v24971_v32, %v23467_v53  ;;  %v15189_v61 = vrot.slane %v24974_v48, %v23467_v53  ;;  %v24498_v60 = vpop.xlane.xlu1 %14252 }
0x1141   :  { %v15127_v28 = vsel %vm14577_vm1, %v15126_v51, %v15122_v57  ;;  %v15163_v54 = vsel %vm14577_vm1, %v15162_v55, %v15158_v15  ;;  %v24977_v51 = vld [vmem:[#allocation105_spill] sm:$0xff]  ;;  %v15172_v42 = vsel %vm14577_vm1, %v15171_v40, %v15167_v22  ;;  %v15185_v3 = vrot.slane %v24978_v12, %v23465_v14  ;;  %v24979_v15 = vld [vmem:[#allocation110_spill] sm:$0xff]  ;;  %v24985_v12 = vld [vmem:[#allocation116_spill] sm:$0xff] }
0x1142   :  { %15860 = vxpose.xlu0.b32.cont [4/16] (narrow) %v24328_v44, 16  ;;  %v24969_v44 = vld [vmem:[#allocation100_spill] sm:$0xff]  ;;  %v15176_v57 = vrot.slane %v24977_v51, %v23465_v14  ;;  %v15136_v7 = vsel %vm14577_vm1, %v15135_v52, %v15131_v24  ;;  %v15781_v32 = vsel %vm15728_vm5, %v15118_v2, %v15780_v21  ;;  %v15198_v0 = vrot.slane %v24979_v15, %v23467_v53  ;;  %v24980_v2 = vld [vmem:[#allocation109_spill] sm:$0xff] }
0x1143   :  { %v15153_v19 = vrot.slane %v24969_v44, %v23467_v53  ;;  %v24511_v44 = vpop.xlane.xlu0 %14250  ;;  %v15190_v22 = vsel %vm14577_vm1, %v15189_v61, %v15185_v3  ;;  %v15782_v52 = vsel %vm15730_vm6, %v15127_v28, %v15781_v32  ;;  %v24981_v61 = vld [vmem:[#allocation118_spill] sm:$0xff]  ;;  %v15225_v3 = vrot.slane %v24985_v12, %v23467_v53 }
0x1144   :  { %v15181_v55 = vsel %vm14577_vm1, %v15180_v37, %v15176_v57  ;;  %v24522_v48 = vpop.xlane.xlu1 %14256  ;;  %v15776_v37 = vsel %vm15732_vm7, %v15064_v43, %v15775_v11  ;;  %v24983_v43 = vld [vmem:[#allocation120_spill] sm:$0xff]  ;;  %v24984_v57 = vld [vmem:[#allocation111_spill] sm:$0xff]  ;;  %v24987_v32 = vld [vmem:[#allocation122_spill] sm:$0xff] }
0x1145   :  { %v15154_v8 = vsel %vm14577_vm1, %v15153_v19, %v15149_v6  ;;  %v15194_v19 = vrot.slane %v24980_v2, %v23465_v14  ;;  %v15777_v50 = vsel %vm15734_vm8, %v15073_v36, %v15776_v37  ;;  %v24982_v6 = vld [vmem:[#allocation112_spill] sm:$0xff]  ;;  %v24986_v36 = vld [vmem:[#allocation117_spill] sm:$0xff] }
0x1146   :  { %15861 = vxpose.xlu0.b32.cont [5/16] (narrow) %v24399_v5, 16  ;;  %v15145_v5 = vsel %vm14577_vm1, %v15144_v56, %v15140_v34  ;;  %v15785_v40 = vsel %vm15722_vm2, %v15163_v54, %v15154_v8  ;;  %v15783_v56 = vsel %vm15732_vm7, %v15136_v7, %v15782_v52  ;;  %v15234_v34 = vrot.slane %v24981_v61, %v23467_v53  ;;  %v24991_v11 = vld [vmem:[#allocation124_spill] sm:$0xff]  ;;  %v24993_v37 = vld [vmem:[#allocation121_spill] sm:$0xff] }
0x1147   :  { %v15786_v21 = vsel %vm15724_vm3, %v15172_v42, %v15785_v40  ;;  %v24535_v4 = vpop.xlane.xlu0 %14254  ;;  %v15784_v20 = vsel %vm15734_vm8, %v15145_v5, %v15783_v56  ;;  %v15199_v28 = vsel %vm14577_vm1, %v15198_v0, %v15194_v19  ;;  %v15243_v54 = vrot.slane %v24983_v43, %v23467_v53  ;;  %v24989_v0 = vld [vmem:[#allocation114_spill] sm:$0xff]  ;;  %v24990_v40 = vld [vmem:[#allocation119_spill] sm:$0xff] }
0x1148   :  { %v15787_v24 = vsel %vm15726_vm4, %v15181_v55, %v15786_v21  ;;  %v15203_v42 = vrot.slane %v24984_v57, %v23465_v14  ;;  %v15230_v7 = vrot.slane %v24986_v36, %v23465_v14  ;;  %v15252_v8 = vrot.slane %v24987_v32, %v23467_v53  ;;  %v24988_v55 = vld [vmem:[#allocation113_spill] sm:$0xff]  ;;  %v24992_v21 = vld [vmem:[#allocation115_spill] sm:$0xff] }
0x1149   :  { %v15788_v51 = vsel %vm15728_vm5, %v15190_v22, %v15787_v24  ;;  %v15212_v15 = vrot.slane %v24988_v55, %v23465_v14  ;;  %v15216_v5 = vrot.slane %v24989_v0, %v23467_v53  ;;  %v15239_v22 = vrot.slane %v24990_v40, %v23465_v14  ;;  %v24994_v24 = vld [vmem:[#allocation126_spill] sm:$0xff]  ;;  %v24995_v57 = vld [vmem:[#allocation123_spill] sm:$0xff]  ;;  %v24997_v55 = vld [vmem:[#allocation125_spill] sm:$0xff] }
0x114a   :  { %15862 = vxpose.xlu0.b32.cont [6/16] (narrow) %v24430_v17, 16  ;;  %v15207_v17 = vrot.slane %v24982_v6, %v23467_v53  ;;  %v15261_v52 = vrot.slane %v24991_v11, %v23467_v53  ;;  %v15221_v2 = vrot.slane %v24992_v21, %v23465_v14  ;;  %v15235_v19 = vsel %vm14577_vm1, %v15234_v34, %v15230_v7  ;;  %v24568_v6 = vpop.xlane.xlu1 %14260  ;;  %v24998_v40 = vld [vmem:[#allocation130_spill] sm:$0xff] }
0x114b   :  { %v15248_v56 = vrot.slane %v24993_v37, %v23465_v14  ;;  %v15270_v61 = vrot.slane %v24994_v24, %v23467_v53  ;;  %v15244_v43 = vsel %vm14577_vm1, %v15243_v54, %v15239_v22  ;;  %v15257_v12 = vrot.slane %v24995_v57, %v23465_v14  ;;  %v24582_v21 = vpop.xlane.xlu0 %14258  ;;  %v24999_v37 = vld [vmem:[#allocation127_spill] sm:$0xff] }
0x114c   :  { %v15208_v32 = vsel %vm14577_vm1, %v15207_v17, %v15203_v42  ;;  %v15226_v34 = vsel %vm14577_vm1, %v15225_v3, %v15221_v2  ;;  %v15266_v0 = vrot.slane %v24997_v55, %v23465_v14  ;;  %v15288_v11 = vrot.slane %v24998_v40, %v23467_v53 }
0x114d   :  { %v15253_v7 = vsel %vm14577_vm1, %v15252_v8, %v15248_v56  ;;  %v15792_v54 = vsel %vm15722_vm2, %v15235_v19, %v15226_v34  ;;  %v15262_v22 = vsel %vm14577_vm1, %v15261_v52, %v15257_v12  ;;  %v15275_v24 = vrot.slane %v24999_v37, %v23465_v14  ;;  %v25000_v8 = vld [vmem:[#allocation129_spill] sm:$0xff] }
0x114e   :  { %15863 = vxpose.xlu0.b32.cont [7/16] (narrow) %v15777_v50, 16  ;;  %v24996_v50 = vld [vmem:[#allocation128_spill] sm:$0xff]  ;;  %v15217_v17 = vsel %vm14577_vm1, %v15216_v5, %v15212_v15  ;;  %v15793_v42 = vsel %vm15724_vm3, %v15244_v43, %v15792_v54  ;;  %v15271_v3 = vsel %vm14577_vm1, %v15270_v61, %v15266_v0  ;;  %v15284_v2 = vrot.slane %v25000_v8, %v23465_v14  ;;  %v24593_v56 = vpop.xlane.xlu1 %14264 }
0x114f   :  { %v15279_v36 = vrot.slane %v24996_v50, %v23467_v53  ;;  %v15789_v57 = vsel %vm15730_vm6, %v15199_v28, %v15788_v51  ;;  %v15794_v19 = vsel %vm15726_vm4, %v15253_v7, %v15793_v42  ;;  %v15486_v43 = vrot.slane %v24079_v41, %v23467_v53 }
0x1150   :  { %v15790_v52 = vsel %vm15732_vm7, %v15208_v32, %v15789_v57  ;;  %v15289_v5 = vsel %vm14577_vm1, %v15288_v11, %v15284_v2  ;;  %v15795_v61 = vsel %vm15728_vm5, %v15262_v22, %v15794_v19  ;;  %v15522_v51 = vrot.slane %v24207_v23, %v23467_v53 }
0x1151   :  { %v15280_v12 = vsel %vm14577_vm1, %v15279_v36, %v15275_v24  ;;  %v15791_v15 = vsel %vm15734_vm8, %v15217_v17, %v15790_v52  ;;  %v15796_v28 = vsel %vm15730_vm6, %v15271_v3, %v15795_v61  ;;  %v15482_v36 = vrot.slane %v24088_v45, %v23465_v14  ;;  %v25001_v61 = vld [vmem:[#allocation131_spill] sm:$0xff] }
0x1152   :  { %15864 = vxpose.xlu0.b32.cont [8/16] (narrow) %v15784_v20, 16  ;;  %v24599_v20 = vpop.xlane.xlu0 %14262  ;;  %v15797_v50 = vsel %vm15732_vm7, %v15280_v12, %v15796_v28  ;;  %v15495_v32 = vrot.slane %v24098_v10, %v23467_v53  ;;  %v15531_v34 = vrot.slane %v24237_v29, %v23467_v53  ;;  %v15504_v41 = vrot.slane %v24135_v35, %v23467_v53  ;;  %v24625_v0 = vpop.xlane.xlu1 %14268 }
0x1153   :  { %v15798_v7 = vsel %vm15734_vm8, %v15289_v5, %v15797_v50  ;;  %v15513_v55 = vrot.slane %v24165_v33, %v23467_v53  ;;  %v15518_v23 = vrot.slane %v24222_v27, %v23465_v14  ;;  %v15540_v45 = vrot.slane %v24280_v38, %v23467_v53 }
0x1154   :  { %v15487_v10 = vsel %vm14577_vm1, %v15486_v43, %v15482_v36  ;;  %v15491_v29 = vrot.slane %v24108_v58, %v23465_v14  ;;  %v15527_v40 = vrot.slane %v24249_v9, %v23465_v14  ;;  %v15549_v35 = vrot.slane %v24305_v47, %v23467_v53 }
0x1155   :  { %v15500_v33 = vrot.slane %v24152_v46, %v23465_v14  ;;  %v15509_v27 = vrot.slane %v24179_v62, %v23465_v14  ;;  %v15523_v38 = vsel %vm14577_vm1, %v15522_v51, %v15518_v23  ;;  %v15536_v11 = vrot.slane %v24293_v26, %v23465_v14 }
0x1156   :  { %15865 = vxpose.xlu0.b32.cont [9/16] (narrow) %v15791_v15, 16  ;;  %v14267_v54 = vpop.xlane.xlu0 %14266  ;;  %v15496_v58 = vsel %vm14577_vm1, %v15495_v32, %v15491_v29  ;;  %v15532_v9 = vsel %vm14577_vm1, %v15531_v34, %v15527_v40  ;;  %v15545_v47 = vrot.slane %v24321_v39, %v23465_v14  ;;  %v14273_v37 = vpop.xlane.xlu1 %14272  ;;  %v15558_v26 = vrot.slane %v24350_v18, %v23467_v53 }
0x1157   :  { %v15514_v22 = vsel %vm14577_vm1, %v15513_v55, %v15509_v27  ;;  %v15541_v46 = vsel %vm14577_vm1, %v15540_v45, %v15536_v11  ;;  %v15505_v62 = vsel %vm14577_vm1, %v15504_v41, %v15500_v33  ;;  %v15817_v42 = vsel %vm15730_vm6, %v15487_v10, %v23843_v49 }
0x1158   :  { %v15820_v24 = vsel %vm15722_vm2, %v15523_v38, %v15514_v22  ;;  %v15550_v17 = vsel %vm14577_vm1, %v15549_v35, %v15545_v47  ;;  %v15567_v3 = vrot.slane %v24379_v63, %v23467_v53  ;;  %v15818_v2 = vsel %vm15732_vm7, %v15496_v58, %v15817_v42 }
0x1159   :  { %v15821_v39 = vsel %vm15724_vm3, %v15532_v9, %v15820_v24  ;;  %v15554_v19 = vrot.slane %v24364_v1, %v23465_v14  ;;  %v15594_v18 = vrot.slane %v24498_v60, %v23467_v53  ;;  %v15563_v52 = vrot.slane %v24394_v59, %v23465_v14 }
0x115a   :  { %15866 = vxpose.xlu0.b32.cont [10/16] (narrow) %v15798_v7, 16  ;;  %v14271_v8 = vpop.xlane.xlu0 %14270  ;;  %v15822_v57 = vsel %vm15726_vm4, %v15541_v46, %v15821_v39  ;;  %v15576_v63 = vrot.slane %v24423_v25, %v23467_v53  ;;  %v15603_v12 = vrot.slane %v24522_v48, %v23467_v53  ;;  %v15585_v1 = vrot.slane %v24454_v13, %v23467_v53  ;;  %v14277_v13 = vpop.xlane.xlu1 %14276 }
0x115b   :  { %v15823_v49 = vsel %vm15728_vm5, %v15550_v17, %v15822_v57  ;;  %v15559_v15 = vsel %vm14577_vm1, %v15558_v26, %v15554_v19  ;;  %v15590_v60 = vrot.slane %v24511_v44, %v23465_v14  ;;  %v15612_v5 = vrot.slane %v24568_v6, %v23467_v53 }
0x115c   :  { %v15568_v59 = vsel %vm14577_vm1, %v15567_v3, %v15563_v52  ;;  %v15572_v25 = vrot.slane %v24439_v30, %v23465_v14  ;;  %v15599_v48 = vrot.slane %v24535_v4, %v23465_v14  ;;  %v15621_v43 = vrot.slane %v24593_v56, %v23467_v53 }
0x115d   :  { %v15581_v44 = vrot.slane %v24468_v16, %v23465_v14  ;;  %v15595_v28 = vsel %vm14577_vm1, %v15594_v18, %v15590_v60  ;;  %v15608_v6 = vrot.slane %v24582_v21, %v23465_v14  ;;  %v15630_v51 = vrot.slane %v24625_v0, %v23467_v53 }
0x115e   :  { %15867 = vxpose.xlu0.b32.cont [11/16] (narrow) %v23590_v31, 16  ;;  %v15819_v31 = vsel %vm15734_vm8, %v15505_v62, %v15818_v2  ;;  %v15604_v30 = vsel %vm14577_vm1, %v15603_v12, %v15599_v48  ;;  %v15617_v4 = vrot.slane %v24599_v20, %v23465_v14  ;;  %v15639_v50 = vrot.slane %v14273_v37, %v23467_v53  ;;  %v14275_v56 = vpop.xlane.xlu0 %14274  ;;  %v14281_v9 = vpop.xlane.xlu1 %14280 }
0x115f   :  { %v15577_v36 = vsel %vm14577_vm1, %v15576_v63, %v15572_v25  ;;  %v15586_v16 = vsel %vm14577_vm1, %v15585_v1, %v15581_v44  ;;  %v15613_v32 = vsel %vm14577_vm1, %v15612_v5, %v15608_v6  ;;  %v15626_v34 = vrot.slane %v14267_v54, %v23465_v14 }
0x1160   :  { %v15648_v21 = vrot.slane %v14277_v13, %v23467_v53  ;;  %v15827_v7 = vsel %vm15722_vm2, %v15595_v28, %v15586_v16  ;;  %v15622_v41 = vsel %vm14577_vm1, %v15621_v43, %v15617_v4  ;;  %v15635_v20 = vrot.slane %v14271_v8, %v23465_v14 }
0x1161   :  { %v15824_v55 = vsel %vm15730_vm6, %v15559_v15, %v15823_v49  ;;  %v15828_v23 = vsel %vm15724_vm3, %v15604_v30, %v15827_v7  ;;  %v15631_v45 = vsel %vm14577_vm1, %v15630_v51, %v15626_v34  ;;  %v15644_v0 = vrot.slane %v14275_v56, %v23465_v14 }
0x1162   :  { %15868 = vxpose.xlu0.b32.cont [12/16] (narrow) %v25001_v61, 16  ;;  %v15825_v10 = vsel %vm15732_vm7, %v15568_v59, %v15824_v55  ;;  %v15829_v29 = vsel %vm15726_vm4, %v15613_v32, %v15828_v23  ;;  %v15640_v40 = vsel %vm14577_vm1, %v15639_v50, %v15635_v20  ;;  %v14279_v58 = vpop.xlane.xlu0 %14278  ;;  %v14285_v22 = vpop.xlane.xlu1 %14284  ;;  %v15657_v57 = vrot.slane %v14281_v9, %v23467_v53 }
0x1163   :  { %v15826_v35 = vsel %vm15734_vm8, %v15577_v36, %v15825_v10  ;;  %v15830_v33 = vsel %vm15728_vm5, %v15622_v41, %v15829_v29  ;;  %v15649_v27 = vsel %vm14577_vm1, %v15648_v21, %v15644_v0  ;;  %v15666_v39 = vrot.slane %v14285_v22, %v23467_v53  ;;  %v16980_v41 = vld [vmem:[#allocation8] ss:$0 sm:$0xff]  ;;  %v16981_v0 = vld [vmem:[#allocation10] ss:$0 sm:$0xff] }
0x1164   :  { %v15831_v38 = vsel %vm15730_vm6, %v15631_v45, %v15830_v33  ;;  %v15653_v52 = vrot.slane %v14279_v58, %v23465_v14 }
0x1165   :  { %v15832_v11 = vsel %vm15732_vm7, %v15640_v40, %v15831_v38  ;;  %v16982_v40 = vld [vmem:[#allocation2] ss:$0 sm:$0xff] }
0x1166   :  { %15869 = vxpose.xlu0.b32.cont [13/16] (narrow) %v15819_v31, 16  ;;  %v15833_v54 = vsel %vm15734_vm8, %v15649_v27, %v15832_v11  ;;  %v14283_v47 = vpop.xlane.xlu0 %14282  ;;  %v14289_v37 = vpop.xlane.xlu1 %14288  ;;  %v15658_v61 = vsel %vm14577_vm1, %v15657_v57, %v15653_v52 }
0x1167   :  { %v15675_v3 = vrot.slane %v14289_v37, %v23467_v53  ;;  %v15662_v19 = vrot.slane %v14283_v47, %v23465_v14 }
0x1169   :  { %v15667_v63 = vsel %vm14577_vm1, %v15666_v39, %v15662_v19 }
0x116a   :  { %15870 = vxpose.xlu0.b32.cont [14/16] (narrow) %v15826_v35, 16  ;;  %v14287_v46 = vpop.xlane.xlu0 %14286  ;;  %v14293_v24 = vpop.xlane.xlu1 %14292  ;;  %v15834_v43 = vsel %vm15722_vm2, %v15667_v63, %v15658_v61 }
0x116b   :  { %v15684_v18 = vrot.slane %v14293_v24, %v23467_v53  ;;  %v15671_v31 = vrot.slane %v14287_v46, %v23465_v14 }
0x116d   :  { %v15676_v1 = vsel %vm14577_vm1, %v15675_v3, %v15671_v31 }
0x116e   :  { %15871 = vxpose.xlu0.b32.cont [15/16] (narrow) %v15833_v54, 16  ;;  %v14291_v62 = vpop.xlane.xlu0 %14290  ;;  %v14297_v26 = vpop.xlane.xlu1 %14296  ;;  %v15835_v6 = vsel %vm15724_vm3, %v15676_v1, %v15834_v43 }
0x116f   :  { %v15693_v49 = vrot.slane %v14297_v26, %v23467_v53  ;;  %v15680_v12 = vrot.slane %v14291_v62, %v23465_v14 }
0x1171   :  { %v15685_v59 = vsel %vm14577_vm1, %v15684_v18, %v15680_v12 }
0x1172   :  { %v14295_v17 = vpop.xlane.xlu0 %14294  ;;  %v14301_v8 = vpop.xlane.xlu1 %14300  ;;  %v15836_v30 = vsel %vm15726_vm4, %v15685_v59, %v15835_v6 }
0x1173   :  { %v15702_v15 = vrot.slane %v14301_v8, %v23467_v53  ;;  %v15689_v60 = vrot.slane %v14295_v17, %v23465_v14 }
0x1175   :  { %v15694_v13 = vsel %vm14577_vm1, %v15693_v49, %v15689_v60 }
0x1176   :  { %v14299_v42 = vpop.xlane.xlu0 %14298  ;;  %v15837_v56 = vsel %vm15728_vm5, %v15694_v13, %v15836_v30 }
0x1177   :  { %v15698_v25 = vrot.slane %v14299_v42, %v23465_v14 }
0x1179   :  { %v15703_v51 = vsel %vm14577_vm1, %v15702_v15, %v15698_v25 }
0x117a   :  { %v15838_v32 = vsel %vm15730_vm6, %v15703_v51, %v15837_v56 }
0x118e   :  { %v14303_v2 = vpop.xlane.xlu0 %14302 }
0x118f   :  { %v15707_v44 = vrot.slane %v14303_v2, %v23465_v14 }
0x1192   :  { %v14305_v5 = vpop.xlane.xlu1 %14304  ;;  %v14307_v28 = vpop.xlane.xlu0 %14306 }
0x1193   :  { %v15711_v48 = vrot.slane %v14305_v5, %v23467_v53  ;;  %v15716_v36 = vrot.slane %v14307_v28, %v23465_v14 }
0x1195   :  { %v15712_v4 = vsel %vm14577_vm1, %v15711_v48, %v15707_v44 }
0x1196   :  { %v14309_v50 = vpop.xlane.xlu1 %14308  ;;  %v15839_v21 = vsel %vm15732_vm7, %v15712_v4, %v15838_v32 }
0x1197   :  { %v15720_v16 = vrot.slane %v14309_v50, %v23467_v53 }
0x1199   :  { %v15721_v34 = vsel %vm14577_vm1, %v15720_v16, %v15716_v36 }
0x119a   :  { %v15840_v7 = vsel %vm15734_vm8, %v15721_v34, %v15839_v21 }
0x119b   :  { %15872 = vxpose.xlu0.b32.end [16/16] (narrow) %v15840_v7, 16 }
0x11db   :  { %v15873_v20 = vpop.trf.xlu0 }
0x11dc   :  { %v15896_v55 = vadd.f32 %v16980_v41, %v15873_v20 }
0x11de   :  { %21733 = vtanh.f32 %v15896_v55 }
0x11df   :  { %v15874_v23 = vpop.trf.xlu0 }
0x11e0   :  { %v15897_v45 = vadd.f32 %v16980_v41, %v15874_v23 }
0x11e2   :  { %21735 = vtanh.f32 %v15897_v45 }
0x11eb   :  { %v21734_v14 = vpop.eup %21733 }
0x11ec   :  { %v15911_v10 = vmul.f32 %v21734_v14, %v16981_v0 }
0x11ee   :  { %15917 = vadd.xlane.f32.xlu1 %v15911_v10 }
0x11ef   :  { %v21736_v53 = vpop.eup %21735 }
0x11f0   :  { %v15912_v29 = vmul.f32 %v21736_v53, %v16981_v0 }
0x11f2   :  { %15919 = vadd.xlane.f32.xlu1 %v15912_v29 }
0x1277   :  { %v15918_v35 = vpop.xlane.xlu1 %15917 }
0x1278   :  { %v15932_v33 = vadd.f32 %v16982_v40, %v15918_v35 }
0x127a   :  { %15935 = vst.msk [vmem:[%s24762_s6] sm:$0xff] %vm15934_vm9, %v15932_v33 }
0x127b   :  { %v15920_v27 = vpop.xlane.xlu1 %15919 }
0x127c   :  { %v15933_v38 = vadd.f32 %v16982_v40, %v15920_v27 }
0x127e   :  { %15936 = vst.msk [vmem:[%s24762_s6 + $0x8] sm:$0xff] %vm15934_vm9, %v15933_v38 }
0x127f   :  { %15952 = vsyncpa [#allocation4], 1 }
0x1280   :  { %15953 = vsyncpa [#allocation6], 1 }
0x1281   :  { %15954 = vsyncpa [#allocation9], 1 }

</bundles_post_ra>
